<compile_context>
chip_gen: v7x
topology: tpu7x:2x2x1
jax: 0.10.0
libtpu: 0.0.40
codegen_flags: <defaults>
</compile_context>

<pallas_src>
import math

import jax
import jax.numpy as jnp
from jax.experimental import pallas as pl
from jax.experimental.pallas import tpu as pltpu

KSIZE = 7
PAD = 3
EPS = 1e-6


def _convnext_kernel(xpad_ref, dww_ref, dwb_ref, lng_ref, lnb_ref,
                     w1_ref, b1_ref, w2_ref, b2_ref, out_ref):
    # xpad_ref: (1, H+6, W+6, C) zero-padded NHWC feature map of the current batch element
    #           (resident across the row-tile axis; also provides the residual interior)
    # dww_ref : (7, 7, C) depthwise weights     dwb_ref: (1, C) depthwise bias
    # lng/lnb : (1, C) LayerNorm gamma/beta
    # w1_ref  : (C, 4C), b1_ref: (1, 4C)        w2_ref: (4C, C), b2_ref: (1, C)
    # out_ref : (1, TH*W, C) output row tile (flattened spatial rows, C on lanes)
    i = pl.program_id(1)

    _, Hp, Wp, C = xpad_ref.shape
    W = Wp - 2 * PAD
    M = out_ref.shape[1]          # = TH * W
    TH = M // W

    # Row window (with 3-row halo each side) for this tile.  H-axis slicing is a free
    # base-offset change; the single padded copy already carries the halo rows.
    xw = xpad_ref[0, pl.ds(i * TH, TH + 2 * PAD), :, :].astype(jnp.float32)
    dww = dww_ref[...].astype(jnp.float32)

    # ---- depthwise 7x7 conv (VPU) ----
    # Hoist the W-axis (sublane) shift out of the inner loop: 7 sublane-shifted slabs,
    # then 49 cheap H-offset multiply-accumulates.
    acc = jnp.zeros((TH, W, C), jnp.float32)
    residual = None
    for kj in range(KSIZE):
        slab = xw[:, kj:kj + W, :]                 # (TH+6, W, C) — one sublane shift per kj
        if kj == PAD:
            residual = slab[PAD:PAD + TH, :, :]    # == original x tile (reuse the slab)
        for ki in range(KSIZE):
            acc = acc + slab[ki:ki + TH, :, :] * dww[ki, kj, :]
    acc = acc + dwb_ref[0, :].astype(jnp.float32)

    # ---- LayerNorm over the channel axis ----
    mean = jnp.mean(acc, axis=-1, keepdims=True)
    var = jnp.mean((acc - mean) * (acc - mean), axis=-1, keepdims=True)
    xn = (acc - mean) * jax.lax.rsqrt(var + EPS)
    xn = xn * lng_ref[0, :].astype(jnp.float32) + lnb_ref[0, :].astype(jnp.float32)

    # ---- pointwise convs as explicit 2D matmuls (MXU), M = TH*W rows ----
    xn2 = xn.reshape(M, C)                         # W % 8 == 0 -> layout-trivial fold
    h = jnp.dot(xn2, w1_ref[...].astype(jnp.float32),
                preferred_element_type=jnp.float32)
    h = h + b1_ref[0, :].astype(jnp.float32)
    # exact erf GELU (matches torch.nn.GELU default)
    h = 0.5 * h * (1.0 + jax.lax.erf(h * (1.0 / math.sqrt(2.0))))
    y = jnp.dot(h, w2_ref[...].astype(jnp.float32),
                preferred_element_type=jnp.float32)
    y = y + b2_ref[0, :].astype(jnp.float32)

    # ---- residual (read from the resident padded block; no second HBM input) ----
    y = y + residual.reshape(M, C)

    out_ref[0, :, :] = y.astype(out_ref.dtype)


def _pick_tile_h(H, W, C, budget_bytes=8 << 20):
    """Largest row tile TH (divisor of H, sublane-aligned output) whose f32 intermediates
    fit a conservative VMEM budget — sized so it also fits v7x (64 MiB physical,
    32 MiB default scoped) without raising vmem_limit_bytes."""
    cands = [th for th in range(1, H + 1)
             if H % th == 0 and ((th * W) % 8 == 0 or th == H)]
    best = cands[0]
    for th in cands:
        per_tile = th * W * (4 * C) * 4           # GELU intermediate (dominant consumer)
        per_tile += 4 * th * W * C * 4            # acc / xn / residual / out copies
        if per_tile <= budget_bytes:
            best = th
    return best


def convnext_block(x_nchw, params, tile_h=None):
    """x_nchw: (B, C, H, W) — PyTorch-style input. Returns (B, C, H, W)."""
    B, C, H, W = x_nchw.shape
    dww, dwb, lng, lnb, w1, b1, w2, b2 = params
    hidden = w1.shape[1]

    # TODO(synk): if this block is used in a stack, keep activations NHWC between blocks
    # and drop the per-call NCHW<->NHWC transposes (layout plumbing outside the kernel).
    x = jnp.transpose(x_nchw, (0, 2, 3, 1))                       # NHWC (C on lanes)
    xpad = jnp.pad(x, ((0, 0), (PAD, PAD), (PAD, PAD), (0, 0)))   # single padded copy
    Hp, Wp = H + 2 * PAD, W + 2 * PAD

    TH = tile_h if tile_h is not None else _pick_tile_h(H, W, C)
    assert H % TH == 0, "row tile must divide H"
    n_h = H // TH

    grid_spec = pltpu.PrefetchScalarGridSpec(
        num_scalar_prefetch=0,
        grid=(B, n_h),
        in_specs=[
            # Full padded map of the current batch element stays VMEM-resident across the
            # row-tile axis (block index ignores i), re-DMA'd only when b changes.
            pl.BlockSpec((1, Hp, Wp, C), lambda b, i: (b, 0, 0, 0)),
            # Weights / biases: resident for the whole grid.
            pl.BlockSpec((KSIZE, KSIZE, C), lambda b, i: (0, 0, 0)),
            pl.BlockSpec((1, C), lambda b, i: (0, 0)),
            pl.BlockSpec((1, C), lambda b, i: (0, 0)),
            pl.BlockSpec((1, C), lambda b, i: (0, 0)),
            pl.BlockSpec((C, hidden), lambda b, i: (0, 0)),
            pl.BlockSpec((1, hidden), lambda b, i: (0, 0)),
            pl.BlockSpec((hidden, C), lambda b, i: (0, 0)),
            pl.BlockSpec((1, C), lambda b, i: (0, 0)),
        ],
        out_specs=pl.BlockSpec((1, TH * W, C), lambda b, i: (b, i, 0)),
    )

    out_flat = pl.pallas_call(
        _convnext_kernel,
        out_shape=jax.ShapeDtypeStruct((B, H * W, C), x_nchw.dtype),
        grid_spec=grid_spec,
        compiler_params=pltpu.CompilerParams(
            dimension_semantics=("parallel", "parallel")),
    )(xpad, dww, dwb, lng, lnb, w1, b1, w2, b2)

    out = out_flat.reshape(B, H, W, C)            # metadata-only reshape
    return jnp.transpose(out, (0, 3, 1, 2))       # back to NCHW


def init_params(key, dim):
    """Deterministic synthetic parameters with shapes implied by the module __init__."""
    ks = jax.random.split(key, 8)
    hidden = 4 * dim
    dww = jax.random.normal(ks[0], (KSIZE, KSIZE, dim), jnp.float32) * 0.05
    dwb = jax.random.normal(ks[1], (1, dim), jnp.float32) * 0.01
    lng = jnp.ones((1, dim), jnp.float32)
    lnb = jnp.zeros((1, dim), jnp.float32)
    w1 = jax.random.normal(ks[2], (dim, hidden), jnp.float32) * (1.0 / math.sqrt(dim))
    b1 = jax.random.normal(ks[3], (1, hidden), jnp.float32) * 0.01
    w2 = jax.random.normal(ks[4], (hidden, dim), jnp.float32) * (1.0 / math.sqrt(hidden))
    b2 = jax.random.normal(ks[5], (1, dim), jnp.float32) * 0.01
    return (dww, dwb, lng, lnb, w1, b1, w2, b2)


def _reference(x_nchw, params):
    """Pure-JAX reference of the same forward pass (NHWC internally)."""
    dww, dwb, lng, lnb, w1, b1, w2, b2 = params
    x = jnp.transpose(x_nchw, (0, 2, 3, 1))
    B, H, W, C = x.shape
    xpad = jnp.pad(x, ((0, 0), (PAD, PAD), (PAD, PAD), (0, 0)))
    acc = jnp.zeros_like(x)
    for ki in range(KSIZE):
        for kj in range(KSIZE):
            acc = acc + xpad[:, ki:ki + H, kj:kj + W, :] * dww[ki, kj, :]
    acc = acc + dwb[0]
    mean = jnp.mean(acc, -1, keepdims=True)
    var = jnp.mean((acc - mean) ** 2, -1, keepdims=True)
    xn = (acc - mean) / jnp.sqrt(var + EPS) * lng[0] + lnb[0]
    h = jnp.einsum('bhwc,cf->bhwf', xn, w1) + b1[0]
    h = 0.5 * h * (1.0 + jax.lax.erf(h / math.sqrt(2.0)))
    y = jnp.einsum('bhwf,fc->bhwc', h, w2) + b2[0]
    return jnp.transpose(y + x, (0, 3, 1, 2))


if __name__ == "__main__":
    key = jax.random.PRNGKey(0)
    k_x, k_p = jax.random.split(key)

    B, C, H, W = 2, 8, 16, 16
    x = jax.random.normal(k_x, (B, C, H, W), jnp.float32)
    params = init_params(k_p, C)

    # tile_h=8 -> grid (B, 2): exercises the halo / multi-row-tile path.
    out = convnext_block(x, params, tile_h=8)
    out = jax.block_until_ready(out)

    ref = _reference(x, params)
    assert out.shape == (B, C, H, W)
    assert jnp.allclose(out, ref, atol=1e-4, rtol=1e-4), "mismatch vs reference"

    print("KERNEL_OK")
</pallas_src>

<mosaic_0001>
module attributes {stable_mosaic.version = 11 : i64} {
  func.func @_convnext_kernel(%arg0: i32, %arg1: i32, %arg2: memref<1x22x22x8xf32, #tpu.memory_space<vmem>>, %arg3: memref<7x7x8xf32, #tpu.memory_space<vmem>>, %arg4: memref<1x8xf32, #tpu.memory_space<vmem>>, %arg5: memref<1x8xf32, #tpu.memory_space<vmem>>, %arg6: memref<1x8xf32, #tpu.memory_space<vmem>>, %arg7: memref<8x32xf32, #tpu.memory_space<vmem>>, %arg8: memref<1x32xf32, #tpu.memory_space<vmem>>, %arg9: memref<32x8xf32, #tpu.memory_space<vmem>>, %arg10: memref<1x8xf32, #tpu.memory_space<vmem>>, %arg11: memref<1x128x8xf32, #tpu.memory_space<vmem>>) attributes {dimension_semantics = [#tpu.dimension_semantics<parallel>, #tpu.dimension_semantics<parallel>], iteration_bounds = array<i64: 2, 2>, scalar_prefetch = 0 : i64, scratch_operands = 0 : i64, tpu.core_type = #tpu.core_type<tc>, window_params = [{transform_indices = @transform_0, window_bounds = array<i64: 1, 22, 22, 8>}, {pipeline_mode = #tpu.pipeline_mode<synchronous>, transform_indices = @transform_1, window_bounds = array<i64: 7, 7, 8>}, {pipeline_mode = #tpu.pipeline_mode<synchronous>, transform_indices = @transform_2, window_bounds = array<i64: 1, 8>}, {pipeline_mode = #tpu.pipeline_mode<synchronous>, transform_indices = @transform_3, window_bounds = array<i64: 1, 8>}, {pipeline_mode = #tpu.pipeline_mode<synchronous>, transform_indices = @transform_4, window_bounds = array<i64: 1, 8>}, {pipeline_mode = #tpu.pipeline_mode<synchronous>, transform_indices = @transform_5, window_bounds = array<i64: 8, 32>}, {pipeline_mode = #tpu.pipeline_mode<synchronous>, transform_indices = @transform_6, window_bounds = array<i64: 1, 32>}, {pipeline_mode = #tpu.pipeline_mode<synchronous>, transform_indices = @transform_7, window_bounds = array<i64: 32, 8>}, {pipeline_mode = #tpu.pipeline_mode<synchronous>, transform_indices = @transform_8, window_bounds = array<i64: 1, 8>}, {transform_indices = @transform_9, window_bounds = array<i64: 1, 128, 8>}]} {
    %c8_i32 = arith.constant 8 : i32
    %0 = arith.muli %arg1, %c8_i32 : i32
    %c0 = arith.constant 0 : index
    %1 = arith.index_cast %0 : i32 to index
    %c0_0 = arith.constant 0 : index
    %c0_1 = arith.constant 0 : index
    %2 = vector.load %arg2[%c0, %1, %c0_0, %c0_1] : memref<1x22x22x8xf32, #tpu.memory_space<vmem>>, vector<1x14x22x8xf32>
    %3 = vector.shape_cast %2 : vector<1x14x22x8xf32> to vector<14x22x8xf32>
    %c0_2 = arith.constant 0 : index
    %c0_3 = arith.constant 0 : index
    %c0_4 = arith.constant 0 : index
    %4 = vector.load %arg3[%c0_2, %c0_3, %c0_4] : memref<7x7x8xf32, #tpu.memory_space<vmem>>, vector<7x7x8xf32>
    %cst = arith.constant 0.000000e+00 : f32
    %5 = vector.broadcast %cst : f32 to vector<8x16x8xf32>
    %6 = vector.extract_strided_slice %3 {offsets = [0, 0, 0], sizes = [14, 16, 8], strides = [1, 1, 1]} : vector<14x22x8xf32> to vector<14x16x8xf32>
    %7 = vector.extract_strided_slice %6 {offsets = [0, 0, 0], sizes = [8, 16, 8], strides = [1, 1, 1]} : vector<14x16x8xf32> to vector<8x16x8xf32>
    %8 = vector.extract_strided_slice %4 {offsets = [0, 0, 0], sizes = [1, 1, 8], strides = [1, 1, 1]} : vector<7x7x8xf32> to vector<1x1x8xf32>
    %9 = vector.shape_cast %8 : vector<1x1x8xf32> to vector<8xf32>
    %10 = vector.shape_cast %9 : vector<8xf32> to vector<1x1x8xf32>
    %11 = vector.broadcast %10 : vector<1x1x8xf32> to vector<8x16x8xf32>
    %12 = arith.mulf %7, %11 : vector<8x16x8xf32>
    %13 = arith.addf %5, %12 : vector<8x16x8xf32>
    %14 = vector.extract_strided_slice %6 {offsets = [1, 0, 0], sizes = [8, 16, 8], strides = [1, 1, 1]} : vector<14x16x8xf32> to vector<8x16x8xf32>
    %15 = vector.extract_strided_slice %4 {offsets = [1, 0, 0], sizes = [1, 1, 8], strides = [1, 1, 1]} : vector<7x7x8xf32> to vector<1x1x8xf32>
    %16 = vector.shape_cast %15 : vector<1x1x8xf32> to vector<8xf32>
    %17 = vector.shape_cast %16 : vector<8xf32> to vector<1x1x8xf32>
    %18 = vector.broadcast %17 : vector<1x1x8xf32> to vector<8x16x8xf32>
    %19 = arith.mulf %14, %18 : vector<8x16x8xf32>
    %20 = arith.addf %13, %19 : vector<8x16x8xf32>
    %21 = vector.extract_strided_slice %6 {offsets = [2, 0, 0], sizes = [8, 16, 8], strides = [1, 1, 1]} : vector<14x16x8xf32> to vector<8x16x8xf32>
    %22 = vector.extract_strided_slice %4 {offsets = [2, 0, 0], sizes = [1, 1, 8], strides = [1, 1, 1]} : vector<7x7x8xf32> to vector<1x1x8xf32>
    %23 = vector.shape_cast %22 : vector<1x1x8xf32> to vector<8xf32>
    %24 = vector.shape_cast %23 : vector<8xf32> to vector<1x1x8xf32>
    %25 = vector.broadcast %24 : vector<1x1x8xf32> to vector<8x16x8xf32>
    %26 = arith.mulf %21, %25 : vector<8x16x8xf32>
    %27 = arith.addf %20, %26 : vector<8x16x8xf32>
    %28 = vector.extract_strided_slice %6 {offsets = [3, 0, 0], sizes = [8, 16, 8], strides = [1, 1, 1]} : vector<14x16x8xf32> to vector<8x16x8xf32>
    %29 = vector.extract_strided_slice %4 {offsets = [3, 0, 0], sizes = [1, 1, 8], strides = [1, 1, 1]} : vector<7x7x8xf32> to vector<1x1x8xf32>
    %30 = vector.shape_cast %29 : vector<1x1x8xf32> to vector<8xf32>
    %31 = vector.shape_cast %30 : vector<8xf32> to vector<1x1x8xf32>
    %32 = vector.broadcast %31 : vector<1x1x8xf32> to vector<8x16x8xf32>
    %33 = arith.mulf %28, %32 : vector<8x16x8xf32>
    %34 = arith.addf %27, %33 : vector<8x16x8xf32>
    %35 = vector.extract_strided_slice %6 {offsets = [4, 0, 0], sizes = [8, 16, 8], strides = [1, 1, 1]} : vector<14x16x8xf32> to vector<8x16x8xf32>
    %36 = vector.extract_strided_slice %4 {offsets = [4, 0, 0], sizes = [1, 1, 8], strides = [1, 1, 1]} : vector<7x7x8xf32> to vector<1x1x8xf32>
    %37 = vector.shape_cast %36 : vector<1x1x8xf32> to vector<8xf32>
    %38 = vector.shape_cast %37 : vector<8xf32> to vector<1x1x8xf32>
    %39 = vector.broadcast %38 : vector<1x1x8xf32> to vector<8x16x8xf32>
    %40 = arith.mulf %35, %39 : vector<8x16x8xf32>
    %41 = arith.addf %34, %40 : vector<8x16x8xf32>
    %42 = vector.extract_strided_slice %6 {offsets = [5, 0, 0], sizes = [8, 16, 8], strides = [1, 1, 1]} : vector<14x16x8xf32> to vector<8x16x8xf32>
    %43 = vector.extract_strided_slice %4 {offsets = [5, 0, 0], sizes = [1, 1, 8], strides = [1, 1, 1]} : vector<7x7x8xf32> to vector<1x1x8xf32>
    %44 = vector.shape_cast %43 : vector<1x1x8xf32> to vector<8xf32>
    %45 = vector.shape_cast %44 : vector<8xf32> to vector<1x1x8xf32>
    %46 = vector.broadcast %45 : vector<1x1x8xf32> to vector<8x16x8xf32>
    %47 = arith.mulf %42, %46 : vector<8x16x8xf32>
    %48 = arith.addf %41, %47 : vector<8x16x8xf32>
    %49 = vector.extract_strided_slice %6 {offsets = [6, 0, 0], sizes = [8, 16, 8], strides = [1, 1, 1]} : vector<14x16x8xf32> to vector<8x16x8xf32>
    %50 = vector.extract_strided_slice %4 {offsets = [6, 0, 0], sizes = [1, 1, 8], strides = [1, 1, 1]} : vector<7x7x8xf32> to vector<1x1x8xf32>
    %51 = vector.shape_cast %50 : vector<1x1x8xf32> to vector<8xf32>
    %52 = vector.shape_cast %51 : vector<8xf32> to vector<1x1x8xf32>
    %53 = vector.broadcast %52 : vector<1x1x8xf32> to vector<8x16x8xf32>
    %54 = arith.mulf %49, %53 : vector<8x16x8xf32>
    %55 = arith.addf %48, %54 : vector<8x16x8xf32>
    %56 = vector.extract_strided_slice %3 {offsets = [0, 1, 0], sizes = [14, 16, 8], strides = [1, 1, 1]} : vector<14x22x8xf32> to vector<14x16x8xf32>
    %57 = vector.extract_strided_slice %56 {offsets = [0, 0, 0], sizes = [8, 16, 8], strides = [1, 1, 1]} : vector<14x16x8xf32> to vector<8x16x8xf32>
    %58 = vector.extract_strided_slice %4 {offsets = [0, 1, 0], sizes = [1, 1, 8], strides = [1, 1, 1]} : vector<7x7x8xf32> to vector<1x1x8xf32>
    %59 = vector.shape_cast %58 : vector<1x1x8xf32> to vector<8xf32>
    %60 = vector.shape_cast %59 : vector<8xf32> to vector<1x1x8xf32>
    %61 = vector.broadcast %60 : vector<1x1x8xf32> to vector<8x16x8xf32>
    %62 = arith.mulf %57, %61 : vector<8x16x8xf32>
    %63 = arith.addf %55, %62 : vector<8x16x8xf32>
    %64 = vector.extract_strided_slice %56 {offsets = [1, 0, 0], sizes = [8, 16, 8], strides = [1, 1, 1]} : vector<14x16x8xf32> to vector<8x16x8xf32>
    %65 = vector.extract_strided_slice %4 {offsets = [1, 1, 0], sizes = [1, 1, 8], strides = [1, 1, 1]} : vector<7x7x8xf32> to vector<1x1x8xf32>
    %66 = vector.shape_cast %65 : vector<1x1x8xf32> to vector<8xf32>
    %67 = vector.shape_cast %66 : vector<8xf32> to vector<1x1x8xf32>
    %68 = vector.broadcast %67 : vector<1x1x8xf32> to vector<8x16x8xf32>
    %69 = arith.mulf %64, %68 : vector<8x16x8xf32>
    %70 = arith.addf %63, %69 : vector<8x16x8xf32>
    %71 = vector.extract_strided_slice %56 {offsets = [2, 0, 0], sizes = [8, 16, 8], strides = [1, 1, 1]} : vector<14x16x8xf32> to vector<8x16x8xf32>
    %72 = vector.extract_strided_slice %4 {offsets = [2, 1, 0], sizes = [1, 1, 8], strides = [1, 1, 1]} : vector<7x7x8xf32> to vector<1x1x8xf32>
    %73 = vector.shape_cast %72 : vector<1x1x8xf32> to vector<8xf32>
    %74 = vector.shape_cast %73 : vector<8xf32> to vector<1x1x8xf32>
    %75 = vector.broadcast %74 : vector<1x1x8xf32> to vector<8x16x8xf32>
    %76 = arith.mulf %71, %75 : vector<8x16x8xf32>
    %77 = arith.addf %70, %76 : vector<8x16x8xf32>
    %78 = vector.extract_strided_slice %56 {offsets = [3, 0, 0], sizes = [8, 16, 8], strides = [1, 1, 1]} : vector<14x16x8xf32> to vector<8x16x8xf32>
    %79 = vector.extract_strided_slice %4 {offsets = [3, 1, 0], sizes = [1, 1, 8], strides = [1, 1, 1]} : vector<7x7x8xf32> to vector<1x1x8xf32>
    %80 = vector.shape_cast %79 : vector<1x1x8xf32> to vector<8xf32>
    %81 = vector.shape_cast %80 : vector<8xf32> to vector<1x1x8xf32>
    %82 = vector.broadcast %81 : vector<1x1x8xf32> to vector<8x16x8xf32>
    %83 = arith.mulf %78, %82 : vector<8x16x8xf32>
    %84 = arith.addf %77, %83 : vector<8x16x8xf32>
    %85 = vector.extract_strided_slice %56 {offsets = [4, 0, 0], sizes = [8, 16, 8], strides = [1, 1, 1]} : vector<14x16x8xf32> to vector<8x16x8xf32>
    %86 = vector.extract_strided_slice %4 {offsets = [4, 1, 0], sizes = [1, 1, 8], strides = [1, 1, 1]} : vector<7x7x8xf32> to vector<1x1x8xf32>
    %87 = vector.shape_cast %86 : vector<1x1x8xf32> to vector<8xf32>
    %88 = vector.shape_cast %87 : vector<8xf32> to vector<1x1x8xf32>
    %89 = vector.broadcast %88 : vector<1x1x8xf32> to vector<8x16x8xf32>
    %90 = arith.mulf %85, %89 : vector<8x16x8xf32>
    %91 = arith.addf %84, %90 : vector<8x16x8xf32>
    %92 = vector.extract_strided_slice %56 {offsets = [5, 0, 0], sizes = [8, 16, 8], strides = [1, 1, 1]} : vector<14x16x8xf32> to vector<8x16x8xf32>
    %93 = vector.extract_strided_slice %4 {offsets = [5, 1, 0], sizes = [1, 1, 8], strides = [1, 1, 1]} : vector<7x7x8xf32> to vector<1x1x8xf32>
    %94 = vector.shape_cast %93 : vector<1x1x8xf32> to vector<8xf32>
    %95 = vector.shape_cast %94 : vector<8xf32> to vector<1x1x8xf32>
    %96 = vector.broadcast %95 : vector<1x1x8xf32> to vector<8x16x8xf32>
    %97 = arith.mulf %92, %96 : vector<8x16x8xf32>
    %98 = arith.addf %91, %97 : vector<8x16x8xf32>
    %99 = vector.extract_strided_slice %56 {offsets = [6, 0, 0], sizes = [8, 16, 8], strides = [1, 1, 1]} : vector<14x16x8xf32> to vector<8x16x8xf32>
    %100 = vector.extract_strided_slice %4 {offsets = [6, 1, 0], sizes = [1, 1, 8], strides = [1, 1, 1]} : vector<7x7x8xf32> to vector<1x1x8xf32>
    %101 = vector.shape_cast %100 : vector<1x1x8xf32> to vector<8xf32>
    %102 = vector.shape_cast %101 : vector<8xf32> to vector<1x1x8xf32>
    %103 = vector.broadcast %102 : vector<1x1x8xf32> to vector<8x16x8xf32>
    %104 = arith.mulf %99, %103 : vector<8x16x8xf32>
    %105 = arith.addf %98, %104 : vector<8x16x8xf32>
    %106 = vector.extract_strided_slice %3 {offsets = [0, 2, 0], sizes = [14, 16, 8], strides = [1, 1, 1]} : vector<14x22x8xf32> to vector<14x16x8xf32>
    %107 = vector.extract_strided_slice %106 {offsets = [0, 0, 0], sizes = [8, 16, 8], strides = [1, 1, 1]} : vector<14x16x8xf32> to vector<8x16x8xf32>
    %108 = vector.extract_strided_slice %4 {offsets = [0, 2, 0], sizes = [1, 1, 8], strides = [1, 1, 1]} : vector<7x7x8xf32> to vector<1x1x8xf32>
    %109 = vector.shape_cast %108 : vector<1x1x8xf32> to vector<8xf32>
    %110 = vector.shape_cast %109 : vector<8xf32> to vector<1x1x8xf32>
    %111 = vector.broadcast %110 : vector<1x1x8xf32> to vector<8x16x8xf32>
    %112 = arith.mulf %107, %111 : vector<8x16x8xf32>
    %113 = arith.addf %105, %112 : vector<8x16x8xf32>
    %114 = vector.extract_strided_slice %106 {offsets = [1, 0, 0], sizes = [8, 16, 8], strides = [1, 1, 1]} : vector<14x16x8xf32> to vector<8x16x8xf32>
    %115 = vector.extract_strided_slice %4 {offsets = [1, 2, 0], sizes = [1, 1, 8], strides = [1, 1, 1]} : vector<7x7x8xf32> to vector<1x1x8xf32>
    %116 = vector.shape_cast %115 : vector<1x1x8xf32> to vector<8xf32>
    %117 = vector.shape_cast %116 : vector<8xf32> to vector<1x1x8xf32>
    %118 = vector.broadcast %117 : vector<1x1x8xf32> to vector<8x16x8xf32>
    %119 = arith.mulf %114, %118 : vector<8x16x8xf32>
    %120 = arith.addf %113, %119 : vector<8x16x8xf32>
    %121 = vector.extract_strided_slice %106 {offsets = [2, 0, 0], sizes = [8, 16, 8], strides = [1, 1, 1]} : vector<14x16x8xf32> to vector<8x16x8xf32>
    %122 = vector.extract_strided_slice %4 {offsets = [2, 2, 0], sizes = [1, 1, 8], strides = [1, 1, 1]} : vector<7x7x8xf32> to vector<1x1x8xf32>
    %123 = vector.shape_cast %122 : vector<1x1x8xf32> to vector<8xf32>
    %124 = vector.shape_cast %123 : vector<8xf32> to vector<1x1x8xf32>
    %125 = vector.broadcast %124 : vector<1x1x8xf32> to vector<8x16x8xf32>
    %126 = arith.mulf %121, %125 : vector<8x16x8xf32>
    %127 = arith.addf %120, %126 : vector<8x16x8xf32>
    %128 = vector.extract_strided_slice %106 {offsets = [3, 0, 0], sizes = [8, 16, 8], strides = [1, 1, 1]} : vector<14x16x8xf32> to vector<8x16x8xf32>
    %129 = vector.extract_strided_slice %4 {offsets = [3, 2, 0], sizes = [1, 1, 8], strides = [1, 1, 1]} : vector<7x7x8xf32> to vector<1x1x8xf32>
    %130 = vector.shape_cast %129 : vector<1x1x8xf32> to vector<8xf32>
    %131 = vector.shape_cast %130 : vector<8xf32> to vector<1x1x8xf32>
    %132 = vector.broadcast %131 : vector<1x1x8xf32> to vector<8x16x8xf32>
    %133 = arith.mulf %128, %132 : vector<8x16x8xf32>
    %134 = arith.addf %127, %133 : vector<8x16x8xf32>
    %135 = vector.extract_strided_slice %106 {offsets = [4, 0, 0], sizes = [8, 16, 8], strides = [1, 1, 1]} : vector<14x16x8xf32> to vector<8x16x8xf32>
    %136 = vector.extract_strided_slice %4 {offsets = [4, 2, 0], sizes = [1, 1, 8], strides = [1, 1, 1]} : vector<7x7x8xf32> to vector<1x1x8xf32>
    %137 = vector.shape_cast %136 : vector<1x1x8xf32> to vector<8xf32>
    %138 = vector.shape_cast %137 : vector<8xf32> to vector<1x1x8xf32>
    %139 = vector.broadcast %138 : vector<1x1x8xf32> to vector<8x16x8xf32>
    %140 = arith.mulf %135, %139 : vector<8x16x8xf32>
    %141 = arith.addf %134, %140 : vector<8x16x8xf32>
    %142 = vector.extract_strided_slice %106 {offsets = [5, 0, 0], sizes = [8, 16, 8], strides = [1, 1, 1]} : vector<14x16x8xf32> to vector<8x16x8xf32>
    %143 = vector.extract_strided_slice %4 {offsets = [5, 2, 0], sizes = [1, 1, 8], strides = [1, 1, 1]} : vector<7x7x8xf32> to vector<1x1x8xf32>
    %144 = vector.shape_cast %143 : vector<1x1x8xf32> to vector<8xf32>
    %145 = vector.shape_cast %144 : vector<8xf32> to vector<1x1x8xf32>
    %146 = vector.broadcast %145 : vector<1x1x8xf32> to vector<8x16x8xf32>
    %147 = arith.mulf %142, %146 : vector<8x16x8xf32>
    %148 = arith.addf %141, %147 : vector<8x16x8xf32>
    %149 = vector.extract_strided_slice %106 {offsets = [6, 0, 0], sizes = [8, 16, 8], strides = [1, 1, 1]} : vector<14x16x8xf32> to vector<8x16x8xf32>
    %150 = vector.extract_strided_slice %4 {offsets = [6, 2, 0], sizes = [1, 1, 8], strides = [1, 1, 1]} : vector<7x7x8xf32> to vector<1x1x8xf32>
    %151 = vector.shape_cast %150 : vector<1x1x8xf32> to vector<8xf32>
    %152 = vector.shape_cast %151 : vector<8xf32> to vector<1x1x8xf32>
    %153 = vector.broadcast %152 : vector<1x1x8xf32> to vector<8x16x8xf32>
    %154 = arith.mulf %149, %153 : vector<8x16x8xf32>
    %155 = arith.addf %148, %154 : vector<8x16x8xf32>
    %156 = vector.extract_strided_slice %3 {offsets = [0, 3, 0], sizes = [14, 16, 8], strides = [1, 1, 1]} : vector<14x22x8xf32> to vector<14x16x8xf32>
    %157 = vector.extract_strided_slice %156 {offsets = [3, 0, 0], sizes = [8, 16, 8], strides = [1, 1, 1]} : vector<14x16x8xf32> to vector<8x16x8xf32>
    %158 = vector.extract_strided_slice %156 {offsets = [0, 0, 0], sizes = [8, 16, 8], strides = [1, 1, 1]} : vector<14x16x8xf32> to vector<8x16x8xf32>
    %159 = vector.extract_strided_slice %4 {offsets = [0, 3, 0], sizes = [1, 1, 8], strides = [1, 1, 1]} : vector<7x7x8xf32> to vector<1x1x8xf32>
    %160 = vector.shape_cast %159 : vector<1x1x8xf32> to vector<8xf32>
    %161 = vector.shape_cast %160 : vector<8xf32> to vector<1x1x8xf32>
    %162 = vector.broadcast %161 : vector<1x1x8xf32> to vector<8x16x8xf32>
    %163 = arith.mulf %158, %162 : vector<8x16x8xf32>
    %164 = arith.addf %155, %163 : vector<8x16x8xf32>
    %165 = vector.extract_strided_slice %156 {offsets = [1, 0, 0], sizes = [8, 16, 8], strides = [1, 1, 1]} : vector<14x16x8xf32> to vector<8x16x8xf32>
    %166 = vector.extract_strided_slice %4 {offsets = [1, 3, 0], sizes = [1, 1, 8], strides = [1, 1, 1]} : vector<7x7x8xf32> to vector<1x1x8xf32>
    %167 = vector.shape_cast %166 : vector<1x1x8xf32> to vector<8xf32>
    %168 = vector.shape_cast %167 : vector<8xf32> to vector<1x1x8xf32>
    %169 = vector.broadcast %168 : vector<1x1x8xf32> to vector<8x16x8xf32>
    %170 = arith.mulf %165, %169 : vector<8x16x8xf32>
    %171 = arith.addf %164, %170 : vector<8x16x8xf32>
    %172 = vector.extract_strided_slice %156 {offsets = [2, 0, 0], sizes = [8, 16, 8], strides = [1, 1, 1]} : vector<14x16x8xf32> to vector<8x16x8xf32>
    %173 = vector.extract_strided_slice %4 {offsets = [2, 3, 0], sizes = [1, 1, 8], strides = [1, 1, 1]} : vector<7x7x8xf32> to vector<1x1x8xf32>
    %174 = vector.shape_cast %173 : vector<1x1x8xf32> to vector<8xf32>
    %175 = vector.shape_cast %174 : vector<8xf32> to vector<1x1x8xf32>
    %176 = vector.broadcast %175 : vector<1x1x8xf32> to vector<8x16x8xf32>
    %177 = arith.mulf %172, %176 : vector<8x16x8xf32>
    %178 = arith.addf %171, %177 : vector<8x16x8xf32>
    %179 = vector.extract_strided_slice %156 {offsets = [3, 0, 0], sizes = [8, 16, 8], strides = [1, 1, 1]} : vector<14x16x8xf32> to vector<8x16x8xf32>
    %180 = vector.extract_strided_slice %4 {offsets = [3, 3, 0], sizes = [1, 1, 8], strides = [1, 1, 1]} : vector<7x7x8xf32> to vector<1x1x8xf32>
    %181 = vector.shape_cast %180 : vector<1x1x8xf32> to vector<8xf32>
    %182 = vector.shape_cast %181 : vector<8xf32> to vector<1x1x8xf32>
    %183 = vector.broadcast %182 : vector<1x1x8xf32> to vector<8x16x8xf32>
    %184 = arith.mulf %179, %183 : vector<8x16x8xf32>
    %185 = arith.addf %178, %184 : vector<8x16x8xf32>
    %186 = vector.extract_strided_slice %156 {offsets = [4, 0, 0], sizes = [8, 16, 8], strides = [1, 1, 1]} : vector<14x16x8xf32> to vector<8x16x8xf32>
    %187 = vector.extract_strided_slice %4 {offsets = [4, 3, 0], sizes = [1, 1, 8], strides = [1, 1, 1]} : vector<7x7x8xf32> to vector<1x1x8xf32>
    %188 = vector.shape_cast %187 : vector<1x1x8xf32> to vector<8xf32>
    %189 = vector.shape_cast %188 : vector<8xf32> to vector<1x1x8xf32>
    %190 = vector.broadcast %189 : vector<1x1x8xf32> to vector<8x16x8xf32>
    %191 = arith.mulf %186, %190 : vector<8x16x8xf32>
    %192 = arith.addf %185, %191 : vector<8x16x8xf32>
    %193 = vector.extract_strided_slice %156 {offsets = [5, 0, 0], sizes = [8, 16, 8], strides = [1, 1, 1]} : vector<14x16x8xf32> to vector<8x16x8xf32>
    %194 = vector.extract_strided_slice %4 {offsets = [5, 3, 0], sizes = [1, 1, 8], strides = [1, 1, 1]} : vector<7x7x8xf32> to vector<1x1x8xf32>
    %195 = vector.shape_cast %194 : vector<1x1x8xf32> to vector<8xf32>
    %196 = vector.shape_cast %195 : vector<8xf32> to vector<1x1x8xf32>
    %197 = vector.broadcast %196 : vector<1x1x8xf32> to vector<8x16x8xf32>
    %198 = arith.mulf %193, %197 : vector<8x16x8xf32>
    %199 = arith.addf %192, %198 : vector<8x16x8xf32>
    %200 = vector.extract_strided_slice %156 {offsets = [6, 0, 0], sizes = [8, 16, 8], strides = [1, 1, 1]} : vector<14x16x8xf32> to vector<8x16x8xf32>
    %201 = vector.extract_strided_slice %4 {offsets = [6, 3, 0], sizes = [1, 1, 8], strides = [1, 1, 1]} : vector<7x7x8xf32> to vector<1x1x8xf32>
    %202 = vector.shape_cast %201 : vector<1x1x8xf32> to vector<8xf32>
    %203 = vector.shape_cast %202 : vector<8xf32> to vector<1x1x8xf32>
    %204 = vector.broadcast %203 : vector<1x1x8xf32> to vector<8x16x8xf32>
    %205 = arith.mulf %200, %204 : vector<8x16x8xf32>
    %206 = arith.addf %199, %205 : vector<8x16x8xf32>
    %207 = vector.extract_strided_slice %3 {offsets = [0, 4, 0], sizes = [14, 16, 8], strides = [1, 1, 1]} : vector<14x22x8xf32> to vector<14x16x8xf32>
    %208 = vector.extract_strided_slice %207 {offsets = [0, 0, 0], sizes = [8, 16, 8], strides = [1, 1, 1]} : vector<14x16x8xf32> to vector<8x16x8xf32>
    %209 = vector.extract_strided_slice %4 {offsets = [0, 4, 0], sizes = [1, 1, 8], strides = [1, 1, 1]} : vector<7x7x8xf32> to vector<1x1x8xf32>
    %210 = vector.shape_cast %209 : vector<1x1x8xf32> to vector<8xf32>
    %211 = vector.shape_cast %210 : vector<8xf32> to vector<1x1x8xf32>
    %212 = vector.broadcast %211 : vector<1x1x8xf32> to vector<8x16x8xf32>
    %213 = arith.mulf %208, %212 : vector<8x16x8xf32>
    %214 = arith.addf %206, %213 : vector<8x16x8xf32>
    %215 = vector.extract_strided_slice %207 {offsets = [1, 0, 0], sizes = [8, 16, 8], strides = [1, 1, 1]} : vector<14x16x8xf32> to vector<8x16x8xf32>
    %216 = vector.extract_strided_slice %4 {offsets = [1, 4, 0], sizes = [1, 1, 8], strides = [1, 1, 1]} : vector<7x7x8xf32> to vector<1x1x8xf32>
    %217 = vector.shape_cast %216 : vector<1x1x8xf32> to vector<8xf32>
    %218 = vector.shape_cast %217 : vector<8xf32> to vector<1x1x8xf32>
    %219 = vector.broadcast %218 : vector<1x1x8xf32> to vector<8x16x8xf32>
    %220 = arith.mulf %215, %219 : vector<8x16x8xf32>
    %221 = arith.addf %214, %220 : vector<8x16x8xf32>
    %222 = vector.extract_strided_slice %207 {offsets = [2, 0, 0], sizes = [8, 16, 8], strides = [1, 1, 1]} : vector<14x16x8xf32> to vector<8x16x8xf32>
    %223 = vector.extract_strided_slice %4 {offsets = [2, 4, 0], sizes = [1, 1, 8], strides = [1, 1, 1]} : vector<7x7x8xf32> to vector<1x1x8xf32>
    %224 = vector.shape_cast %223 : vector<1x1x8xf32> to vector<8xf32>
    %225 = vector.shape_cast %224 : vector<8xf32> to vector<1x1x8xf32>
    %226 = vector.broadcast %225 : vector<1x1x8xf32> to vector<8x16x8xf32>
    %227 = arith.mulf %222, %226 : vector<8x16x8xf32>
    %228 = arith.addf %221, %227 : vector<8x16x8xf32>
    %229 = vector.extract_strided_slice %207 {offsets = [3, 0, 0], sizes = [8, 16, 8], strides = [1, 1, 1]} : vector<14x16x8xf32> to vector<8x16x8xf32>
    %230 = vector.extract_strided_slice %4 {offsets = [3, 4, 0], sizes = [1, 1, 8], strides = [1, 1, 1]} : vector<7x7x8xf32> to vector<1x1x8xf32>
    %231 = vector.shape_cast %230 : vector<1x1x8xf32> to vector<8xf32>
    %232 = vector.shape_cast %231 : vector<8xf32> to vector<1x1x8xf32>
    %233 = vector.broadcast %232 : vector<1x1x8xf32> to vector<8x16x8xf32>
    %234 = arith.mulf %229, %233 : vector<8x16x8xf32>
    %235 = arith.addf %228, %234 : vector<8x16x8xf32>
    %236 = vector.extract_strided_slice %207 {offsets = [4, 0, 0], sizes = [8, 16, 8], strides = [1, 1, 1]} : vector<14x16x8xf32> to vector<8x16x8xf32>
    %237 = vector.extract_strided_slice %4 {offsets = [4, 4, 0], sizes = [1, 1, 8], strides = [1, 1, 1]} : vector<7x7x8xf32> to vector<1x1x8xf32>
    %238 = vector.shape_cast %237 : vector<1x1x8xf32> to vector<8xf32>
    %239 = vector.shape_cast %238 : vector<8xf32> to vector<1x1x8xf32>
    %240 = vector.broadcast %239 : vector<1x1x8xf32> to vector<8x16x8xf32>
    %241 = arith.mulf %236, %240 : vector<8x16x8xf32>
    %242 = arith.addf %235, %241 : vector<8x16x8xf32>
    %243 = vector.extract_strided_slice %207 {offsets = [5, 0, 0], sizes = [8, 16, 8], strides = [1, 1, 1]} : vector<14x16x8xf32> to vector<8x16x8xf32>
    %244 = vector.extract_strided_slice %4 {offsets = [5, 4, 0], sizes = [1, 1, 8], strides = [1, 1, 1]} : vector<7x7x8xf32> to vector<1x1x8xf32>
    %245 = vector.shape_cast %244 : vector<1x1x8xf32> to vector<8xf32>
    %246 = vector.shape_cast %245 : vector<8xf32> to vector<1x1x8xf32>
    %247 = vector.broadcast %246 : vector<1x1x8xf32> to vector<8x16x8xf32>
    %248 = arith.mulf %243, %247 : vector<8x16x8xf32>
    %249 = arith.addf %242, %248 : vector<8x16x8xf32>
    %250 = vector.extract_strided_slice %207 {offsets = [6, 0, 0], sizes = [8, 16, 8], strides = [1, 1, 1]} : vector<14x16x8xf32> to vector<8x16x8xf32>
    %251 = vector.extract_strided_slice %4 {offsets = [6, 4, 0], sizes = [1, 1, 8], strides = [1, 1, 1]} : vector<7x7x8xf32> to vector<1x1x8xf32>
    %252 = vector.shape_cast %251 : vector<1x1x8xf32> to vector<8xf32>
    %253 = vector.shape_cast %252 : vector<8xf32> to vector<1x1x8xf32>
    %254 = vector.broadcast %253 : vector<1x1x8xf32> to vector<8x16x8xf32>
    %255 = arith.mulf %250, %254 : vector<8x16x8xf32>
    %256 = arith.addf %249, %255 : vector<8x16x8xf32>
    %257 = vector.extract_strided_slice %3 {offsets = [0, 5, 0], sizes = [14, 16, 8], strides = [1, 1, 1]} : vector<14x22x8xf32> to vector<14x16x8xf32>
    %258 = vector.extract_strided_slice %257 {offsets = [0, 0, 0], sizes = [8, 16, 8], strides = [1, 1, 1]} : vector<14x16x8xf32> to vector<8x16x8xf32>
    %259 = vector.extract_strided_slice %4 {offsets = [0, 5, 0], sizes = [1, 1, 8], strides = [1, 1, 1]} : vector<7x7x8xf32> to vector<1x1x8xf32>
    %260 = vector.shape_cast %259 : vector<1x1x8xf32> to vector<8xf32>
    %261 = vector.shape_cast %260 : vector<8xf32> to vector<1x1x8xf32>
    %262 = vector.broadcast %261 : vector<1x1x8xf32> to vector<8x16x8xf32>
    %263 = arith.mulf %258, %262 : vector<8x16x8xf32>
    %264 = arith.addf %256, %263 : vector<8x16x8xf32>
    %265 = vector.extract_strided_slice %257 {offsets = [1, 0, 0], sizes = [8, 16, 8], strides = [1, 1, 1]} : vector<14x16x8xf32> to vector<8x16x8xf32>
    %266 = vector.extract_strided_slice %4 {offsets = [1, 5, 0], sizes = [1, 1, 8], strides = [1, 1, 1]} : vector<7x7x8xf32> to vector<1x1x8xf32>
    %267 = vector.shape_cast %266 : vector<1x1x8xf32> to vector<8xf32>
    %268 = vector.shape_cast %267 : vector<8xf32> to vector<1x1x8xf32>
    %269 = vector.broadcast %268 : vector<1x1x8xf32> to vector<8x16x8xf32>
    %270 = arith.mulf %265, %269 : vector<8x16x8xf32>
    %271 = arith.addf %264, %270 : vector<8x16x8xf32>
    %272 = vector.extract_strided_slice %257 {offsets = [2, 0, 0], sizes = [8, 16, 8], strides = [1, 1, 1]} : vector<14x16x8xf32> to vector<8x16x8xf32>
    %273 = vector.extract_strided_slice %4 {offsets = [2, 5, 0], sizes = [1, 1, 8], strides = [1, 1, 1]} : vector<7x7x8xf32> to vector<1x1x8xf32>
    %274 = vector.shape_cast %273 : vector<1x1x8xf32> to vector<8xf32>
    %275 = vector.shape_cast %274 : vector<8xf32> to vector<1x1x8xf32>
    %276 = vector.broadcast %275 : vector<1x1x8xf32> to vector<8x16x8xf32>
    %277 = arith.mulf %272, %276 : vector<8x16x8xf32>
    %278 = arith.addf %271, %277 : vector<8x16x8xf32>
    %279 = vector.extract_strided_slice %257 {offsets = [3, 0, 0], sizes = [8, 16, 8], strides = [1, 1, 1]} : vector<14x16x8xf32> to vector<8x16x8xf32>
    %280 = vector.extract_strided_slice %4 {offsets = [3, 5, 0], sizes = [1, 1, 8], strides = [1, 1, 1]} : vector<7x7x8xf32> to vector<1x1x8xf32>
    %281 = vector.shape_cast %280 : vector<1x1x8xf32> to vector<8xf32>
    %282 = vector.shape_cast %281 : vector<8xf32> to vector<1x1x8xf32>
    %283 = vector.broadcast %282 : vector<1x1x8xf32> to vector<8x16x8xf32>
    %284 = arith.mulf %279, %283 : vector<8x16x8xf32>
    %285 = arith.addf %278, %284 : vector<8x16x8xf32>
    %286 = vector.extract_strided_slice %257 {offsets = [4, 0, 0], sizes = [8, 16, 8], strides = [1, 1, 1]} : vector<14x16x8xf32> to vector<8x16x8xf32>
    %287 = vector.extract_strided_slice %4 {offsets = [4, 5, 0], sizes = [1, 1, 8], strides = [1, 1, 1]} : vector<7x7x8xf32> to vector<1x1x8xf32>
    %288 = vector.shape_cast %287 : vector<1x1x8xf32> to vector<8xf32>
    %289 = vector.shape_cast %288 : vector<8xf32> to vector<1x1x8xf32>
    %290 = vector.broadcast %289 : vector<1x1x8xf32> to vector<8x16x8xf32>
    %291 = arith.mulf %286, %290 : vector<8x16x8xf32>
    %292 = arith.addf %285, %291 : vector<8x16x8xf32>
    %293 = vector.extract_strided_slice %257 {offsets = [5, 0, 0], sizes = [8, 16, 8], strides = [1, 1, 1]} : vector<14x16x8xf32> to vector<8x16x8xf32>
    %294 = vector.extract_strided_slice %4 {offsets = [5, 5, 0], sizes = [1, 1, 8], strides = [1, 1, 1]} : vector<7x7x8xf32> to vector<1x1x8xf32>
    %295 = vector.shape_cast %294 : vector<1x1x8xf32> to vector<8xf32>
    %296 = vector.shape_cast %295 : vector<8xf32> to vector<1x1x8xf32>
    %297 = vector.broadcast %296 : vector<1x1x8xf32> to vector<8x16x8xf32>
    %298 = arith.mulf %293, %297 : vector<8x16x8xf32>
    %299 = arith.addf %292, %298 : vector<8x16x8xf32>
    %300 = vector.extract_strided_slice %257 {offsets = [6, 0, 0], sizes = [8, 16, 8], strides = [1, 1, 1]} : vector<14x16x8xf32> to vector<8x16x8xf32>
    %301 = vector.extract_strided_slice %4 {offsets = [6, 5, 0], sizes = [1, 1, 8], strides = [1, 1, 1]} : vector<7x7x8xf32> to vector<1x1x8xf32>
    %302 = vector.shape_cast %301 : vector<1x1x8xf32> to vector<8xf32>
    %303 = vector.shape_cast %302 : vector<8xf32> to vector<1x1x8xf32>
    %304 = vector.broadcast %303 : vector<1x1x8xf32> to vector<8x16x8xf32>
    %305 = arith.mulf %300, %304 : vector<8x16x8xf32>
    %306 = arith.addf %299, %305 : vector<8x16x8xf32>
    %307 = vector.extract_strided_slice %3 {offsets = [0, 6, 0], sizes = [14, 16, 8], strides = [1, 1, 1]} : vector<14x22x8xf32> to vector<14x16x8xf32>
    %308 = vector.extract_strided_slice %307 {offsets = [0, 0, 0], sizes = [8, 16, 8], strides = [1, 1, 1]} : vector<14x16x8xf32> to vector<8x16x8xf32>
    %309 = vector.extract_strided_slice %4 {offsets = [0, 6, 0], sizes = [1, 1, 8], strides = [1, 1, 1]} : vector<7x7x8xf32> to vector<1x1x8xf32>
    %310 = vector.shape_cast %309 : vector<1x1x8xf32> to vector<8xf32>
    %311 = vector.shape_cast %310 : vector<8xf32> to vector<1x1x8xf32>
    %312 = vector.broadcast %311 : vector<1x1x8xf32> to vector<8x16x8xf32>
    %313 = arith.mulf %308, %312 : vector<8x16x8xf32>
    %314 = arith.addf %306, %313 : vector<8x16x8xf32>
    %315 = vector.extract_strided_slice %307 {offsets = [1, 0, 0], sizes = [8, 16, 8], strides = [1, 1, 1]} : vector<14x16x8xf32> to vector<8x16x8xf32>
    %316 = vector.extract_strided_slice %4 {offsets = [1, 6, 0], sizes = [1, 1, 8], strides = [1, 1, 1]} : vector<7x7x8xf32> to vector<1x1x8xf32>
    %317 = vector.shape_cast %316 : vector<1x1x8xf32> to vector<8xf32>
    %318 = vector.shape_cast %317 : vector<8xf32> to vector<1x1x8xf32>
    %319 = vector.broadcast %318 : vector<1x1x8xf32> to vector<8x16x8xf32>
    %320 = arith.mulf %315, %319 : vector<8x16x8xf32>
    %321 = arith.addf %314, %320 : vector<8x16x8xf32>
    %322 = vector.extract_strided_slice %307 {offsets = [2, 0, 0], sizes = [8, 16, 8], strides = [1, 1, 1]} : vector<14x16x8xf32> to vector<8x16x8xf32>
    %323 = vector.extract_strided_slice %4 {offsets = [2, 6, 0], sizes = [1, 1, 8], strides = [1, 1, 1]} : vector<7x7x8xf32> to vector<1x1x8xf32>
    %324 = vector.shape_cast %323 : vector<1x1x8xf32> to vector<8xf32>
    %325 = vector.shape_cast %324 : vector<8xf32> to vector<1x1x8xf32>
    %326 = vector.broadcast %325 : vector<1x1x8xf32> to vector<8x16x8xf32>
    %327 = arith.mulf %322, %326 : vector<8x16x8xf32>
    %328 = arith.addf %321, %327 : vector<8x16x8xf32>
    %329 = vector.extract_strided_slice %307 {offsets = [3, 0, 0], sizes = [8, 16, 8], strides = [1, 1, 1]} : vector<14x16x8xf32> to vector<8x16x8xf32>
    %330 = vector.extract_strided_slice %4 {offsets = [3, 6, 0], sizes = [1, 1, 8], strides = [1, 1, 1]} : vector<7x7x8xf32> to vector<1x1x8xf32>
    %331 = vector.shape_cast %330 : vector<1x1x8xf32> to vector<8xf32>
    %332 = vector.shape_cast %331 : vector<8xf32> to vector<1x1x8xf32>
    %333 = vector.broadcast %332 : vector<1x1x8xf32> to vector<8x16x8xf32>
    %334 = arith.mulf %329, %333 : vector<8x16x8xf32>
    %335 = arith.addf %328, %334 : vector<8x16x8xf32>
    %336 = vector.extract_strided_slice %307 {offsets = [4, 0, 0], sizes = [8, 16, 8], strides = [1, 1, 1]} : vector<14x16x8xf32> to vector<8x16x8xf32>
    %337 = vector.extract_strided_slice %4 {offsets = [4, 6, 0], sizes = [1, 1, 8], strides = [1, 1, 1]} : vector<7x7x8xf32> to vector<1x1x8xf32>
    %338 = vector.shape_cast %337 : vector<1x1x8xf32> to vector<8xf32>
    %339 = vector.shape_cast %338 : vector<8xf32> to vector<1x1x8xf32>
    %340 = vector.broadcast %339 : vector<1x1x8xf32> to vector<8x16x8xf32>
    %341 = arith.mulf %336, %340 : vector<8x16x8xf32>
    %342 = arith.addf %335, %341 : vector<8x16x8xf32>
    %343 = vector.extract_strided_slice %307 {offsets = [5, 0, 0], sizes = [8, 16, 8], strides = [1, 1, 1]} : vector<14x16x8xf32> to vector<8x16x8xf32>
    %344 = vector.extract_strided_slice %4 {offsets = [5, 6, 0], sizes = [1, 1, 8], strides = [1, 1, 1]} : vector<7x7x8xf32> to vector<1x1x8xf32>
    %345 = vector.shape_cast %344 : vector<1x1x8xf32> to vector<8xf32>
    %346 = vector.shape_cast %345 : vector<8xf32> to vector<1x1x8xf32>
    %347 = vector.broadcast %346 : vector<1x1x8xf32> to vector<8x16x8xf32>
    %348 = arith.mulf %343, %347 : vector<8x16x8xf32>
    %349 = arith.addf %342, %348 : vector<8x16x8xf32>
    %350 = vector.extract_strided_slice %307 {offsets = [6, 0, 0], sizes = [8, 16, 8], strides = [1, 1, 1]} : vector<14x16x8xf32> to vector<8x16x8xf32>
    %351 = vector.extract_strided_slice %4 {offsets = [6, 6, 0], sizes = [1, 1, 8], strides = [1, 1, 1]} : vector<7x7x8xf32> to vector<1x1x8xf32>
    %352 = vector.shape_cast %351 : vector<1x1x8xf32> to vector<8xf32>
    %353 = vector.shape_cast %352 : vector<8xf32> to vector<1x1x8xf32>
    %354 = vector.broadcast %353 : vector<1x1x8xf32> to vector<8x16x8xf32>
    %355 = arith.mulf %350, %354 : vector<8x16x8xf32>
    %356 = arith.addf %349, %355 : vector<8x16x8xf32>
    %c0_5 = arith.constant 0 : index
    %c0_6 = arith.constant 0 : index
    %357 = vector.load %arg4[%c0_5, %c0_6] : memref<1x8xf32, #tpu.memory_space<vmem>>, vector<1x8xf32>
    %358 = vector.shape_cast %357 : vector<1x8xf32> to vector<8xf32>
    %359 = vector.shape_cast %358 : vector<8xf32> to vector<1x1x8xf32>
    %360 = vector.broadcast %359 : vector<1x1x8xf32> to vector<8x16x8xf32>
    %361 = arith.addf %356, %360 : vector<8x16x8xf32>
    %cst_7 = arith.constant dense<0.000000e+00> : vector<8x16xf32>
    %362 = vector.multi_reduction <add>, %361, %cst_7 [2] : vector<8x16x8xf32> to vector<8x16xf32>
    %363 = vector.shape_cast %362 : vector<8x16xf32> to vector<8x16x1xf32>
    %cst_8 = arith.constant 8.000000e+00 : f32
    %364 = vector.broadcast %cst_8 : f32 to vector<8x16x1xf32>
    %365 = arith.divf %363, %364 : vector<8x16x1xf32>
    %366 = vector.broadcast %365 : vector<8x16x1xf32> to vector<8x16x8xf32>
    %367 = arith.subf %361, %366 : vector<8x16x8xf32>
    %368 = vector.broadcast %365 : vector<8x16x1xf32> to vector<8x16x8xf32>
    %369 = arith.subf %361, %368 : vector<8x16x8xf32>
    %370 = arith.mulf %367, %369 : vector<8x16x8xf32>
    %cst_9 = arith.constant dense<0.000000e+00> : vector<8x16xf32>
    %371 = vector.multi_reduction <add>, %370, %cst_9 [2] : vector<8x16x8xf32> to vector<8x16xf32>
    %372 = vector.shape_cast %371 : vector<8x16xf32> to vector<8x16x1xf32>
    %cst_10 = arith.constant 8.000000e+00 : f32
    %373 = vector.broadcast %cst_10 : f32 to vector<8x16x1xf32>
    %374 = arith.divf %372, %373 : vector<8x16x1xf32>
    %375 = vector.broadcast %365 : vector<8x16x1xf32> to vector<8x16x8xf32>
    %376 = arith.subf %361, %375 : vector<8x16x8xf32>
    %cst_11 = arith.constant 9.99999997E-7 : f32
    %377 = vector.broadcast %cst_11 : f32 to vector<8x16x1xf32>
    %378 = arith.addf %374, %377 : vector<8x16x1xf32>
    %379 = math.rsqrt %378 : vector<8x16x1xf32>
    %380 = vector.broadcast %379 : vector<8x16x1xf32> to vector<8x16x8xf32>
    %381 = arith.mulf %376, %380 : vector<8x16x8xf32>
    %c0_12 = arith.constant 0 : index
    %c0_13 = arith.constant 0 : index
    %382 = vector.load %arg5[%c0_12, %c0_13] : memref<1x8xf32, #tpu.memory_space<vmem>>, vector<1x8xf32>
    %383 = vector.shape_cast %382 : vector<1x8xf32> to vector<8xf32>
    %384 = vector.shape_cast %383 : vector<8xf32> to vector<1x1x8xf32>
    %385 = vector.broadcast %384 : vector<1x1x8xf32> to vector<8x16x8xf32>
    %386 = arith.mulf %381, %385 : vector<8x16x8xf32>
    %c0_14 = arith.constant 0 : index
    %c0_15 = arith.constant 0 : index
    %387 = vector.load %arg6[%c0_14, %c0_15] : memref<1x8xf32, #tpu.memory_space<vmem>>, vector<1x8xf32>
    %388 = vector.shape_cast %387 : vector<1x8xf32> to vector<8xf32>
    %389 = vector.shape_cast %388 : vector<8xf32> to vector<1x1x8xf32>
    %390 = vector.broadcast %389 : vector<1x1x8xf32> to vector<8x16x8xf32>
    %391 = arith.addf %386, %390 : vector<8x16x8xf32>
    %392 = vector.shape_cast %391 : vector<8x16x8xf32> to vector<128x8xf32>
    %c0_16 = arith.constant 0 : index
    %c0_17 = arith.constant 0 : index
    %393 = vector.load %arg7[%c0_16, %c0_17] : memref<8x32xf32, #tpu.memory_space<vmem>>, vector<8x32xf32>
    %cst_18 = arith.constant dense<0.000000e+00> : vector<128x32xf32>
    %394 = tpu.matmul %392, %393, %cst_18 {dimension_numbers = #tpu.dot_dimension_numbers<[1], [0], [0], [1], [0, 0, 1, 1], [], []>} : vector<128x8xf32>, vector<8x32xf32>, vector<128x32xf32> -> vector<128x32xf32>
    %c0_19 = arith.constant 0 : index
    %c0_20 = arith.constant 0 : index
    %395 = vector.load %arg8[%c0_19, %c0_20] : memref<1x32xf32, #tpu.memory_space<vmem>>, vector<1x32xf32>
    %396 = vector.shape_cast %395 : vector<1x32xf32> to vector<32xf32>
    %397 = vector.shape_cast %396 : vector<32xf32> to vector<1x32xf32>
    %398 = vector.broadcast %397 : vector<1x32xf32> to vector<128x32xf32>
    %399 = arith.addf %394, %398 : vector<128x32xf32>
    %cst_21 = arith.constant 5.000000e-01 : f32
    %400 = vector.broadcast %cst_21 : f32 to vector<128x32xf32>
    %401 = arith.mulf %400, %399 : vector<128x32xf32>
    %cst_22 = arith.constant 0.707106769 : f32
    %402 = vector.broadcast %cst_22 : f32 to vector<128x32xf32>
    %403 = arith.mulf %399, %402 : vector<128x32xf32>
    %404 = math.erf %403 : vector<128x32xf32>
    %cst_23 = arith.constant 1.000000e+00 : f32
    %405 = vector.broadcast %cst_23 : f32 to vector<128x32xf32>
    %406 = arith.addf %405, %404 : vector<128x32xf32>
    %407 = arith.mulf %401, %406 : vector<128x32xf32>
    %c0_24 = arith.constant 0 : index
    %c0_25 = arith.constant 0 : index
    %408 = vector.load %arg9[%c0_24, %c0_25] : memref<32x8xf32, #tpu.memory_space<vmem>>, vector<32x8xf32>
    %cst_26 = arith.constant dense<0.000000e+00> : vector<128x8xf32>
    %409 = tpu.matmul %407, %408, %cst_26 {dimension_numbers = #tpu.dot_dimension_numbers<[1], [0], [0], [1], [0, 0, 1, 1], [], []>} : vector<128x32xf32>, vector<32x8xf32>, vector<128x8xf32> -> vector<128x8xf32>
    %c0_27 = arith.constant 0 : index
    %c0_28 = arith.constant 0 : index
    %410 = vector.load %arg10[%c0_27, %c0_28] : memref<1x8xf32, #tpu.memory_space<vmem>>, vector<1x8xf32>
    %411 = vector.shape_cast %410 : vector<1x8xf32> to vector<8xf32>
    %412 = vector.shape_cast %411 : vector<8xf32> to vector<1x8xf32>
    %413 = vector.broadcast %412 : vector<1x8xf32> to vector<128x8xf32>
    %414 = arith.addf %409, %413 : vector<128x8xf32>
    %415 = vector.shape_cast %157 : vector<8x16x8xf32> to vector<128x8xf32>
    %416 = arith.addf %414, %415 : vector<128x8xf32>
    %c0_29 = arith.constant 0 : index
    %c0_30 = arith.constant 0 : index
    %c0_31 = arith.constant 0 : index
    %417 = vector.load %arg11[%c0_29, %c0_30, %c0_31] : memref<1x128x8xf32, #tpu.memory_space<vmem>>, vector<1x128x8xf32>
    %418 = vector.shape_cast %417 : vector<1x128x8xf32> to vector<128x8xf32>
    %419 = vector.shape_cast %416 : vector<128x8xf32> to vector<1x128x8xf32>
    tpu.vector_store %arg11[%c0_29, %c0_30, %c0_31], %419 {strides = array<i32>} : memref<1x128x8xf32, #tpu.memory_space<vmem>>, vector<1x128x8xf32>,
    return
  }
  func.func @transform_0(%arg0: i32, %arg1: i32) -> (i32, i32, i32, i32) {
    %c0_i32 = arith.constant 0 : i32
    %c0_i32_0 = arith.constant 0 : i32
    %c0_i32_1 = arith.constant 0 : i32
    %c0_i32_2 = arith.constant 0 : i32
    return %arg0, %c0_i32, %c0_i32_0, %c0_i32_1 : i32, i32, i32, i32
  }
  func.func @transform_1(%arg0: i32, %arg1: i32) -> (i32, i32, i32) {
    %c0_i32 = arith.constant 0 : i32
    %c0_i32_0 = arith.constant 0 : i32
    %c0_i32_1 = arith.constant 0 : i32
    %c0_i32_2 = arith.constant 0 : i32
    return %c0_i32, %c0_i32_0, %c0_i32_1 : i32, i32, i32
  }
  func.func @transform_2(%arg0: i32, %arg1: i32) -> (i32, i32) {
    %c0_i32 = arith.constant 0 : i32
    %c0_i32_0 = arith.constant 0 : i32
    %c0_i32_1 = arith.constant 0 : i32
    return %c0_i32, %c0_i32_0 : i32, i32
  }
  func.func @transform_3(%arg0: i32, %arg1: i32) -> (i32, i32) {
    %c0_i32 = arith.constant 0 : i32
    %c0_i32_0 = arith.constant 0 : i32
    %c0_i32_1 = arith.constant 0 : i32
    return %c0_i32, %c0_i32_0 : i32, i32
  }
  func.func @transform_4(%arg0: i32, %arg1: i32) -> (i32, i32) {
    %c0_i32 = arith.constant 0 : i32
    %c0_i32_0 = arith.constant 0 : i32
    %c0_i32_1 = arith.constant 0 : i32
    return %c0_i32, %c0_i32_0 : i32, i32
  }
  func.func @transform_5(%arg0: i32, %arg1: i32) -> (i32, i32) {
    %c0_i32 = arith.constant 0 : i32
    %c0_i32_0 = arith.constant 0 : i32
    %c0_i32_1 = arith.constant 0 : i32
    return %c0_i32, %c0_i32_0 : i32, i32
  }
  func.func @transform_6(%arg0: i32, %arg1: i32) -> (i32, i32) {
    %c0_i32 = arith.constant 0 : i32
    %c0_i32_0 = arith.constant 0 : i32
    %c0_i32_1 = arith.constant 0 : i32
    return %c0_i32, %c0_i32_0 : i32, i32
  }
  func.func @transform_7(%arg0: i32, %arg1: i32) -> (i32, i32) {
    %c0_i32 = arith.constant 0 : i32
    %c0_i32_0 = arith.constant 0 : i32
    %c0_i32_1 = arith.constant 0 : i32
    return %c0_i32, %c0_i32_0 : i32, i32
  }
  func.func @transform_8(%arg0: i32, %arg1: i32) -> (i32, i32) {
    %c0_i32 = arith.constant 0 : i32
    %c0_i32_0 = arith.constant 0 : i32
    %c0_i32_1 = arith.constant 0 : i32
    return %c0_i32, %c0_i32_0 : i32, i32
  }
  func.func @transform_9(%arg0: i32, %arg1: i32) -> (i32, i32, i32) {
    %c0_i32 = arith.constant 0 : i32
    %c0_i32_0 = arith.constant 0 : i32
    return %arg0, %arg1, %c0_i32 : i32, i32, i32
  }
}

</mosaic_0001>

<bundles_post_ra>
// kernel: tpu_custom_call.1
= control target key start
LH: loop header
LB: loop body
LE: loop exit
PB: predicated region body
PF: predicated region fallthrough
CT: control target
= control target key end

     0   :  { %s7314_s30 = smov 0   ;;  %s7316_s10 = smov 0   ;;  %s14560_s0 = inlined_call_operand.vmem [shape: f32[2,22,22,8], index: 0, kind: input, shape index: {}]   ;;  %s14561_s1 = inlined_call_operand.vmem [shape: f32[7,7,8], index: 1, kind: input, shape index: {}]   ;;  %s14562_s2 = inlined_call_operand.vmem [shape: f32[1,8], index: 2, kind: input, shape index: {}]   ;;  %s14563_s3 = inlined_call_operand.vmem [shape: f32[1,8], index: 3, kind: input, shape index: {}]   ;;  %s14564_s4 = inlined_call_operand.vmem [shape: f32[1,8], index: 4, kind: input, shape index: {}]   ;;  %s14565_s5 = inlined_call_operand.vmem [shape: f32[8,32], index: 5, kind: input, shape index: {}]   ;;  %s14566_s6 = inlined_call_operand.vmem [shape: f32[1,32], index: 6, kind: input, shape index: {}]   ;;  %s14567_s7 = inlined_call_operand.vmem [shape: f32[32,8], index: 7, kind: input, shape index: {}]   ;;  %s14568_s8 = inlined_call_operand.vmem [shape: f32[1,8], index: 8, kind: input, shape index: {}]   ;;  %s14569_s9 = inlined_call_operand.vmem [shape: f32[2,256,8], index: 9, kind: output, shape index: {}]  }
   0x1   :  { %s7318_s11 = smov 0   ;;  %s7320_s12 = smov 0  }
   0x2   :  { %s7322_s13 = smov 0  }
   0x3 LB: > { %s28_s14 = sadd.s32 1, %s7254_s11  ;;  %s31_s15 = sadd.s32 1, %s7258_s12  ;;  %s7262_s13 = sphi %s7322_s13, %s19_s13   ;;  %s7258_s12 = sphi %s7320_s12, %s17489_s12   ;;  %s7254_s11 = sphi %s7318_s11, %s17488_s11   ;;  %s7250_s10 = sphi %s7316_s10, %s17487_s10   ;;  %s7246_s30 = sphi %s7314_s30, %s17486_s30  }
   0x4   : > { %p29_p0 = scmp.ge.s32.totalorder %s28_s14, 2  ;;  %p6841_p1 = scmp.ge.s32.totalorder %s7262_s13, 1 }
   0x5   : > { %p301_p2 = scmp.lt.s32.totalorder %s7262_s13, 5 }
   0x6   : > { %s17491_s14 = smov (%p29_p0, %s28_s14), 0  ;;  %s17493_s15 = smov (!%p29_p0, %s31_s15), %s7258_s12 }
   0x7   : > { %p302_p3 = pnand %p6841_p1, %p301_p2  ;;  %p33_p4 = scmp.ge.s32.totalorder %s17493_s15, 2 }
   0x9   : > { %s17495_s15 = smov (%p33_p4, %s17493_s15), 0  ;;  %305 = sbr.rel (%p302_p3) target bundleno = 1821 (0x71d), region = 56 }
  0x10   : > { %p341_p5 = scmp.lt.s32.totalorder %s7250_s10, 1  ;;  %v408_v0 = vlaneseq  ;;  %s6847_s16 = smul.u32 192, %s7246_s30  ;;  %v7352_v2 = vld [vmem:[%s14561_s1] sm:$0x7f]  ;;  %v7357_v3 = vld [vmem:[%s14561_s1 + $0x8] sm:$0x7f] }
  0x11   : > { %v7362_v4 = vld [vmem:[%s14561_s1 + $0x10] sm:$0x7f]  ;;  %v7368_v5 = vld [vmem:[%s14561_s1 + $0x18] sm:$0x7f]  ;;  %v7375_v8 = vld [vmem:[%s14561_s1 + $0x20] sm:$0x7f] }
  0x12   : > { %s17497_s10 = smov (!%p341_p5, %s7250_s10), 1  ;;  %v409_v1 = vshrl.u32 %v408_v0, 7  ;;  %v7407_v16 = vld [vmem:[%s14561_s1 + $0x28] sm:$0x7f]  ;;  %vm712_vm0 = vcmask 1046528   ;;  %vm1581_vm1 = vcmask 1045504  }
  0x13   : > { %s6990_s23 = smul.u32 528, %s17497_s10  ;;  %v7423_v21 = vld [vmem:[%s14561_s1 + $0x30] sm:$0x7f]  ;;  %vm2450_vm2 = vcmask 1044480   ;;  %vm3319_vm3 = vcmask 1043456   ;;  %vm4188_vm4 = vcmask 1042432  }
  0x14   : > { %v410_v6 = vsub.s32 0, %v409_v1  ;;  %v7370_v7 = vsub.s32 1, %v409_v1  ;;  %v7412_v18 = vsub.s32 2, %v409_v1  ;;  %v7451_v31 = vsub.s32 3, %v409_v1  ;;  %s6843_s24 = sshll.u32 %s7246_s30, 4  ;;  %s6844_s25 = sshll.u32 %s17497_s10, 5 }
  0x15   : > { %s345_s17 = scalar_lea.vmem %s14560_s0, %s6990_s23  ;;  %v7458_v35 = vsub.s32 4, %v409_v1  ;;  %v7498_v51 = vsub.s32 5, %v409_v1  ;;  %v7506_v55 = vsub.s32 6, %v409_v1  ;;  %vm5057_vm5 = vcmask 1041408   ;;  %p349_p6 = scmp.lt.s32.totalorder %s6843_s24, 31 }
  0x16   : > { %v7381_v9 = vrot.slane %v7352_v2, %v410_v6  ;;  %v7384_v10 = vrot.slane %v7357_v3, %v410_v6  ;;  %v7387_v11 = vrot.slane %v7362_v4, %v410_v6  ;;  %s7389_s18 = scalar_lea.vmem %s345_s17, %s6847_s16  ;;  %v7392_v12 = vrot.slane %v7368_v5, %v410_v6 }
  0x17   : > { %v7396_v13 = vrot.slane %v7352_v2, %v7370_v7  ;;  %v7399_v14 = vld [vmem:[%s7389_s18] sm:$0xff]  ;;  %v7402_v15 = vld [vmem:[%s7389_s18 + $0x18] sm:$0xff]  ;;  %v7410_v17 = vrot.slane %v7375_v8, %v410_v6  ;;  %v7415_v19 = vld [vmem:[%s7389_s18 + $0x8] sm:$0xff]  ;;  %v7433_v25 = vrot.slane %v7357_v3, %v7370_v7  ;;  %v7449_v30 = vrot.slane %v7362_v4, %v7370_v7  ;;  %s17499_s24 = smov (!%p349_p6, %s6843_s24), 31 }
  0x18   : > { %15489 = vst [vmem:[#allocation2_spill] sm:$0xff] %v7381_v9  ;;  %15490 = vst [vmem:[#allocation3_spill] sm:$0xff] %v7384_v10  ;;  %v7418_v20 = vld [vmem:[%s7389_s18 + $0x30] sm:$0xff]  ;;  %v412_v22 = vmul.f32 %v7381_v9, %v7399_v14  ;;  %v448_v23 = vmul.f32 %v7384_v10, %v7402_v15  ;;  %v7436_v26 = vld [vmem:[%s7389_s18 + $0x48] sm:$0xff]  ;;  %v7456_v34 = vrot.slane %v7407_v16, %v410_v6  ;;  %vm5897_vm6 = vcmask 64512   ;;  %s352_s26 = sadd.s32 %s6844_s25, %s17499_s24 }
  0x19   : > { %15491 = vst [vmem:[#allocation4_spill] sm:$0xff] %v7387_v11  ;;  %15492 = vst [vmem:[#allocation5_spill] sm:$0xff] %v7392_v12  ;;  %v664_v24 = vmul.f32 %v7396_v13, %v7399_v14  ;;  %v7439_v27 = vld [vmem:[%s7389_s18 + $0x60] sm:$0xff]  ;;  %v484_v28 = vmul.f32 %v7387_v11, %v7418_v20  ;;  %v7445_v29 = vmul.f32 %v7396_v13, %v7415_v19  ;;  %v7464_v37 = vld [vmem:[%s7389_s18 + $0x78] sm:$0xff]  ;;  %vm6445_vm7 = vcmask 261120   ;;  %s6845_s29 = sshll.u32 %s352_s26, 3 }
  0x1a   : > { %15493 = vst [vmem:[#allocation6_spill] sm:$0xff] %v7396_v13  ;;  %15494 = vst [vmem:[#allocation7_spill] sm:$0xff] %v7410_v17  ;;  %v464_v32 = vadd.f32 %v448_v23, %v412_v22  ;;  %v520_v33 = vmul.f32 %v7392_v12, %v7436_v26  ;;  %v7461_v36 = vld [vmem:[%s7389_s18 + $0x20] sm:$0xff]  ;;  %v556_v38 = vmul.f32 %v7410_v17, %v7439_v27  ;;  %v7476_v42 = vld [vmem:[%s7389_s18 + $0x38] sm:$0xff]  ;;  %s14464_s17 = scalar_lea.vmem %s14569_s9, %s6845_s29 }
  0x1b   : > { %15495 = vst [vmem:[#allocation8_spill] sm:$0xff] %v7433_v25  ;;  %15496 = vst [vmem:[#allocation9_spill] sm:$0xff] %v7445_v29  ;;  %v7469_v39 = vrot.slane %v7423_v21, %v410_v6  ;;  %v713_v40 = vrot.slane %v664_v24, 1  ;;  %v7473_v41 = vrot.slane %v7368_v5, %v7370_v7  ;;  %v14570_v44 = vrot.slane %v7445_v29, 1  ;;  %v7486_v47 = vld [vmem:[%s7389_s18 + $0x90] sm:$0xff]  ;;  %v7524_v1 = vld [vmem:[%s7389_s18 + $0x68] sm:$0xff] }
  0x1c   : > { %15497 = vst [vmem:[#allocation10_spill] sm:$0xff] %v7449_v30  ;;  %15498 = vst [vmem:[#allocation11_spill] sm:$0xff] %v7456_v34  ;;  %v500_v43 = vadd.f32 %v484_v28, %v464_v32  ;;  %v789_v45 = vmul.f32 %v7433_v25, %v7402_v15  ;;  %v7483_v46 = vmul.f32 %v7433_v25, %v7461_v36  ;;  %v7516_v60 = vld [vmem:[%s7389_s18 + $0x50] sm:$0xff]  ;;  %v7538_v28 = vld [vmem:[%s7389_s18 + $0x80] sm:$0xff] }
  0x1d   : > { %15499 = vst [vmem:[#allocation12_spill] sm:$0xff] %v7469_v39  ;;  %15500 = vst [vmem:[#allocation13_spill] sm:$0xff] %v7473_v41  ;;  %v913_v48 = vmul.f32 %v7449_v30, %v7418_v20  ;;  %v7492_v49 = vmul.f32 %v7449_v30, %v7476_v42  ;;  %v7496_v50 = vrot.slane %v7375_v8, %v7370_v7 }
  0x1e   : > { %15501 = vst [vmem:[#allocation14_spill] sm:$0xff] %v7483_v46  ;;  %v7502_v52 = vmul.f32 %v7381_v9, %v7415_v19  ;;  %v536_v53 = vadd.f32 %v520_v33, %v500_v43  ;;  %v592_v54 = vmul.f32 %v7456_v34, %v7464_v37  ;;  %v7510_v56 = vmul.f32 %v7384_v10, %v7461_v36  ;;  %v7553_v43 = vld [vmem:[%s7389_s18 + $0x98] sm:$0xff] }
  0x1f   : > { %15502 = vst [vmem:[#allocation15_spill] sm:$0xff] %v7492_v49  ;;  %15503 = vst [vmem:[#allocation16_spill] sm:$0xff] %v7496_v50  ;;  %v837_v57 = vrot.slane %v789_v45, 1  ;;  %v14571_v58 = vrot.slane %v7483_v46, 1  ;;  %v1037_v59 = vmul.f32 %v7473_v41, %v7436_v26  ;;  %v628_v62 = vmul.f32 %v7469_v39, %v7486_v47 }
  0x20   : > { %v572_v61 = vadd.f32 %v556_v38, %v536_v53  ;;  %v715_v63 = vsel %vm712_vm0, %v713_v40, %v14570_v44  ;;  %v961_v0 = vrot.slane %v913_v48, 1  ;;  %v7529_v22 = vmul.f32 %v7473_v41, %v7516_v60 }
  0x21   : > { %v1161_v23 = vmul.f32 %v7496_v50, %v7439_v27  ;;  %v7535_v24 = vrot.slane %v7407_v16, %v7370_v7  ;;  %v7542_v33 = vmul.f32 %v7496_v50, %v7524_v1  ;;  %v7546_v38 = vrot.slane %v7423_v21, %v7370_v7 }
  0x22   : > { %15504 = vst [vmem:[#allocation17_spill] sm:$0xff] %v7529_v22  ;;  %v608_v32 = vadd.f32 %v592_v54, %v572_v61  ;;  %v7550_v40 = vrot.slane %v7352_v2, %v7412_v18  ;;  %v839_v45 = vsel %vm712_vm0, %v837_v57, %v14571_v58  ;;  %v1085_v48 = vrot.slane %v1037_v59, 1 }
  0x23   : > { %15505 = vst [vmem:[#allocation18_spill] sm:$0xff] %v7535_v24  ;;  %15506 = vst [vmem:[#allocation19_spill] sm:$0xff] %v7542_v33  ;;  %v1285_v53 = vmul.f32 %v7535_v24, %v7464_v37  ;;  %v7562_v54 = vmul.f32 %v7535_v24, %v7538_v28  ;;  %v1409_v61 = vmul.f32 %v7546_v38, %v7486_v47  ;;  %v15511_v57 = vrot.slane %v7492_v49, 1 }
  0x24   : > { %15507 = vst [vmem:[#allocation20_spill] sm:$0xff] %v7546_v38  ;;  %15508 = vst [vmem:[#allocation21_spill] sm:$0xff] %v7550_v40  ;;  %v644_v7 = vadd.f32 %v628_v62, %v608_v32  ;;  %v7568_v44 = vmul.f32 %v7546_v38, %v7553_v43  ;;  %v1533_v6 = vmul.f32 %v7550_v40, %v7399_v14  ;;  %v14583_v58 = vrot.slane %v7529_v22, 1 }
  0x25   : > { %15509 = vst [vmem:[#allocation22_spill] sm:$0xff] %v7562_v54  ;;  %v963_v59 = vsel %vm712_vm0, %v961_v0, %v15511_v57  ;;  %v1209_v46 = vrot.slane %v1161_v23, 1  ;;  %v7578_v62 = vmul.f32 %v7550_v40, %v7415_v19  ;;  %v14592_v29 = vrot.slane %v7542_v33, 1 }
  0x26   : > { %15510 = vst [vmem:[#allocation23_spill] sm:$0xff] %v7568_v44  ;;  %v769_v32 = vadd.f32 %v715_v63, %v644_v7  ;;  %v1333_v24 = vrot.slane %v1285_v53, 1  ;;  %v1457_v50 = vrot.slane %v1409_v61, 1  ;;  %v7585_v49 = vrot.slane %v7357_v3, %v7412_v18 }
  0x27   : > { %15512 = vst [vmem:[#allocation24_spill] sm:$0xff] %v7578_v62  ;;  %v7589_v0 = vrot.slane %v7362_v4, %v7412_v18  ;;  %v1582_v57 = vrot.slane %v1533_v6, 2  ;;  %v7594_v53 = vrot.slane %v7368_v5, %v7412_v18  ;;  %v1087_v7 = vsel %vm712_vm0, %v1085_v48, %v14583_v58 }
  0x28   : > { %15513 = vst [vmem:[#allocation25_spill] sm:$0xff] %v7585_v49  ;;  %v893_v23 = vadd.f32 %v839_v45, %v769_v32  ;;  %v1658_v61 = vmul.f32 %v7585_v49, %v7402_v15  ;;  %v7603_v41 = vmul.f32 %v7585_v49, %v7461_v36  ;;  %v7609_v45 = vmul.f32 %v7387_v11, %v7476_v42 }
  0x29   : > { %15514 = vst [vmem:[#allocation26_spill] sm:$0xff] %v7589_v0  ;;  %15515 = vst [vmem:[#allocation27_spill] sm:$0xff] %v7594_v53  ;;  %v1782_v6 = vmul.f32 %v7589_v0, %v7418_v20  ;;  %v7613_v63 = vmul.f32 %v7589_v0, %v7476_v42  ;;  %v7617_v48 = vrot.slane %v7375_v8, %v7412_v18  ;;  %v15521_v22 = vrot.slane %v7562_v54, 1 }
  0x2a   : > { %15516 = vst [vmem:[#allocation28_spill] sm:$0xff] %v7603_v41  ;;  %15517 = vst [vmem:[#allocation29_spill] sm:$0xff] %v7609_v45  ;;  %v1017_v32 = vadd.f32 %v963_v59, %v893_v23  ;;  %v7621_v58 = vmul.f32 %v7392_v12, %v7516_v60  ;;  %v1211_v38 = vsel %vm712_vm0, %v1209_v46, %v14592_v29  ;;  %v15522_v23 = vrot.slane %v7568_v44, 1 }
  0x2b   : > { %15518 = vst [vmem:[#allocation30_spill] sm:$0xff] %v7613_v63  ;;  %15519 = vst [vmem:[#allocation31_spill] sm:$0xff] %v7617_v48  ;;  %v1335_v59 = vsel %vm712_vm0, %v1333_v24, %v15521_v22  ;;  %v15523_v49 = vrot.slane %v7578_v62, 2  ;;  %v7639_v33 = vmul.f32 %v7594_v53, %v7516_v60  ;;  %v1706_v46 = vrot.slane %v1658_v61, 2 }
  0x2c   : > { %15520 = vst [vmem:[#allocation32_spill] sm:$0xff] %v7621_v58  ;;  %v1459_v45 = vsel %vm712_vm0, %v1457_v50, %v15522_v23  ;;  %v1141_v0 = vadd.f32 %v1087_v7, %v1017_v32  ;;  %v1906_v58 = vmul.f32 %v7594_v53, %v7436_v26  ;;  %v14601_v29 = vrot.slane %v7603_v41, 2 }
  0x2d   : > { %v1584_v40 = vsel %vm1581_vm1, %v1582_v57, %v15523_v49  ;;  %15524 = vst [vmem:[#allocation33_spill] sm:$0xff] %v7639_v33  ;;  %v1830_v22 = vrot.slane %v1782_v6, 2  ;;  %v7644_v24 = vrot.slane %v7407_v16, %v7412_v18  ;;  %v2030_v49 = vmul.f32 %v7617_v48, %v7439_v27 }
  0x2e   : > { %v1265_v50 = vadd.f32 %v1211_v38, %v1141_v0  ;;  %v7651_v57 = vrot.slane %v7423_v21, %v7412_v18  ;;  %v7655_v61 = vmul.f32 %v7617_v48, %v7524_v1  ;;  %v7665_v38 = vrot.slane %v7352_v2, %v7451_v31 }
  0x2f   : > { %15525 = vst [vmem:[#allocation34_spill] sm:$0xff] %v7644_v24  ;;  %v2154_v6 = vmul.f32 %v7644_v24, %v7464_v37  ;;  %v7661_v32 = vmul.f32 %v7644_v24, %v7538_v28  ;;  %v1954_v23 = vrot.slane %v1906_v58, 2  ;;  %v7671_v7 = vrot.slane %v7357_v3, %v7451_v31 }
  0x30   : > { %15526 = vst [vmem:[#allocation35_spill] sm:$0xff] %v7651_v57  ;;  %15527 = vst [vmem:[#allocation36_spill] sm:$0xff] %v7655_v61  ;;  %v1389_v0 = vadd.f32 %v1335_v59, %v1265_v50  ;;  %v2278_v18 = vmul.f32 %v7651_v57, %v7486_v47  ;;  %v1708_v62 = vsel %vm1581_vm1, %v1706_v46, %v14601_v29  ;;  %v15532_v50 = vrot.slane %v7613_v63, 2 }
  0x31   : > { %15528 = vst [vmem:[#allocation37_spill] sm:$0xff] %v7661_v32  ;;  %15529 = vst [vmem:[#allocation38_spill] sm:$0xff] %v7665_v38  ;;  %v7679_v54 = vmul.f32 %v7651_v57, %v7553_v43  ;;  %v2402_v58 = vmul.f32 %v7665_v38, %v7399_v14  ;;  %v2078_v48 = vrot.slane %v2030_v49, 2  ;;  %v7688_v41 = vmul.f32 %v7665_v38, %v7415_v19 }
  0x32   : > { %15530 = vst [vmem:[#allocation39_spill] sm:$0xff] %v7671_v7  ;;  %v1513_v59 = vadd.f32 %v1459_v45, %v1389_v0  ;;  %v1832_v24 = vsel %vm1581_vm1, %v1830_v22, %v15532_v50  ;;  %v14616_v46 = vrot.slane %v7655_v61, 2  ;;  %v2202_v29 = vrot.slane %v2154_v6, 2 }
  0x33   : > { %15531 = vst [vmem:[#allocation40_spill] sm:$0xff] %v7679_v54  ;;  %15533 = vst [vmem:[#allocation41_spill] sm:$0xff] %v7688_v41  ;;  %v2527_v57 = vmul.f32 %v7671_v7, %v7402_v15  ;;  %v2326_v39 = vrot.slane %v2278_v18, 2  ;;  %v7696_v45 = vmul.f32 %v7671_v7, %v7461_v36  ;;  %v7700_v22 = vrot.slane %v7362_v4, %v7451_v31 }
  0x34   : > { %v1638_v53 = vadd.f32 %v1584_v40, %v1513_v59  ;;  %v2451_v0 = vrot.slane %v2402_v58, 3  ;;  %v7705_v6 = vrot.slane %v7368_v5, %v7451_v31  ;;  %v7709_v50 = vrot.slane %v7375_v8, %v7451_v31 }
  0x35   : > { %15534 = vst [vmem:[#allocation42_spill] sm:$0xff] %v7696_v45  ;;  %15535 = vst [vmem:[#allocation43_spill] sm:$0xff] %v7700_v22  ;;  %v2651_v59 = vmul.f32 %v7700_v22, %v7418_v20  ;;  %v7716_v44 = vmul.f32 %v7700_v22, %v7476_v42  ;;  %v15539_v58 = vrot.slane %v7639_v33, 2  ;;  %v2080_v63 = vsel %vm1581_vm1, %v2078_v48, %v14616_v46 }
  0x36   : > { %15536 = vst [vmem:[#allocation44_spill] sm:$0xff] %v7705_v6  ;;  %15537 = vst [vmem:[#allocation45_spill] sm:$0xff] %v7709_v50  ;;  %v1762_v40 = vadd.f32 %v1708_v62, %v1638_v53  ;;  %v15540_v7 = vrot.slane %v7661_v32, 2  ;;  %v2575_v53 = vrot.slane %v2527_v57, 3  ;;  %v2775_v22 = vmul.f32 %v7705_v6, %v7436_v26 }
  0x37   : > { %15538 = vst [vmem:[#allocation46_spill] sm:$0xff] %v7716_v44  ;;  %v1956_v49 = vsel %vm1581_vm1, %v1954_v23, %v15539_v58  ;;  %v7732_v33 = vmul.f32 %v7705_v6, %v7516_v60  ;;  %v2699_v23 = vrot.slane %v2651_v59, 3  ;;  %v2899_v48 = vmul.f32 %v7709_v50, %v7439_v27 }
  0x38   : > { %v2204_v62 = vsel %vm1581_vm1, %v2202_v29, %v15540_v7  ;;  %v1886_v18 = vadd.f32 %v1832_v24, %v1762_v40  ;;  %v7739_v29 = vrot.slane %v7407_v16, %v7451_v31  ;;  %v15543_v7 = vrot.slane %v7679_v54, 2 }
  0x39   : > { %15541 = vst [vmem:[#allocation47_spill] sm:$0xff] %v7732_v33  ;;  %v15544_v40 = vrot.slane %v7688_v41, 3  ;;  %v7749_v59 = vrot.slane %v7423_v21, %v7451_v31  ;;  %v7753_v58 = vmul.f32 %v7709_v50, %v7524_v1  ;;  %v15549_v31 = vrot.slane %v7696_v45, 3 }
  0x3a   : > { %15542 = vst [vmem:[#allocation48_spill] sm:$0xff] %v7739_v29  ;;  %v2010_v24 = vadd.f32 %v1956_v49, %v1886_v18  ;;  %v2328_v57 = vsel %vm1581_vm1, %v2326_v39, %v15543_v7  ;;  %v3023_v38 = vmul.f32 %v7739_v29, %v7464_v37  ;;  %v7759_v49 = vmul.f32 %v7739_v29, %v7538_v28 }
  0x3b   : > { %v2453_v46 = vsel %vm2450_vm2, %v2451_v0, %v15544_v40  ;;  %15545 = vst [vmem:[#allocation49_spill] sm:$0xff] %v7749_v59  ;;  %15546 = vst [vmem:[#allocation50_spill] sm:$0xff] %v7753_v58  ;;  %v7763_v39 = vrot.slane %v7352_v2, %v7458_v35  ;;  %v2577_v18 = vsel %vm2450_vm2, %v2575_v53, %v15549_v31  ;;  %v2823_v7 = vrot.slane %v2775_v22, 3 }
  0x3c   : > { %15547 = vst [vmem:[#allocation51_spill] sm:$0xff] %v7759_v49  ;;  %v2134_v0 = vadd.f32 %v2080_v63, %v2010_v24  ;;  %v3147_v40 = vmul.f32 %v7749_v59, %v7486_v47  ;;  %v15550_v41 = vrot.slane %v7716_v44, 3  ;;  %v2947_v61 = vrot.slane %v2899_v48, 3 }
  0x3d   : > { %15548 = vst [vmem:[#allocation52_spill] sm:$0xff] %v7763_v39  ;;  %v7776_v29 = vmul.f32 %v7749_v59, %v7553_v43  ;;  %v3271_v24 = vmul.f32 %v7763_v39, %v7399_v14  ;;  %v7782_v22 = vmul.f32 %v7763_v39, %v7415_v19  ;;  %v7786_v53 = vrot.slane %v7357_v3, %v7458_v35 }
  0x3e   : > { %v2701_v54 = vsel %vm2450_vm2, %v2699_v23, %v15550_v41  ;;  %v2258_v63 = vadd.f32 %v2204_v62, %v2134_v0  ;;  %v3071_v23 = vrot.slane %v3023_v38, 3  ;;  %v7792_v31 = vrot.slane %v7362_v4, %v7458_v35 }
  0x3f   : > { %15551 = vst [vmem:[#allocation53_spill] sm:$0xff] %v7776_v29  ;;  %15552 = vst [vmem:[#allocation54_spill] sm:$0xff] %v7782_v22  ;;  %v3195_v0 = vrot.slane %v3147_v40, 3  ;;  %v3396_v32 = vmul.f32 %v7786_v53, %v7402_v15  ;;  %v7798_v44 = vmul.f32 %v7786_v53, %v7461_v36  ;;  %v15559_v45 = vrot.slane %v7732_v33, 3 }
  0x40   : > { %15553 = vst [vmem:[#allocation55_spill] sm:$0xff] %v7786_v53  ;;  %15554 = vst [vmem:[#allocation56_spill] sm:$0xff] %v7792_v31  ;;  %v2382_v62 = vadd.f32 %v2328_v57, %v2258_v63  ;;  %v3520_v38 = vmul.f32 %v7792_v31, %v7418_v20  ;;  %v7805_v48 = vmul.f32 %v7792_v31, %v7476_v42  ;;  %v3320_v63 = vrot.slane %v3271_v24, 4 }
  0x41   : > { %15555 = vst [vmem:[#allocation57_spill] sm:$0xff] %v7798_v44  ;;  %v7809_v57 = vrot.slane %v7368_v5, %v7458_v35  ;;  %v7814_v53 = vrot.slane %v7375_v8, %v7458_v35  ;;  %v2825_v39 = vsel %vm2450_vm2, %v2823_v7, %v15559_v45  ;;  %v15560_v59 = vrot.slane %v7753_v58, 3 }
  0x42   : > { %15556 = vst [vmem:[#allocation58_spill] sm:$0xff] %v7805_v48  ;;  %v2507_v40 = vadd.f32 %v2453_v46, %v2382_v62  ;;  %v15561_v50 = vrot.slane %v7759_v49, 3  ;;  %v3444_v46 = vrot.slane %v3396_v32, 4  ;;  %v14644_v62 = vrot.slane %v7798_v44, 4 }
  0x43   : > { %15557 = vst [vmem:[#allocation59_spill] sm:$0xff] %v7809_v57  ;;  %15558 = vst [vmem:[#allocation60_spill] sm:$0xff] %v7814_v53  ;;  %v2949_v31 = vsel %vm2450_vm2, %v2947_v61, %v15560_v59  ;;  %v3568_v41 = vrot.slane %v3520_v38, 4  ;;  %v3644_v33 = vmul.f32 %v7809_v57, %v7436_v26  ;;  %v7831_v45 = vmul.f32 %v7809_v57, %v7516_v60 }
  0x44   : > { %v3073_v6 = vsel %vm2450_vm2, %v3071_v23, %v15561_v50  ;;  %v2631_v24 = vadd.f32 %v2577_v18, %v2507_v40  ;;  %v3768_v61 = vmul.f32 %v7814_v53, %v7439_v27  ;;  %v7837_v50 = vrot.slane %v7407_v16, %v7458_v35 }
  0x45   : > { %15562 = vst [vmem:[#allocation61_spill] sm:$0xff] %v7831_v45  ;;  %v15564_v59 = vrot.slane %v7776_v29, 3  ;;  %v15565_v7 = vrot.slane %v7782_v22, 4  ;;  %v7847_v38 = vrot.slane %v7423_v21, %v7458_v35  ;;  %v7851_v40 = vmul.f32 %v7814_v53, %v7524_v1 }
  0x46   : > { %15563 = vst [vmem:[#allocation62_spill] sm:$0xff] %v7837_v50  ;;  %v2755_v32 = vadd.f32 %v2701_v54, %v2631_v24  ;;  %v3892_v30 = vmul.f32 %v7837_v50, %v7464_v37  ;;  %v7857_v54 = vmul.f32 %v7837_v50, %v7538_v28  ;;  %v3446_v35 = vsel %vm3319_vm3, %v3444_v46, %v14644_v62 }
  0x47   : > { %v3197_v18 = vsel %vm2450_vm2, %v3195_v0, %v15564_v59  ;;  %v3322_v23 = vsel %vm3319_vm3, %v3320_v63, %v15565_v7  ;;  %15566 = vst [vmem:[#allocation63_spill] sm:$0xff] %v7847_v38  ;;  %15567 = vst [vmem:[#allocation64_spill] sm:$0xff] %v7851_v40  ;;  %v7861_v0 = vrot.slane %v7352_v2, %v7498_v51  ;;  %v15570_v24 = vrot.slane %v7805_v48, 4 }
  0x48   : > { %15568 = vst [vmem:[#allocation65_spill] sm:$0xff] %v7857_v54  ;;  %v2879_v63 = vadd.f32 %v2825_v39, %v2755_v32  ;;  %v4016_v7 = vmul.f32 %v7847_v38, %v7486_v47  ;;  %v3692_v22 = vrot.slane %v3644_v33, 4  ;;  %v3816_v49 = vrot.slane %v3768_v61, 4 }
  0x49   : > { %15569 = vst [vmem:[#allocation66_spill] sm:$0xff] %v7861_v0  ;;  %v3570_v59 = vsel %vm3319_vm3, %v3568_v41, %v15570_v24  ;;  %v7874_v58 = vmul.f32 %v7847_v38, %v7553_v43  ;;  %v4140_v32 = vmul.f32 %v7861_v0, %v7399_v14  ;;  %v7880_v46 = vmul.f32 %v7861_v0, %v7415_v19 }
  0x4a   : > { %v3003_v39 = vadd.f32 %v2949_v31, %v2879_v63  ;;  %v7884_v41 = vrot.slane %v7357_v3, %v7498_v51  ;;  %v3940_v61 = vrot.slane %v3892_v30, 4  ;;  %v7890_v31 = vrot.slane %v7362_v4, %v7498_v51 }
  0x4b   : > { %15571 = vst [vmem:[#allocation67_spill] sm:$0xff] %v7874_v58  ;;  %15572 = vst [vmem:[#allocation68_spill] sm:$0xff] %v7880_v46  ;;  %v4064_v62 = vrot.slane %v4016_v7, 4  ;;  %v7931_v33 = vrot.slane %v7407_v16, %v7498_v51 }
  0x4c   : > { %15573 = vst [vmem:[#allocation69_spill] sm:$0xff] %v7884_v41  ;;  %15574 = vst [vmem:[#allocation70_spill] sm:$0xff] %v7890_v31  ;;  %v3127_v63 = vadd.f32 %v3073_v6, %v3003_v39  ;;  %v4265_v29 = vmul.f32 %v7884_v41, %v7402_v15  ;;  %v7896_v48 = vmul.f32 %v7884_v41, %v7461_v36  ;;  %v4189_v39 = vrot.slane %v4140_v32, 5 }
  0x4d   : > { %v4389_v30 = vmul.f32 %v7890_v31, %v7418_v20  ;;  %v7903_v24 = vmul.f32 %v7890_v31, %v7476_v42  ;;  %v7907_v6 = vrot.slane %v7368_v5, %v7498_v51  ;;  %v7912_v41 = vrot.slane %v7375_v8, %v7498_v51  ;;  %15581 = vst [vmem:[#allocation77_spill] sm:$0xff] %v7931_v33 }
  0x4e   : > { %15575 = vst [vmem:[#allocation71_spill] sm:$0xff] %v7896_v48  ;;  %v3251_v7 = vadd.f32 %v3197_v18, %v3127_v63  ;;  %v4313_v44 = vrot.slane %v4265_v29, 5  ;;  %v4761_v29 = vmul.f32 %v7931_v33, %v7464_v37 }
  0x4f   : > { %15576 = vst [vmem:[#allocation72_spill] sm:$0xff] %v7903_v24  ;;  %15577 = vst [vmem:[#allocation73_spill] sm:$0xff] %v7907_v6  ;;  %v4513_v38 = vmul.f32 %v7907_v6, %v7436_v26  ;;  %v7919_v31 = vmul.f32 %v7907_v6, %v7516_v60  ;;  %v4437_v53 = vrot.slane %v4389_v30, 5  ;;  %v4637_v18 = vmul.f32 %v7912_v41, %v7439_v27 }
  0x50   : > { %15578 = vst [vmem:[#allocation74_spill] sm:$0xff] %v7912_v41  ;;  %v3376_v50 = vadd.f32 %v3322_v23, %v3251_v7  ;;  %v7925_v32 = vmul.f32 %v7912_v41, %v7524_v1  ;;  %v7936_v30 = vrot.slane %v7423_v21, %v7498_v51  ;;  %v7940_v7 = vadd.f32 %v7510_v56, %v7502_v52 }
  0x51   : > { %15579 = vst [vmem:[#allocation75_spill] sm:$0xff] %v7919_v31  ;;  %v4561_v63 = vrot.slane %v4513_v38, 5  ;;  %v4685_v57 = vrot.slane %v4637_v18, 5  ;;  %v15583_v38 = vrot.slane %v7831_v45, 4  ;;  %v15585_v18 = vrot.slane %v7851_v40, 4 }
  0x52   : > { %15580 = vst [vmem:[#allocation76_spill] sm:$0xff] %v7925_v32  ;;  %v3500_v6 = vadd.f32 %v3446_v35, %v3376_v50  ;;  %15582 = vst [vmem:[#allocation78_spill] sm:$0xff] %v7936_v30  ;;  %v7949_v50 = vrot.slane %v7352_v2, %v7506_v55  ;;  %v15586_v23 = vrot.slane %v7857_v54, 4  ;;  %v15587_v56 = vrot.slane %v7874_v58, 4 }
  0x53   : > { %v3694_v0 = vsel %vm3319_vm3, %v3692_v22, %v15583_v38  ;;  %v3818_v51 = vsel %vm3319_vm3, %v3816_v49, %v15585_v18  ;;  %v15588_v38 = vrot.slane %v7880_v46, 5  ;;  %v15589_v2 = vrot.slane %v7896_v48, 5 }
  0x54   : > { %15584 = vst [vmem:[#allocation79_spill] sm:$0xff] %v7949_v50  ;;  %v3624_v35 = vadd.f32 %v3570_v59, %v3500_v6  ;;  %v3942_v52 = vsel %vm3319_vm3, %v3940_v61, %v15586_v23  ;;  %v4066_v22 = vsel %vm3319_vm3, %v4064_v62, %v15587_v56  ;;  %v15590_v6 = vrot.slane %v7903_v24, 5 }
  0x55   : > { %v4191_v45 = vsel %vm4188_vm4, %v4189_v39, %v15588_v38  ;;  %v4315_v59 = vsel %vm4188_vm4, %v4313_v44, %v15589_v2  ;;  %v7971_v18 = vmul.f32 %v7931_v33, %v7538_v28  ;;  %v15592_v23 = vrot.slane %v7919_v31, 5 }
  0x56   : > { %v4439_v49 = vsel %vm4188_vm4, %v4437_v53, %v15590_v6  ;;  %v3748_v61 = vadd.f32 %v3694_v0, %v3624_v35  ;;  %v15593_v56 = vrot.slane %v7925_v32, 5  ;;  %v4885_v44 = vmul.f32 %v7936_v30, %v7486_v47 }
  0x57   : > { %15591 = vst [vmem:[#allocation80_spill] sm:$0xff] %v7971_v18  ;;  %v4563_v62 = vsel %vm4188_vm4, %v4561_v63, %v15592_v23  ;;  %v4809_v38 = vrot.slane %v4761_v29, 5  ;;  %v7983_v53 = vmul.f32 %v7936_v30, %v7553_v43  ;;  %v5009_v2 = vmul.f32 %v7949_v50, %v7399_v14 }
  0x58   : > { %v4687_v39 = vsel %vm4188_vm4, %v4685_v57, %v15593_v56  ;;  %v7989_v0 = vrot.slane %v7357_v3, %v7506_v55  ;;  %v3872_v63 = vadd.f32 %v3818_v51, %v3748_v61  ;;  %v7993_v35 = vmul.f32 %v7949_v50, %v7415_v19 }
  0x59   : > { %15594 = vst [vmem:[#allocation81_spill] sm:$0xff] %v7983_v53  ;;  %v7997_v57 = vrot.slane %v7362_v4, %v7506_v55  ;;  %v8001_v29 = vrot.slane %v7368_v5, %v7506_v55  ;;  %v8012_v19 = vrot.slane %v7375_v8, %v7506_v55  ;;  %v4933_v23 = vrot.slane %v4885_v44, 5 }
  0x5a   : > { %15595 = vst [vmem:[#allocation82_spill] sm:$0xff] %v7989_v0  ;;  %15596 = vst [vmem:[#allocation83_spill] sm:$0xff] %v7993_v35  ;;  %v5134_v14 = vmul.f32 %v7989_v0, %v7402_v15  ;;  %v8008_v3 = vmul.f32 %v7989_v0, %v7461_v36  ;;  %v3996_v51 = vadd.f32 %v3942_v52, %v3872_v63  ;;  %v5058_v52 = vrot.slane %v5009_v2, 6 }
  0x5b   : > { %15597 = vst [vmem:[#allocation84_spill] sm:$0xff] %v7997_v57  ;;  %15598 = vst [vmem:[#allocation85_spill] sm:$0xff] %v8001_v29  ;;  %v5258_v4 = vmul.f32 %v7997_v57, %v7418_v20  ;;  %v8018_v5 = vmul.f32 %v7997_v57, %v7476_v42  ;;  %v5382_v61 = vmul.f32 %v8001_v29, %v7436_v26  ;;  %v14670_v63 = vrot.slane %v7993_v35, 6 }
  0x5c   : > { %15599 = vst [vmem:[#allocation86_spill] sm:$0xff] %v8008_v3  ;;  %15600 = vst [vmem:[#allocation87_spill] sm:$0xff] %v8012_v19  ;;  %v8025_v6 = vmul.f32 %v8001_v29, %v7516_v60  ;;  %v4120_v8 = vadd.f32 %v4066_v22, %v3996_v51  ;;  %v5182_v32 = vrot.slane %v5134_v14, 6  ;;  %v14671_v31 = vrot.slane %v8008_v3, 6 }
  0x5d   : > { %15601 = vst [vmem:[#allocation88_spill] sm:$0xff] %v8018_v5  ;;  %v5306_v24 = vrot.slane %v5258_v4, 6  ;;  %v14673_v48 = vrot.slane %v8018_v5, 6  ;;  %v8032_v44 = vmul.f32 %v8012_v19, %v7439_v27  ;;  %v5430_v46 = vrot.slane %v5382_v61, 6  ;;  %v15613_v5 = vld [vmem:[#allocation10_spill] sm:$0xff] }
  0x5e   : > { %15602 = vst [vmem:[#allocation89_spill] sm:$0xff] %v8025_v6  ;;  %v4245_v56 = vadd.f32 %v4191_v45, %v4120_v8  ;;  %v8037_v22 = vrot.slane %v7407_v16, %v7506_v55  ;;  %v15604_v2 = vrot.slane %v7971_v18, 5  ;;  %v8044_v51 = vmul.f32 %v8012_v19, %v7524_v1  ;;  %v15615_v18 = vld [vmem:[#allocation12_spill] sm:$0xff] }
  0x5f   : > { %v8048_v4 = vrot.slane %v7423_v21, %v7506_v55  ;;  %v414_v45 = vmul.f32 %v7381_v9, %v7402_v15  ;;  %v15607_v8 = vrot.slane %v7983_v53, 5  ;;  %v5060_v21 = vsel %vm5057_vm5, %v5058_v52, %v14670_v63 }
  0x60   : > { %15603 = vst [vmem:[#allocation90_spill] sm:$0xff] %v8037_v22  ;;  %v4811_v14 = vsel %vm4188_vm4, %v4809_v38, %v15604_v2  ;;  %15605 = vst [vmem:[#allocation91_spill] sm:$0xff] %v8044_v51  ;;  %v4369_v61 = vadd.f32 %v4315_v59, %v4245_v56  ;;  %v8057_v58 = vmul.f32 %v8037_v22, %v7464_v37  ;;  %v5554_v63 = vrot.slane %v8032_v44, 6 }
  0x61   : > { %15606 = vst [vmem:[#allocation92_spill] sm:$0xff] %v8048_v4  ;;  %v4935_v16 = vsel %vm4188_vm4, %v4933_v23, %v15607_v8  ;;  %v8061_v38 = vmul.f32 %v8037_v22, %v7538_v28  ;;  %v5184_v55 = vsel %vm5057_vm5, %v5182_v32, %v14671_v31  ;;  %v450_v59 = vmul.f32 %v7384_v10, %v7418_v20 }
  0x62   : > { %v486_v23 = vmul.f32 %v7387_v11, %v7436_v26  ;;  %v4493_v56 = vadd.f32 %v4439_v49, %v4369_v61  ;;  %v5308_v2 = vsel %vm5057_vm5, %v5306_v24, %v14673_v48  ;;  %v15609_v8 = vrot.slane %v8025_v6, 6 }
  0x63   : > { %15608 = vst [vmem:[#allocation93_spill] sm:$0xff] %v8061_v38  ;;  %v5754_v31 = vmul.f32 %v8048_v4, %v7486_v47  ;;  %v466_v3 = vadd.f32 %v450_v59, %v414_v45  ;;  %v522_v49 = vmul.f32 %v7392_v12, %v7439_v27  ;;  %v5678_v24 = vrot.slane %v8057_v58, 6  ;;  %v8102_v59 = vld [vmem:[%s7389_s18 + $0xa8] sm:$0xff] }
  0x64   : > { %v8079_v52 = vsel %vm5057_vm5, %v5430_v46, %v15609_v8  ;;  %v4617_v61 = vadd.f32 %v4563_v62, %v4493_v56  ;;  %v8091_v46 = vmul.f32 %v8048_v4, %v7553_v43  ;;  %v558_v44 = vmul.f32 %v7410_v17, %v7464_v37 }
  0x65   : > { %v502_v8 = vadd.f32 %v486_v23, %v466_v3  ;;  %v667_v32 = vmul.f32 %v7396_v13, %v7402_v15  ;;  %v8099_v45 = vmul.f32 %v7396_v13, %v7461_v36  ;;  %v594_v58 = vmul.f32 %v7456_v34, %v7486_v47 }
  0x66   : > { %15610 = vst [vmem:[#allocation94_spill] sm:$0xff] %v8091_v46  ;;  %v4741_v62 = vadd.f32 %v4687_v39, %v4617_v61  ;;  %v792_v56 = vmul.f32 %v7433_v25, %v7418_v20  ;;  %v8110_v3 = vmul.f32 %v7433_v25, %v7476_v42  ;;  %v916_v35 = vmul.f32 %v15613_v5, %v7436_v26 }
  0x67   : > { %15611 = vst [vmem:[#allocation95_spill] sm:$0xff] %v8099_v45  ;;  %v538_v23 = vadd.f32 %v522_v49, %v502_v8  ;;  %v718_v48 = vrot.slane %v667_v32, 1  ;;  %v8118_v11 = vmul.f32 %v15613_v5, %v7516_v60  ;;  %v5802_v53 = vrot.slane %v5754_v31, 6  ;;  %v15616_v32 = vld [vmem:[#allocation13_spill] sm:$0xff] }
  0x68   : > { %15612 = vst [vmem:[#allocation96_spill] sm:$0xff] %v8110_v3  ;;  %v4865_v39 = vadd.f32 %v4811_v14, %v4741_v62  ;;  %v842_v61 = vrot.slane %v792_v56, 1  ;;  %v630_v49 = vmul.f32 %v15615_v18, %v8102_v59  ;;  %v1040_v8 = vmul.f32 %v15616_v32, %v7439_v27  ;;  %v15618_v62 = vld [vmem:[#allocation16_spill] sm:$0xff] }
  0x69   : > { %15614 = vst [vmem:[#allocation97_spill] sm:$0xff] %v8118_v11  ;;  %v574_v10 = vadd.f32 %v558_v44, %v538_v23  ;;  %v8127_v14 = vmul.f32 %v15616_v32, %v7524_v1  ;;  %v1164_v56 = vmul.f32 %v15618_v62, %v7464_v37  ;;  %v15619_v31 = vrot.slane %v8099_v45, 1  ;;  %v15622_v32 = vld [vmem:[#allocation18_spill] sm:$0xff] }
  0x6a   : > { %v4989_v6 = vadd.f32 %v4935_v16, %v4865_v39  ;;  %v966_v23 = vrot.slane %v916_v35, 1  ;;  %v8136_v54 = vmul.f32 %v15618_v62, %v7538_v28  ;;  %v15621_v39 = vrot.slane %v8110_v3, 1  ;;  %v15625_v35 = vld [vmem:[#allocation20_spill] sm:$0xff] }
  0x6b   : > { %15617 = vst [vmem:[#allocation98_spill] sm:$0xff] %v8127_v14  ;;  %v610_v12 = vadd.f32 %v594_v58, %v574_v10  ;;  %v720_v44 = vsel %vm712_vm0, %v718_v48, %v15619_v31  ;;  %v1288_v5 = vmul.f32 %v15622_v32, %v7486_v47  ;;  %v8145_v10 = vld [vmem:[%s7389_s18 + $0xb0] sm:$0xff]  ;;  %v1090_v45 = vrot.slane %v1040_v8, 1 }
  0x6c   : > { %15620 = vst [vmem:[#allocation99_spill] sm:$0xff] %v8136_v54  ;;  %v5114_v16 = vadd.f32 %v5060_v21, %v4989_v6  ;;  %v844_v9 = vsel %vm712_vm0, %v842_v61, %v15621_v39  ;;  %15623 = vst [vmem:[#allocation100_spill] sm:$0xff] %v8145_v10  ;;  %v8149_v48 = vmul.f32 %v15622_v32, %v7553_v43  ;;  %v1214_v61 = vrot.slane %v1164_v56, 1 }
  0x6d   : > { %v646_v58 = vadd.f32 %v630_v49, %v610_v12  ;;  %v1412_v6 = vmul.f32 %v15625_v35, %v8102_v59  ;;  %v8156_v39 = vmul.f32 %v15625_v35, %v8145_v10  ;;  %v14698_v3 = vrot.slane %v8136_v54, 1  ;;  %v15644_v54 = vld [vmem:[#allocation34_spill] sm:$0xff] }
  0x6e   : > { %15624 = vst [vmem:[#allocation101_spill] sm:$0xff] %v8149_v48  ;;  %v5238_v21 = vadd.f32 %v5184_v55, %v5114_v16  ;;  %v1338_v12 = vrot.slane %v1288_v5, 1  ;;  %v14697_v49 = vrot.slane %v8149_v48, 1  ;;  %v15627_v32 = vrot.slane %v8118_v11, 1 }
  0x6f   : > { %15626 = vst [vmem:[#allocation102_spill] sm:$0xff] %v8156_v39  ;;  %v771_v40 = vadd.f32 %v720_v44, %v646_v58  ;;  %v1462_v25 = vrot.slane %v1412_v6, 1  ;;  %v15628_v56 = vrot.slane %v8044_v51, 6  ;;  %v15629_v31 = vrot.slane %v8061_v38, 6  ;;  %v15632_v6 = vld [vmem:[#allocation21_spill] sm:$0xff] }
  0x70   : > { %v5362_v8 = vadd.f32 %v5308_v2, %v5238_v21  ;;  %v968_v62 = vsel %vm712_vm0, %v966_v23, %v15627_v32  ;;  %v15630_v5 = vrot.slane %v8091_v46, 6  ;;  %v15631_v32 = vrot.slane %v8127_v14, 1  ;;  %v15650_v46 = vld [vmem:[#allocation35_spill] sm:$0xff] }
  0x71   : > { %v5556_v16 = vsel %vm5057_vm5, %v5554_v63, %v15628_v56  ;;  %v5680_v44 = vsel %vm5057_vm5, %v5678_v24, %v15629_v31  ;;  %v895_v2 = vadd.f32 %v844_v9, %v771_v40  ;;  %v1536_v55 = vmul.f32 %v15632_v6, %v7402_v15  ;;  %v15634_v40 = vld [vmem:[#allocation25_spill] sm:$0xff] }
  0x72   : > { %v5804_v58 = vsel %vm5057_vm5, %v5802_v53, %v15630_v5  ;;  %v5486_v21 = vadd.f32 %v8079_v52, %v5362_v8  ;;  %v1092_v23 = vsel %vm712_vm0, %v1090_v45, %v15631_v32  ;;  %v8181_v63 = vmul.f32 %v15632_v6, %v7461_v36 }
  0x73   : > { %v1019_v24 = vadd.f32 %v968_v62, %v895_v2  ;;  %v1216_v53 = vsel %vm712_vm0, %v1214_v61, %v14698_v3  ;;  %v1340_v9 = vsel %vm712_vm0, %v1338_v12, %v14697_v49  ;;  %v1661_v52 = vmul.f32 %v15634_v40, %v7418_v20  ;;  %v15637_v62 = vld [vmem:[#allocation26_spill] sm:$0xff]  ;;  %v15639_v12 = vld [vmem:[#allocation27_spill] sm:$0xff] }
  0x74   : > { %15633 = vst [vmem:[#allocation103_spill] sm:$0xff] %v8181_v63  ;;  %v5610_v45 = vadd.f32 %v5556_v16, %v5486_v21  ;;  %v15635_v31 = vrot.slane %v8156_v39, 1  ;;  %v8196_v56 = vmul.f32 %v15634_v40, %v7476_v42  ;;  %v1785_v5 = vmul.f32 %v15637_v62, %v7436_v26  ;;  %v15641_v49 = vld [vmem:[#allocation31_spill] sm:$0xff] }
  0x75   : > { %v1143_v61 = vadd.f32 %v1092_v23, %v1019_v24  ;;  %v8202_v2 = vmul.f32 %v15637_v62, %v7516_v60  ;;  %v1909_v32 = vmul.f32 %v15639_v12, %v7439_v27  ;;  %v8208_v16 = vmul.f32 %v15639_v12, %v7524_v1  ;;  %v8216_v23 = vld [vmem:[%s14562_s2] ss:$0 sm:$0xff] }
  0x76   : > { %v1464_v8 = vsel %vm712_vm0, %v1462_v25, %v15635_v31  ;;  %15636 = vst [vmem:[#allocation104_spill] sm:$0xff] %v8196_v56  ;;  %v5734_v25 = vadd.f32 %v5680_v44, %v5610_v45  ;;  %v1587_v21 = vrot.slane %v1536_v55, 2  ;;  %v2033_v3 = vmul.f32 %v15641_v49, %v7464_v37  ;;  %15642 = vst [vmem:[#allocation107_spill] sm:$0xff] %v8216_v23  ;;  %v15648_v45 = vld [vmem:[#allocation29_spill] sm:$0xff] }
  0x77   : > { %15638 = vst [vmem:[#allocation105_spill] sm:$0xff] %v8202_v2  ;;  %15640 = vst [vmem:[#allocation106_spill] sm:$0xff] %v8208_v16  ;;  %v1267_v24 = vadd.f32 %v1216_v53, %v1143_v61  ;;  %v1711_v39 = vrot.slane %v1661_v52, 2  ;;  %v8220_v48 = vmul.f32 %v15641_v49, %v7538_v28  ;;  %v2157_v44 = vmul.f32 %v15644_v54, %v7486_v47  ;;  %v15668_v49 = vld [vmem:[#allocation49_spill] sm:$0xff] }
  0x78   : > { %v5858_v55 = vadd.f32 %v5804_v58, %v5734_v25  ;;  %v1835_v31 = vrot.slane %v1785_v5, 2  ;;  %v8227_v14 = vmul.f32 %v15644_v54, %v7553_v43  ;;  %v1959_v53 = vrot.slane %v1909_v32, 2 }
  0x79   : > { %15643 = vst [vmem:[#allocation108_spill] sm:$0xff] %v8220_v48  ;;  %v1391_v11 = vadd.f32 %v1340_v9, %v1267_v24  ;;  %v15647_v38 = vrot.slane %v8181_v63, 2  ;;  %v2083_v25 = vrot.slane %v2033_v3, 2  ;;  %v14709_v5 = vrot.slane %v8220_v48, 2 }
  0x7a   : > { %15645 = vst [vmem:[#allocation109_spill] sm:$0xff] %v8227_v14  ;;  %v8232_v61 = vadd.f32 %v8216_v23, %v5858_v55  ;;  %v501_v51 = vadd.f32 %v15648_v45, %v7940_v7  ;;  %v2207_v9 = vrot.slane %v2157_v44, 2  ;;  %v15649_v55 = vrot.slane %v8196_v56, 2  ;;  %v15654_v45 = vld [vmem:[#allocation38_spill] sm:$0xff]  ;;  %v15665_v23 = vld [vmem:[#allocation48_spill] sm:$0xff] }
  0x7b   : > { %v1589_v58 = vsel %vm1581_vm1, %v1587_v21, %v15647_v38  ;;  %v1515_v54 = vadd.f32 %v1464_v8, %v1391_v11  ;;  %v2281_v38 = vmul.f32 %v15650_v46, %v8102_v59  ;;  %v8250_v3 = vmul.f32 %v15650_v46, %v8145_v10 }
  0x7c   : > { %15646 = vst [vmem:[#allocation110_spill] sm:$0xff] %v8232_v61  ;;  %v5898_v32 = vsel %vm5897_vm6, %v8232_v61, 0.0  ;;  %v1713_v52 = vsel %vm1581_vm1, %v1711_v39, %v15649_v55  ;;  %v15652_v11 = vrot.slane %v8202_v2, 2  ;;  %v15653_v21 = vrot.slane %v8208_v16, 2  ;;  %v15661_v16 = vld [vmem:[#allocation44_spill] sm:$0xff] }
  0x7d   : > { %15651 = vst [vmem:[#allocation29_spill] sm:$0xff] %v8250_v3  ;;  %5899 = vadd.xlane.f32.xlu0 %v5898_v32  ;;  %v1640_v7 = vadd.f32 %v1589_v58, %v1515_v54  ;;  %v2405_v39 = vmul.f32 %v15654_v45, %v7402_v15  ;;  %v2085_v55 = vsel %vm1581_vm1, %v2083_v25, %v14709_v5  ;;  %v15656_v54 = vld [vmem:[#allocation39_spill] sm:$0xff]  ;;  %v2331_v5 = vrot.slane %v2281_v38, 2 }
  0x7e   : > { %v1837_v8 = vsel %vm1581_vm1, %v1835_v31, %v15652_v11  ;;  %v1961_v44 = vsel %vm1581_vm1, %v1959_v53, %v15653_v21  ;;  %v8265_v24 = vmul.f32 %v15654_v45, %v7461_v36  ;;  %v2530_v58 = vmul.f32 %v15656_v54, %v7418_v20  ;;  %v15659_v21 = vld [vmem:[#allocation43_spill] sm:$0xff] }
  0x7f   : > { %v8271_v31 = vmul.f32 %v15656_v54, %v7476_v42  ;;  %v1764_v32 = vadd.f32 %v1713_v52, %v1640_v7  ;;  %v15658_v53 = vrot.slane %v8227_v14, 2  ;;  %v2654_v61 = vmul.f32 %v15659_v21, %v7436_v26 }
  0x80   : > { %15655 = vst [vmem:[#allocation111_spill] sm:$0xff] %v8265_v24  ;;  %v8280_v25 = vmul.f32 %v15659_v21, %v7516_v60  ;;  %v2778_v2 = vmul.f32 %v15661_v16, %v7439_v27  ;;  %v8287_v52 = vmul.f32 %v15661_v16, %v7524_v1  ;;  %v2456_v14 = vrot.slane %v2405_v39, 3 }
  0x81   : > { %15657 = vst [vmem:[#allocation112_spill] sm:$0xff] %v8271_v31  ;;  %v2209_v11 = vsel %vm1581_vm1, %v2207_v9, %v15658_v53  ;;  %v1888_v7 = vadd.f32 %v1837_v8, %v1764_v32  ;;  %v15663_v9 = vld [vmem:[#allocation45_spill] sm:$0xff]  ;;  %v2580_v63 = vrot.slane %v2530_v58, 3  ;;  %v3026_v21 = vmul.f32 %v15665_v23, %v7486_v47  ;;  %v15667_v58 = vld [vmem:[#allocation32_spill] sm:$0xff] }
  0x82   : > { %15660 = vst [vmem:[#allocation113_spill] sm:$0xff] %v8280_v25  ;;  %15662 = vst [vmem:[#allocation114_spill] sm:$0xff] %v8287_v52  ;;  %v2902_v53 = vmul.f32 %v15663_v9, %v7464_v37  ;;  %v8293_v56 = vmul.f32 %v15663_v9, %v7538_v28  ;;  %v2704_v16 = vrot.slane %v2654_v61, 3  ;;  %v14727_v8 = vrot.slane %v8280_v25, 3  ;;  %v15685_v25 = vld [vmem:[#allocation62_spill] sm:$0xff] }
  0x83   : > { %v2012_v54 = vadd.f32 %v1961_v44, %v1888_v7  ;;  %v8302_v39 = vmul.f32 %v15665_v23, %v7553_v43  ;;  %v2828_v32 = vrot.slane %v2778_v2, 3  ;;  %v8307_v46 = vadd.f32 %v15667_v58, %v501_v51 }
  0x84   : > { %15664 = vst [vmem:[#allocation115_spill] sm:$0xff] %v8293_v56  ;;  %v2952_v45 = vrot.slane %v2902_v53, 3  ;;  %v3150_v44 = vmul.f32 %v15668_v49, %v8102_v59  ;;  %v8313_v61 = vmul.f32 %v15668_v49, %v8145_v10  ;;  %v15670_v7 = vrot.slane %v8250_v3, 2  ;;  %v15673_v3 = vld [vmem:[#allocation52_spill] sm:$0xff] }
  0x85   : > { %15666 = vst [vmem:[#allocation116_spill] sm:$0xff] %v8302_v39  ;;  %v2136_v48 = vadd.f32 %v2085_v55, %v2012_v54  ;;  %v15671_v9 = vrot.slane %v8265_v24, 3  ;;  %v3076_v38 = vrot.slane %v3026_v21, 3  ;;  %v14731_v51 = vrot.slane %v8302_v39, 3  ;;  %v15683_v39 = vld [vmem:[#allocation60_spill] sm:$0xff] }
  0x86   : > { %15669 = vst [vmem:[#allocation32_spill] sm:$0xff] %v8313_v61  ;;  %v2333_v2 = vsel %vm1581_vm1, %v2331_v5, %v15670_v7  ;;  %v15672_v55 = vrot.slane %v8271_v31, 3  ;;  %v2706_v49 = vsel %vm2450_vm2, %v2704_v16, %v14727_v8  ;;  %v3274_v23 = vmul.f32 %v15673_v3, %v7402_v15 }
  0x87   : > { %v2458_v53 = vsel %vm2450_vm2, %v2456_v14, %v15671_v9  ;;  %v2260_v58 = vadd.f32 %v2209_v11, %v2136_v48  ;;  %v15674_v5 = vrot.slane %v8287_v52, 3  ;;  %v15675_v14 = vrot.slane %v8293_v56, 3 }
  0x88   : > { %v2582_v54 = vsel %vm2450_vm2, %v2580_v63, %v15672_v55  ;;  %v8338_v48 = vmul.f32 %v15673_v3, %v7461_v36  ;;  %v15677_v63 = vld [vmem:[#allocation55_spill] sm:$0xff]  ;;  %v3200_v16 = vrot.slane %v3150_v44, 3  ;;  %v3325_v55 = vrot.slane %v3274_v23, 4  ;;  %v15689_v23 = vld [vmem:[#allocation66_spill] sm:$0xff] }
  0x89   : > { %v2830_v7 = vsel %vm2450_vm2, %v2828_v32, %v15674_v5  ;;  %v2954_v21 = vsel %vm2450_vm2, %v2952_v45, %v15675_v14  ;;  %v3399_v11 = vmul.f32 %v15677_v63, %v7418_v20  ;;  %v2384_v9 = vadd.f32 %v2333_v2, %v2260_v58  ;;  %v15679_v45 = vld [vmem:[#allocation56_spill] sm:$0xff]  ;;  %v15681_v2 = vld [vmem:[#allocation59_spill] sm:$0xff] }
  0x8a   : > { %15676 = vst [vmem:[#allocation117_spill] sm:$0xff] %v8338_v48  ;;  %v8345_v8 = vmul.f32 %v15677_v63, %v7476_v42  ;;  %v3078_v32 = vsel %vm2450_vm2, %v3076_v38, %v14731_v51  ;;  %v3523_v5 = vmul.f32 %v15679_v45, %v7436_v26  ;;  %v8354_v14 = vmul.f32 %v15679_v45, %v7516_v60 }
  0x8b   : > { %v3647_v44 = vmul.f32 %v15681_v2, %v7439_v27  ;;  %v2509_v58 = vadd.f32 %v2458_v53, %v2384_v9  ;;  %v8360_v56 = vmul.f32 %v15681_v2, %v7524_v1  ;;  %v3771_v52 = vmul.f32 %v15683_v39, %v7464_v37  ;;  %v15687_v9 = vld [vmem:[#allocation63_spill] sm:$0xff] }
  0x8c   : > { %15678 = vst [vmem:[#allocation118_spill] sm:$0xff] %v8345_v8  ;;  %15680 = vst [vmem:[#allocation119_spill] sm:$0xff] %v8354_v14  ;;  %v3449_v51 = vrot.slane %v3399_v11, 4  ;;  %v8367_v26 = vmul.f32 %v15683_v39, %v7538_v28  ;;  %v3895_v31 = vmul.f32 %v15685_v25, %v7486_v47  ;;  %v8374_v53 = vmul.f32 %v15685_v25, %v7553_v43 }
  0x8d   : > { %15682 = vst [vmem:[#allocation120_spill] sm:$0xff] %v8360_v56  ;;  %v2633_v27 = vadd.f32 %v2582_v54, %v2509_v58  ;;  %v4019_v24 = vmul.f32 %v15687_v9, %v8102_v59  ;;  %v3573_v2 = vrot.slane %v3523_v5, 4  ;;  %v3697_v38 = vrot.slane %v3647_v44, 4 }
  0x8e   : > { %15684 = vst [vmem:[#allocation121_spill] sm:$0xff] %v8367_v26  ;;  %15686 = vst [vmem:[#allocation122_spill] sm:$0xff] %v8374_v53  ;;  %v8381_v39 = vmul.f32 %v15687_v9, %v8145_v10  ;;  %v3821_v58 = vrot.slane %v3771_v52, 4  ;;  %v4143_v63 = vmul.f32 %v15689_v23, %v7402_v15  ;;  %v3945_v3 = vrot.slane %v3895_v31, 4 }
  0x8f   : > { %v2757_v45 = vadd.f32 %v2706_v49, %v2633_v27  ;;  %v8390_v5 = vmul.f32 %v15689_v23, %v7461_v36  ;;  %v15691_v11 = vrot.slane %v8313_v61, 3  ;;  %v4069_v27 = vrot.slane %v4019_v24, 4  ;;  %v15694_v36 = vld [vmem:[#allocation69_spill] sm:$0xff] }
  0x90   : > { %15688 = vst [vmem:[#allocation123_spill] sm:$0xff] %v8381_v39  ;;  %v15692_v15 = vrot.slane %v8338_v48, 4  ;;  %v15693_v31 = vrot.slane %v8345_v8, 4  ;;  %v4268_v54 = vmul.f32 %v15694_v36, %v7418_v20  ;;  %v15696_v24 = vrot.slane %v8354_v14, 4  ;;  %v8512_v14 = vld [vmem:[%s7389_s18 + $0x68] sm:$0xff] }
  0x91   : > { %15690 = vst [vmem:[#allocation124_spill] sm:$0xff] %v8390_v5  ;;  %v2881_v44 = vadd.f32 %v2830_v7, %v2757_v45  ;;  %v3202_v49 = vsel %vm2450_vm2, %v3200_v16, %v15691_v11  ;;  %v8406_v7 = vmul.f32 %v15694_v36, %v7476_v42  ;;  %v4194_v11 = vrot.slane %v4143_v63, 5  ;;  %15718 = vst [vmem:[#allocation140_spill] sm:$0xff] %v8512_v14 }
  0x92   : > { %v3327_v25 = vsel %vm3319_vm3, %v3325_v55, %v15692_v15  ;;  %v3451_v12 = vsel %vm3319_vm3, %v3449_v51, %v15693_v31  ;;  %v3575_v45 = vsel %vm3319_vm3, %v3573_v2, %v15696_v24  ;;  %v15697_v15 = vrot.slane %v8360_v56, 4 }
  0x93   : > { %15695 = vst [vmem:[#allocation125_spill] sm:$0xff] %v8406_v7  ;;  %v3005_v16 = vadd.f32 %v2954_v21, %v2881_v44  ;;  %v15698_v51 = vrot.slane %v8367_v26, 4  ;;  %v15699_v31 = vrot.slane %v8374_v53, 4  ;;  %v8424_v21 = vld [vmem:[%s7389_s18 + $0x48] sm:$0xff]  ;;  %v15701_v44 = vld [vmem:[#allocation70_spill] sm:$0xff]  ;;  %v15702_v24 = vrot.slane %v8381_v39, 4 }
  0x94   : > { %v3699_v52 = vsel %vm3319_vm3, %v3697_v38, %v15697_v15  ;;  %15700 = vst [vmem:[#allocation126_spill] sm:$0xff] %v8424_v21  ;;  %v4392_v63 = vmul.f32 %v8424_v21, %v15701_v44  ;;  %v8435_v38 = vmul.f32 %v15701_v44, %v7516_v60  ;;  %v15705_v15 = vld [vmem:[#allocation73_spill] sm:$0xff]  ;;  %v15707_v60 = vrot.slane %v8390_v5, 5  ;;  %v8482_v26 = vld [vmem:[%s7389_s18 + $0x30] sm:$0xff] }
  0x95   : > { %v3823_v20 = vsel %vm3319_vm3, %v3821_v58, %v15698_v51  ;;  %v8421_v42 = vsel %vm3319_vm3, %v3945_v3, %v15699_v31  ;;  %v3129_v2 = vadd.f32 %v3078_v32, %v3005_v16  ;;  %v8431_v55 = vsel %vm3319_vm3, %v4069_v27, %v15702_v24  ;;  %v8438_v58 = vld [vmem:[%s7389_s18 + $0x60] sm:$0xff]  ;;  %15713 = vst [vmem:[#allocation135_spill] sm:$0xff] %v8482_v26 }
  0x96   : > { %15703 = vst [vmem:[#allocation127_spill] sm:$0xff] %v8435_v38  ;;  %15704 = vst [vmem:[#allocation128_spill] sm:$0xff] %v8438_v58  ;;  %v4516_v3 = vmul.f32 %v8438_v58, %v15705_v15  ;;  %v4318_v51 = vrot.slane %v4268_v54, 5  ;;  %v8445_v32 = vmul.f32 %v15705_v15, %v7524_v1  ;;  %v4640_v27 = vmul.f32 %v7912_v41, %v7464_v37 }
  0x97   : > { %v3253_v16 = vadd.f32 %v3202_v49, %v3129_v2  ;;  %v8452_v24 = vsel %vm4188_vm4, %v4194_v11, %v15707_v60  ;;  %v8456_v54 = vmul.f32 %v7912_v41, %v7538_v28  ;;  %v4764_v31 = vmul.f32 %v7931_v33, %v7486_v47  ;;  %v7097_v60 = vld [vmem:[%s7389_s18 + $0x18] sm:$0xff] }
  0x98   : > { %15706 = vst [vmem:[#allocation129_spill] sm:$0xff] %v8445_v32  ;;  %v4442_v1 = vrot.slane %v4392_v63, 5  ;;  %v8462_v39 = vmul.f32 %v7931_v33, %v7553_v43  ;;  %v4888_v37 = vmul.f32 %v7936_v30, %v8102_v59  ;;  %v8468_v49 = vmul.f32 %v7936_v30, %v8145_v10  ;;  %v8475_v43 = vld [vmem:[%s7389_s18 + $0x20] sm:$0xff]  ;;  %v8488_v28 = vld [vmem:[%s7389_s18 + $0x38] sm:$0xff] }
  0x99   : > { %15708 = vst [vmem:[#allocation130_spill] sm:$0xff] %v8456_v54  ;;  %v3378_v11 = vadd.f32 %v3327_v25, %v3253_v16  ;;  %v4566_v2 = vrot.slane %v4516_v3, 5  ;;  %v5012_v47 = vmul.f32 %v7097_v60, %v7949_v50  ;;  %v4690_v5 = vrot.slane %v4640_v27, 5  ;;  %15711 = vst [vmem:[#allocation133_spill] sm:$0xff] %v8475_v43 }
  0x9a   : > { %15709 = vst [vmem:[#allocation131_spill] sm:$0xff] %v8462_v39  ;;  %15710 = vst [vmem:[#allocation132_spill] sm:$0xff] %v8468_v49  ;;  %v8479_v53 = vmul.f32 %v8475_v43, %v7949_v50  ;;  %v5137_v25 = vmul.f32 %v8482_v26, %v7989_v0  ;;  %v4814_v60 = vrot.slane %v4764_v31, 5  ;;  %v8492_v27 = vmul.f32 %v8488_v28, %v7989_v0  ;;  %v8500_v31 = vld [vmem:[%s7389_s18 + $0x50] sm:$0xff] }
  0x9b   : > { %v3502_v16 = vadd.f32 %v3451_v12, %v3378_v11  ;;  %15714 = vst [vmem:[#allocation136_spill] sm:$0xff] %v8488_v28  ;;  %v4938_v56 = vrot.slane %v4888_v37, 5  ;;  %v5261_v26 = vmul.f32 %v8424_v21, %v7997_v57  ;;  %v5063_v11 = vrot.slane %v5012_v47, 6  ;;  %15716 = vst [vmem:[#allocation138_spill] sm:$0xff] %v8500_v31  ;;  %v8525_v21 = vld [vmem:[%s7389_s18 + $0x78] sm:$0xff] }
  0x9c   : > { %15712 = vst [vmem:[#allocation134_spill] sm:$0xff] %v8479_v53  ;;  %15715 = vst [vmem:[#allocation137_spill] sm:$0xff] %v8492_v27  ;;  %v8504_v8 = vmul.f32 %v8500_v31, %v7997_v57  ;;  %v5187_v48 = vrot.slane %v5137_v25, 6  ;;  %v8509_v37 = vmul.f32 %v8438_v58, %v8001_v29  ;;  %v15721_v25 = vrot.slane %v8435_v38, 5 }
  0x9d   : > { %v3626_v12 = vadd.f32 %v3575_v45, %v3502_v16  ;;  %v8516_v45 = vmul.f32 %v8512_v14, %v8001_v29  ;;  %v15720_v16 = vrot.slane %v8406_v7, 5  ;;  %15722 = vst [vmem:[#allocation142_spill] sm:$0xff] %v8525_v21  ;;  %v8529_v58 = vmul.f32 %v8525_v21, %v8012_v19  ;;  %v8617_v7 = vld [vmem:[%s7389_s18 + $0x88] sm:$0x3f] }
  0x9e   : > { %15717 = vst [vmem:[#allocation139_spill] sm:$0xff] %v8504_v8  ;;  %v4444_v63 = vsel %vm4188_vm4, %v4442_v1, %v15721_v25  ;;  %v15723_v61 = vrot.slane %v8445_v32, 5  ;;  %v15725_v38 = vrot.slane %v8462_v39, 5  ;;  %v15726_v32 = vrot.slane %v8468_v49, 5  ;;  %v8608_v39 = vld [vmem:[%s7389_s18 + $0x70] sm:$0x3f] }
  0x9f   : > { %15719 = vst [vmem:[#allocation141_spill] sm:$0xff] %v8516_v45  ;;  %v3750_v47 = vadd.f32 %v3699_v52, %v3626_v12  ;;  %v4320_v3 = vsel %vm4188_vm4, %v4318_v51, %v15720_v16  ;;  %v15724_v12 = vrot.slane %v8456_v54, 5  ;;  %v5311_v16 = vrot.slane %v5261_v26, 6 }
  0xa0   : > { %v4568_v52 = vsel %vm4188_vm4, %v4566_v2, %v15723_v61  ;;  %v8543_v21 = vsel %vm4188_vm4, %v4814_v60, %v15725_v38  ;;  %v8548_v61 = vsel %vm4188_vm4, %v4938_v56, %v15726_v32  ;;  %v15728_v26 = vrot.slane %v8492_v27, 6  ;;  %v8563_v60 = vld [vmem:[%s7389_s18 + $0x80] sm:$0xff]  ;;  %v8570_v32 = vld [vmem:[%s7389_s18 + $0x10] sm:$0x3f]  ;;  %v8586_v38 = vld [vmem:[%s7389_s18 + $0x58] sm:$0x3f] }
  0xa1   : > { %v8537_v51 = vsel %vm4188_vm4, %v4690_v5, %v15724_v12  ;;  %v3874_v25 = vadd.f32 %v3823_v20, %v3750_v47  ;;  %v15727_v5 = vrot.slane %v8479_v53, 6  ;;  %v5435_v47 = vrot.slane %v8509_v37, 6  ;;  %15729 = vst [vmem:[#allocation143_spill] sm:$0xff] %v8563_v60 }
  0xa2   : > { %v8558_v20 = vsel %vm5057_vm5, %v5187_v48, %v15728_v26  ;;  %v8567_v56 = vmul.f32 %v8563_v60, %v8012_v19  ;;  %v5559_v48 = vrot.slane %v8529_v58, 6  ;;  %v8583_v26 = vld [vmem:[%s7389_s18 + $0x40] sm:$0x3f]  ;;  %v557_v1 = vmul.f32 %v8512_v14, %v7410_v17 }
  0xa3   : > { %v8553_v2 = vsel %vm5057_vm5, %v5063_v11, %v15727_v5  ;;  %v8573_v11 = vld [vmem:[%s7389_s18 + $0x28] sm:$0x3f]  ;;  %v3998_v12 = vadd.f32 %v8421_v42, %v3874_v25  ;;  %v8578_v5 = vld [vmem:[%s7389_s18 + $0x90] sm:$0xff]  ;;  %v15732_v27 = vrot.slane %v8504_v8, 6  ;;  %v8596_v42 = vld [vmem:[%s7389_s18 + $0x98] sm:$0xff]  ;;  %v5757_v25 = vmul.f32 %v8048_v4, %v8102_v59 }
  0xa4   : > { %15730 = vst [vmem:[#allocation144_spill] sm:$0xff] %v8567_v56  ;;  %15731 = vst [vmem:[#allocation145_spill] sm:$0xff] %v8578_v5  ;;  %v5633_v37 = vmul.f32 %v8578_v5, %v8037_v22  ;;  %v8600_v58 = vmul.f32 %v8596_v42, %v8037_v22  ;;  %v593_v5 = vmul.f32 %v8563_v60, %v7456_v34  ;;  %v15735_v59 = vld [vmem:[#allocation8_spill] sm:$0xff]  ;;  %v15736_v60 = vld [vmem:[#allocation10_spill] sm:$0xff] }
  0xa5   : > { %v8593_v53 = vsel %vm5057_vm5, %v5311_v16, %v15732_v27  ;;  %15733 = vst [vmem:[#allocation146_spill] sm:$0xff] %v8596_v42  ;;  %v4122_v49 = vadd.f32 %v8431_v55, %v3998_v12  ;;  %v573_v27 = vadd.f32 %v557_v1, %v8307_v46  ;;  %v629_v16 = vmul.f32 %v8596_v42, %v15615_v18  ;;  %v15737_v12 = vld [vmem:[#allocation13_spill] sm:$0xff] }
  0xa6   : > { %15734 = vst [vmem:[#allocation147_spill] sm:$0xff] %v8600_v58  ;;  %v666_v8 = vmul.f32 %v7396_v13, %v8570_v32  ;;  %v791_v34 = vmul.f32 %v15735_v59, %v8573_v11  ;;  %v915_v55 = vmul.f32 %v15736_v60, %v8583_v26  ;;  %v1039_v17 = vmul.f32 %v15737_v12, %v8586_v38  ;;  %v8631_v13 = vld [vmem:[%s7389_s18 + $0xa0] sm:$0x3f]  ;;  %v15739_v59 = vld [vmem:[#allocation16_spill] sm:$0xff]  ;;  %v15740_v22 = vld [vmem:[#allocation9_spill] sm:$0xff] }
  0xa7   : > { %v4247_v46 = vadd.f32 %v8452_v24, %v4122_v49  ;;  %v8628_v1 = vmul.f32 %v8048_v4, %v8145_v10  ;;  %v609_v18 = vadd.f32 %v593_v5, %v573_v27  ;;  %v5683_v54 = vrot.slane %v5633_v37, 6  ;;  %v15742_v49 = vld [vmem:[#allocation18_spill] sm:$0xff] }
  0xa8   : > { %v716_v42 = vrot.slane %v666_v8, 1  ;;  %v840_v14 = vrot.slane %v791_v34, 1  ;;  %v964_v31 = vrot.slane %v915_v55, 1  ;;  %v1163_v28 = vmul.f32 %v15739_v59, %v8608_v39  ;;  %v15743_v37 = vld [vmem:[#allocation14_spill] sm:$0xff] }
  0xa9   : > { %15738 = vst [vmem:[#allocation148_spill] sm:$0xff] %v8628_v1  ;;  %v4371_v60 = vadd.f32 %v4320_v3, %v4247_v46  ;;  %v645_v43 = vadd.f32 %v629_v16, %v609_v18  ;;  %v15741_v12 = vrot.slane %v15740_v22, 1  ;;  %v1287_v10 = vmul.f32 %v15742_v49, %v8617_v7  ;;  %v15745_v22 = vld [vmem:[#allocation15_spill] sm:$0xff] }
  0xaa   : > { %v14794_v5 = vrot.slane %v8600_v58, 6  ;;  %v5807_v8 = vrot.slane %v5757_v25, 6  ;;  %v15744_v27 = vrot.slane %v15743_v37, 1  ;;  %v1088_v55 = vrot.slane %v1039_v17, 1 }
  0xab   : > { %v717_v24 = vsel %vm712_vm0, %v15741_v12, %v716_v42  ;;  %v4495_v4 = vadd.f32 %v4444_v63, %v4371_v60  ;;  %v14795_v59 = vrot.slane %v8628_v1, 6  ;;  %v1411_v18 = vmul.f32 %v15625_v35, %v8631_v13 }
  0xac   : > { %v841_v34 = vsel %vm712_vm0, %v15744_v27, %v840_v14  ;;  %v770_v3 = vadd.f32 %v717_v24, %v645_v43  ;;  %v15746_v42 = vrot.slane %v15745_v22, 1  ;;  %v1212_v12 = vrot.slane %v1163_v28, 1 }
  0xad   : > { %v1535_v25 = vmul.f32 %v15632_v6, %v8570_v32  ;;  %v1660_v46 = vmul.f32 %v15634_v40, %v8573_v11  ;;  %v4619_v14 = vadd.f32 %v4568_v52, %v4495_v4  ;;  %v1336_v63 = vrot.slane %v1287_v10, 1 }
  0xae   : > { %v965_v16 = vsel %vm712_vm0, %v15746_v42, %v964_v31  ;;  %v894_v17 = vadd.f32 %v841_v34, %v770_v3  ;;  %v1784_v43 = vmul.f32 %v15637_v62, %v8583_v26  ;;  %v15747_v60 = vrot.slane %v8516_v45, 6  ;;  %v15749_v31 = vld [vmem:[#allocation17_spill] sm:$0xff]  ;;  %v15751_v42 = vld [vmem:[#allocation27_spill] sm:$0xff] }
  0xaf   : > { %v15748_v37 = vrot.slane %v8567_v56, 6  ;;  %v15750_v27 = vrot.slane %v15749_v31, 1  ;;  %v1908_v4 = vmul.f32 %v15751_v42, %v8586_v38  ;;  %v4743_v10 = vadd.f32 %v8537_v51, %v4619_v14  ;;  %v15752_v3 = vld [vmem:[#allocation19_spill] sm:$0xff] }
  0xb0   : > { %v5437_v24 = vsel %vm5057_vm5, %v5435_v47, %v15747_v60  ;;  %v8671_v52 = vsel %vm5057_vm5, %v5683_v54, %v14794_v5  ;;  %v1018_v34 = vadd.f32 %v965_v16, %v894_v17  ;;  %v1460_v47 = vrot.slane %v1411_v18, 1  ;;  %v15756_v17 = vld [vmem:[#allocation31_spill] sm:$0xff] }
  0xb1   : > { %v5561_v28 = vsel %vm5057_vm5, %v5559_v48, %v15748_v37  ;;  %v1089_v22 = vsel %vm712_vm0, %v15750_v27, %v1088_v55  ;;  %v8676_v48 = vsel %vm5057_vm5, %v5807_v8, %v14795_v59  ;;  %v15753_v60 = vrot.slane %v15752_v3, 1  ;;  %v15754_v27 = vld [vmem:[#allocation22_spill] sm:$0xff]  ;;  %v15758_v3 = vld [vmem:[#allocation35_spill] sm:$0xff] }
  0xb2   : > { %v1585_v37 = vrot.slane %v1535_v25, 2  ;;  %v1709_v31 = vrot.slane %v1660_v46, 2  ;;  %v4867_v51 = vadd.f32 %v8543_v21, %v4743_v10  ;;  %v1142_v14 = vadd.f32 %v1089_v22, %v1018_v34  ;;  %v15757_v8 = vld [vmem:[#allocation34_spill] sm:$0xff]  ;;  %v15759_v21 = vld [vmem:[#allocation23_spill] sm:$0xff] }
  0xb3   : > { %v1213_v55 = vsel %vm712_vm0, %v15753_v60, %v1212_v12  ;;  %v15755_v58 = vrot.slane %v15754_v27, 1  ;;  %v1833_v16 = vrot.slane %v1784_v43, 2  ;;  %v1957_v18 = vrot.slane %v1908_v4, 2  ;;  %v15762_v43 = vld [vmem:[#allocation24_spill] sm:$0xff]  ;;  %v15766_v56 = vld [vmem:[#allocation39_spill] sm:$0xff] }
  0xb4   : > { %v2032_v5 = vmul.f32 %v15756_v17, %v8608_v39  ;;  %v2156_v59 = vmul.f32 %v15757_v8, %v8617_v7  ;;  %v2280_v12 = vmul.f32 %v15758_v3, %v8631_v13  ;;  %v4991_v25 = vadd.f32 %v8548_v61, %v4867_v51  ;;  %v15764_v60 = vld [vmem:[#allocation28_spill] sm:$0xff]  ;;  %v15767_v61 = vld [vmem:[#allocation43_spill] sm:$0xff] }
  0xb5   : > { %v1337_v54 = vsel %vm712_vm0, %v15755_v58, %v1336_v63  ;;  %v1266_v46 = vadd.f32 %v1213_v55, %v1142_v14  ;;  %v15760_v22 = vrot.slane %v15759_v21, 1  ;;  %v15761_v58 = vld [vmem:[#allocation38_spill] sm:$0xff]  ;;  %v15763_v4 = vrot.slane %v15762_v43, 2  ;;  %v15770_v43 = vld [vmem:[#allocation44_spill] sm:$0xff] }
  0xb6   : > { %v2404_v63 = vmul.f32 %v15761_v58, %v8570_v32  ;;  %v15765_v27 = vrot.slane %v15764_v60, 2  ;;  %v2529_v45 = vmul.f32 %v15766_v56, %v8573_v11  ;;  %v2653_v55 = vmul.f32 %v15767_v61, %v8583_v26  ;;  %v15768_v14 = vld [vmem:[#allocation30_spill] sm:$0xff] }
  0xb7   : > { %v1461_v10 = vsel %vm712_vm0, %v15760_v22, %v1460_v47  ;;  %v1586_v34 = vsel %vm1581_vm1, %v15763_v4, %v1585_v37  ;;  %v5116_v51 = vadd.f32 %v8553_v2, %v4991_v25  ;;  %v1390_v47 = vadd.f32 %v1337_v54, %v1266_v46  ;;  %v15771_v4 = vld [vmem:[#allocation33_spill] sm:$0xff] }
  0xb8   : > { %v1710_v1 = vsel %vm1581_vm1, %v15765_v27, %v1709_v31  ;;  %v15769_v21 = vrot.slane %v15768_v14, 2  ;;  %v2777_v37 = vmul.f32 %v15770_v43, %v8586_v38  ;;  %v15772_v60 = vrot.slane %v15771_v4, 2  ;;  %v15773_v2 = vld [vmem:[#allocation45_spill] sm:$0xff]  ;;  %v15786_v43 = vld [vmem:[#allocation42_spill] sm:$0xff] }
  0xb9   : > { %v2081_v27 = vrot.slane %v2032_v5, 2  ;;  %v2205_v58 = vrot.slane %v2156_v59, 2  ;;  %v2329_v56 = vrot.slane %v2280_v12, 2  ;;  %v5240_v3 = vadd.f32 %v8558_v20, %v5116_v51  ;;  %v15776_v12 = vld [vmem:[#allocation52_spill] sm:$0xff] }
  0xba   : > { %v1834_v22 = vsel %vm1581_vm1, %v15769_v21, %v1833_v16  ;;  %v1958_v31 = vsel %vm1581_vm1, %v15772_v60, %v1957_v18  ;;  %v1514_v61 = vadd.f32 %v1461_v10, %v1390_v47  ;;  %v2454_v8 = vrot.slane %v2404_v63, 3  ;;  %v15774_v16 = vld [vmem:[#allocation48_spill] sm:$0xff]  ;;  %v15775_v21 = vld [vmem:[#allocation49_spill] sm:$0xff] }
  0xbb   : > { %v2901_v54 = vmul.f32 %v15773_v2, %v8608_v39  ;;  %v2578_v25 = vrot.slane %v2529_v45, 3  ;;  %v2702_v46 = vrot.slane %v2653_v55, 3  ;;  %v3025_v14 = vmul.f32 %v15774_v16, %v8617_v7  ;;  %v15777_v10 = vld [vmem:[#allocation36_spill] sm:$0xff]  ;;  %v15779_v47 = vld [vmem:[#allocation37_spill] sm:$0xff] }
  0xbc   : > { %v3149_v4 = vmul.f32 %v15775_v21, %v8631_v13  ;;  %v5364_v18 = vadd.f32 %v8593_v53, %v5240_v3  ;;  %v1639_v5 = vadd.f32 %v1586_v34, %v1514_v61  ;;  %v2826_v59 = vrot.slane %v2777_v37, 3  ;;  %v15781_v60 = vld [vmem:[#allocation40_spill] sm:$0xff]  ;;  %v15783_v21 = vld [vmem:[#allocation55_spill] sm:$0xff]  ;;  %v15784_v61 = vld [vmem:[#allocation41_spill] sm:$0xff] }
  0xbd   : > { %v3273_v20 = vmul.f32 %v15776_v12, %v8570_v32  ;;  %v15778_v63 = vrot.slane %v15777_v10, 2  ;;  %v15780_v45 = vrot.slane %v15779_v47, 2  ;;  %v15782_v16 = vrot.slane %v15781_v60, 2  ;;  %v15788_v47 = vld [vmem:[#allocation46_spill] sm:$0xff] }
  0xbe   : > { %v3398_v53 = vmul.f32 %v15783_v21, %v8573_v11  ;;  %v5488_v3 = vadd.f32 %v5437_v24, %v5364_v18  ;;  %v1763_v34 = vadd.f32 %v1710_v1, %v1639_v5  ;;  %v15785_v37 = vrot.slane %v15784_v61, 3  ;;  %v15790_v21 = vld [vmem:[#allocation47_spill] sm:$0xff]  ;;  %v15794_v61 = vld [vmem:[#allocation60_spill] sm:$0xff] }
  0xbf   : > { %v2082_v51 = vsel %vm1581_vm1, %v15778_v63, %v2081_v27  ;;  %v2206_v55 = vsel %vm1581_vm1, %v15780_v45, %v2205_v58  ;;  %v2330_v2 = vsel %vm1581_vm1, %v15782_v16, %v2329_v56  ;;  %v2950_v10 = vrot.slane %v2901_v54, 3  ;;  %v15792_v54 = vld [vmem:[#allocation56_spill] sm:$0xff] }
  0xc0   : > { %v2455_v12 = vsel %vm2450_vm2, %v15785_v37, %v2454_v8  ;;  %v15787_v27 = vrot.slane %v15786_v43, 3  ;;  %v15789_v58 = vrot.slane %v15788_v47, 3  ;;  %v3074_v60 = vrot.slane %v3025_v14, 3  ;;  %v15800_v37 = vld [vmem:[#allocation53_spill] sm:$0xff] }
  0xc1   : > { %v3198_v56 = vrot.slane %v3149_v4, 3  ;;  %v5612_v16 = vadd.f32 %v5561_v28, %v5488_v3  ;;  %v1887_v17 = vadd.f32 %v1834_v22, %v1763_v34  ;;  %v15791_v24 = vrot.slane %v15790_v21, 3  ;;  %v15795_v22 = vld [vmem:[#allocation50_spill] sm:$0xff] }
  0xc2   : > { %v2579_v63 = vsel %vm2450_vm2, %v15787_v27, %v2578_v25  ;;  %v2703_v45 = vsel %vm2450_vm2, %v15789_v58, %v2702_v46  ;;  %v3323_v18 = vrot.slane %v3273_v20, 4  ;;  %v3447_v8 = vrot.slane %v3398_v53, 4  ;;  %v15793_v25 = vld [vmem:[#allocation59_spill] sm:$0xff]  ;;  %v15802_v58 = vld [vmem:[#allocation54_spill] sm:$0xff] }
  0xc3   : > { %v8749_v1 = vsel %vm2450_vm2, %v15791_v24, %v2826_v59  ;;  %v3522_v43 = vmul.f32 %v15792_v54, %v8583_v26  ;;  %v3646_v5 = vmul.f32 %v15793_v25, %v8586_v38  ;;  %v3770_v46 = vmul.f32 %v15794_v61, %v8608_v39  ;;  %v15797_v59 = vld [vmem:[#allocation62_spill] sm:$0xff]  ;;  %v15798_v53 = vld [vmem:[#allocation51_spill] sm:$0xff] }
  0xc4   : > { %v5736_v14 = vadd.f32 %v8671_v52, %v5612_v16  ;;  %v2011_v28 = vadd.f32 %v1958_v31, %v1887_v17  ;;  %v15796_v4 = vrot.slane %v15795_v22, 3  ;;  %v3894_v20 = vmul.f32 %v15797_v59, %v8617_v7  ;;  %v15804_v22 = vld [vmem:[#allocation57_spill] sm:$0xff] }
  0xc5   : > { %v15799_v3 = vrot.slane %v15798_v53, 3  ;;  %v15801_v27 = vrot.slane %v15800_v37, 3  ;;  %v4018_v52 = vmul.f32 %v15687_v9, %v8631_v13  ;;  %v4142_v17 = vmul.f32 %v15689_v23, %v8570_v32 }
  0xc6   : > { %v8761_v21 = vsel %vm2450_vm2, %v15796_v4, %v2950_v10  ;;  %v5860_v31 = vadd.f32 %v8676_v48, %v5736_v14  ;;  %v2135_v10 = vadd.f32 %v2082_v51, %v2011_v28  ;;  %v15803_v16 = vrot.slane %v15802_v58, 4 }
  0xc7   : > { %v8768_v34 = vsel %vm2450_vm2, %v15799_v3, %v3074_v60  ;;  %v8773_v47 = vsel %vm2450_vm2, %v15801_v27, %v3198_v56  ;;  %v4267_v60 = vmul.f32 %v15694_v36, %v8573_v11  ;;  %v15805_v56 = vrot.slane %v15804_v22, 4  ;;  %v15806_v27 = vld [vmem:[#allocation107_spill] sm:$0xff] }
  0xc8   : > { %v8783_v24 = vsel %vm3319_vm3, %v15803_v16, %v3323_v18  ;;  %v3571_v53 = vrot.slane %v3522_v43, 4  ;;  %v3695_v3 = vrot.slane %v3646_v5, 4  ;;  %v3819_v37 = vrot.slane %v3770_v46, 4 }
  0xc9   : > { %v8790_v4 = vsel %vm3319_vm3, %v15805_v56, %v3447_v8  ;;  %v8793_v23 = vadd.f32 %v15806_v27, %v5860_v31  ;;  %v2259_v48 = vadd.f32 %v2206_v55, %v2135_v10  ;;  %v3943_v51 = vrot.slane %v3894_v20, 4  ;;  %v15808_v20 = vld [vmem:[#allocation58_spill] sm:$0xff] }
  0xca   : > { %v4391_v18 = vmul.f32 %v15701_v44, %v8583_v26  ;;  %v4067_v14 = vrot.slane %v4018_v52, 4  ;;  %v4192_v28 = vrot.slane %v4142_v17, 5  ;;  %v4515_v58 = vmul.f32 %v15705_v15, %v8586_v38  ;;  %v15810_v17 = vld [vmem:[#allocation61_spill] sm:$0xff] }
  0xcb   : > { %15807 = vst [vmem:[#allocation9_spill] sm:$0xff] %v8793_v23  ;;  %v4639_v8 = vmul.f32 %v7912_v41, %v8608_v39  ;;  %v5904_v43 = vsel %vm5897_vm6, %v8793_v23, 0.0  ;;  %v2383_v5 = vadd.f32 %v2330_v2, %v2259_v48  ;;  %v4316_v46 = vrot.slane %v4267_v60, 5  ;;  %v15812_v60 = vld [vmem:[#allocation64_spill] sm:$0xff]  ;;  %v15814_v23 = vld [vmem:[#allocation65_spill] sm:$0xff]  ;;  %v15842_v41 = vld [vmem:[#allocation83_spill] sm:$0xff] }
  0xcc   : > { %v4763_v55 = vmul.f32 %v7931_v33, %v8617_v7  ;;  %5905 = vadd.xlane.f32.xlu1 %v5904_v43  ;;  %v15809_v31 = vrot.slane %v15808_v20, 4  ;;  %v15811_v10 = vrot.slane %v15810_v17, 4  ;;  %v4440_v22 = vrot.slane %v4391_v18, 5  ;;  %v15816_v17 = vld [vmem:[#allocation67_spill] sm:$0xff]  ;;  %v15841_v33 = vld [vmem:[#allocation140_spill] sm:$0xff] }
  0xcd   : > { %v4887_v56 = vmul.f32 %v7936_v30, %v8631_v13  ;;  %v2508_v2 = vadd.f32 %v2455_v12, %v2383_v5  ;;  %v15813_v27 = vrot.slane %v15812_v60, 4  ;;  %v4564_v43 = vrot.slane %v4515_v58, 5  ;;  %v15840_v30 = vld [vmem:[#allocation5_spill] sm:$0xff] }
  0xce   : > { %v8808_v52 = vsel %vm3319_vm3, %v15809_v31, %v3571_v53  ;;  %v8813_v16 = vsel %vm3319_vm3, %v15811_v10, %v3695_v3  ;;  %v4688_v20 = vrot.slane %v4639_v8, 5  ;;  %v15815_v53 = vrot.slane %v15814_v23, 4  ;;  %v15818_v10 = vld [vmem:[#allocation68_spill] sm:$0xff]  ;;  %v15820_v23 = vld [vmem:[#allocation71_spill] sm:$0xff] }
  0xcf   : > { %v8820_v48 = vsel %vm3319_vm3, %v15813_v27, %v3819_v37  ;;  %v15817_v3 = vrot.slane %v15816_v17, 4  ;;  %v5011_v12 = vmul.f32 %v7949_v50, %v8570_v32  ;;  %v5136_v5 = vmul.f32 %v7989_v0, %v8573_v11 }
  0xd0   : > { %v8825_v31 = vsel %vm3319_vm3, %v15815_v53, %v3943_v51  ;;  %v2632_v37 = vadd.f32 %v2579_v63, %v2508_v2  ;;  %v15819_v58 = vrot.slane %v15818_v10, 5  ;;  %v15821_v51 = vrot.slane %v15820_v23, 5 }
  0xd1   : > { %v8830_v18 = vsel %vm3319_vm3, %v15817_v3, %v4067_v14  ;;  %v4812_v27 = vrot.slane %v4763_v55, 5  ;;  %v15822_v14 = vld [vmem:[#allocation72_spill] sm:$0xff]  ;;  %v4936_v32 = vrot.slane %v4887_v56, 5  ;;  %v5260_v63 = vmul.f32 %v7997_v57, %v8583_v26  ;;  %v15824_v3 = vld [vmem:[#allocation75_spill] sm:$0xff] }
  0xd2   : > { %v8839_v8 = vsel %vm4188_vm4, %v15819_v58, %v4192_v28  ;;  %v8844_v60 = vsel %vm4188_vm4, %v15821_v51, %v4316_v46  ;;  %v15823_v53 = vrot.slane %v15822_v14, 5  ;;  %v5384_v2 = vmul.f32 %v8001_v29, %v8586_v38  ;;  %v15826_v46 = vld [vmem:[#allocation76_spill] sm:$0xff]  ;;  %v15828_v14 = vld [vmem:[#allocation90_spill] sm:$0xff]  ;;  %v15834_v57 = vld [vmem:[#allocation3_spill] sm:$0xff] }
  0xd3   : > { %v2756_v28 = vadd.f32 %v2703_v45, %v2632_v37  ;;  %v15825_v10 = vrot.slane %v15824_v3, 5  ;;  %v15827_v55 = vrot.slane %v15826_v46, 5  ;;  %v5061_v56 = vrot.slane %v5011_v12, 6  ;;  %v15829_v29 = vld [vmem:[#allocation2_spill] sm:$0xff]  ;;  %v15830_v45 = vld [vmem:[#allocation133_spill] sm:$0xff] }
  0xd4   : > { %v8849_v17 = vsel %vm4188_vm4, %v15823_v53, %v4440_v22  ;;  %v5508_v22 = vmul.f32 %v8012_v19, %v8608_v39  ;;  %v5185_v51 = vrot.slane %v5136_v5, 6  ;;  %v5632_v53 = vmul.f32 %v15828_v14, %v8617_v7  ;;  %v15835_v19 = vld [vmem:[#allocation136_spill] sm:$0xff]  ;;  %v15836_v5 = vld [vmem:[#allocation81_spill] sm:$0xff] }
  0xd5   : > { %v8858_v58 = vsel %vm4188_vm4, %v15825_v10, %v4564_v43  ;;  %v8863_v23 = vsel %vm4188_vm4, %v15827_v55, %v4688_v20  ;;  %v415_v37 = vmul.f32 %v15830_v45, %v15829_v29  ;;  %v2880_v3 = vadd.f32 %v8749_v1, %v2756_v28  ;;  %v15831_v43 = vld [vmem:[#allocation80_spill] sm:$0xff]  ;;  %v15839_v1 = vld [vmem:[#allocation138_spill] sm:$0xff] }
  0xd6   : > { %v15832_v10 = vrot.slane %v15831_v43, 5  ;;  %v15833_v20 = vld [vmem:[#allocation92_spill] sm:$0xff]  ;;  %v451_v12 = vmul.f32 %v15835_v19, %v15834_v57  ;;  %v15837_v0 = vrot.slane %v15836_v5, 5  ;;  %v5309_v50 = vrot.slane %v5260_v63, 6 }
  0xd7   : > { %v5756_v55 = vmul.f32 %v15833_v20, %v8631_v13  ;;  %v5433_v45 = vrot.slane %v5384_v2, 6  ;;  %v15838_v29 = vld [vmem:[#allocation4_spill] sm:$0xff]  ;;  %v3004_v43 = vadd.f32 %v8761_v21, %v2880_v3  ;;  %v523_v20 = vmul.f32 %v15841_v33, %v15840_v30  ;;  %v15848_v33 = vld [vmem:[#allocation143_spill] sm:$0xff] }
  0xd8   : > { %v8875_v46 = vsel %vm4188_vm4, %v15832_v10, %v4812_v27  ;;  %v8884_v14 = vsel %vm4188_vm4, %v15837_v0, %v4936_v32  ;;  %v487_v28 = vmul.f32 %v15839_v1, %v15838_v29  ;;  %v5557_v27 = vrot.slane %v5508_v22, 6  ;;  %v15844_v0 = vld [vmem:[#allocation86_spill] sm:$0xff] }
  0xd9   : > { %v467_v10 = vadd.f32 %v451_v12, %v415_v37  ;;  %v15843_v19 = vrot.slane %v15842_v41, 6  ;;  %v15845_v32 = vrot.slane %v15844_v0, 6  ;;  %v5681_v2 = vrot.slane %v5632_v53, 6  ;;  %v15846_v1 = vld [vmem:[#allocation6_spill] sm:$0xff]  ;;  %v15847_v12 = vld [vmem:[#allocation7_spill] sm:$0xff]  ;;  %v15849_v41 = vld [vmem:[#allocation88_spill] sm:$0xff] }
  0xda   : > { %v669_v21 = vmul.f32 %v15846_v1, %v8573_v11  ;;  %v3128_v22 = vadd.f32 %v8768_v34, %v3004_v43  ;;  %v5805_v37 = vrot.slane %v5756_v55, 6  ;;  %v559_v30 = vmul.f32 %v15848_v33, %v15847_v12  ;;  %v15853_v53 = vld [vmem:[#allocation8_spill] sm:$0xff]  ;;  %v15854_v34 = vld [vmem:[#allocation10_spill] sm:$0xff]  ;;  %v15855_v43 = vld [vmem:[#allocation91_spill] sm:$0xff] }
  0xdb   : > { %v8894_v5 = vsel %vm5057_vm5, %v15843_v19, %v5061_v56  ;;  %v8899_v63 = vsel %vm5057_vm5, %v15845_v32, %v5185_v51  ;;  %v503_v3 = vadd.f32 %v487_v28, %v467_v10  ;;  %v15850_v29 = vrot.slane %v15849_v41, 6  ;;  %v15851_v56 = vld [vmem:[#allocation89_spill] sm:$0xff]  ;;  %v15859_v33 = vld [vmem:[#allocation146_spill] sm:$0xff] }
  0xdc   : > { %v15852_v0 = vrot.slane %v15851_v56, 6  ;;  %v794_v32 = vmul.f32 %v15853_v53, %v8583_v26  ;;  %v918_v55 = vmul.f32 %v15854_v34, %v8586_v38  ;;  %v3252_v28 = vadd.f32 %v8773_v47, %v3128_v22  ;;  %v15858_v56 = vld [vmem:[#allocation11_spill] sm:$0xff]  ;;  %v15862_v34 = vld [vmem:[#allocation13_spill] sm:$0xff]  ;;  %v15863_v22 = vld [vmem:[#allocation16_spill] sm:$0xff] }
  0xdd   : > { %v8909_v19 = vsel %vm5057_vm5, %v15850_v29, %v5309_v50  ;;  %v15856_v10 = vrot.slane %v15855_v43, 6  ;;  %v8927_v50 = vld [vmem:[%s7389_s18 + $0xb8] sm:$0x3f]  ;;  %v539_v29 = vadd.f32 %v523_v20, %v503_v3  ;;  %v721_v1 = vrot.slane %v669_v21, 1 }
  0xde   : > { %v8914_v51 = vsel %vm5057_vm5, %v15852_v0, %v5433_v45  ;;  %15857 = vst [vmem:[#allocation14_spill] sm:$0xff] %v8927_v50  ;;  %v595_v45 = vmul.f32 %v15859_v33, %v15858_v56  ;;  %v15860_v0 = vld [vmem:[#allocation93_spill] sm:$0xff]  ;;  %v1042_v47 = vmul.f32 %v15862_v34, %v8608_v39  ;;  %v1166_v43 = vmul.f32 %v15863_v22, %v8617_v7  ;;  %v15866_v33 = vld [vmem:[#allocation100_spill] sm:$0xff] }
  0xdf   : > { %v8924_v41 = vsel %vm5057_vm5, %v15856_v10, %v5557_v27  ;;  %v15861_v12 = vrot.slane %v15860_v0, 6  ;;  %v3377_v27 = vadd.f32 %v8783_v24, %v3252_v28  ;;  %v15864_v10 = vld [vmem:[#allocation94_spill] sm:$0xff]  ;;  %v575_v3 = vadd.f32 %v559_v30, %v539_v29  ;;  %v15867_v0 = vld [vmem:[#allocation12_spill] sm:$0xff] }
  0xe0   : > { %v15865_v57 = vrot.slane %v15864_v10, 6  ;;  %v631_v56 = vmul.f32 %v15867_v0, %v15866_v33  ;;  %v1290_v21 = vmul.f32 %v15742_v49, %v8631_v13  ;;  %v1414_v34 = vmul.f32 %v15625_v35, %v8927_v50 }
  0xe1   : > { %v8934_v53 = vsel %vm5057_vm5, %v15861_v12, %v5681_v2  ;;  %v845_v2 = vrot.slane %v794_v32, 1  ;;  %v969_v12 = vrot.slane %v918_v55, 1  ;;  %v3501_v22 = vadd.f32 %v8790_v4, %v3377_v27 }
  0xe2   : > { %v8944_v20 = vsel %vm5057_vm5, %v15865_v57, %v5805_v37  ;;  %v611_v24 = vadd.f32 %v595_v45, %v575_v3  ;;  %v1538_v28 = vmul.f32 %v15632_v6, %v8573_v11  ;;  %v1663_v30 = vmul.f32 %v15634_v40, %v8583_v26  ;;  %v15868_v57 = vld [vmem:[#allocation95_spill] sm:$0xff]  ;;  %v15871_v3 = vld [vmem:[#allocation96_spill] sm:$0xff]  ;;  %v15873_v6 = vld [vmem:[#allocation97_spill] sm:$0xff] }
  0xe3   : > { %v15869_v37 = vrot.slane %v15868_v57, 1  ;;  %v1093_v32 = vrot.slane %v1042_v47, 1  ;;  %v1217_v55 = vrot.slane %v1166_v43, 1  ;;  %v1787_v29 = vmul.f32 %v15637_v62, %v8586_v38  ;;  %v15870_v45 = vld [vmem:[#allocation31_spill] sm:$0xff] }
  0xe4   : > { %v3625_v10 = vadd.f32 %v8808_v52, %v3501_v22  ;;  %v647_v35 = vadd.f32 %v631_v56, %v611_v24  ;;  %v1911_v4 = vmul.f32 %v15751_v42, %v8608_v39  ;;  %v2035_v27 = vmul.f32 %v15870_v45, %v8617_v7  ;;  %v15875_v24 = vld [vmem:[#allocation98_spill] sm:$0xff]  ;;  %v15877_v45 = vld [vmem:[#allocation99_spill] sm:$0xff] }
  0xe5   : > { %v722_v33 = vsel %vm712_vm0, %v15869_v37, %v721_v1  ;;  %v15872_v40 = vrot.slane %v15871_v3, 1  ;;  %v15874_v1 = vrot.slane %v15873_v6, 1  ;;  %v1341_v43 = vrot.slane %v1290_v21, 1  ;;  %v15879_v6 = vld [vmem:[#allocation34_spill] sm:$0xff] }
  0xe6   : > { %v1465_v37 = vrot.slane %v1414_v34, 1  ;;  %v3749_v62 = vadd.f32 %v8813_v16, %v3625_v10  ;;  %v772_v52 = vadd.f32 %v722_v33, %v647_v35  ;;  %v1590_v56 = vrot.slane %v1538_v28, 2  ;;  %v15880_v35 = vld [vmem:[#allocation101_spill] sm:$0xff]  ;;  %v15882_v33 = vld [vmem:[#allocation102_spill] sm:$0xff] }
  0xe7   : > { %v846_v57 = vsel %vm712_vm0, %v15872_v40, %v845_v2  ;;  %v970_v47 = vsel %vm712_vm0, %v15874_v1, %v969_v12  ;;  %v1714_v22 = vrot.slane %v1663_v30, 2  ;;  %v15876_v42 = vrot.slane %v15875_v24, 1 }
  0xe8   : > { %v15878_v0 = vrot.slane %v15877_v45, 1  ;;  %v1838_v40 = vrot.slane %v1787_v29, 2  ;;  %v2159_v2 = vmul.f32 %v15879_v6, %v8631_v13  ;;  %v3873_v12 = vadd.f32 %v8820_v48, %v3749_v62  ;;  %v15886_v48 = vld [vmem:[#allocation103_spill] sm:$0xff] }
  0xe9   : > { %v1094_v49 = vsel %vm712_vm0, %v15876_v42, %v1093_v32  ;;  %v896_v34 = vadd.f32 %v846_v57, %v772_v52  ;;  %v1962_v21 = vrot.slane %v1911_v4, 2  ;;  %v2086_v16 = vrot.slane %v2035_v27, 2  ;;  %v15884_v32 = vld [vmem:[#allocation35_spill] sm:$0xff]  ;;  %v15888_v57 = vld [vmem:[#allocation104_spill] sm:$0xff]  ;;  %v15890_v52 = vld [vmem:[#allocation105_spill] sm:$0xff] }
  0xea   : > { %v1218_v3 = vsel %vm712_vm0, %v15878_v0, %v1217_v55  ;;  %v15881_v28 = vrot.slane %v15880_v35, 1  ;;  %v15883_v10 = vrot.slane %v15882_v33, 1  ;;  %v2283_v0 = vmul.f32 %v15884_v32, %v8927_v50  ;;  %v15885_v55 = vld [vmem:[#allocation38_spill] sm:$0xff] }
  0xeb   : > { %v2407_v29 = vmul.f32 %v15885_v55, %v8573_v11  ;;  %v3997_v45 = vadd.f32 %v8825_v31, %v3873_v12  ;;  %v1020_v62 = vadd.f32 %v970_v47, %v896_v34  ;;  %v15887_v4 = vrot.slane %v15886_v48, 2  ;;  %v15894_v34 = vld [vmem:[#allocation106_spill] sm:$0xff] }
  0xec   : > { %v1342_v30 = vsel %vm712_vm0, %v15881_v28, %v1341_v43  ;;  %v1466_v42 = vsel %vm712_vm0, %v15883_v10, %v1465_v37  ;;  %v15889_v1 = vrot.slane %v15888_v57, 2  ;;  %v15891_v24 = vrot.slane %v15890_v52, 2  ;;  %v15892_v28 = vld [vmem:[#allocation39_spill] sm:$0xff] }
  0xed   : > { %v1591_v27 = vsel %vm1581_vm1, %v15887_v4, %v1590_v56  ;;  %v2210_v35 = vrot.slane %v2159_v2, 2  ;;  %v2532_v33 = vmul.f32 %v15892_v28, %v8583_v26  ;;  %v15893_v10 = vld [vmem:[#allocation43_spill] sm:$0xff]  ;;  %v4121_v47 = vadd.f32 %v8830_v18, %v3997_v45  ;;  %v15896_v4 = vld [vmem:[#allocation108_spill] sm:$0xff] }
  0xee   : > { %v1715_v43 = vsel %vm1581_vm1, %v15889_v1, %v1714_v22  ;;  %v1839_v37 = vsel %vm1581_vm1, %v15891_v24, %v1838_v40  ;;  %v2656_v31 = vmul.f32 %v15893_v10, %v8586_v38  ;;  %v1144_v12 = vadd.f32 %v1094_v49, %v1020_v62  ;;  %v15898_v2 = vld [vmem:[#allocation44_spill] sm:$0xff]  ;;  %v15899_v24 = vld [vmem:[#allocation45_spill] sm:$0xff] }
  0xef   : > { %v15895_v56 = vrot.slane %v15894_v34, 2  ;;  %v15897_v22 = vrot.slane %v15896_v4, 2  ;;  %v2334_v1 = vrot.slane %v2283_v0, 2  ;;  %v2459_v40 = vrot.slane %v2407_v29, 3  ;;  %v15900_v49 = vld [vmem:[#allocation48_spill] sm:$0xff]  ;;  %v15902_v34 = vld [vmem:[#allocation109_spill] sm:$0xff] }
  0xf0   : > { %v2780_v52 = vmul.f32 %v15898_v2, %v8608_v39  ;;  %v2904_v28 = vmul.f32 %v15899_v24, %v8617_v7  ;;  %v4246_v10 = vadd.f32 %v8839_v8, %v4121_v47  ;;  %v1268_v18 = vadd.f32 %v1218_v3, %v1144_v12  ;;  %v15904_v4 = vld [vmem:[#allocation52_spill] sm:$0xff]  ;;  %v15905_v8 = vld [vmem:[#allocation55_spill] sm:$0xff]  ;;  %v15906_v12 = vld [vmem:[#allocation29_spill] sm:$0xff] }
  0xf1   : > { %v1963_v48 = vsel %vm1581_vm1, %v15895_v56, %v1962_v21  ;;  %v2087_v57 = vsel %vm1581_vm1, %v15897_v22, %v2086_v16  ;;  %v3028_v45 = vmul.f32 %v15900_v49, %v8631_v13  ;;  %v15901_v21 = vld [vmem:[#allocation49_spill] sm:$0xff]  ;;  %v15903_v56 = vrot.slane %v15902_v34, 2  ;;  %v15908_v49 = vld [vmem:[#allocation111_spill] sm:$0xff] }
  0xf2   : > { %v3152_v62 = vmul.f32 %v15901_v21, %v8927_v50  ;;  %v2583_v0 = vrot.slane %v2532_v33, 3  ;;  %v2707_v29 = vrot.slane %v2656_v31, 3  ;;  %v3276_v22 = vmul.f32 %v15904_v4, %v8573_v11 }
  0xf3   : > { %v2211_v16 = vsel %vm1581_vm1, %v15903_v56, %v2210_v35  ;;  %v4370_v24 = vadd.f32 %v8844_v60, %v4246_v10  ;;  %v1392_v2 = vadd.f32 %v1342_v30, %v1268_v18  ;;  %v3401_v3 = vmul.f32 %v15905_v8, %v8583_v26  ;;  %v15910_v8 = vld [vmem:[#allocation112_spill] sm:$0xff] }
  0xf4   : > { %v3525_v47 = vmul.f32 %v15792_v54, %v8586_v38  ;;  %v15907_v21 = vrot.slane %v15906_v12, 2  ;;  %v15909_v35 = vrot.slane %v15908_v49, 3  ;;  %v2831_v31 = vrot.slane %v2780_v52, 3  ;;  %v15912_v12 = vld [vmem:[#allocation113_spill] sm:$0xff]  ;;  %v15914_v52 = vld [vmem:[#allocation114_spill] sm:$0xff] }
  0xf5   : > { %v2955_v56 = vrot.slane %v2904_v28, 3  ;;  %v4494_v60 = vadd.f32 %v8849_v17, %v4370_v24  ;;  %v1516_v30 = vadd.f32 %v1466_v42, %v1392_v2  ;;  %v3079_v10 = vrot.slane %v3028_v45, 3 }
  0xf6   : > { %v2335_v34 = vsel %vm1581_vm1, %v15907_v21, %v2334_v1  ;;  %v9039_v33 = vsel %vm2450_vm2, %v15909_v35, %v2459_v40  ;;  %v3203_v18 = vrot.slane %v3152_v62, 3  ;;  %v15911_v4 = vrot.slane %v15910_v8, 3  ;;  %v15916_v21 = vld [vmem:[#allocation115_spill] sm:$0xff] }
  0xf7   : > { %v15913_v55 = vrot.slane %v15912_v12, 3  ;;  %v3328_v49 = vrot.slane %v3276_v22, 4  ;;  %v3649_v40 = vmul.f32 %v15793_v25, %v8608_v39  ;;  %v4618_v28 = vadd.f32 %v8858_v58, %v4494_v60 }
  0xf8   : > { %v9045_v54 = vsel %vm2450_vm2, %v15911_v4, %v2583_v0  ;;  %v1641_v17 = vadd.f32 %v1591_v27, %v1516_v30  ;;  %v3452_v42 = vrot.slane %v3401_v3, 4  ;;  %v3576_v2 = vrot.slane %v3525_v47, 4  ;;  %v15918_v4 = vld [vmem:[#allocation116_spill] sm:$0xff] }
  0xf9   : > { %v9050_v1 = vsel %vm2450_vm2, %v15913_v55, %v2707_v29  ;;  %v15915_v24 = vrot.slane %v15914_v52, 3  ;;  %v15917_v62 = vrot.slane %v15916_v21, 3  ;;  %v3773_v55 = vmul.f32 %v15794_v61, %v8617_v7  ;;  %v15920_v3 = vld [vmem:[#allocation32_spill] sm:$0xff] }
  0xfa   : > { %v3897_v29 = vmul.f32 %v15797_v59, %v8631_v13  ;;  %v4742_v58 = vadd.f32 %v8863_v23, %v4618_v28  ;;  %v1765_v27 = vadd.f32 %v1715_v43, %v1641_v17  ;;  %v15919_v22 = vrot.slane %v15918_v4, 3  ;;  %v15924_v43 = vld [vmem:[#allocation66_spill] sm:$0xff] }
  0xfb   : > { %v9058_v45 = vsel %vm2450_vm2, %v15915_v24, %v2831_v31  ;;  %v9063_v0 = vsel %vm2450_vm2, %v15917_v62, %v2955_v56  ;;  %v15921_v47 = vrot.slane %v15920_v3, 3  ;;  %v15922_v31 = vld [vmem:[#allocation117_spill] sm:$0xff]  ;;  %v3700_v30 = vrot.slane %v3649_v40, 4  ;;  %v15925_v17 = vld [vmem:[#allocation118_spill] sm:$0xff]  ;;  %v15927_v24 = vld [vmem:[#allocation119_spill] sm:$0xff] }
  0xfc   : > { %v9073_v8 = vsel %vm2450_vm2, %v15919_v22, %v3079_v10  ;;  %v15923_v56 = vrot.slane %v15922_v31, 4  ;;  %v4021_v23 = vmul.f32 %v15687_v9, %v8927_v50  ;;  %v4145_v12 = vmul.f32 %v15924_v43, %v8573_v11  ;;  %v15930_v3 = vld [vmem:[#allocation120_spill] sm:$0xff]  ;;  %v15932_v31 = vld [vmem:[#allocation77_spill] sm:$0xff] }
  0xfd   : > { %v9078_v35 = vsel %vm2450_vm2, %v15921_v47, %v3203_v18  ;;  %v4866_v10 = vadd.f32 %v8875_v46, %v4742_v58  ;;  %v1889_v28 = vadd.f32 %v1839_v37, %v1765_v27  ;;  %v15926_v52 = vrot.slane %v15925_v17, 4  ;;  %v15929_v58 = vld [vmem:[#allocation74_spill] sm:$0xff]  ;;  %v9299_v9 = vld [vmem:[%s7389_s18 + $0xb0] sm:$0xff] }
  0xfe   : > { %v9083_v60 = vsel %vm3319_vm3, %v15923_v56, %v3328_v49  ;;  %v15928_v21 = vrot.slane %v15927_v24, 4  ;;  %v3824_v40 = vrot.slane %v3773_v55, 4  ;;  %v3948_v62 = vrot.slane %v3897_v29, 4  ;;  %v15935_v24 = vld [vmem:[#allocation121_spill] sm:$0xff]  ;;  %16000 = vst [vmem:[#allocation33_spill] sm:$0xff] %v9299_v9 }
  0xff   : > { %v9093_v18 = vsel %vm3319_vm3, %v15926_v52, %v3452_v42  ;;  %v4270_v4 = vmul.f32 %v15694_v36, %v8583_v26  ;;  %v4394_v22 = vmul.f32 %v15701_v44, %v8586_v38  ;;  %v4990_v46 = vadd.f32 %v8884_v14, %v4866_v10  ;;  %v15990_v44 = vld [vmem:[#allocation13_spill] sm:$0xff] }
 0x100   : > { %v9098_v49 = vsel %vm3319_vm3, %v15928_v21, %v3576_v2  ;;  %v2013_v37 = vadd.f32 %v1963_v48, %v1889_v28  ;;  %v4518_v42 = vmul.f32 %v15705_v15, %v8608_v39  ;;  %v4642_v27 = vmul.f32 %v15929_v58, %v8617_v7  ;;  %v15933_v48 = vld [vmem:[#allocation78_spill] sm:$0xff]  ;;  %v15934_v28 = vld [vmem:[#allocation79_spill] sm:$0xff] }
 0x101   : > { %v15931_v2 = vrot.slane %v15930_v3, 4  ;;  %v4072_v29 = vrot.slane %v4021_v23, 4  ;;  %v4197_v47 = vrot.slane %v4145_v12, 5  ;;  %v4766_v56 = vmul.f32 %v15932_v31, %v8631_v13 }
 0x102   : > { %v5115_v17 = vadd.f32 %v8894_v5, %v4990_v46  ;;  %v2137_v14 = vadd.f32 %v2087_v57, %v2013_v37  ;;  %v4890_v10 = vmul.f32 %v15933_v48, %v8927_v50  ;;  %v5014_v52 = vmul.f32 %v15934_v28, %v8573_v11  ;;  %v15939_v48 = vld [vmem:[#allocation123_spill] sm:$0xff] }
 0x103   : > { %v9112_v55 = vsel %vm3319_vm3, %v15931_v2, %v3700_v30  ;;  %v15936_v21 = vrot.slane %v15935_v24, 4  ;;  %v15937_v30 = vld [vmem:[#allocation122_spill] sm:$0xff]  ;;  %v4321_v2 = vrot.slane %v4270_v4, 5  ;;  %v4445_v31 = vrot.slane %v4394_v22, 5  ;;  %v15941_v24 = vld [vmem:[#allocation124_spill] sm:$0xff] }
 0x104   : > { %v15938_v23 = vrot.slane %v15937_v30, 4  ;;  %v5239_v5 = vadd.f32 %v8899_v63, %v5115_v17  ;;  %v2261_v57 = vadd.f32 %v2211_v16, %v2137_v14  ;;  %v4569_v46 = vrot.slane %v4518_v42, 5 }
 0x105   : > { %v9124_v3 = vsel %vm3319_vm3, %v15936_v21, %v3824_v40  ;;  %v4693_v37 = vrot.slane %v4642_v27, 5  ;;  %v15940_v58 = vrot.slane %v15939_v48, 4  ;;  %v15942_v40 = vrot.slane %v15941_v24, 5  ;;  %v15944_v27 = vld [vmem:[#allocation125_spill] sm:$0xff]  ;;  %v15954_v24 = vld [vmem:[#allocation131_spill] sm:$0xff] }
 0x106   : > { %v9129_v12 = vsel %vm3319_vm3, %v15938_v23, %v3948_v62  ;;  %v4817_v30 = vrot.slane %v4766_v56, 5  ;;  %v15943_v62 = vld [vmem:[#allocation82_spill] sm:$0xff]  ;;  %v5363_v22 = vadd.f32 %v8909_v19, %v5239_v5  ;;  %v2385_v63 = vadd.f32 %v2335_v34, %v2261_v57 }
 0x107   : > { %v9135_v11 = vsel %vm3319_vm3, %v15940_v58, %v4072_v29  ;;  %v9140_v21 = vsel %vm4188_vm4, %v15942_v40, %v4197_v47  ;;  %v5139_v4 = vmul.f32 %v15943_v62, %v8583_v26  ;;  %v4941_v16 = vrot.slane %v4890_v10, 5  ;;  %v15946_v58 = vld [vmem:[#allocation127_spill] sm:$0xff]  ;;  %v15948_v47 = vld [vmem:[#allocation84_spill] sm:$0xff]  ;;  %v15949_v26 = vld [vmem:[#allocation85_spill] sm:$0xff] }
 0x108   : > { %v5066_v42 = vrot.slane %v5014_v52, 6  ;;  %v15945_v17 = vrot.slane %v15944_v27, 5  ;;  %v15947_v29 = vrot.slane %v15946_v58, 5  ;;  %v5263_v56 = vmul.f32 %v15948_v47, %v8586_v38  ;;  %v15950_v10 = vld [vmem:[#allocation129_spill] sm:$0xff]  ;;  %v15952_v5 = vld [vmem:[#allocation130_spill] sm:$0xff] }
 0x109   : > { %v9159_v23 = vmul.f32 %v15949_v26, %v8608_v39  ;;  %v5487_v19 = vadd.f32 %v8914_v51, %v5363_v22  ;;  %v2510_v34 = vadd.f32 %v9039_v33, %v2385_v63  ;;  %v15951_v52 = vrot.slane %v15950_v10, 5  ;;  %v15956_v51 = vld [vmem:[#allocation87_spill] sm:$0xff]  ;;  %v15957_v33 = vld [vmem:[#allocation90_spill] sm:$0xff]  ;;  %v15978_v10 = vld [vmem:[#allocation8_spill] sm:$0xff] }
 0x10a   : > { %v9148_v14 = vsel %vm4188_vm4, %v15945_v17, %v4321_v2  ;;  %v9153_v48 = vsel %vm4188_vm4, %v15947_v29, %v4445_v31  ;;  %v15953_v57 = vrot.slane %v15952_v5, 5  ;;  %v15955_v38 = vrot.slane %v15954_v24, 5  ;;  %v15965_v5 = vld [vmem:[#allocation3_spill] sm:$0xff]  ;;  %v15986_v62 = vld [vmem:[#allocation10_spill] sm:$0xff] }
 0x10b   : > { %v9166_v2 = vsel %vm4188_vm4, %v15951_v52, %v4569_v46  ;;  %v5190_v39 = vrot.slane %v5139_v4, 6  ;;  %v9180_v22 = vmul.f32 %v15956_v51, %v8617_v7  ;;  %v9184_v63 = vmul.f32 %v15957_v33, %v8631_v13  ;;  %v15962_v13 = vld [vmem:[#allocation92_spill] sm:$0xff] }
 0x10c   : > { %v9171_v31 = vsel %vm4188_vm4, %v15953_v57, %v4693_v37  ;;  %v9176_v40 = vsel %vm4188_vm4, %v15955_v38, %v4817_v30  ;;  %v5611_v46 = vadd.f32 %v8924_v41, %v5487_v19  ;;  %v2634_v27 = vadd.f32 %v9045_v54, %v2510_v34  ;;  %v15958_v37 = vld [vmem:[#allocation132_spill] sm:$0xff]  ;;  %v15960_v30 = vld [vmem:[#allocation134_spill] sm:$0xff]  ;;  %v15964_v19 = vld [vmem:[#allocation135_spill] sm:$0xff] }
 0x10d   : > { %v15959_v17 = vrot.slane %v15958_v37, 5  ;;  %v15961_v29 = vrot.slane %v15960_v30, 6  ;;  %v5314_v7 = vrot.slane %v5263_v56, 6  ;;  %v9201_v52 = vmul.f32 %v15962_v13, %v8927_v50  ;;  %v15963_v41 = vld [vmem:[#allocation2_spill] sm:$0xff]  ;;  %v15967_v38 = vld [vmem:[#allocation4_spill] sm:$0xff]  ;;  %v15969_v56 = vld [vmem:[#allocation137_spill] sm:$0xff] }
 0x10e   : > { %v416_v54 = vmul.f32 %v15964_v19, %v15963_v41  ;;  %v5735_v34 = vadd.f32 %v8934_v53, %v5611_v46  ;;  %v15966_v57 = vld [vmem:[#allocation126_spill] sm:$0xff]  ;;  %v15971_v50 = vld [vmem:[#allocation5_spill] sm:$0xff]  ;;  %v15976_v41 = vld [vmem:[#allocation136_spill] sm:$0xff] }
 0x10f   : > { %v9191_v58 = vsel %vm4188_vm4, %v15959_v17, %v4941_v16  ;;  %v9196_v4 = vsel %vm5057_vm5, %v15961_v29, %v5066_v42  ;;  %v2758_v16 = vadd.f32 %v9050_v1, %v2634_v27  ;;  %v452_v24 = vmul.f32 %v15966_v57, %v15965_v5  ;;  %v15968_v42 = vld [vmem:[#allocation128_spill] sm:$0xff]  ;;  %v15972_v53 = vld [vmem:[#allocation142_spill] sm:$0xff]  ;;  %v15974_v5 = vld [vmem:[#allocation7_spill] sm:$0xff] }
 0x110   : > { %v488_v37 = vmul.f32 %v15968_v42, %v15967_v38  ;;  %v15970_v17 = vrot.slane %v15969_v56, 6  ;;  %v524_v1 = vmul.f32 %v15972_v53, %v15971_v50  ;;  %v5859_v46 = vadd.f32 %v8944_v20, %v5735_v34  ;;  %v15973_v38 = vld [vmem:[#allocation6_spill] sm:$0xff] }
 0x111   : > { %v2882_v27 = vadd.f32 %v9058_v45, %v2758_v16  ;;  %v468_v13 = vadd.f32 %v452_v24, %v416_v54  ;;  %v670_v56 = vmul.f32 %v15964_v19, %v15973_v38  ;;  %v9228_v29 = vmul.f32 %v15976_v41, %v15973_v38  ;;  %v15979_v50 = vld [vmem:[#allocation138_spill] sm:$0xff]  ;;  %v9246_v16 = vld [vmem:[%s7389_s18 + $0xa8] sm:$0xff] }
 0x112   : > { %v9214_v30 = vsel %vm5057_vm5, %v15970_v17, %v5190_v39  ;;  %v15975_v39 = vld [vmem:[#allocation145_spill] sm:$0xff]  ;;  %v795_v33 = vmul.f32 %v15966_v57, %v15978_v10  ;;  %v9234_v51 = vmul.f32 %v15979_v50, %v15978_v10  ;;  %v9239_v20 = vld [vmem:[%s14562_s2] ss:$0 sm:$0xff]  ;;  %15983 = vst [vmem:[#allocation23_spill] sm:$0xff] %v9246_v16  ;;  %v15984_v24 = vld [vmem:[#allocation11_spill] sm:$0xff]  ;;  %v919_v28 = vmul.f32 %v15968_v42, %v15986_v62 }
 0x113   : > { %v560_v17 = vmul.f32 %v15975_v39, %v15974_v5  ;;  %15977 = vst [vmem:[#allocation15_spill] sm:$0xff] %v9228_v29  ;;  %15981 = vst [vmem:[#allocation19_spill] sm:$0xff] %v9239_v20  ;;  %v9242_v45 = vadd.f32 %v9239_v20, %v5859_v46  ;;  %v3006_v54 = vadd.f32 %v9063_v0, %v2882_v27  ;;  %v9251_v5 = vld [vmem:[%s7389_s18 + $0xc0] sm:$0xff]  ;;  %v723_v10 = vrot.slane %v670_v56, 1  ;;  %v15987_v27 = vld [vmem:[#allocation139_spill] sm:$0xff] }
 0x114   : > { %15980 = vst [vmem:[#allocation17_spill] sm:$0xff] %v9234_v51  ;;  %v504_v34 = vadd.f32 %v488_v37, %v468_v13  ;;  %v596_v38 = vmul.f32 %v9246_v16, %v15984_v24  ;;  %15985 = vst [vmem:[#allocation24_spill] sm:$0xff] %v9251_v5  ;;  %v847_v47 = vrot.slane %v795_v33, 1  ;;  %v15988_v24 = vrot.slane %v15987_v27, 6  ;;  %v15989_v56 = vld [vmem:[#allocation140_spill] sm:$0xff]  ;;  %v15994_v37 = vld [vmem:[#allocation146_spill] sm:$0xff] }
 0x115   : > { %15982 = vst [vmem:[#allocation22_spill] sm:$0xff] %v9242_v45  ;;  %v5901_v46 = vsel %vm5897_vm6, %v9242_v45, 0.0  ;;  %v3130_v0 = vadd.f32 %v9073_v8, %v3006_v54  ;;  %v9268_v26 = vmul.f32 %v15989_v56, %v15986_v62  ;;  %v1043_v45 = vmul.f32 %v15972_v53, %v15990_v44  ;;  %v15991_v54 = vld [vmem:[#allocation12_spill] sm:$0xff]  ;;  %v15996_v20 = vld [vmem:[#allocation18_spill] sm:$0xff] }
 0x116   : > { %v540_v13 = vadd.f32 %v524_v1, %v504_v34  ;;  %5902 = vadd.xlane.f32.xlu0 %v5901_v46  ;;  %v9263_v15 = vsel %vm5057_vm5, %v15988_v24, %v5314_v7  ;;  %v632_v34 = vmul.f32 %v15991_v54, %v9251_v5  ;;  %v15992_v7 = vld [vmem:[#allocation143_spill] sm:$0xff]  ;;  %v971_v46 = vrot.slane %v919_v28, 1  ;;  %v15993_v27 = vld [vmem:[#allocation16_spill] sm:$0xff] }
 0x117   : > { %v3254_v8 = vadd.f32 %v9078_v35, %v3130_v0  ;;  %v9277_v24 = vmul.f32 %v15992_v7, %v15990_v44  ;;  %v1167_v33 = vmul.f32 %v15975_v39, %v15993_v27  ;;  %v9283_v62 = vmul.f32 %v15994_v37, %v15993_v27  ;;  %v9295_v44 = vld [vmem:[%s7389_s18 + $0xc8] sm:$0xff] }
 0x118   : > { %v576_v1 = vadd.f32 %v560_v17, %v540_v13  ;;  %v1291_v36 = vmul.f32 %v9246_v16, %v15996_v20  ;;  %v15997_v0 = vrot.slane %v9228_v29, 1  ;;  %v15998_v54 = vrot.slane %v9234_v51, 1  ;;  %15999 = vst [vmem:[#allocation30_spill] sm:$0xff] %v9295_v44 }
 0x119   : > { %15995 = vst [vmem:[#allocation28_spill] sm:$0xff] %v9283_v62  ;;  %v3379_v35 = vadd.f32 %v9083_v60, %v3254_v8  ;;  %v1095_v27 = vrot.slane %v1043_v45, 1  ;;  %v9303_v59 = vmul.f32 %v9299_v9, %v15996_v20  ;;  %v16002_v60 = vld [vmem:[#allocation20_spill] sm:$0xff]  ;;  %v16004_v29 = vrot.slane %v9159_v23, 6  ;;  %v16005_v20 = vld [vmem:[#allocation141_spill] sm:$0xff] }
 0x11a   : > { %v612_v17 = vadd.f32 %v596_v38, %v576_v1  ;;  %v725_v13 = vsel %vm712_vm0, %v723_v10, %v15997_v0  ;;  %v849_v28 = vsel %vm712_vm0, %v847_v47, %v15998_v54  ;;  %v1415_v38 = vmul.f32 %v16002_v60, %v9251_v5 }
 0x11b   : > { %16001 = vst [vmem:[#allocation36_spill] sm:$0xff] %v9303_v59  ;;  %v3503_v10 = vadd.f32 %v9093_v18, %v3379_v35  ;;  %v9311_v47 = vmul.f32 %v16002_v60, %v9295_v44  ;;  %v1219_v54 = vrot.slane %v1167_v33, 1  ;;  %v1343_v0 = vrot.slane %v1291_v36, 1  ;;  %v16007_v35 = vld [vmem:[#allocation21_spill] sm:$0xff] }
 0x11c   : > { %v648_v8 = vadd.f32 %v632_v34, %v612_v17  ;;  %v16006_v61 = vrot.slane %v16005_v20, 6  ;;  %v1539_v17 = vmul.f32 %v15964_v19, %v16007_v35  ;;  %v16008_v33 = vrot.slane %v9268_v26, 1 }
 0x11d   : > { %16003 = vst [vmem:[#allocation37_spill] sm:$0xff] %v9311_v47  ;;  %v3627_v51 = vadd.f32 %v9098_v49, %v3503_v10  ;;  %v1467_v36 = vrot.slane %v1415_v38, 1  ;;  %v9331_v49 = vmul.f32 %v15976_v41, %v16007_v35  ;;  %v16014_v38 = vrot.slane %v9184_v63, 6 }
 0x11e   : > { %v9321_v18 = vsel %vm5057_vm5, %v16006_v61, %v16004_v29  ;;  %v773_v34 = vadd.f32 %v725_v13, %v648_v8  ;;  %v973_v45 = vsel %vm712_vm0, %v971_v46, %v16008_v33  ;;  %v16010_v61 = vrot.slane %v9180_v22, 6  ;;  %v16011_v29 = vld [vmem:[#allocation144_spill] sm:$0xff]  ;;  %v16013_v8 = vld [vmem:[#allocation25_spill] sm:$0xff]  ;;  %v16015_v33 = vld [vmem:[#allocation147_spill] sm:$0xff] }
 0x11f   : > { %16009 = vst [vmem:[#allocation40_spill] sm:$0xff] %v9331_v49  ;;  %v3751_v23 = vadd.f32 %v9112_v55, %v3627_v51  ;;  %v16012_v20 = vrot.slane %v16011_v29, 6  ;;  %v1664_v46 = vmul.f32 %v15966_v57, %v16013_v8  ;;  %v16016_v43 = vrot.slane %v16015_v33, 6  ;;  %v16021_v33 = vld [vmem:[#allocation26_spill] sm:$0xff] }
 0x120   : > { %v897_v10 = vadd.f32 %v849_v28, %v773_v34  ;;  %v16017_v55 = vrot.slane %v9277_v24, 1  ;;  %v16018_v22 = vrot.slane %v9283_v62, 1  ;;  %v16019_v28 = vrot.slane %v9303_v59, 1 }
 0x121   : > { %v9339_v13 = vsel %vm5057_vm5, %v16012_v20, %v16010_v61  ;;  %v9348_v1 = vsel %vm5057_vm5, %v16016_v43, %v16014_v38  ;;  %v3875_v57 = vadd.f32 %v9124_v3, %v3751_v23  ;;  %v1592_v29 = vrot.slane %v1539_v17, 2  ;;  %v16022_v23 = vld [vmem:[#allocation27_spill] sm:$0xff] }
 0x122   : > { %v1097_v51 = vsel %vm712_vm0, %v1095_v27, %v16017_v55  ;;  %v1221_v61 = vsel %vm712_vm0, %v1219_v54, %v16018_v22  ;;  %v1345_v34 = vsel %vm712_vm0, %v1343_v0, %v16019_v28  ;;  %v1021_v63 = vadd.f32 %v973_v45, %v897_v10 }
 0x123   : > { %v9362_v43 = vmul.f32 %v15979_v50, %v16013_v8  ;;  %v16020_v20 = vrot.slane %v9311_v47, 1  ;;  %v14847_v38 = vrot.slane %v9331_v49, 2  ;;  %v1788_v54 = vmul.f32 %v15968_v42, %v16021_v33 }
 0x124   : > { %v9372_v0 = vmul.f32 %v15989_v56, %v16021_v33  ;;  %v3999_v3 = vadd.f32 %v9129_v12, %v3875_v57  ;;  %v1145_v45 = vadd.f32 %v1097_v51, %v1021_v63  ;;  %v1716_v17 = vrot.slane %v1664_v46, 2 }
 0x125   : > { %v1469_v27 = vsel %vm712_vm0, %v1467_v36, %v16020_v20  ;;  %v1912_v10 = vmul.f32 %v15972_v53, %v16022_v23  ;;  %v9379_v55 = vmul.f32 %v15992_v7, %v16022_v23  ;;  %v16023_v36 = vld [vmem:[#allocation31_spill] sm:$0xff]  ;;  %v2160_v28 = vmul.f32 %v9246_v16, %v15879_v6 }
 0x126   : > { %v2036_v22 = vmul.f32 %v15975_v39, %v16023_v36  ;;  %v9385_v42 = vmul.f32 %v15994_v37, %v16023_v36  ;;  %v4123_v12 = vadd.f32 %v9135_v11, %v3999_v3  ;;  %v1269_v46 = vadd.f32 %v1221_v61, %v1145_v45 }
 0x127   : > { %v9393_v57 = vmul.f32 %v9299_v9, %v15879_v6  ;;  %v1594_v63 = vsel %vm1581_vm1, %v1592_v29, %v14847_v38  ;;  %v1840_v20 = vrot.slane %v1788_v54, 2  ;;  %v2284_v59 = vmul.f32 %v15884_v32, %v9251_v5  ;;  %v16027_v6 = vld [vmem:[#allocation38_spill] sm:$0xff] }
 0x128   : > { %16024 = vst [vmem:[#allocation41_spill] sm:$0xff] %v9385_v42  ;;  %v4248_v62 = vadd.f32 %v9140_v21, %v4123_v12  ;;  %v1393_v11 = vadd.f32 %v1345_v34, %v1269_v46  ;;  %v1964_v61 = vrot.slane %v1912_v10, 2  ;;  %v9404_v3 = vmul.f32 %v15884_v32, %v9295_v44 }
 0x129   : > { %16025 = vst [vmem:[#allocation42_spill] sm:$0xff] %v9393_v57  ;;  %v14852_v45 = vrot.slane %v9379_v55, 2  ;;  %v2088_v51 = vrot.slane %v2036_v22, 2  ;;  %v14851_v49 = vrot.slane %v9385_v42, 2  ;;  %v2212_v29 = vrot.slane %v2160_v28, 2 }
 0x12a   : > { %16026 = vst [vmem:[#allocation46_spill] sm:$0xff] %v9404_v3  ;;  %v4372_v54 = vadd.f32 %v9148_v14, %v4248_v62  ;;  %v1517_v38 = vadd.f32 %v1469_v27, %v1393_v11  ;;  %v14850_v47 = vrot.slane %v9393_v57, 2  ;;  %v2408_v21 = vmul.f32 %v15964_v19, %v16027_v6  ;;  %v16031_v27 = vld [vmem:[#allocation148_spill] sm:$0xff]  ;;  %v9500_v57 = vld [vmem:[%s7389_s18 + $0x38] sm:$0xff] }
 0x12b   : > { %v16028_v34 = vrot.slane %v9362_v43, 2  ;;  %v2336_v12 = vrot.slane %v2284_v59, 2  ;;  %v14849_v46 = vrot.slane %v9404_v3, 2  ;;  %v9418_v22 = vmul.f32 %v15976_v41, %v16027_v6  ;;  %v9495_v3 = vld [vmem:[%s7389_s18 + $0x30] sm:$0xff] }
 0x12c   : > { %v4496_v62 = vadd.f32 %v9153_v48, %v4372_v54  ;;  %v16030_v14 = vrot.slane %v9201_v52, 6  ;;  %v16032_v28 = vrot.slane %v16031_v27, 6  ;;  %v1642_v11 = vadd.f32 %v1594_v63, %v1517_v38  ;;  %v9438_v54 = vld [vmem:[%s7389_s18 + $0x48] sm:$0xff] }
 0x12d   : > { %v1718_v10 = vsel %vm1581_vm1, %v1716_v17, %v16028_v34  ;;  %16029 = vst [vmem:[#allocation47_spill] sm:$0xff] %v9418_v22  ;;  %v16033_v17 = vrot.slane %v9372_v0, 2  ;;  %v1966_v41 = vsel %vm1581_vm1, %v1964_v61, %v14852_v45  ;;  %v2090_v48 = vsel %vm1581_vm1, %v2088_v51, %v14851_v49  ;;  %16034 = vst [vmem:[#allocation50_spill] sm:$0xff] %v9438_v54  ;;  %v16035_v52 = vld [vmem:[#allocation39_spill] sm:$0xff] }
 0x12e   : > { %v9426_v19 = vsel %vm5057_vm5, %v16032_v28, %v16030_v14  ;;  %v2533_v34 = vmul.f32 %v9438_v54, %v16035_v52  ;;  %v9444_v38 = vmul.f32 %v15979_v50, %v16035_v52  ;;  %v4620_v63 = vadd.f32 %v9166_v2, %v4496_v62  ;;  %v9455_v28 = vld [vmem:[%s7389_s18 + $0x60] sm:$0xff] }
 0x12f   : > { %v1842_v59 = vsel %vm1581_vm1, %v1840_v20, %v16033_v17  ;;  %v1766_v20 = vadd.f32 %v1718_v10, %v1642_v11  ;;  %v2214_v61 = vsel %vm1581_vm1, %v2212_v29, %v14850_v47  ;;  %v2461_v14 = vrot.slane %v2408_v21, 3  ;;  %16037 = vst [vmem:[#allocation53_spill] sm:$0xff] %v9455_v28  ;;  %v16038_v17 = vld [vmem:[#allocation43_spill] sm:$0xff]  ;;  %v16040_v29 = vld [vmem:[#allocation44_spill] sm:$0xff]  ;;  %v16042_v47 = vld [vmem:[#allocation45_spill] sm:$0xff] }
 0x130   : > { %16036 = vst [vmem:[#allocation51_spill] sm:$0xff] %v9444_v38  ;;  %v2338_v51 = vsel %vm1581_vm1, %v2336_v12, %v14849_v46  ;;  %v2657_v50 = vmul.f32 %v9455_v28, %v16038_v17  ;;  %v9461_v2 = vmul.f32 %v15989_v56, %v16038_v17  ;;  %v4744_v10 = vadd.f32 %v9171_v31, %v4620_v63 }
 0x131   : > { %v1890_v62 = vadd.f32 %v1842_v59, %v1766_v20  ;;  %v2781_v21 = vmul.f32 %v15972_v53, %v16040_v29  ;;  %v9468_v12 = vmul.f32 %v15992_v7, %v16040_v29  ;;  %v2585_v11 = vrot.slane %v2533_v34, 3  ;;  %v16044_v53 = vld [vmem:[#allocation48_spill] sm:$0xff] }
 0x132   : > { %16039 = vst [vmem:[#allocation54_spill] sm:$0xff] %v9461_v2  ;;  %v2905_v49 = vmul.f32 %v15975_v39, %v16042_v47  ;;  %v9475_v56 = vmul.f32 %v15994_v37, %v16042_v47  ;;  %v4868_v31 = vadd.f32 %v9176_v40, %v4744_v10  ;;  %v3029_v63 = vmul.f32 %v9246_v16, %v16044_v53  ;;  %v16046_v39 = vld [vmem:[#allocation49_spill] sm:$0xff] }
 0x133   : > { %16041 = vst [vmem:[#allocation57_spill] sm:$0xff] %v9468_v12  ;;  %v2014_v59 = vadd.f32 %v1966_v41, %v1890_v62  ;;  %v9482_v7 = vmul.f32 %v9299_v9, %v16044_v53  ;;  %v2709_v34 = vrot.slane %v2657_v50, 3  ;;  %v3153_v45 = vmul.f32 %v16046_v39, %v9251_v5  ;;  %v16048_v50 = vld [vmem:[#allocation52_spill] sm:$0xff]  ;;  %v16051_v53 = vld [vmem:[#allocation55_spill] sm:$0xff] }
 0x134   : > { %16043 = vst [vmem:[#allocation107_spill] sm:$0xff] %v9475_v56  ;;  %v9489_v37 = vmul.f32 %v16046_v39, %v9295_v44  ;;  %v4992_v40 = vadd.f32 %v9191_v58, %v4868_v31  ;;  %v2833_v10 = vrot.slane %v2781_v21, 3  ;;  %v2957_v46 = vrot.slane %v2905_v49, 3 }
 0x135   : > { %16045 = vst [vmem:[#allocation58_spill] sm:$0xff] %v9482_v7  ;;  %v2138_v41 = vadd.f32 %v2090_v48, %v2014_v59  ;;  %v3277_v20 = vmul.f32 %v9495_v3, %v16048_v50  ;;  %v9504_v39 = vmul.f32 %v9500_v57, %v16048_v50  ;;  %v3081_v21 = vrot.slane %v3029_v63, 3 }
 0x136   : > { %16047 = vst [vmem:[#allocation61_spill] sm:$0xff] %v9489_v37  ;;  %v5117_v58 = vadd.f32 %v9196_v4, %v4992_v40  ;;  %v14861_v49 = vrot.slane %v9482_v7, 3  ;;  %v16050_v31 = vrot.slane %v9418_v22, 3  ;;  %v3205_v27 = vrot.slane %v3153_v45, 3 }
 0x137   : > { %16049 = vst [vmem:[#allocation64_spill] sm:$0xff] %v9504_v39  ;;  %v2262_v48 = vadd.f32 %v2214_v61, %v2138_v41  ;;  %v14860_v62 = vrot.slane %v9489_v37, 3  ;;  %v3402_v47 = vmul.f32 %v9438_v54, %v16051_v53  ;;  %v16052_v4 = vrot.slane %v9444_v38, 3 }
 0x138   : > { %v2463_v59 = vsel %vm2450_vm2, %v2461_v14, %v16050_v31  ;;  %v5241_v50 = vadd.f32 %v9214_v30, %v5117_v58  ;;  %v16053_v63 = vrot.slane %v9461_v2, 3  ;;  %v16054_v14 = vrot.slane %v9468_v12, 3  ;;  %v9526_v30 = vld [vmem:[%s7389_s18 + $0x50] sm:$0xff] }
 0x139   : > { %v2386_v42 = vadd.f32 %v2338_v51, %v2262_v48  ;;  %v2587_v61 = vsel %vm2450_vm2, %v2585_v11, %v16052_v4  ;;  %v3330_v41 = vrot.slane %v3277_v20, 4  ;;  %v14866_v31 = vrot.slane %v9504_v39, 4  ;;  %16055 = vst [vmem:[#allocation65_spill] sm:$0xff] %v9526_v30 }
 0x13a   : > { %v2711_v40 = vsel %vm2450_vm2, %v2709_v34, %v16053_v63  ;;  %v2835_v45 = vsel %vm2450_vm2, %v2833_v10, %v16054_v14  ;;  %v9530_v51 = vmul.f32 %v9526_v30, %v16051_v53  ;;  %v5365_v11 = vadd.f32 %v9263_v15, %v5241_v50  ;;  %v16058_v63 = vld [vmem:[#allocation56_spill] sm:$0xff]  ;;  %v9545_v15 = vld [vmem:[%s7389_s18 + $0x68] sm:$0xff]  ;;  %v16078_v53 = vld [vmem:[#allocation70_spill] sm:$0xff] }
 0x13b   : > { %v2511_v58 = vadd.f32 %v2463_v59, %v2386_v42  ;;  %v16057_v34 = vrot.slane %v9475_v56, 3  ;;  %v3083_v20 = vsel %vm2450_vm2, %v3081_v21, %v14861_v49  ;;  %v3207_v10 = vsel %vm2450_vm2, %v3205_v27, %v14860_v62  ;;  %16059 = vst [vmem:[#allocation68_spill] sm:$0xff] %v9545_v15  ;;  %v9553_v59 = vld [vmem:[%s7389_s18 + $0x78] sm:$0xff]  ;;  %v9569_v49 = vld [vmem:[%s7389_s18 + $0x90] sm:$0xff]  ;;  %v16068_v56 = vld [vmem:[#allocation62_spill] sm:$0xff] }
 0x13c   : > { %16056 = vst [vmem:[#allocation67_spill] sm:$0xff] %v9530_v51  ;;  %v3454_v4 = vrot.slane %v3402_v47, 4  ;;  %v3526_v14 = vmul.f32 %v9455_v28, %v16058_v63  ;;  %v9549_v42 = vmul.f32 %v9545_v15, %v16058_v63  ;;  %16061 = vst [vmem:[#allocation72_spill] sm:$0xff] %v9553_v59  ;;  %v3650_v21 = vmul.f32 %v9553_v59, %v15793_v25  ;;  %v16072_v63 = vld [vmem:[#allocation66_spill] sm:$0xff] }
 0x13d   : > { %v2959_v48 = vsel %vm2450_vm2, %v2957_v46, %v16057_v34  ;;  %v5489_v46 = vadd.f32 %v9321_v18, %v5365_v11  ;;  %v2635_v50 = vadd.f32 %v2587_v61, %v2511_v58  ;;  %v9558_v34 = vld [vmem:[%s7389_s18 + $0x80] sm:$0xff]  ;;  %v3332_v27 = vsel %vm3319_vm3, %v3330_v41, %v14866_v31  ;;  %16064 = vst [vmem:[#allocation133_spill] sm:$0xff] %v9569_v49  ;;  %v16065_v18 = vld [vmem:[#allocation60_spill] sm:$0xff]  ;;  %v9574_v11 = vld [vmem:[%s7389_s18 + $0x98] sm:$0xff] }
 0x13e   : > { %16060 = vst [vmem:[#allocation71_spill] sm:$0xff] %v9549_v42  ;;  %16062 = vst [vmem:[#allocation75_spill] sm:$0xff] %v9558_v34  ;;  %v9562_v47 = vmul.f32 %v9558_v34, %v15793_v25  ;;  %v3774_v61 = vmul.f32 %v9569_v49, %v16065_v18  ;;  %v9578_v58 = vmul.f32 %v9574_v11, %v16065_v18  ;;  %v3578_v31 = vrot.slane %v3526_v14, 4  ;;  %v16070_v25 = vld [vmem:[#allocation63_spill] sm:$0xff] }
 0x13f   : > { %16066 = vst [vmem:[#allocation80_spill] sm:$0xff] %v9574_v11  ;;  %v5613_v37 = vadd.f32 %v9339_v13, %v5489_v46  ;;  %v2759_v7 = vadd.f32 %v2711_v40, %v2635_v50  ;;  %v3898_v39 = vmul.f32 %v9246_v16, %v16068_v56  ;;  %v9585_v41 = vmul.f32 %v9299_v9, %v16068_v56  ;;  %v16076_v56 = vld [vmem:[#allocation19_spill] sm:$0xff] }
 0x140   : > { %16063 = vst [vmem:[#allocation76_spill] sm:$0xff] %v9562_v47  ;;  %16067 = vst [vmem:[#allocation81_spill] sm:$0xff] %v9578_v58  ;;  %v4022_v12 = vmul.f32 %v16070_v25, %v9251_v5  ;;  %v9592_v18 = vmul.f32 %v16070_v25, %v9295_v44  ;;  %v3702_v46 = vrot.slane %v3650_v21, 4  ;;  %v3826_v2 = vrot.slane %v3774_v61, 4 }
 0x141   : > { %16069 = vst [vmem:[#allocation83_spill] sm:$0xff] %v9585_v41  ;;  %v5737_v13 = vadd.f32 %v9348_v1, %v5613_v37  ;;  %v2883_v40 = vadd.f32 %v2835_v45, %v2759_v7  ;;  %v4146_v14 = vmul.f32 %v9495_v3, %v16072_v63  ;;  %v9601_v62 = vmul.f32 %v9500_v57, %v16072_v63  ;;  %v16074_v45 = vld [vmem:[#allocation69_spill] sm:$0xff] }
 0x142   : > { %16071 = vst [vmem:[#allocation86_spill] sm:$0xff] %v9592_v18  ;;  %v3950_v22 = vrot.slane %v3898_v39, 4  ;;  %v4074_v7 = vrot.slane %v4022_v12, 4  ;;  %v4271_v21 = vmul.f32 %v9438_v54, %v16074_v45  ;;  %v9610_v61 = vmul.f32 %v9526_v30, %v16074_v45 }
 0x143   : > { %16073 = vst [vmem:[#allocation88_spill] sm:$0xff] %v9601_v62  ;;  %v5861_v38 = vadd.f32 %v9426_v19, %v5737_v13  ;;  %v3007_v25 = vadd.f32 %v2959_v48, %v2883_v40  ;;  %v4395_v19 = vmul.f32 %v9455_v28, %v16078_v53  ;;  %v9619_v39 = vmul.f32 %v9545_v15, %v16078_v53 }
 0x144   : > { %16075 = vst [vmem:[#allocation89_spill] sm:$0xff] %v9610_v61  ;;  %v16080_v12 = vrot.slane %v9530_v51, 4  ;;  %v16081_v13 = vrot.slane %v9549_v42, 4  ;;  %v4199_v37 = vrot.slane %v4146_v14, 5  ;;  %v16082_v1 = vrot.slane %v9562_v47, 4 }
 0x145   : > { %v9613_v50 = vadd.f32 %v16076_v56, %v5861_v38  ;;  %v3131_v63 = vadd.f32 %v3083_v20, %v3007_v25  ;;  %16079 = vst [vmem:[#allocation93_spill] sm:$0xff] %v9619_v39  ;;  %v16083_v45 = vrot.slane %v9578_v58, 4  ;;  %v4323_v14 = vrot.slane %v4271_v21, 5  ;;  %v16088_v21 = vld [vmem:[#allocation74_spill] sm:$0xff] }
 0x146   : > { %v3456_v48 = vsel %vm3319_vm3, %v3454_v4, %v16080_v12  ;;  %v3580_v40 = vsel %vm3319_vm3, %v3578_v31, %v16081_v13  ;;  %v3704_v53 = vsel %vm3319_vm3, %v3702_v46, %v16082_v1  ;;  %v16084_v4 = vrot.slane %v9585_v41, 4  ;;  %v16085_v13 = vld [vmem:[#allocation73_spill] sm:$0xff] }
 0x147   : > { %16077 = vst [vmem:[#allocation91_spill] sm:$0xff] %v9613_v50  ;;  %v5907_v25 = vsel %vm5897_vm6, %v9613_v50, 0.0  ;;  %v3255_v20 = vadd.f32 %v3207_v10, %v3131_v63  ;;  %v3828_v51 = vsel %vm3319_vm3, %v3826_v2, %v16083_v45  ;;  %v14888_v12 = vrot.slane %v9610_v61, 5  ;;  %v16096_v61 = vld [vmem:[#allocation82_spill] sm:$0xff] }
 0x148   : > { %5908 = vadd.xlane.f32.xlu1 %v5907_v25  ;;  %v3952_v31 = vsel %vm3319_vm3, %v3950_v22, %v16084_v4  ;;  %v4519_v38 = vmul.f32 %v9553_v59, %v16085_v13  ;;  %v16086_v63 = vrot.slane %v9592_v18, 4  ;;  %v4447_v1 = vrot.slane %v4395_v19, 5 }
 0x149   : > { %v3380_v10 = vadd.f32 %v3332_v27, %v3255_v20  ;;  %v16087_v2 = vrot.slane %v9601_v62, 5  ;;  %v9651_v22 = vmul.f32 %v9558_v34, %v16085_v13  ;;  %v4643_v25 = vmul.f32 %v9569_v49, %v16088_v21 }
 0x14a   : > { %v4076_v46 = vsel %vm3319_vm3, %v4074_v7, %v16086_v63  ;;  %v9657_v27 = vmul.f32 %v9574_v11, %v16088_v21  ;;  %v16089_v7 = vld [vmem:[#allocation77_spill] sm:$0xff]  ;;  %v4571_v50 = vrot.slane %v4519_v38, 5  ;;  %v16094_v41 = vrot.slane %v9619_v39, 5 }
 0x14b   : > { %v4201_v45 = vsel %vm4188_vm4, %v4199_v37, %v16087_v2  ;;  %v3504_v20 = vadd.f32 %v3456_v48, %v3380_v10  ;;  %v4767_v19 = vmul.f32 %v9246_v16, %v16089_v7  ;;  %v9663_v4 = vmul.f32 %v9299_v9, %v16089_v7  ;;  %v16091_v37 = vld [vmem:[#allocation78_spill] sm:$0xff]  ;;  %v16093_v48 = vld [vmem:[#allocation79_spill] sm:$0xff] }
 0x14c   : > { %v4891_v63 = vmul.f32 %v16091_v37, %v9251_v5  ;;  %v4325_v2 = vsel %vm4188_vm4, %v4323_v14, %v14888_v12  ;;  %v9672_v62 = vmul.f32 %v16091_v37, %v9295_v44  ;;  %v5015_v10 = vmul.f32 %v9495_v3, %v16093_v48  ;;  %v16103_v37 = vld [vmem:[#allocation87_spill] sm:$0xff] }
 0x14d   : > { %16090 = vst [vmem:[#allocation94_spill] sm:$0xff] %v9663_v4  ;;  %v3628_v18 = vadd.f32 %v3580_v40, %v3504_v20  ;;  %v4449_v58 = vsel %vm4188_vm4, %v4447_v1, %v16094_v41  ;;  %v9681_v47 = vmul.f32 %v9500_v57, %v16093_v48  ;;  %v5140_v14 = vmul.f32 %v9438_v54, %v16096_v61  ;;  %v16098_v54 = vld [vmem:[#allocation84_spill] sm:$0xff] }
 0x14e   : > { %16092 = vst [vmem:[#allocation100_spill] sm:$0xff] %v9672_v62  ;;  %v4695_v12 = vrot.slane %v4643_v25, 5  ;;  %v9689_v3 = vmul.f32 %v9526_v30, %v16096_v61  ;;  %v4819_v20 = vrot.slane %v4767_v19, 5  ;;  %v14902_v41 = vrot.slane %v9663_v4, 5  ;;  %v16101_v19 = vld [vmem:[#allocation85_spill] sm:$0xff]  ;;  %v16129_v4 = vld [vmem:[#allocation11_spill] sm:$0xff] }
 0x14f   : > { %16095 = vst [vmem:[#allocation95_spill] sm:$0xff] %v9681_v47  ;;  %v3752_v40 = vadd.f32 %v3704_v53, %v3628_v18  ;;  %v4943_v1 = vrot.slane %v4891_v63, 5  ;;  %v5068_v48 = vrot.slane %v5015_v10, 6  ;;  %v5264_v38 = vmul.f32 %v9455_v28, %v16098_v54  ;;  %v9810_v28 = vld [vmem:[%s7389_s18 + $0xa0] sm:$0x3f] }
 0x150   : > { %16097 = vst [vmem:[#allocation96_spill] sm:$0xff] %v9689_v3  ;;  %v5192_v7 = vrot.slane %v5140_v14, 6  ;;  %v9699_v61 = vmul.f32 %v9545_v15, %v16098_v54  ;;  %v16100_v53 = vrot.slane %v9651_v22, 5  ;;  %v5388_v63 = vmul.f32 %v9553_v59, %v16101_v19  ;;  %16130 = vst [vmem:[#allocation108_spill] sm:$0xff] %v9810_v28 }
 0x151   : > { %v3876_v25 = vadd.f32 %v3828_v51, %v3752_v40  ;;  %v9708_v10 = vmul.f32 %v9558_v34, %v16101_v19  ;;  %v5512_v51 = vmul.f32 %v9569_v49, %v16103_v37  ;;  %v16104_v40 = vrot.slane %v9657_v27, 5  ;;  %v16107_v49 = vld [vmem:[#allocation90_spill] sm:$0xff] }
 0x152   : > { %16099 = vst [vmem:[#allocation97_spill] sm:$0xff] %v9699_v61  ;;  %v4573_v18 = vsel %vm4188_vm4, %v4571_v50, %v16100_v53  ;;  %v4821_v39 = vsel %vm4188_vm4, %v4819_v20, %v14902_v41  ;;  %v9720_v50 = vmul.f32 %v9574_v11, %v16103_v37  ;;  %v16106_v53 = vrot.slane %v9672_v62, 5  ;;  %v16111_v62 = vld [vmem:[#allocation2_spill] sm:$0xff] }
 0x153   : > { %16102 = vst [vmem:[#allocation98_spill] sm:$0xff] %v9708_v10  ;;  %v4000_v14 = vadd.f32 %v3952_v31, %v3876_v25  ;;  %v4697_v42 = vsel %vm4188_vm4, %v4695_v12, %v16104_v40  ;;  %v5316_v19 = vrot.slane %v5264_v38, 6  ;;  %v5636_v31 = vmul.f32 %v9246_v16, %v16107_v49 }
 0x154   : > { %16105 = vst [vmem:[#allocation99_spill] sm:$0xff] %v9720_v50  ;;  %v9725_v59 = vsel %vm4188_vm4, %v4943_v1, %v16106_v53  ;;  %v9731_v12 = vmul.f32 %v9299_v9, %v16107_v49  ;;  %v16109_v20 = vrot.slane %v9681_v47, 6  ;;  %v16110_v41 = vrot.slane %v9689_v3, 6  ;;  %v16113_v3 = vld [vmem:[#allocation4_spill] sm:$0xff] }
 0x155   : > { %v4124_v25 = vadd.f32 %v4076_v46, %v4000_v14  ;;  %v14916_v38 = vrot.slane %v9699_v61, 6  ;;  %v5440_v1 = vrot.slane %v5388_v63, 6  ;;  %v5564_v16 = vrot.slane %v5512_v51, 6  ;;  %v16114_v51 = vld [vmem:[#allocation92_spill] sm:$0xff] }
 0x156   : > { %16108 = vst [vmem:[#allocation101_spill] sm:$0xff] %v9731_v12  ;;  %v9736_v40 = vsel %vm5057_vm5, %v5068_v48, %v16109_v20  ;;  %v9741_v37 = vsel %vm5057_vm5, %v5192_v7, %v16110_v41  ;;  %v417_v46 = vmul.f32 %v9500_v57, %v16111_v62  ;;  %v16112_v20 = vld [vmem:[#allocation3_spill] sm:$0xff]  ;;  %v489_v7 = vmul.f32 %v9545_v15, %v16113_v3  ;;  %v16116_v15 = vld [vmem:[#allocation5_spill] sm:$0xff]  ;;  %v9784_v61 = vld [vmem:[%s7389_s18 + $0x70] sm:$0x3f] }
 0x157   : > { %v4249_v14 = vadd.f32 %v4201_v45, %v4124_v25  ;;  %v453_v49 = vmul.f32 %v9526_v30, %v16112_v20  ;;  %v5688_v41 = vrot.slane %v5636_v31, 6  ;;  %v5760_v53 = vmul.f32 %v16114_v51, %v9251_v5  ;;  %v16118_v5 = vld [vmem:[#allocation7_spill] sm:$0xff]  ;;  %16122 = vst [vmem:[#allocation104_spill] sm:$0xff] %v9784_v61  ;;  %v16134_v20 = vld [vmem:[#allocation18_spill] sm:$0xff] }
 0x158   : > { %v9757_v57 = vmul.f32 %v16114_v51, %v9295_v44  ;;  %v9762_v25 = vsel %vm5057_vm5, %v5316_v19, %v14916_v38  ;;  %v525_v31 = vmul.f32 %v9558_v34, %v16116_v15  ;;  %v16117_v63 = vrot.slane %v9708_v10, 6  ;;  %v9774_v51 = vld [vmem:[%s7389_s18 + $0x40] sm:$0x3f]  ;;  %v9779_v19 = vld [vmem:[%s7389_s18 + $0x58] sm:$0x3f] }
 0x159   : > { %v4373_v45 = vadd.f32 %v4325_v2, %v4249_v14  ;;  %v469_v48 = vadd.f32 %v453_v49, %v417_v46  ;;  %v561_v3 = vmul.f32 %v9574_v11, %v16118_v5  ;;  %v16119_v2 = vld [vmem:[#allocation6_spill] sm:$0xff]  ;;  %16120 = vst [vmem:[#allocation103_spill] sm:$0xff] %v9779_v19  ;;  %v16121_v49 = vld [vmem:[#allocation8_spill] sm:$0xff]  ;;  %v9789_v11 = vld [vmem:[%s7389_s18 + $0x88] sm:$0x3f]  ;;  %v16127_v47 = vrot.slane %v9731_v12, 6 }
 0x15a   : > { %16115 = vst [vmem:[#allocation102_spill] sm:$0xff] %v9757_v57  ;;  %v9769_v30 = vsel %vm5057_vm5, %v5440_v1, %v16117_v63  ;;  %v672_v14 = vmul.f32 %v9774_v51, %v16119_v2  ;;  %v797_v46 = vmul.f32 %v9779_v19, %v16121_v49  ;;  %v16123_v1 = vld [vmem:[#allocation10_spill] sm:$0xff]  ;;  %16124 = vst [vmem:[#allocation105_spill] sm:$0xff] %v9789_v11  ;;  %v16125_v34 = vld [vmem:[#allocation13_spill] sm:$0xff]  ;;  %v16126_v2 = vrot.slane %v9720_v50, 6 }
 0x15b   : > { %v4497_v38 = vadd.f32 %v4449_v58, %v4373_v45  ;;  %v505_v10 = vadd.f32 %v489_v7, %v469_v48  ;;  %v921_v63 = vmul.f32 %v9784_v61, %v16123_v1  ;;  %v1045_v5 = vmul.f32 %v9789_v11, %v16125_v34  ;;  %v9805_v1 = vld [vmem:[%s7389_s18 + $0xd0] sm:$0x3f] }
 0x15c   : > { %v9796_v15 = vsel %vm5057_vm5, %v5564_v16, %v16126_v2  ;;  %v9801_v58 = vsel %vm5057_vm5, %v5688_v41, %v16127_v47  ;;  %v5812_v48 = vrot.slane %v5760_v53, 6  ;;  %16128 = vst [vmem:[#allocation106_spill] sm:$0xff] %v9805_v1  ;;  %v597_v34 = vmul.f32 %v9299_v9, %v16129_v4  ;;  %v16131_v50 = vld [vmem:[#allocation16_spill] sm:$0xff]  ;;  %v16133_v53 = vld [vmem:[#allocation14_spill] sm:$0xff] }
 0x15d   : > { %v4621_v45 = vadd.f32 %v4573_v18, %v4497_v38  ;;  %v541_v49 = vadd.f32 %v525_v31, %v505_v10  ;;  %v1169_v16 = vmul.f32 %v9810_v28, %v16131_v50  ;;  %v16132_v2 = vld [vmem:[#allocation12_spill] sm:$0xff]  ;;  %v726_v47 = vrot.slane %v672_v14, 1 }
 0x15e   : > { %v633_v12 = vmul.f32 %v16132_v2, %v9295_v44  ;;  %v850_v41 = vrot.slane %v797_v46, 1  ;;  %v1293_v7 = vmul.f32 %v16134_v20, %v16133_v53  ;;  %v974_v62 = vrot.slane %v921_v63, 1 }
 0x15f   : > { %v4745_v18 = vadd.f32 %v4697_v42, %v4621_v45  ;;  %v577_v38 = vadd.f32 %v561_v3, %v541_v49  ;;  %v1098_v10 = vrot.slane %v1045_v5, 1  ;;  %v16135_v31 = vrot.slane %v9757_v57, 6  ;;  %v16136_v3 = vld [vmem:[#allocation15_spill] sm:$0xff] }
 0x160   : > { %v1417_v50 = vmul.f32 %v16002_v60, %v9805_v1  ;;  %v1541_v44 = vmul.f32 %v9774_v51, %v16007_v35  ;;  %v1666_v14 = vmul.f32 %v9779_v19, %v16013_v8  ;;  %v1222_v42 = vrot.slane %v1169_v16, 1 }
 0x161   : > { %v9821_v9 = vsel %vm5057_vm5, %v5812_v48, %v16135_v31  ;;  %v4869_v46 = vadd.f32 %v4821_v39, %v4745_v18  ;;  %v613_v20 = vadd.f32 %v597_v34, %v577_v38  ;;  %v1790_v5 = vmul.f32 %v9784_v61, %v16021_v33  ;;  %v16138_v48 = vld [vmem:[#allocation17_spill] sm:$0xff] }
 0x162   : > { %v16137_v49 = vrot.slane %v16136_v3, 1  ;;  %v16139_v45 = vrot.slane %v16138_v48, 1  ;;  %v1346_v57 = vrot.slane %v1293_v7, 1  ;;  %v1914_v35 = vmul.f32 %v9789_v11, %v16022_v23 }
 0x163   : > { %v4993_v8 = vadd.f32 %v9725_v59, %v4869_v46  ;;  %v649_v39 = vadd.f32 %v633_v12, %v613_v20  ;;  %v16140_v34 = vrot.slane %v9268_v26, 1  ;;  %v16141_v18 = vrot.slane %v9277_v24, 1  ;;  %v16144_v20 = vld [vmem:[#allocation36_spill] sm:$0xff] }
 0x164   : > { %v727_v63 = vsel %vm712_vm0, %v16137_v49, %v726_v47  ;;  %v851_v31 = vsel %vm712_vm0, %v16139_v45, %v850_v41  ;;  %v1470_v47 = vrot.slane %v1417_v50, 1  ;;  %v1595_v3 = vrot.slane %v1541_v44, 2  ;;  %v16142_v45 = vld [vmem:[#allocation28_spill] sm:$0xff]  ;;  %v16146_v50 = vld [vmem:[#allocation34_spill] sm:$0xff] }
 0x165   : > { %v975_v16 = vsel %vm712_vm0, %v16140_v34, %v974_v62  ;;  %v1099_v38 = vsel %vm712_vm0, %v16141_v18, %v1098_v10  ;;  %v1719_v49 = vrot.slane %v1666_v14, 2  ;;  %v2038_v7 = vmul.f32 %v9810_v28, %v16023_v36 }
 0x166   : > { %v5118_v41 = vadd.f32 %v9736_v40, %v4993_v8  ;;  %v774_v48 = vadd.f32 %v727_v63, %v649_v39  ;;  %v16143_v59 = vrot.slane %v16142_v45, 1  ;;  %v1843_v26 = vrot.slane %v1790_v5, 2  ;;  %v16147_v5 = vld [vmem:[#allocation37_spill] sm:$0xff] }
 0x167   : > { %v16145_v62 = vrot.slane %v16144_v20, 1  ;;  %v1967_v46 = vrot.slane %v1914_v35, 2  ;;  %v2162_v44 = vmul.f32 %v16146_v50, %v16133_v53  ;;  %v2286_v10 = vmul.f32 %v15884_v32, %v9805_v1  ;;  %v16149_v35 = vld [vmem:[#allocation40_spill] sm:$0xff] }
 0x168   : > { %v1223_v12 = vsel %vm712_vm0, %v16143_v59, %v1222_v42  ;;  %v5242_v14 = vadd.f32 %v9741_v37, %v5118_v41  ;;  %v898_v8 = vadd.f32 %v851_v31, %v774_v48  ;;  %v2410_v40 = vmul.f32 %v9774_v51, %v16027_v6 }
 0x169   : > { %v1347_v24 = vsel %vm712_vm0, %v16145_v62, %v1346_v57  ;;  %v2535_v42 = vmul.f32 %v9779_v19, %v16035_v52  ;;  %v16148_v63 = vrot.slane %v16147_v5, 1  ;;  %v16150_v39 = vrot.slane %v16149_v35, 2 }
 0x16a   : > { %v16151_v34 = vrot.slane %v9362_v43, 2  ;;  %v2091_v37 = vrot.slane %v2038_v7, 2  ;;  %v5366_v31 = vadd.f32 %v9762_v25, %v5242_v14  ;;  %v1022_v41 = vadd.f32 %v975_v16, %v898_v8  ;;  %v16156_v8 = vld [vmem:[#allocation45_spill] sm:$0xff] }
 0x16b   : > { %v1471_v57 = vsel %vm712_vm0, %v16148_v63, %v1470_v47  ;;  %v1596_v53 = vsel %vm1581_vm1, %v16150_v39, %v1595_v3  ;;  %v16152_v48 = vrot.slane %v9372_v0, 2  ;;  %v2659_v47 = vmul.f32 %v9784_v61, %v16038_v17  ;;  %v16154_v0 = vld [vmem:[#allocation41_spill] sm:$0xff]  ;;  %v16161_v39 = vld [vmem:[#allocation42_spill] sm:$0xff] }
 0x16c   : > { %v1720_v18 = vsel %vm1581_vm1, %v16151_v34, %v1719_v49  ;;  %v16153_v59 = vrot.slane %v9379_v55, 2  ;;  %v2215_v20 = vrot.slane %v2162_v44, 2  ;;  %v2339_v43 = vrot.slane %v2286_v10, 2  ;;  %v9891_v55 = vld [vmem:[%s7389_s18 + $0xb8] sm:$0x3f] }
 0x16d   : > { %v1844_v45 = vsel %vm1581_vm1, %v16152_v48, %v1843_v26  ;;  %v2783_v49 = vmul.f32 %v9789_v11, %v16040_v29  ;;  %v5490_v7 = vadd.f32 %v9769_v30, %v5366_v31  ;;  %v1146_v25 = vadd.f32 %v1099_v38, %v1022_v41  ;;  %16157 = vst [vmem:[#allocation109_spill] sm:$0xff] %v9891_v55  ;;  %v16159_v10 = vld [vmem:[#allocation49_spill] sm:$0xff]  ;;  %v16163_v31 = vld [vmem:[#allocation46_spill] sm:$0xff] }
 0x16e   : > { %v1968_v3 = vsel %vm1581_vm1, %v16153_v59, %v1967_v46  ;;  %v2464_v16 = vrot.slane %v2410_v40, 3  ;;  %v2588_v62 = vrot.slane %v2535_v42, 3  ;;  %v16155_v14 = vrot.slane %v16154_v0, 2  ;;  %v16158_v46 = vld [vmem:[#allocation48_spill] sm:$0xff]  ;;  %v16165_v0 = vld [vmem:[#allocation55_spill] sm:$0xff] }
 0x16f   : > { %v2907_v5 = vmul.f32 %v9810_v28, %v16156_v8  ;;  %v3031_v44 = vmul.f32 %v9891_v55, %v16158_v46  ;;  %v3155_v63 = vmul.f32 %v16159_v10, %v9805_v1  ;;  %v5614_v30 = vadd.f32 %v9796_v15, %v5490_v7  ;;  %v16160_v42 = vld [vmem:[#allocation52_spill] sm:$0xff] }
 0x170   : > { %v2092_v26 = vsel %vm1581_vm1, %v16155_v14, %v2091_v37  ;;  %v1270_v38 = vadd.f32 %v1223_v12, %v1146_v25  ;;  %v2712_v40 = vrot.slane %v2659_v47, 3  ;;  %v3279_v35 = vmul.f32 %v9774_v51, %v16160_v42  ;;  %v16166_v47 = vld [vmem:[#allocation47_spill] sm:$0xff]  ;;  %v16199_v46 = vld [vmem:[#allocation76_spill] sm:$0xff] }
 0x171   : > { %v16162_v34 = vrot.slane %v16161_v39, 2  ;;  %v16164_v41 = vrot.slane %v16163_v31, 2  ;;  %v2836_v59 = vrot.slane %v2783_v49, 3  ;;  %v3404_v14 = vmul.f32 %v9779_v19, %v16165_v0  ;;  %v16168_v39 = vld [vmem:[#allocation51_spill] sm:$0xff]  ;;  %v16170_v49 = vld [vmem:[#allocation56_spill] sm:$0xff] }
 0x172   : > { %v5738_v15 = vadd.f32 %v9801_v58, %v5614_v30  ;;  %v1394_v12 = vadd.f32 %v1347_v24, %v1270_v38  ;;  %v16167_v7 = vrot.slane %v16166_v47, 3  ;;  %v16169_v42 = vrot.slane %v16168_v39, 3  ;;  %v16171_v24 = vld [vmem:[#allocation54_spill] sm:$0xff]  ;;  %v16173_v47 = vld [vmem:[#allocation57_spill] sm:$0xff] }
 0x173   : > { %v2216_v37 = vsel %vm1581_vm1, %v16162_v34, %v2215_v20  ;;  %v9906_v48 = vsel %vm1581_vm1, %v16164_v41, %v2339_v43  ;;  %v2960_v34 = vrot.slane %v2907_v5, 3  ;;  %v3084_v43 = vrot.slane %v3031_v44, 3  ;;  %v16175_v44 = vld [vmem:[#allocation59_spill] sm:$0xff] }
 0x174   : > { %v9914_v25 = vsel %vm2450_vm2, %v16167_v7, %v2464_v16  ;;  %v9919_v20 = vsel %vm2450_vm2, %v16169_v42, %v2588_v62  ;;  %v3208_v31 = vrot.slane %v3155_v63, 3  ;;  %v3528_v41 = vmul.f32 %v9784_v61, %v16170_v49  ;;  %v16176_v42 = vld [vmem:[#allocation60_spill] sm:$0xff] }
 0x175   : > { %v5862_v0 = vadd.f32 %v9821_v9, %v5738_v15  ;;  %v1518_v58 = vadd.f32 %v1471_v57, %v1394_v12  ;;  %v16172_v30 = vrot.slane %v16171_v24, 3  ;;  %v3333_v16 = vrot.slane %v3279_v35, 4  ;;  %v16178_v15 = vld [vmem:[#allocation62_spill] sm:$0xff]  ;;  %v16179_v35 = vld [vmem:[#allocation63_spill] sm:$0xff] }
 0x176   : > { %v16174_v7 = vrot.slane %v16173_v47, 3  ;;  %v3457_v5 = vrot.slane %v3404_v14, 4  ;;  %v3652_v63 = vmul.f32 %v9789_v11, %v16175_v44  ;;  %v3776_v39 = vmul.f32 %v9810_v28, %v16176_v42  ;;  %v16180_v24 = vld [vmem:[#allocation107_spill] sm:$0xff]  ;;  %v16184_v42 = vld [vmem:[#allocation61_spill] sm:$0xff]  ;;  %v16192_v44 = vld [vmem:[#allocation70_spill] sm:$0xff] }
 0x177   : > { %v9927_v38 = vsel %vm2450_vm2, %v16172_v30, %v2712_v40  ;;  %v9939_v9 = vadd.f32 %v16076_v56, %v5862_v0  ;;  %v1643_v57 = vadd.f32 %v1596_v53, %v1518_v58  ;;  %v3900_v40 = vmul.f32 %v9891_v55, %v16178_v15  ;;  %v16182_v30 = vld [vmem:[#allocation58_spill] sm:$0xff]  ;;  %v16186_v15 = vld [vmem:[#allocation64_spill] sm:$0xff] }
 0x178   : > { %v9932_v62 = vsel %vm2450_vm2, %v16174_v7, %v2836_v59  ;;  %v4024_v12 = vmul.f32 %v16179_v35, %v9805_v1  ;;  %v16181_v59 = vrot.slane %v16180_v24, 3  ;;  %v16183_v47 = vrot.slane %v16182_v30, 3 }
 0x179   : > { %16177 = vst [vmem:[#allocation29_spill] sm:$0xff] %v9939_v9  ;;  %v16185_v56 = vrot.slane %v16184_v42, 3  ;;  %v3581_v0 = vrot.slane %v3528_v41, 4  ;;  %v5910_v58 = vsel %vm5897_vm6, %v9939_v9, 0.0  ;;  %v1767_v35 = vadd.f32 %v1720_v18, %v1643_v57 }
 0x17a   : > { %v9948_v14 = vsel %vm2450_vm2, %v16181_v59, %v2960_v34  ;;  %v9953_v7 = vsel %vm2450_vm2, %v16183_v47, %v3084_v43  ;;  %v16187_v24 = vrot.slane %v16186_v15, 4  ;;  %v16188_v59 = vld [vmem:[#allocation66_spill] sm:$0xff]  ;;  %5911 = vadd.xlane.f32.xlu0 %v5910_v58  ;;  %v16189_v43 = vld [vmem:[#allocation67_spill] sm:$0xff]  ;;  %v3829_v41 = vrot.slane %v3776_v39, 4 }
 0x17b   : > { %v9958_v53 = vsel %vm2450_vm2, %v16185_v56, %v3208_v31  ;;  %v4148_v30 = vmul.f32 %v9774_v51, %v16188_v59  ;;  %v16190_v47 = vrot.slane %v16189_v43, 4  ;;  %v3705_v31 = vrot.slane %v3652_v63, 4  ;;  %v16191_v56 = vld [vmem:[#allocation69_spill] sm:$0xff]  ;;  %v16194_v63 = vld [vmem:[#allocation78_spill] sm:$0xff] }
 0x17c   : > { %v9965_v34 = vsel %vm3319_vm3, %v16187_v24, %v3333_v16  ;;  %v4273_v9 = vmul.f32 %v9779_v19, %v16191_v56  ;;  %v1891_v18 = vadd.f32 %v1844_v45, %v1767_v35  ;;  %v3953_v57 = vrot.slane %v3900_v40, 4  ;;  %v16193_v43 = vld [vmem:[#allocation77_spill] sm:$0xff]  ;;  %v16195_v45 = vld [vmem:[#allocation79_spill] sm:$0xff]  ;;  %v16196_v35 = vld [vmem:[#allocation82_spill] sm:$0xff] }
 0x17d   : > { %v9972_v42 = vsel %vm3319_vm3, %v16190_v47, %v3457_v5  ;;  %v4077_v15 = vrot.slane %v4024_v12, 4  ;;  %v4397_v16 = vmul.f32 %v9784_v61, %v16192_v44  ;;  %v4521_v24 = vmul.f32 %v9789_v11, %v16085_v13  ;;  %v16197_v44 = vld [vmem:[#allocation71_spill] sm:$0xff] }
 0x17e   : > { %v4645_v58 = vmul.f32 %v9810_v28, %v16088_v21  ;;  %v4769_v5 = vmul.f32 %v9891_v55, %v16193_v43  ;;  %v4893_v39 = vmul.f32 %v16194_v63, %v9805_v1  ;;  %v2015_v47 = vadd.f32 %v1968_v3, %v1891_v18  ;;  %v16250_v63 = vld [vmem:[#allocation75_spill] sm:$0xff] }
 0x17f   : > { %v4202_v56 = vrot.slane %v4148_v30, 5  ;;  %v5017_v40 = vmul.f32 %v9774_v51, %v16195_v45  ;;  %v5142_v12 = vmul.f32 %v9779_v19, %v16196_v35  ;;  %v16198_v59 = vrot.slane %v16197_v44, 4  ;;  %v16201_v30 = vld [vmem:[#allocation81_spill] sm:$0xff]  ;;  %v16203_v35 = vld [vmem:[#allocation83_spill] sm:$0xff] }
 0x180   : > { %v4326_v21 = vrot.slane %v4273_v9, 5  ;;  %v4450_v49 = vrot.slane %v4397_v16, 5  ;;  %v4574_v10 = vrot.slane %v4521_v24, 5  ;;  %v2139_v43 = vadd.f32 %v2092_v26, %v2015_v47  ;;  %v16205_v24 = vld [vmem:[#allocation86_spill] sm:$0xff] }
 0x181   : > { %v9993_v13 = vsel %vm3319_vm3, %v16198_v59, %v3581_v0  ;;  %v16200_v8 = vrot.slane %v16199_v46, 4  ;;  %v16202_v18 = vrot.slane %v16201_v30, 4  ;;  %v4698_v19 = vrot.slane %v4645_v58, 5  ;;  %v16209_v30 = vld [vmem:[#allocation89_spill] sm:$0xff] }
 0x182   : > { %v16204_v44 = vrot.slane %v16203_v35, 4  ;;  %v4822_v9 = vrot.slane %v4769_v5, 5  ;;  %v4946_v59 = vrot.slane %v4893_v39, 5  ;;  %v5071_v16 = vrot.slane %v5017_v40, 6  ;;  %v16211_v5 = vld [vmem:[#allocation93_spill] sm:$0xff] }
 0x183   : > { %v9998_v3 = vsel %vm3319_vm3, %v16200_v8, %v3705_v31  ;;  %v10003_v51 = vsel %vm3319_vm3, %v16202_v18, %v3829_v41  ;;  %v2263_v26 = vadd.f32 %v2216_v37, %v2139_v43  ;;  %v16206_v46 = vrot.slane %v16205_v24, 4  ;;  %v16207_v31 = vld [vmem:[#allocation88_spill] sm:$0xff]  ;;  %v16215_v18 = vld [vmem:[#allocation2_spill] sm:$0xff]  ;;  %v16217_v24 = vld [vmem:[#allocation3_spill] sm:$0xff] }
 0x184   : > { %v10008_v0 = vsel %vm3319_vm3, %v16204_v44, %v3953_v57  ;;  %v16208_v47 = vrot.slane %v16207_v31, 5  ;;  %v5195_v58 = vrot.slane %v5142_v12, 6  ;;  %v16210_v35 = vrot.slane %v16209_v30, 5  ;;  %v16216_v44 = vld [vmem:[#allocation50_spill] sm:$0xff]  ;;  %v16222_v30 = vld [vmem:[#allocation100_spill] sm:$0xff] }
 0x185   : > { %v10013_v8 = vsel %vm3319_vm3, %v16206_v46, %v4077_v15  ;;  %v16212_v39 = vrot.slane %v16211_v5, 5  ;;  %v16213_v43 = vrot.slane %v9651_v22, 5  ;;  %v2387_v40 = vadd.f32 %v9906_v48, %v2263_v26  ;;  %v16218_v46 = vld [vmem:[#allocation53_spill] sm:$0xff]  ;;  %v16219_v31 = vld [vmem:[#allocation94_spill] sm:$0xff] }
 0x186   : > { %v10018_v41 = vsel %vm4188_vm4, %v16208_v47, %v4202_v56  ;;  %v10023_v57 = vsel %vm4188_vm4, %v16210_v35, %v4326_v21  ;;  %v10037_v56 = vmul.f32 %v9784_v61, %v16098_v54  ;;  %v16214_v12 = vrot.slane %v9657_v27, 5  ;;  %v16225_v27 = vld [vmem:[#allocation95_spill] sm:$0xff]  ;;  %v16228_v5 = vld [vmem:[#allocation85_spill] sm:$0xff]  ;;  %v16249_v54 = vld [vmem:[#allocation10_spill] sm:$0xff] }
 0x187   : > { %v10028_v37 = vsel %vm4188_vm4, %v16212_v39, %v4450_v49  ;;  %v10033_v15 = vsel %vm4188_vm4, %v16213_v43, %v4574_v10  ;;  %v418_v49 = vmul.f32 %v16216_v44, %v16215_v18  ;;  %v454_v22 = vmul.f32 %v16218_v46, %v16217_v24  ;;  %v16234_v61 = vld [vmem:[#allocation87_spill] sm:$0xff]  ;;  %v10096_v18 = vld [vmem:[%s7389_s18 + $0xd8] sm:$0xff] }
 0x188   : > { %v10043_v21 = vsel %vm4188_vm4, %v16214_v12, %v4698_v19  ;;  %v16220_v10 = vrot.slane %v16219_v31, 5  ;;  %v16223_v35 = vrot.slane %v16222_v30, 5  ;;  %v16226_v26 = vrot.slane %v16225_v27, 6  ;;  %v16229_v12 = vld [vmem:[#allocation96_spill] sm:$0xff]  ;;  %v16240_v27 = vld [vmem:[#allocation23_spill] sm:$0xff]  ;;  %16241 = vst [vmem:[#allocation115_spill] sm:$0xff] %v10096_v18 }
 0x189   : > { %v10066_v39 = vmul.f32 %v9789_v11, %v16228_v5  ;;  %v2512_v43 = vadd.f32 %v9914_v25, %v2387_v40  ;;  %v16233_v30 = vld [vmem:[#allocation72_spill] sm:$0xff] }
 0x18a   : > { %v10052_v47 = vsel %vm4188_vm4, %v16220_v10, %v4822_v9  ;;  %v10057_v48 = vsel %vm4188_vm4, %v16223_v35, %v4946_v59  ;;  %v10062_v19 = vsel %vm5057_vm5, %v16226_v26, %v5071_v16  ;;  %v16230_v9 = vrot.slane %v16229_v12, 6  ;;  %v16232_v59 = vld [vmem:[#allocation4_spill] sm:$0xff]  ;;  %v16235_v26 = vld [vmem:[#allocation90_spill] sm:$0xff]  ;;  %v16238_v12 = vld [vmem:[#allocation133_spill] sm:$0xff] }
 0x18b   : > { %16221 = vst [vmem:[#allocation111_spill] sm:$0xff] %v10052_v47  ;;  %16224 = vst [vmem:[#allocation112_spill] sm:$0xff] %v10057_v48  ;;  %v470_v10 = vadd.f32 %v454_v22, %v418_v49  ;;  %v490_v35 = vmul.f32 %v16233_v30, %v16232_v59  ;;  %v10079_v16 = vmul.f32 %v9810_v28, %v16234_v61  ;;  %v16236_v25 = vld [vmem:[#allocation92_spill] sm:$0xff]  ;;  %v16237_v22 = vld [vmem:[#allocation5_spill] sm:$0xff] }
 0x18c   : > { %16227 = vst [vmem:[#allocation113_spill] sm:$0xff] %v10062_v19  ;;  %v10072_v31 = vsel %vm5057_vm5, %v16230_v9, %v5195_v58  ;;  %v10083_v11 = vmul.f32 %v9891_v55, %v16235_v26  ;;  %v10087_v40 = vmul.f32 %v16236_v25, %v9805_v1  ;;  %v2636_v58 = vadd.f32 %v9919_v20, %v2512_v43  ;;  %v16239_v59 = vld [vmem:[#allocation7_spill] sm:$0xff]  ;;  %v16242_v61 = vld [vmem:[#allocation24_spill] sm:$0xff]  ;;  %v16243_v26 = vld [vmem:[#allocation6_spill] sm:$0xff] }
 0x18d   : > { %16231 = vst [vmem:[#allocation114_spill] sm:$0xff] %v10072_v31  ;;  %v506_v49 = vadd.f32 %v490_v35, %v470_v10  ;;  %v526_v9 = vmul.f32 %v16238_v12, %v16237_v22  ;;  %v562_v24 = vmul.f32 %v16240_v27, %v16239_v59  ;;  %v598_v55 = vmul.f32 %v16129_v4, %v16242_v61  ;;  %v16244_v25 = vld [vmem:[#allocation65_spill] sm:$0xff]  ;;  %v16246_v35 = vld [vmem:[#allocation8_spill] sm:$0xff] }
 0x18e   : > { %v673_v1 = vmul.f32 %v16216_v44, %v16243_v26  ;;  %v10104_v20 = vmul.f32 %v16244_v25, %v16243_v26  ;;  %v2760_v43 = vadd.f32 %v9927_v38, %v2636_v58  ;;  %v798_v59 = vmul.f32 %v16218_v46, %v16246_v35  ;;  %v16247_v28 = vld [vmem:[#allocation68_spill] sm:$0xff]  ;;  %v16252_v19 = vld [vmem:[#allocation13_spill] sm:$0xff] }
 0x18f   : > { %v542_v10 = vadd.f32 %v526_v9, %v506_v49  ;;  %v10111_v22 = vmul.f32 %v16247_v28, %v16246_v35  ;;  %v922_v45 = vmul.f32 %v16233_v30, %v16249_v54  ;;  %v10118_v26 = vmul.f32 %v16250_v63, %v16249_v54 }
 0x190   : > { %16245 = vst [vmem:[#allocation116_spill] sm:$0xff] %v10104_v20  ;;  %v728_v5 = vrot.slane %v673_v1, 1  ;;  %v14957_v4 = vrot.slane %v10104_v20, 1  ;;  %v2884_v38 = vadd.f32 %v9932_v62, %v2760_v43  ;;  %v634_v9 = vmul.f32 %v16132_v2, %v10096_v18  ;;  %v16253_v43 = vld [vmem:[#allocation80_spill] sm:$0xff] }
 0x191   : > { %16248 = vst [vmem:[#allocation32_spill] sm:$0xff] %v10111_v22  ;;  %16251 = vst [vmem:[#allocation117_spill] sm:$0xff] %v10118_v26  ;;  %v578_v49 = vadd.f32 %v562_v24, %v542_v10  ;;  %v852_v35 = vrot.slane %v798_v59, 1  ;;  %v1046_v48 = vmul.f32 %v16238_v12, %v16252_v19  ;;  %v976_v62 = vrot.slane %v922_v45, 1  ;;  %v16255_v20 = vld [vmem:[#allocation16_spill] sm:$0xff]  ;;  %v16256_v59 = vld [vmem:[#allocation33_spill] sm:$0xff] }
 0x192   : > { %v730_v1 = vsel %vm712_vm0, %v728_v5, %v14957_v4  ;;  %v3008_v54 = vadd.f32 %v9948_v14, %v2884_v38  ;;  %v10133_v24 = vmul.f32 %v16253_v43, %v16252_v19  ;;  %v1170_v5 = vmul.f32 %v16240_v27, %v16255_v20  ;;  %v16258_v45 = vld [vmem:[#allocation18_spill] sm:$0xff] }
 0x193   : > { %v614_v47 = vadd.f32 %v598_v55, %v578_v49  ;;  %v1100_v58 = vrot.slane %v1046_v48, 1  ;;  %v10140_v4 = vmul.f32 %v16256_v59, %v16255_v20  ;;  %v1294_v38 = vmul.f32 %v16258_v45, %v16242_v61  ;;  %v16260_v27 = vld [vmem:[#allocation30_spill] sm:$0xff] }
 0x194   : > { %16254 = vst [vmem:[#allocation118_spill] sm:$0xff] %v10133_v24  ;;  %v3132_v31 = vadd.f32 %v9953_v7, %v3008_v54  ;;  %v14961_v55 = vrot.slane %v10133_v24, 1  ;;  %v16259_v49 = vrot.slane %v10111_v22, 1  ;;  %v1224_v48 = vrot.slane %v1170_v5, 1  ;;  %v10157_v7 = vld [vmem:[%s7389_s18 + $0xe0] sm:$0xff] }
 0x195   : > { %16257 = vst [vmem:[#allocation119_spill] sm:$0xff] %v10140_v4  ;;  %v650_v14 = vadd.f32 %v634_v9, %v614_v47  ;;  %v10152_v19 = vmul.f32 %v16258_v45, %v16260_v27  ;;  %16261 = vst [vmem:[#allocation120_spill] sm:$0xff] %v10157_v7  ;;  %v1418_v61 = vmul.f32 %v16002_v60, %v10096_v18  ;;  %v16262_v9 = vrot.slane %v10118_v26, 1 }
 0x196   : > { %v854_v10 = vsel %vm712_vm0, %v852_v35, %v16259_v49  ;;  %v3256_v20 = vadd.f32 %v9958_v53, %v3132_v31  ;;  %v1102_v5 = vsel %vm712_vm0, %v1100_v58, %v14961_v55  ;;  %v1348_v49 = vrot.slane %v1294_v38, 1  ;;  %v16267_v38 = vld [vmem:[#allocation25_spill] sm:$0xff] }
 0x197   : > { %v775_v47 = vadd.f32 %v730_v1, %v650_v14  ;;  %v978_v35 = vsel %vm712_vm0, %v976_v62, %v16262_v9  ;;  %v10169_v53 = vmul.f32 %v16002_v60, %v10157_v7  ;;  %v16264_v1 = vld [vmem:[#allocation21_spill] sm:$0xff]  ;;  %v16266_v62 = vrot.slane %v10140_v4, 1 }
 0x198   : > { %v3381_v31 = vadd.f32 %v9965_v34, %v3256_v20  ;;  %v1542_v14 = vmul.f32 %v16216_v44, %v16264_v1  ;;  %v10176_v2 = vmul.f32 %v16244_v25, %v16264_v1  ;;  %v1667_v55 = vmul.f32 %v16218_v46, %v16267_v38 }
 0x199   : > { %16263 = vst [vmem:[#allocation121_spill] sm:$0xff] %v10169_v53  ;;  %v899_v54 = vadd.f32 %v854_v10, %v775_v47  ;;  %v1226_v9 = vsel %vm712_vm0, %v1224_v48, %v16266_v62  ;;  %v10186_v34 = vmul.f32 %v16247_v28, %v16267_v38  ;;  %v1472_v47 = vrot.slane %v1418_v61, 1 }
 0x19a   : > { %16265 = vst [vmem:[#allocation122_spill] sm:$0xff] %v10176_v2  ;;  %v3505_v20 = vadd.f32 %v9972_v42, %v3381_v31  ;;  %v14968_v24 = vrot.slane %v10169_v53, 1  ;;  %v1597_v26 = vrot.slane %v1542_v14, 2  ;;  %v14967_v4 = vrot.slane %v10176_v2, 2 }
 0x19b   : > { %16268 = vst [vmem:[#allocation123_spill] sm:$0xff] %v10186_v34  ;;  %v1023_v10 = vadd.f32 %v978_v35, %v899_v54  ;;  %v1721_v22 = vrot.slane %v1667_v55, 2  ;;  %v1791_v48 = vmul.f32 %v16233_v30, %v16021_v33  ;;  %v14969_v38 = vrot.slane %v10186_v34, 2  ;;  %v16278_v34 = vld [vmem:[#allocation97_spill] sm:$0xff] }
 0x19c   : > { %v3629_v62 = vadd.f32 %v9993_v13, %v3505_v20  ;;  %v10197_v42 = vmul.f32 %v16250_v63, %v16021_v33  ;;  %v16270_v54 = vrot.slane %v10152_v19, 1  ;;  %v1915_v55 = vmul.f32 %v16238_v12, %v16022_v23 }
 0x19d   : > { %v1147_v58 = vadd.f32 %v1102_v5, %v1023_v10  ;;  %v1845_v35 = vrot.slane %v1791_v48, 2  ;;  %v10206_v31 = vmul.f32 %v16253_v43, %v16022_v23  ;;  %v1599_v10 = vsel %vm1581_vm1, %v1597_v26, %v14967_v4  ;;  %v10218_v48 = vld [vmem:[%s7389_s18 + $0xa8] sm:$0xff] }
 0x19e   : > { %16269 = vst [vmem:[#allocation124_spill] sm:$0xff] %v10197_v42  ;;  %v1350_v61 = vsel %vm712_vm0, %v1348_v49, %v16270_v54  ;;  %v3753_v13 = vadd.f32 %v9998_v3, %v3629_v62  ;;  %v14970_v20 = vrot.slane %v10197_v42, 2  ;;  %v1474_v49 = vsel %vm712_vm0, %v1472_v47, %v14968_v24  ;;  %16271 = vst [vmem:[#allocation125_spill] sm:$0xff] %v10218_v48  ;;  %v10231_v62 = vld [vmem:[%s7389_s18 + $0xc0] sm:$0xff] }
 0x19f   : > { %v1271_v14 = vadd.f32 %v1226_v9, %v1147_v58  ;;  %v2039_v54 = vmul.f32 %v10218_v48, %v16023_v36  ;;  %v10224_v3 = vmul.f32 %v16256_v59, %v16023_v36  ;;  %v1723_v47 = vsel %vm1581_vm1, %v1721_v22, %v14969_v38  ;;  %16273 = vst [vmem:[#allocation129_spill] sm:$0xff] %v10231_v62 }
 0x1a0   : > { %v3877_v9 = vadd.f32 %v10003_v51, %v3753_v13  ;;  %v2163_v26 = vmul.f32 %v10231_v62, %v16146_v50  ;;  %v1847_v4 = vsel %vm1581_vm1, %v1845_v35, %v14970_v20  ;;  %v1969_v24 = vrot.slane %v1915_v55, 2 }
 0x1a1   : > { %16272 = vst [vmem:[#allocation127_spill] sm:$0xff] %v10224_v3  ;;  %v1395_v58 = vadd.f32 %v1350_v61, %v1271_v14  ;;  %v10241_v51 = vmul.f32 %v16146_v50, %v16260_v27  ;;  %v2287_v22 = vmul.f32 %v15884_v32, %v10096_v18  ;;  %v10248_v14 = vmul.f32 %v15884_v32, %v10157_v7 }
 0x1a2   : > { %v4001_v61 = vadd.f32 %v10008_v0, %v3877_v9  ;;  %v2093_v38 = vrot.slane %v2039_v54, 2  ;;  %v2411_v55 = vmul.f32 %v16216_v44, %v16027_v6  ;;  %v10255_v27 = vmul.f32 %v16244_v25, %v16027_v6 }
 0x1a3   : > { %16274 = vst [vmem:[#allocation130_spill] sm:$0xff] %v10241_v51  ;;  %v1519_v13 = vadd.f32 %v1474_v49, %v1395_v58  ;;  %16275 = vst [vmem:[#allocation131_spill] sm:$0xff] %v10248_v14  ;;  %v2217_v9 = vrot.slane %v2163_v26, 2  ;;  %v14976_v58 = vrot.slane %v10241_v51, 2  ;;  %v2341_v20 = vrot.slane %v2287_v22, 2 }
 0x1a4   : > { %16276 = vst [vmem:[#allocation132_spill] sm:$0xff] %v10255_v27  ;;  %v4125_v0 = vadd.f32 %v10013_v8, %v4001_v61  ;;  %v14975_v5 = vrot.slane %v10248_v14, 2  ;;  %v2466_v59 = vrot.slane %v2411_v55, 3  ;;  %v16277_v42 = vrot.slane %v10037_v56, 6  ;;  %v16284_v55 = vld [vmem:[#allocation99_spill] sm:$0xff] }
 0x1a5   : > { %v1644_v49 = vadd.f32 %v1599_v10, %v1519_v13  ;;  %v16279_v2 = vrot.slane %v16278_v34, 6  ;;  %v16280_v8 = vrot.slane %v10066_v39, 6  ;;  %v16281_v10 = vld [vmem:[#allocation98_spill] sm:$0xff]  ;;  %v16283_v22 = vrot.slane %v10079_v16, 6 }
 0x1a6   : > { %v4250_v35 = vadd.f32 %v10018_v41, %v4125_v0  ;;  %v16282_v26 = vrot.slane %v16281_v10, 6  ;;  %v16285_v54 = vrot.slane %v16284_v55, 6  ;;  %v16286_v56 = vrot.slane %v10206_v31, 2 }
 0x1a7   : > { %v10267_v53 = vsel %vm5057_vm5, %v16279_v2, %v16277_v42  ;;  %v1768_v13 = vadd.f32 %v1723_v47, %v1644_v49  ;;  %v2536_v39 = vmul.f32 %v16218_v46, %v16035_v52  ;;  %v10290_v34 = vmul.f32 %v16247_v28, %v16035_v52 }
 0x1a8   : > { %v10274_v61 = vsel %vm5057_vm5, %v16282_v26, %v16280_v8  ;;  %v10281_v41 = vsel %vm5057_vm5, %v16285_v54, %v16283_v22  ;;  %v1971_v2 = vsel %vm1581_vm1, %v1969_v24, %v16286_v56  ;;  %v4374_v42 = vadd.f32 %v10023_v57, %v4250_v35  ;;  %v16290_v26 = vld [vmem:[#allocation45_spill] sm:$0xff]  ;;  %v10322_v22 = vld [vmem:[%s7389_s18 + $0xb0] sm:$0xff] }
 0x1a9   : > { %v1892_v16 = vadd.f32 %v1847_v4, %v1768_v13  ;;  %v16287_v47 = vrot.slane %v10224_v3, 2  ;;  %v2219_v49 = vsel %vm1581_vm1, %v2217_v9, %v14976_v58  ;;  %v2343_v24 = vsel %vm1581_vm1, %v2341_v20, %v14975_v5  ;;  %16291 = vst [vmem:[#allocation135_spill] sm:$0xff] %v10322_v22  ;;  %v16296_v5 = vld [vmem:[#allocation49_spill] sm:$0xff] }
 0x1aa   : > { %v16288_v54 = vrot.slane %v10255_v27, 3  ;;  %v2660_v4 = vmul.f32 %v16233_v30, %v16038_v17  ;;  %v10309_v57 = vmul.f32 %v16250_v63, %v16038_v17  ;;  %v2784_v9 = vmul.f32 %v16238_v12, %v16040_v29  ;;  %v16300_v17 = vld [vmem:[#allocation101_spill] sm:$0xff] }
 0x1ab   : > { %v2095_v0 = vsel %vm1581_vm1, %v2093_v38, %v16287_v47  ;;  %v4498_v38 = vadd.f32 %v10028_v37, %v4374_v42  ;;  %v2016_v35 = vadd.f32 %v1971_v2, %v1892_v16  ;;  %v10316_v20 = vmul.f32 %v16253_v43, %v16040_v29  ;;  %v16293_v2 = vld [vmem:[#allocation48_spill] sm:$0xff]  ;;  %v10332_v16 = vld [vmem:[%s7389_s18 + $0xc8] sm:$0xff] }
 0x1ac   : > { %v2468_v8 = vsel %vm2450_vm2, %v2466_v59, %v16288_v54  ;;  %v2590_v10 = vrot.slane %v2536_v39, 3  ;;  %v2908_v13 = vmul.f32 %v10218_v48, %v16290_v26  ;;  %v10326_v55 = vmul.f32 %v10322_v22, %v16290_v26  ;;  %16294 = vst [vmem:[#allocation128_spill] sm:$0xff] %v10332_v16  ;;  %v16298_v54 = vld [vmem:[#allocation111_spill] sm:$0xff] }
 0x1ad   : > { %16289 = vst [vmem:[#allocation134_spill] sm:$0xff] %v10316_v20  ;;  %v4622_v37 = vadd.f32 %v10033_v15, %v4498_v38  ;;  %v2140_v56 = vadd.f32 %v2095_v0, %v2016_v35  ;;  %v3032_v42 = vmul.f32 %v10231_v62, %v16293_v2  ;;  %v10336_v39 = vmul.f32 %v10332_v16, %v16293_v2 }
 0x1ae   : > { %16292 = vst [vmem:[#allocation126_spill] sm:$0xff] %v10326_v55  ;;  %v2714_v47 = vrot.slane %v2660_v4, 3  ;;  %v3156_v58 = vmul.f32 %v16296_v5, %v10096_v18  ;;  %v10343_v59 = vmul.f32 %v16296_v5, %v10157_v7  ;;  %v2838_v38 = vrot.slane %v2784_v9, 3 }
 0x1af   : > { %16295 = vst [vmem:[#allocation137_spill] sm:$0xff] %v10336_v39  ;;  %v4746_v15 = vadd.f32 %v10043_v21, %v4622_v37  ;;  %v2264_v0 = vadd.f32 %v2219_v49, %v2140_v56  ;;  %v14989_v35 = vrot.slane %v10316_v20, 3  ;;  %v2962_v27 = vrot.slane %v2908_v13, 3  ;;  %v16303_v37 = vld [vmem:[#allocation52_spill] sm:$0xff] }
 0x1b0   : > { %16297 = vst [vmem:[#allocation142_spill] sm:$0xff] %v10343_v59  ;;  %v14988_v14 = vrot.slane %v10326_v55, 3  ;;  %v3086_v51 = vrot.slane %v3032_v42, 3  ;;  %v14987_v4 = vrot.slane %v10336_v39, 3  ;;  %v3210_v29 = vrot.slane %v3156_v58, 3  ;;  %v16305_v58 = vld [vmem:[#allocation112_spill] sm:$0xff] }
 0x1b1   : > { %v4870_v2 = vadd.f32 %v16298_v54, %v4746_v15  ;;  %v2388_v26 = vadd.f32 %v2343_v24, %v2264_v0  ;;  %v14986_v3 = vrot.slane %v10343_v59, 3  ;;  %v16299_v5 = vrot.slane %v10083_v11, 6  ;;  %v16307_v11 = vld [vmem:[#allocation102_spill] sm:$0xff]  ;;  %v16309_v0 = vld [vmem:[#allocation55_spill] sm:$0xff] }
 0x1b2   : > { %v16301_v21 = vrot.slane %v16300_v17, 6  ;;  %v16302_v9 = vrot.slane %v10290_v34, 3  ;;  %v3280_v56 = vmul.f32 %v16216_v44, %v16303_v37  ;;  %v10363_v42 = vmul.f32 %v16244_v25, %v16303_v37  ;;  %v16321_v55 = vld [vmem:[#allocation63_spill] sm:$0xff] }
 0x1b3   : > { %v4994_v24 = vadd.f32 %v16305_v58, %v4870_v2  ;;  %v16306_v54 = vrot.slane %v10087_v40, 6  ;;  %v16308_v15 = vrot.slane %v16307_v11, 6  ;;  %v2964_v40 = vsel %vm2450_vm2, %v2962_v27, %v14988_v14  ;;  %v16312_v11 = vld [vmem:[#allocation56_spill] sm:$0xff]  ;;  %v16319_v14 = vld [vmem:[#allocation62_spill] sm:$0xff] }
 0x1b4   : > { %v5692_v49 = vsel %vm5057_vm5, %v16301_v21, %v16299_v5  ;;  %v2592_v13 = vsel %vm2450_vm2, %v2590_v10, %v16302_v9  ;;  %16304 = vst [vmem:[#allocation145_spill] sm:$0xff] %v10363_v42  ;;  %v2513_v5 = vadd.f32 %v2468_v8, %v2388_v26  ;;  %v3405_v21 = vmul.f32 %v16218_v46, %v16309_v0  ;;  %v16311_v8 = vld [vmem:[#allocation113_spill] sm:$0xff] }
 0x1b5   : > { %v5816_v17 = vsel %vm5057_vm5, %v16308_v15, %v16306_v54  ;;  %v16310_v10 = vrot.slane %v10309_v57, 3  ;;  %v2840_v9 = vsel %vm2450_vm2, %v2838_v38, %v14989_v35  ;;  %v3088_v2 = vsel %vm2450_vm2, %v3086_v51, %v14987_v4 }
 0x1b6   : > { %v5119_v26 = vadd.f32 %v16311_v8, %v4994_v24  ;;  %v2637_v58 = vadd.f32 %v2592_v13, %v2513_v5  ;;  %v3212_v46 = vsel %vm2450_vm2, %v3210_v29, %v14986_v3  ;;  %v3335_v38 = vrot.slane %v3280_v56, 4  ;;  %v16314_v24 = vld [vmem:[#allocation114_spill] sm:$0xff]  ;;  %v16317_v56 = vld [vmem:[#allocation60_spill] sm:$0xff] }
 0x1b7   : > { %v2716_v44 = vsel %vm2450_vm2, %v2714_v47, %v16310_v10  ;;  %v10391_v47 = vmul.f32 %v16247_v28, %v16309_v0  ;;  %v14995_v54 = vrot.slane %v10363_v42, 4  ;;  %v3529_v27 = vmul.f32 %v16233_v30, %v16312_v11  ;;  %v16315_v10 = vld [vmem:[#allocation59_spill] sm:$0xff] }
 0x1b8   : > { %v10398_v51 = vmul.f32 %v16250_v63, %v16312_v11  ;;  %v5243_v13 = vadd.f32 %v16314_v24, %v5119_v26  ;;  %v2761_v15 = vadd.f32 %v2716_v44, %v2637_v58  ;;  %v3459_v5 = vrot.slane %v3405_v21, 4 }
 0x1b9   : > { %v3653_v29 = vmul.f32 %v16238_v12, %v16315_v10  ;;  %v10405_v8 = vmul.f32 %v16253_v43, %v16315_v10  ;;  %v3777_v3 = vmul.f32 %v10218_v48, %v16317_v56  ;;  %v10411_v4 = vmul.f32 %v10322_v22, %v16317_v56  ;;  %v7130_v56 = vld [vmem:[%s7389_s18 + $0x48] sm:$0xff] }
 0x1ba   : > { %16313 = vst [vmem:[#allocation136_spill] sm:$0xff] %v10398_v51  ;;  %v3901_v35 = vmul.f32 %v10231_v62, %v16319_v14  ;;  %v5367_v44 = vadd.f32 %v10267_v53, %v5243_v13  ;;  %v2885_v21 = vadd.f32 %v2840_v9, %v2761_v15  ;;  %v10419_v58 = vmul.f32 %v10332_v16, %v16319_v14 }
 0x1bb   : > { %16316 = vst [vmem:[#allocation138_spill] sm:$0xff] %v10405_v8  ;;  %16318 = vst [vmem:[#allocation139_spill] sm:$0xff] %v10411_v4  ;;  %v3337_v24 = vsel %vm3319_vm3, %v3335_v38, %v14995_v54  ;;  %v3583_v59 = vrot.slane %v3529_v27, 4  ;;  %v4025_v20 = vmul.f32 %v16321_v55, %v10096_v18  ;;  %v3707_v13 = vrot.slane %v3653_v29, 4 }
 0x1bc   : > { %16320 = vst [vmem:[#allocation140_spill] sm:$0xff] %v10419_v58  ;;  %v5491_v53 = vadd.f32 %v10274_v61, %v5367_v44  ;;  %v3009_v9 = vadd.f32 %v2964_v40, %v2885_v21  ;;  %v10430_v15 = vmul.f32 %v16321_v55, %v10157_v7  ;;  %v3831_v42 = vrot.slane %v3777_v3, 4  ;;  %v16323_v61 = vld [vmem:[#allocation66_spill] sm:$0xff] }
 0x1bd   : > { %v3955_v27 = vrot.slane %v3901_v35, 4  ;;  %v4149_v40 = vmul.f32 %v7130_v56, %v16323_v61  ;;  %v16324_v29 = vrot.slane %v10391_v47, 4  ;;  %v4079_v21 = vrot.slane %v4025_v20, 4 }
 0x1be   : > { %16322 = vst [vmem:[#allocation143_spill] sm:$0xff] %v10430_v15  ;;  %v5615_v54 = vadd.f32 %v10281_v41, %v5491_v53  ;;  %v3133_v39 = vadd.f32 %v3088_v2, %v3009_v9  ;;  %v10444_v3 = vmul.f32 %v16244_v25, %v16323_v61  ;;  %v16326_v41 = vrot.slane %v10398_v51, 4  ;;  %v10450_v53 = vld [vmem:[%s7389_s18 + $0x60] sm:$0xff]  ;;  %v16328_v9 = vld [vmem:[#allocation69_spill] sm:$0xff] }
 0x1bf   : > { %v3461_v44 = vsel %vm3319_vm3, %v3459_v5, %v16324_v29  ;;  %16327 = vst [vmem:[#allocation141_spill] sm:$0xff] %v10450_v53  ;;  %v4274_v14 = vmul.f32 %v10450_v53, %v16328_v9  ;;  %v16329_v5 = vrot.slane %v10405_v8, 4  ;;  %v16330_v29 = vrot.slane %v10411_v4, 4  ;;  %v7133_v4 = vld [vmem:[%s7389_s18 + $0x50] sm:$0xff] }
 0x1c0   : > { %16325 = vst [vmem:[#allocation146_spill] sm:$0xff] %v10444_v3  ;;  %v5739_v35 = vadd.f32 %v5692_v49, %v5615_v54  ;;  %v3257_v38 = vadd.f32 %v3212_v46, %v3133_v39  ;;  %v3585_v2 = vsel %vm3319_vm3, %v3583_v59, %v16326_v41  ;;  %v10462_v39 = vmul.f32 %v16247_v28, %v16328_v9  ;;  %v16332_v49 = vld [vmem:[#allocation70_spill] sm:$0xff] }
 0x1c1   : > { %v3709_v20 = vsel %vm3319_vm3, %v3707_v13, %v16329_v5  ;;  %v3833_v25 = vsel %vm3319_vm3, %v3831_v42, %v16330_v29  ;;  %v4398_v59 = vmul.f32 %v16233_v30, %v16332_v49  ;;  %v16333_v41 = vrot.slane %v10419_v58, 4  ;;  %v16336_v29 = vld [vmem:[#allocation73_spill] sm:$0xff] }
 0x1c2   : > { %16331 = vst [vmem:[#allocation144_spill] sm:$0xff] %v10462_v39  ;;  %v5863_v46 = vadd.f32 %v5816_v17, %v5739_v35  ;;  %v3382_v54 = vadd.f32 %v3337_v24, %v3257_v38  ;;  %v4204_v8 = vrot.slane %v4149_v40, 5  ;;  %v16334_v13 = vrot.slane %v10430_v15, 4  ;;  %v10482_v17 = vld [vmem:[%s14562_s2] ss:$0 sm:$0xff] }
 0x1c3   : > { %v3957_v26 = vsel %vm3319_vm3, %v3955_v27, %v16333_v41  ;;  %v10475_v28 = vmul.f32 %v16250_v63, %v16332_v49  ;;  %v4522_v30 = vmul.f32 %v16238_v12, %v16336_v29  ;;  %16337 = vst [vmem:[#allocation148_spill] sm:$0xff] %v10482_v17  ;;  %v4328_v27 = vrot.slane %v4274_v14, 5  ;;  %v16340_v35 = vld [vmem:[#allocation74_spill] sm:$0xff]  ;;  %v16342_v14 = vld [vmem:[#allocation77_spill] sm:$0xff]  ;;  %v16357_v49 = vld [vmem:[#allocation84_spill] sm:$0xff] }
 0x1c4   : > { %v4081_v5 = vsel %vm3319_vm3, %v4079_v21, %v16334_v13  ;;  %v10485_v24 = vadd.f32 %v10482_v17, %v5863_v46  ;;  %v3506_v38 = vadd.f32 %v3461_v44, %v3382_v54  ;;  %v10489_v40 = vmul.f32 %v16253_v43, %v16336_v29  ;;  %v16344_v63 = vld [vmem:[#allocation78_spill] sm:$0xff]  ;;  %v10523_v29 = vld [vmem:[%s7389_s18 + $0x68] sm:$0xff] }
 0x1c5   : > { %16335 = vst [vmem:[#allocation147_spill] sm:$0xff] %v10475_v28  ;;  %v4452_v21 = vrot.slane %v4398_v59, 5  ;;  %v4646_v12 = vmul.f32 %v10218_v48, %v16340_v35  ;;  %v10496_v41 = vmul.f32 %v10322_v22, %v16340_v35  ;;  %v4770_v43 = vmul.f32 %v10231_v62, %v16342_v14  ;;  %16349 = vst [vmem:[#allocation37_spill] sm:$0xff] %v10523_v29 }
 0x1c6   : > { %16338 = vst [vmem:[#allocation19_spill] sm:$0xff] %v10485_v24  ;;  %16339 = vst [vmem:[#allocation14_spill] sm:$0xff] %v10489_v40  ;;  %v5913_v46 = vsel %vm5897_vm6, %v10485_v24, 0.0  ;;  %v3630_v44 = vadd.f32 %v3585_v2, %v3506_v38  ;;  %v10504_v54 = vmul.f32 %v10332_v16, %v16342_v14  ;;  %v4576_v13 = vrot.slane %v4522_v30, 5  ;;  %v16346_v24 = vld [vmem:[#allocation79_spill] sm:$0xff]  ;;  %v16348_v30 = vld [vmem:[#allocation82_spill] sm:$0xff] }
 0x1c7   : > { %16341 = vst [vmem:[#allocation15_spill] sm:$0xff] %v10496_v41  ;;  %5914 = vadd.xlane.f32.xlu1 %v5913_v46  ;;  %v4894_v42 = vmul.f32 %v16344_v63, %v10096_v18  ;;  %v10511_v15 = vmul.f32 %v16344_v63, %v10157_v7  ;;  %v5018_v58 = vmul.f32 %v7130_v56, %v16346_v24  ;;  %v4700_v46 = vrot.slane %v4646_v12, 5 }
 0x1c8   : > { %16343 = vst [vmem:[#allocation17_spill] sm:$0xff] %v10504_v54  ;;  %v3754_v2 = vadd.f32 %v3709_v20, %v3630_v44  ;;  %v10517_v14 = vmul.f32 %v7133_v4, %v16346_v24  ;;  %v5143_v35 = vmul.f32 %v10450_v53, %v16348_v30  ;;  %v10527_v63 = vmul.f32 %v10523_v29, %v16348_v30 }
 0x1c9   : > { %16345 = vst [vmem:[#allocation28_spill] sm:$0xff] %v10511_v15  ;;  %v16351_v56 = vrot.slane %v10444_v3, 5  ;;  %v4824_v38 = vrot.slane %v4770_v43, 5  ;;  %v15013_v12 = vrot.slane %v10504_v54, 5  ;;  %v4948_v59 = vrot.slane %v4894_v42, 5 }
 0x1ca   : > { %16347 = vst [vmem:[#allocation36_spill] sm:$0xff] %v10517_v14  ;;  %16350 = vst [vmem:[#allocation40_spill] sm:$0xff] %v10527_v63  ;;  %v3878_v20 = vadd.f32 %v3833_v25, %v3754_v2  ;;  %v5073_v53 = vrot.slane %v5018_v58, 6  ;;  %v16352_v30 = vrot.slane %v10462_v39, 5  ;;  %v16353_v2 = vrot.slane %v10475_v28, 5 }
 0x1cb   : > { %v4206_v44 = vsel %vm4188_vm4, %v4204_v8, %v16351_v56  ;;  %v16354_v43 = vrot.slane %v10489_v40, 5  ;;  %v16355_v56 = vrot.slane %v10496_v41, 5  ;;  %v5197_v24 = vrot.slane %v5143_v35, 6  ;;  %v16361_v35 = vld [vmem:[#allocation85_spill] sm:$0xff]  ;;  %v16373_v40 = vld [vmem:[#allocation2_spill] sm:$0xff] }
 0x1cc   : > { %v4002_v51 = vadd.f32 %v3957_v26, %v3878_v20  ;;  %v4330_v25 = vsel %vm4188_vm4, %v4328_v27, %v16352_v30  ;;  %v4454_v8 = vsel %vm4188_vm4, %v4452_v21, %v16353_v2  ;;  %v10549_v20 = vld [vmem:[%s7389_s18 + $0x78] sm:$0xff]  ;;  %v4826_v21 = vsel %vm4188_vm4, %v4824_v38, %v15013_v12  ;;  %v10557_v2 = vld [vmem:[%s7389_s18 + $0x80] sm:$0xff] }
 0x1cd   : > { %v4578_v42 = vsel %vm4188_vm4, %v4576_v13, %v16354_v43  ;;  %v4702_v58 = vsel %vm4188_vm4, %v4700_v46, %v16355_v56  ;;  %16356 = vst [vmem:[#allocation41_spill] sm:$0xff] %v10549_v20  ;;  %v5267_v27 = vmul.f32 %v10549_v20, %v16357_v49  ;;  %16358 = vst [vmem:[#allocation42_spill] sm:$0xff] %v10557_v2  ;;  %v10564_v46 = vld [vmem:[%s7389_s18 + $0x90] sm:$0xff]  ;;  %v16362_v56 = vrot.slane %v10511_v15, 5  ;;  %v10575_v38 = vld [vmem:[%s7389_s18 + $0x98] sm:$0xff] }
 0x1ce   : > { %v4126_v30 = vadd.f32 %v4081_v5, %v4002_v51  ;;  %v10561_v13 = vmul.f32 %v10557_v2, %v16357_v49  ;;  %16360 = vst [vmem:[#allocation47_spill] sm:$0xff] %v10564_v46  ;;  %v5391_v43 = vmul.f32 %v10564_v46, %v16361_v35  ;;  %v16363_v51 = vrot.slane %v10517_v14, 6  ;;  %16364 = vst [vmem:[#allocation51_spill] sm:$0xff] %v10575_v38  ;;  %v16366_v20 = vld [vmem:[#allocation87_spill] sm:$0xff]  ;;  %v16368_v15 = vld [vmem:[#allocation90_spill] sm:$0xff] }
 0x1cf   : > { %v4950_v26 = vsel %vm4188_vm4, %v4948_v59, %v16362_v56  ;;  %v10579_v12 = vmul.f32 %v10575_v38, %v16361_v35  ;;  %v5515_v54 = vmul.f32 %v10218_v48, %v16366_v20  ;;  %v10585_v46 = vmul.f32 %v10322_v22, %v16366_v20  ;;  %v16371_v14 = vld [vmem:[#allocation92_spill] sm:$0xff]  ;;  %v16376_v20 = vld [vmem:[#allocation5_spill] sm:$0xff] }
 0x1d0   : > { %16359 = vst [vmem:[#allocation46_spill] sm:$0xff] %v10561_v13  ;;  %v5075_v5 = vsel %vm5057_vm5, %v5073_v53, %v16363_v51  ;;  %v4251_v41 = vadd.f32 %v4206_v44, %v4126_v30  ;;  %v5639_v59 = vmul.f32 %v10231_v62, %v16368_v15  ;;  %v10591_v53 = vmul.f32 %v10332_v16, %v16368_v15  ;;  %v16385_v49 = vld [vmem:[#allocation13_spill] sm:$0xff] }
 0x1d1   : > { %16365 = vst [vmem:[#allocation54_spill] sm:$0xff] %v10579_v12  ;;  %16367 = vst [vmem:[#allocation57_spill] sm:$0xff] %v10585_v46  ;;  %v16370_v56 = vrot.slane %v10527_v63, 6  ;;  %v5321_v35 = vrot.slane %v5267_v27, 6  ;;  %v5763_v48 = vmul.f32 %v16371_v14, %v10096_v18  ;;  %v10600_v44 = vmul.f32 %v16371_v14, %v10157_v7  ;;  %v16374_v63 = vld [vmem:[#allocation3_spill] sm:$0xff]  ;;  %v16375_v27 = vld [vmem:[#allocation4_spill] sm:$0xff] }
 0x1d2   : > { %16369 = vst [vmem:[#allocation107_spill] sm:$0xff] %v10591_v53  ;;  %v4375_v30 = vadd.f32 %v4330_v25, %v4251_v41  ;;  %v5445_v62 = vrot.slane %v5391_v43, 6  ;;  %v419_v28 = vmul.f32 %v7133_v4, %v16373_v40  ;;  %v5569_v39 = vrot.slane %v5515_v54, 6  ;;  %v16383_v40 = vld [vmem:[#allocation10_spill] sm:$0xff] }
 0x1d3   : > { %v5199_v51 = vsel %vm5057_vm5, %v5197_v24, %v16370_v56  ;;  %16372 = vst [vmem:[#allocation58_spill] sm:$0xff] %v10600_v44  ;;  %v455_v24 = vmul.f32 %v10523_v29, %v16374_v63  ;;  %v491_v56 = vmul.f32 %v10557_v2, %v16375_v27  ;;  %v5693_v14 = vrot.slane %v5639_v59, 6  ;;  %v16378_v2 = vld [vmem:[#allocation7_spill] sm:$0xff]  ;;  %v16382_v27 = vld [vmem:[#allocation104_spill] sm:$0xff] }
 0x1d4   : > { %v4499_v18 = vadd.f32 %v4454_v8, %v4375_v30  ;;  %v5817_v25 = vrot.slane %v5763_v48, 6  ;;  %v527_v54 = vmul.f32 %v10575_v38, %v16376_v20  ;;  %v16377_v29 = vrot.slane %v10561_v13, 6  ;;  %v16379_v30 = vld [vmem:[#allocation6_spill] sm:$0xff]  ;;  %v16380_v59 = vld [vmem:[#allocation103_spill] sm:$0xff]  ;;  %v16381_v48 = vld [vmem:[#allocation8_spill] sm:$0xff] }
 0x1d5   : > { %v471_v4 = vadd.f32 %v455_v24, %v419_v28  ;;  %v563_v8 = vmul.f32 %v10322_v22, %v16378_v2  ;;  %v675_v3 = vmul.f32 %v16380_v59, %v16379_v30  ;;  %v800_v43 = vmul.f32 %v16382_v27, %v16381_v48  ;;  %v16384_v28 = vld [vmem:[#allocation105_spill] sm:$0xff]  ;;  %v16386_v38 = vld [vmem:[#allocation108_spill] sm:$0xff] }
 0x1d6   : > { %v4623_v15 = vadd.f32 %v4578_v42, %v4499_v18  ;;  %v5323_v63 = vsel %vm5057_vm5, %v5321_v35, %v16377_v29  ;;  %v924_v24 = vmul.f32 %v16384_v28, %v16383_v40  ;;  %v1048_v18 = vmul.f32 %v16386_v38, %v16385_v49  ;;  %v10644_v49 = vld [vmem:[%s7389_s18 + $0xe8] sm:$0x3f] }
 0x1d7   : > { %v507_v41 = vadd.f32 %v491_v56, %v471_v4  ;;  %v16387_v13 = vrot.slane %v10579_v12, 6  ;;  %v16388_v35 = vrot.slane %v10585_v46, 6  ;;  %v16389_v56 = vrot.slane %v10591_v53, 6  ;;  %16391 = vst [vmem:[#allocation61_spill] sm:$0xff] %v10644_v49  ;;  %v16394_v46 = vld [vmem:[#allocation109_spill] sm:$0xff] }
 0x1d8   : > { %v4747_v42 = vadd.f32 %v4702_v58, %v4623_v15  ;;  %v16390_v48 = vrot.slane %v10600_v44, 6  ;;  %v16392_v58 = vld [vmem:[#allocation11_spill] sm:$0xff]  ;;  %v1103_v2 = vrot.slane %v1048_v18, 1 }
 0x1d9   : > { %v5447_v29 = vsel %vm5057_vm5, %v5445_v62, %v16387_v13  ;;  %v5571_v22 = vsel %vm5057_vm5, %v5569_v39, %v16388_v35  ;;  %v10636_v4 = vsel %vm5057_vm5, %v5693_v14, %v16389_v56  ;;  %v543_v15 = vadd.f32 %v527_v54, %v507_v41  ;;  %v16393_v13 = vld [vmem:[#allocation16_spill] sm:$0xff]  ;;  %v16396_v56 = vld [vmem:[#allocation106_spill] sm:$0xff] }
 0x1da   : > { %v10641_v40 = vsel %vm5057_vm5, %v5817_v25, %v16390_v48  ;;  %v599_v62 = vmul.f32 %v10332_v16, %v16392_v58  ;;  %v1172_v12 = vmul.f32 %v16394_v46, %v16393_v13  ;;  %v4871_v39 = vadd.f32 %v4826_v21, %v4747_v42  ;;  %v16395_v35 = vld [vmem:[#allocation12_spill] sm:$0xff]  ;;  %v16397_v16 = vld [vmem:[#allocation25_spill] sm:$0xff] }
 0x1db   : > { %v635_v53 = vmul.f32 %v16395_v35, %v10157_v7  ;;  %v731_v14 = vrot.slane %v675_v3, 1  ;;  %v1296_v44 = vmul.f32 %v16258_v45, %v16396_v56  ;;  %v579_v30 = vadd.f32 %v563_v8, %v543_v15  ;;  %v16406_v45 = vld [vmem:[#allocation119_spill] sm:$0xff] }
 0x1dc   : > { %v855_v25 = vrot.slane %v800_v43, 1  ;;  %v979_v48 = vrot.slane %v924_v24, 1  ;;  %v4995_v20 = vadd.f32 %v4950_v26, %v4871_v39  ;;  %v1420_v41 = vmul.f32 %v16002_v60, %v10644_v49  ;;  %v16398_v24 = vld [vmem:[#allocation116_spill] sm:$0xff] }
 0x1dd   : > { %v1544_v54 = vmul.f32 %v16380_v59, %v16264_v1  ;;  %v1669_v21 = vmul.f32 %v16382_v27, %v16397_v16  ;;  %v615_v42 = vadd.f32 %v599_v62, %v579_v30  ;;  %v1227_v7 = vrot.slane %v1172_v12, 1  ;;  %v16400_v60 = vld [vmem:[#allocation32_spill] sm:$0xff]  ;;  %v16402_v30 = vld [vmem:[#allocation117_spill] sm:$0xff] }
 0x1de   : > { %v1793_v3 = vmul.f32 %v16384_v28, %v16021_v33  ;;  %v1917_v43 = vmul.f32 %v16386_v38, %v16022_v23  ;;  %v5120_v8 = vadd.f32 %v5075_v5, %v4995_v20  ;;  %v16399_v26 = vrot.slane %v16398_v24, 1  ;;  %v16404_v33 = vld [vmem:[#allocation118_spill] sm:$0xff] }
 0x1df   : > { %v1351_v15 = vrot.slane %v1296_v44, 1  ;;  %v2041_v39 = vmul.f32 %v16394_v46, %v16023_v36  ;;  %v651_v1 = vadd.f32 %v635_v53, %v615_v42  ;;  %v16401_v16 = vrot.slane %v16400_v60, 1 }
 0x1e0   : > { %v732_v18 = vsel %vm712_vm0, %v16399_v26, %v731_v14  ;;  %v16403_v62 = vrot.slane %v16402_v30, 1  ;;  %v16405_v23 = vrot.slane %v16404_v33, 1  ;;  %v5244_v5 = vadd.f32 %v5199_v51, %v5120_v8 }
 0x1e1   : > { %v856_v12 = vsel %vm712_vm0, %v16401_v16, %v855_v25  ;;  %v1475_v24 = vrot.slane %v1420_v41, 1  ;;  %v1600_v14 = vrot.slane %v1544_v54, 2  ;;  %v1724_v44 = vrot.slane %v1669_v21, 2  ;;  %v16411_v41 = vld [vmem:[#allocation122_spill] sm:$0xff] }
 0x1e2   : > { %v980_v28 = vsel %vm712_vm0, %v16403_v62, %v979_v48  ;;  %v1104_v20 = vsel %vm712_vm0, %v16405_v23, %v1103_v2  ;;  %v776_v26 = vadd.f32 %v732_v18, %v651_v1  ;;  %v16407_v36 = vrot.slane %v16406_v45, 1  ;;  %v16415_v18 = vld [vmem:[#allocation124_spill] sm:$0xff] }
 0x1e3   : > { %v1848_v60 = vrot.slane %v1793_v3, 2  ;;  %v1972_v42 = vrot.slane %v1917_v43, 2  ;;  %v5368_v16 = vadd.f32 %v5323_v63, %v5244_v5  ;;  %v16408_v25 = vrot.slane %v10152_v19, 1  ;;  %v16409_v63 = vld [vmem:[#allocation121_spill] sm:$0xff]  ;;  %v16420_v5 = vld [vmem:[#allocation127_spill] sm:$0xff] }
 0x1e4   : > { %v1228_v53 = vsel %vm712_vm0, %v16407_v36, %v1227_v7  ;;  %v2096_v33 = vrot.slane %v2041_v39, 2  ;;  %v2165_v23 = vmul.f32 %v16146_v50, %v16396_v56  ;;  %v900_v2 = vadd.f32 %v856_v12, %v776_v26  ;;  %v16413_v56 = vld [vmem:[#allocation123_spill] sm:$0xff] }
 0x1e5   : > { %v1352_v48 = vsel %vm712_vm0, %v16408_v25, %v1351_v15  ;;  %v2289_v1 = vmul.f32 %v15884_v32, %v10644_v49  ;;  %v2413_v45 = vmul.f32 %v16380_v59, %v16027_v6  ;;  %v2538_v36 = vmul.f32 %v16382_v27, %v16035_v52  ;;  %v10710_v39 = vld [vmem:[%s7389_s18 + $0x88] sm:$0x3f] }
 0x1e6   : > { %v5492_v7 = vadd.f32 %v5447_v29, %v5368_v16  ;;  %v16410_v51 = vrot.slane %v16409_v63, 1  ;;  %v16412_v54 = vrot.slane %v16411_v41, 2  ;;  %v16414_v3 = vrot.slane %v16413_v56, 2  ;;  %16418 = vst [vmem:[#allocation64_spill] sm:$0xff] %v10710_v39  ;;  %v16419_v12 = vld [vmem:[#allocation43_spill] sm:$0xff] }
 0x1e7   : > { %v1024_v8 = vadd.f32 %v980_v28, %v900_v2  ;;  %v16416_v59 = vrot.slane %v16415_v18, 2  ;;  %v16417_v27 = vrot.slane %v10206_v31, 2  ;;  %v2662_v30 = vmul.f32 %v10710_v39, %v16419_v12  ;;  %v16423_v2 = vld [vmem:[#allocation45_spill] sm:$0xff] }
 0x1e8   : > { %v1476_v19 = vsel %vm712_vm0, %v16410_v51, %v1475_v24  ;;  %v1601_v21 = vsel %vm1581_vm1, %v16412_v54, %v1600_v14  ;;  %v1725_v43 = vsel %vm1581_vm1, %v16414_v3, %v1724_v44  ;;  %v5616_v62 = vadd.f32 %v5571_v22, %v5492_v7  ;;  %v16422_v44 = vld [vmem:[#allocation44_spill] sm:$0xff]  ;;  %v16426_v51 = vld [vmem:[#allocation49_spill] sm:$0xff] }
 0x1e9   : > { %v1849_v15 = vsel %vm1581_vm1, %v16416_v59, %v1848_v60  ;;  %v10707_v29 = vsel %vm1581_vm1, %v16417_v27, %v1972_v42  ;;  %v16421_v24 = vrot.slane %v16420_v5, 2  ;;  %v2220_v14 = vrot.slane %v2165_v23, 2  ;;  %v10725_v22 = vld [vmem:[%s7389_s18 + $0xd0] sm:$0x3f]  ;;  %v16430_v59 = vld [vmem:[#allocation131_spill] sm:$0xff] }
 0x1ea   : > { %v2786_v31 = vmul.f32 %v16386_v38, %v16422_v44  ;;  %v1148_v26 = vadd.f32 %v1104_v20, %v1024_v8  ;;  %v2344_v60 = vrot.slane %v2289_v1, 2  ;;  %v2469_v42 = vrot.slane %v2413_v45, 3  ;;  %16424 = vst [vmem:[#allocation67_spill] sm:$0xff] %v10725_v22  ;;  %v16425_v7 = vld [vmem:[#allocation48_spill] sm:$0xff]  ;;  %v7141_v38 = vld [vmem:[%s7389_s18 + $0x58] sm:$0x3f] }
 0x1eb   : > { %v10717_v28 = vsel %vm1581_vm1, %v16421_v24, %v2096_v33  ;;  %v2593_v16 = vrot.slane %v2538_v36, 3  ;;  %v5740_v25 = vadd.f32 %v10636_v4, %v5616_v62  ;;  %v2910_v63 = vmul.f32 %v16394_v46, %v16423_v2  ;;  %v10734_v1 = vld [vmem:[%s7389_s18 + $0x70] sm:$0x3f]  ;;  %v16428_v36 = vld [vmem:[#allocation130_spill] sm:$0xff] }
 0x1ec   : > { %v3034_v33 = vmul.f32 %v10725_v22, %v16425_v7  ;;  %v3158_v23 = vmul.f32 %v16426_v51, %v10644_v49  ;;  %v1272_v41 = vadd.f32 %v1228_v53, %v1148_v26  ;;  %v2717_v54 = vrot.slane %v2662_v30, 3  ;;  %16427 = vst [vmem:[#allocation71_spill] sm:$0xff] %v10734_v1  ;;  %v16432_v62 = vld [vmem:[#allocation132_spill] sm:$0xff] }
 0x1ed   : > { %v3282_v20 = vmul.f32 %v7141_v38, %v16303_v37  ;;  %v3407_v4 = vmul.f32 %v10734_v1, %v16309_v0  ;;  %v5864_v45 = vadd.f32 %v10641_v40, %v5740_v25  ;;  %v16429_v56 = vrot.slane %v16428_v36, 2 }
 0x1ee   : > { %v2841_v8 = vrot.slane %v2786_v31, 3  ;;  %v3531_v53 = vmul.f32 %v10710_v39, %v16312_v11  ;;  %v1396_v18 = vadd.f32 %v1352_v48, %v1272_v41  ;;  %v16431_v27 = vrot.slane %v16430_v59, 2 }
 0x1ef   : > { %v2221_v3 = vsel %vm1581_vm1, %v16429_v56, %v2220_v14  ;;  %v16433_v5 = vrot.slane %v16432_v62, 3  ;;  %v16434_v40 = vrot.slane %v10290_v34, 3  ;;  %v10760_v31 = vadd.f32 %v10482_v17, %v5864_v45  ;;  %v16455_v17 = vld [vmem:[#allocation74_spill] sm:$0xff] }
 0x1f0   : > { %v10747_v30 = vsel %vm1581_vm1, %v16431_v27, %v2344_v60  ;;  %v2965_v26 = vrot.slane %v2910_v63, 3  ;;  %v3089_v48 = vrot.slane %v3034_v33, 3  ;;  %v3213_v25 = vrot.slane %v3158_v23, 3  ;;  %v16438_v63 = vld [vmem:[#allocation60_spill] sm:$0xff] }
 0x1f1   : > { %v10752_v24 = vsel %vm2450_vm2, %v16433_v5, %v2469_v42  ;;  %v10757_v14 = vsel %vm2450_vm2, %v16434_v40, %v2593_v16  ;;  %16435 = vst [vmem:[#allocation76_spill] sm:$0xff] %v10760_v31  ;;  %v1520_v41 = vadd.f32 %v1476_v19, %v1396_v18  ;;  %v16436_v60 = vrot.slane %v10309_v57, 3  ;;  %v10770_v16 = vld [vmem:[%s7389_s18 + $0xa0] sm:$0x3f]  ;;  %v16444_v5 = vld [vmem:[#allocation137_spill] sm:$0xff] }
 0x1f2   : > { %v3338_v56 = vrot.slane %v3282_v20, 4  ;;  %v3462_v42 = vrot.slane %v3407_v4, 4  ;;  %v5916_v34 = vsel %vm5897_vm6, %v10760_v31, 0.0  ;;  %v3586_v59 = vrot.slane %v3531_v53, 4  ;;  %16437 = vst [vmem:[#allocation81_spill] sm:$0xff] %v10770_v16  ;;  %v16439_v57 = vld [vmem:[#allocation134_spill] sm:$0xff] }
 0x1f3   : > { %v10765_v36 = vsel %vm2450_vm2, %v16436_v60, %v2717_v54  ;;  %v3655_v45 = vmul.f32 %v10770_v16, %v16315_v10  ;;  %v3779_v33 = vmul.f32 %v16394_v46, %v16438_v63  ;;  %5917 = vadd.xlane.f32.xlu0 %v5916_v34  ;;  %v1645_v19 = vadd.f32 %v1601_v21, %v1520_v41  ;;  %v16441_v20 = vld [vmem:[#allocation62_spill] sm:$0xff]  ;;  %v16518_v63 = vld [vmem:[#allocation51_spill] sm:$0xff] }
 0x1f4   : > { %v16440_v23 = vrot.slane %v16439_v57, 3  ;;  %v3903_v4 = vmul.f32 %v10725_v22, %v16441_v20  ;;  %v4027_v53 = vmul.f32 %v16321_v55, %v10644_v49  ;;  %v16442_v18 = vld [vmem:[#allocation126_spill] sm:$0xff]  ;;  %v16445_v40 = vrot.slane %v16444_v5, 3  ;;  %v16451_v5 = vld [vmem:[#allocation136_spill] sm:$0xff] }
 0x1f5   : > { %v16443_v27 = vrot.slane %v16442_v18, 3  ;;  %v16446_v41 = vld [vmem:[#allocation142_spill] sm:$0xff]  ;;  %v4151_v34 = vmul.f32 %v7141_v38, %v16323_v61  ;;  %v1769_v57 = vadd.f32 %v1725_v43, %v1645_v19  ;;  %v3834_v43 = vrot.slane %v3779_v33, 4  ;;  %v16456_v61 = vld [vmem:[#allocation77_spill] sm:$0xff]  ;;  %v16460_v55 = vld [vmem:[#allocation84_spill] sm:$0xff] }
 0x1f6   : > { %v10779_v54 = vsel %vm2450_vm2, %v16440_v23, %v2841_v8  ;;  %v10793_v21 = vsel %vm2450_vm2, %v16445_v40, %v3089_v48  ;;  %v16447_v60 = vrot.slane %v16446_v41, 3  ;;  %v16448_v23 = vld [vmem:[#allocation145_spill] sm:$0xff]  ;;  %v4276_v48 = vmul.f32 %v10734_v1, %v16328_v9  ;;  %v16453_v19 = vld [vmem:[#allocation70_spill] sm:$0xff] }
 0x1f7   : > { %v10788_v62 = vsel %vm2450_vm2, %v16443_v27, %v2965_v26  ;;  %v16449_v31 = vrot.slane %v16448_v23, 4  ;;  %v16450_v26 = vrot.slane %v10391_v47, 4  ;;  %v16452_v40 = vrot.slane %v16451_v5, 4  ;;  %v16454_v47 = vld [vmem:[#allocation73_spill] sm:$0xff] }
 0x1f8   : > { %v10798_v8 = vsel %vm2450_vm2, %v16447_v60, %v3213_v25  ;;  %v3710_v41 = vrot.slane %v3655_v45, 4  ;;  %v4400_v60 = vmul.f32 %v10710_v39, %v16453_v19  ;;  %v4082_v23 = vrot.slane %v4027_v53, 4  ;;  %v16458_v19 = vld [vmem:[#allocation79_spill] sm:$0xff] }
 0x1f9   : > { %v10804_v18 = vsel %vm3319_vm3, %v16449_v31, %v3338_v56  ;;  %v10809_v27 = vsel %vm3319_vm3, %v16450_v26, %v3462_v42  ;;  %v10816_v25 = vsel %vm3319_vm3, %v16452_v40, %v3586_v59  ;;  %v1893_v31 = vadd.f32 %v1849_v15, %v1769_v57  ;;  %v16457_v59 = vld [vmem:[#allocation78_spill] sm:$0xff] }
 0x1fa   : > { %v3958_v56 = vrot.slane %v3903_v4, 4  ;;  %v4524_v42 = vmul.f32 %v10770_v16, %v16454_v47  ;;  %v4207_v26 = vrot.slane %v4151_v34, 5  ;;  %v4648_v9 = vmul.f32 %v16394_v46, %v16455_v17  ;;  %v16459_v4 = vld [vmem:[#allocation82_spill] sm:$0xff] }
 0x1fb   : > { %v4772_v5 = vmul.f32 %v10725_v22, %v16456_v61  ;;  %v4896_v45 = vmul.f32 %v16457_v59, %v10644_v49  ;;  %v2017_v33 = vadd.f32 %v10707_v29, %v1893_v31  ;;  %v4331_v40 = vrot.slane %v4276_v48, 5  ;;  %v16461_v61 = vld [vmem:[#allocation138_spill] sm:$0xff]  ;;  %v16463_v29 = vld [vmem:[#allocation139_spill] sm:$0xff] }
 0x1fc   : > { %v5020_v15 = vmul.f32 %v7141_v38, %v16458_v19  ;;  %v5145_v53 = vmul.f32 %v10734_v1, %v16459_v4  ;;  %v4455_v57 = vrot.slane %v4400_v60, 5  ;;  %v4579_v47 = vrot.slane %v4524_v42, 5  ;;  %v16465_v1 = vld [vmem:[#allocation140_spill] sm:$0xff]  ;;  %v16499_v4 = vld [vmem:[#allocation125_spill] sm:$0xff] }
 0x1fd   : > { %v4703_v34 = vrot.slane %v4648_v9, 5  ;;  %v5269_v46 = vmul.f32 %v10710_v39, %v16460_v55  ;;  %v2141_v17 = vadd.f32 %v10717_v28, %v2017_v33  ;;  %v16462_v20 = vrot.slane %v16461_v61, 4  ;;  %v16467_v33 = vld [vmem:[#allocation143_spill] sm:$0xff] }
 0x1fe   : > { %v16464_v48 = vrot.slane %v16463_v29, 4  ;;  %v4827_v31 = vrot.slane %v4772_v5, 5  ;;  %v16466_v60 = vrot.slane %v16465_v1, 4  ;;  %v4951_v42 = vrot.slane %v4896_v45, 5  ;;  %v16471_v5 = vld [vmem:[#allocation144_spill] sm:$0xff] }
 0x1ff   : > { %v10838_v59 = vsel %vm3319_vm3, %v16462_v20, %v3710_v41  ;;  %v5076_v39 = vrot.slane %v5020_v15, 6  ;;  %v5200_v55 = vrot.slane %v5145_v53, 6  ;;  %v2265_v28 = vadd.f32 %v2221_v3, %v2141_v17  ;;  %v16469_v41 = vld [vmem:[#allocation146_spill] sm:$0xff]  ;;  %v16477_v53 = vld [vmem:[#allocation15_spill] sm:$0xff] }
 0x200   : > { %v10843_v38 = vsel %vm3319_vm3, %v16464_v48, %v3834_v43  ;;  %v10848_v9 = vsel %vm3319_vm3, %v16466_v60, %v3958_v56  ;;  %v16468_v61 = vrot.slane %v16467_v33, 4  ;;  %v16470_v29 = vrot.slane %v16469_v41, 5  ;;  %v16473_v56 = vld [vmem:[#allocation147_spill] sm:$0xff]  ;;  %v16475_v17 = vld [vmem:[#allocation14_spill] sm:$0xff] }
 0x201   : > { %v16472_v48 = vrot.slane %v16471_v5, 5  ;;  %v16474_v45 = vrot.slane %v16473_v56, 5  ;;  %v16476_v3 = vrot.slane %v16475_v17, 5  ;;  %v16478_v60 = vrot.slane %v16477_v53, 5  ;;  %v16483_v5 = vld [vmem:[#allocation141_spill] sm:$0xff]  ;;  %v16484_v56 = vld [vmem:[#allocation3_spill] sm:$0xff] }
 0x202   : > { %v10853_v20 = vsel %vm3319_vm3, %v16468_v61, %v4082_v23  ;;  %v10858_v43 = vsel %vm4188_vm4, %v16470_v29, %v4207_v26  ;;  %v5324_v33 = vrot.slane %v5269_v46, 6  ;;  %v16479_v61 = vld [vmem:[#allocation17_spill] sm:$0xff]  ;;  %v16486_v17 = vld [vmem:[#allocation28_spill] sm:$0xff] }
 0x203   : > { %v10863_v1 = vsel %vm4188_vm4, %v16472_v48, %v4331_v40  ;;  %v10868_v15 = vsel %vm4188_vm4, %v16474_v45, %v4455_v57  ;;  %v10873_v23 = vsel %vm4188_vm4, %v16476_v3, %v4579_v47  ;;  %v10878_v26 = vsel %vm4188_vm4, %v16478_v60, %v4703_v34  ;;  %v16482_v57 = vld [vmem:[#allocation2_spill] sm:$0xff]  ;;  %v16485_v47 = vld [vmem:[#allocation41_spill] sm:$0xff]  ;;  %v16489_v34 = vld [vmem:[#allocation36_spill] sm:$0xff] }
 0x204   : > { %v2389_v40 = vadd.f32 %v10747_v30, %v2265_v28  ;;  %v16480_v41 = vrot.slane %v16479_v61, 5  ;;  %v420_v48 = vmul.f32 %v16483_v5, %v16482_v57  ;;  %v456_v45 = vmul.f32 %v16485_v47, %v16484_v56  ;;  %v16492_v28 = vld [vmem:[#allocation40_spill] sm:$0xff] }
 0x205   : > { %v16487_v3 = vrot.slane %v16486_v17, 5  ;;  %v16490_v46 = vrot.slane %v16489_v34, 6  ;;  %v16493_v60 = vrot.slane %v16492_v28, 6  ;;  %v16495_v61 = vld [vmem:[#allocation4_spill] sm:$0xff]  ;;  %v16497_v17 = vld [vmem:[#allocation85_spill] sm:$0xff] }
 0x206   : > { %v10884_v29 = vsel %vm4188_vm4, %v16480_v41, %v4827_v31  ;;  %v16496_v41 = vld [vmem:[#allocation47_spill] sm:$0xff]  ;;  %v2514_v56 = vadd.f32 %v10752_v24, %v2389_v40  ;;  %v16498_v34 = vld [vmem:[#allocation5_spill] sm:$0xff]  ;;  %v16505_v24 = vld [vmem:[#allocation90_spill] sm:$0xff] }
 0x207   : > { %16481 = vst [vmem:[#allocation83_spill] sm:$0xff] %v10884_v29  ;;  %v10893_v53 = vsel %vm4188_vm4, %v16487_v3, %v4951_v42  ;;  %v10898_v30 = vsel %vm5057_vm5, %v16490_v46, %v5076_v39  ;;  %v10903_v31 = vsel %vm5057_vm5, %v16493_v60, %v5200_v55  ;;  %v492_v57 = vmul.f32 %v16496_v41, %v16495_v61  ;;  %v16500_v46 = vld [vmem:[#allocation46_spill] sm:$0xff]  ;;  %v10920_v55 = vld [vmem:[%s7389_s18 + $0xb8] sm:$0x3f]  ;;  %v16504_v60 = vld [vmem:[#allocation87_spill] sm:$0xff] }
 0x208   : > { %16488 = vst [vmem:[#allocation86_spill] sm:$0xff] %v10893_v53  ;;  %16491 = vst [vmem:[#allocation88_spill] sm:$0xff] %v10898_v30  ;;  %v10910_v42 = vmul.f32 %v10770_v16, %v16497_v17  ;;  %v472_v3 = vadd.f32 %v456_v45, %v420_v48  ;;  %v528_v39 = vmul.f32 %v16499_v4, %v16498_v34  ;;  %v16501_v19 = vrot.slane %v16500_v46, 6  ;;  %v16506_v48 = vld [vmem:[#allocation92_spill] sm:$0xff]  ;;  %v16507_v34 = vld [vmem:[#allocation7_spill] sm:$0xff] }
 0x209   : > { %16494 = vst [vmem:[#allocation89_spill] sm:$0xff] %v10903_v31  ;;  %16503 = vst [vmem:[#allocation50_spill] sm:$0xff] %v10920_v55  ;;  %v10924_v61 = vmul.f32 %v10920_v55, %v16504_v60  ;;  %v10928_v40 = vmul.f32 %v10725_v22, %v16505_v24  ;;  %v10932_v45 = vmul.f32 %v16506_v48, %v10644_v49  ;;  %v16509_v17 = vld [vmem:[#allocation115_spill] sm:$0xff]  ;;  %v10940_v31 = vld [vmem:[%s7389_s18 + $0xf0] sm:$0xff] }
 0x20a   : > { %v10917_v28 = vsel %vm5057_vm5, %v16501_v19, %v5324_v33  ;;  %v2638_v16 = vadd.f32 %v10757_v14, %v2514_v56  ;;  %v508_v46 = vadd.f32 %v492_v57, %v472_v3  ;;  %v16508_v19 = vld [vmem:[#allocation129_spill] sm:$0xff]  ;;  %16510 = vst [vmem:[#allocation53_spill] sm:$0xff] %v10940_v31  ;;  %v16511_v55 = vld [vmem:[#allocation6_spill] sm:$0xff]  ;;  %v16514_v49 = vld [vmem:[#allocation8_spill] sm:$0xff] }
 0x20b   : > { %16502 = vst [vmem:[#allocation93_spill] sm:$0xff] %v10917_v28  ;;  %v564_v33 = vmul.f32 %v16508_v19, %v16507_v34  ;;  %v600_v28 = vmul.f32 %v16392_v58, %v16509_v17  ;;  %v676_v60 = vmul.f32 %v16483_v5, %v16511_v55  ;;  %v16512_v22 = vld [vmem:[#allocation37_spill] sm:$0xff]  ;;  %v801_v48 = vmul.f32 %v16485_v47, %v16514_v49  ;;  %v16515_v14 = vld [vmem:[#allocation42_spill] sm:$0xff] }
 0x20c   : > { %v10946_v24 = vmul.f32 %v16512_v22, %v16511_v55  ;;  %v10952_v57 = vmul.f32 %v16515_v14, %v16514_v49  ;;  %v2762_v56 = vadd.f32 %v10765_v36, %v2638_v16  ;;  %v544_v3 = vadd.f32 %v528_v39, %v508_v46  ;;  %v16517_v58 = vld [vmem:[#allocation10_spill] sm:$0xff]  ;;  %v16520_v29 = vld [vmem:[#allocation13_spill] sm:$0xff]  ;;  %v16521_v55 = vld [vmem:[#allocation135_spill] sm:$0xff] }
 0x20d   : > { %v925_v34 = vmul.f32 %v16496_v41, %v16517_v58  ;;  %v10959_v10 = vmul.f32 %v16518_v63, %v16517_v58  ;;  %v733_v30 = vrot.slane %v676_v60, 1  ;;  %v636_v36 = vmul.f32 %v16395_v35, %v10940_v31  ;;  %v16524_v39 = vld [vmem:[#allocation128_spill] sm:$0xff] }
 0x20e   : > { %16513 = vst [vmem:[#allocation94_spill] sm:$0xff] %v10946_v24  ;;  %16516 = vst [vmem:[#allocation100_spill] sm:$0xff] %v10952_v57  ;;  %v2886_v49 = vadd.f32 %v10779_v54, %v2762_v56  ;;  %v580_v53 = vadd.f32 %v564_v33, %v544_v3  ;;  %v857_v16 = vrot.slane %v801_v48, 1  ;;  %v1049_v58 = vmul.f32 %v16499_v4, %v16520_v29 }
 0x20f   : > { %16519 = vst [vmem:[#allocation95_spill] sm:$0xff] %v10959_v10  ;;  %v981_v46 = vrot.slane %v925_v34, 1  ;;  %v10972_v11 = vmul.f32 %v16521_v55, %v16520_v29  ;;  %v1173_v33 = vmul.f32 %v16508_v19, %v16393_v13  ;;  %v16523_v48 = vrot.slane %v10946_v24, 1 }
 0x210   : > { %v3010_v60 = vadd.f32 %v10788_v62, %v2886_v49  ;;  %v616_v0 = vadd.f32 %v600_v28, %v580_v53  ;;  %v1105_v56 = vrot.slane %v1049_v58, 1  ;;  %v10984_v35 = vmul.f32 %v16524_v39, %v16393_v13  ;;  %v16525_v62 = vld [vmem:[#allocation18_spill] sm:$0xff]  ;;  %v16526_v28 = vld [vmem:[#allocation120_spill] sm:$0xff] }
 0x211   : > { %16522 = vst [vmem:[#allocation96_spill] sm:$0xff] %v10972_v11  ;;  %v735_v34 = vsel %vm712_vm0, %v733_v30, %v16523_v48  ;;  %v1297_v53 = vmul.f32 %v16525_v62, %v16509_v17  ;;  %v10991_v54 = vmul.f32 %v16525_v62, %v16526_v28  ;;  %v10995_v30 = vld [vmem:[%s7389_s18 + $0xf8] sm:$0xff]  ;;  %v16529_v58 = vrot.slane %v10952_v57, 1  ;;  %v16530_v13 = vld [vmem:[#allocation20_spill] sm:$0xff] }
 0x212   : > { %v3134_v29 = vadd.f32 %v10793_v21, %v3010_v60  ;;  %v652_v49 = vadd.f32 %v636_v36, %v616_v0  ;;  %16528 = vst [vmem:[#allocation133_spill] sm:$0xff] %v10995_v30  ;;  %v1229_v3 = vrot.slane %v1173_v33, 1  ;;  %v1421_v21 = vmul.f32 %v16530_v13, %v10940_v31  ;;  %v16534_v33 = vld [vmem:[#allocation21_spill] sm:$0xff] }
 0x213   : > { %16527 = vst [vmem:[#allocation72_spill] sm:$0xff] %v10991_v54  ;;  %v859_v48 = vsel %vm712_vm0, %v857_v16, %v16529_v58  ;;  %v11006_v60 = vmul.f32 %v16530_v13, %v10995_v30  ;;  %v16532_v24 = vrot.slane %v10959_v10, 1  ;;  %v16533_v57 = vrot.slane %v10972_v11, 1 }
 0x214   : > { %v3258_v0 = vadd.f32 %v10798_v8, %v3134_v29  ;;  %v777_v36 = vadd.f32 %v735_v34, %v652_v49  ;;  %v1545_v58 = vmul.f32 %v16483_v5, %v16534_v33  ;;  %v11018_v8 = vmul.f32 %v16512_v22, %v16534_v33 }
 0x215   : > { %16531 = vst [vmem:[#allocation23_spill] sm:$0xff] %v11006_v60  ;;  %v983_v62 = vsel %vm712_vm0, %v981_v46, %v16532_v24  ;;  %v1107_v16 = vsel %vm712_vm0, %v1105_v56, %v16533_v57  ;;  %v1353_v49 = vrot.slane %v1297_v53, 1  ;;  %v1477_v10 = vrot.slane %v1421_v21, 1  ;;  %v16536_v46 = vld [vmem:[#allocation25_spill] sm:$0xff] }
 0x216   : > { %16535 = vst [vmem:[#allocation24_spill] sm:$0xff] %v11018_v8  ;;  %v3383_v29 = vadd.f32 %v10804_v18, %v3258_v0  ;;  %v901_v34 = vadd.f32 %v859_v48, %v777_v36  ;;  %v1670_v11 = vmul.f32 %v16485_v47, %v16536_v46  ;;  %v11027_v57 = vmul.f32 %v16515_v14, %v16536_v46  ;;  %v16539_v36 = vld [vmem:[#allocation26_spill] sm:$0xff] }
 0x217   : > { %v16538_v13 = vrot.slane %v10984_v35, 1  ;;  %v1602_v53 = vrot.slane %v1545_v58, 2  ;;  %v15098_v48 = vrot.slane %v11018_v8, 2  ;;  %v1794_v24 = vmul.f32 %v16496_v41, %v16539_v36 }
 0x218   : > { %16537 = vst [vmem:[#allocation65_spill] sm:$0xff] %v11027_v57  ;;  %v3507_v56 = vadd.f32 %v10809_v27, %v3383_v29  ;;  %v1025_v33 = vadd.f32 %v983_v62, %v901_v34  ;;  %v1726_v21 = vrot.slane %v1670_v11, 2  ;;  %v15099_v0 = vrot.slane %v11027_v57, 2  ;;  %v16542_v29 = vld [vmem:[#allocation27_spill] sm:$0xff] }
 0x219   : > { %v1231_v18 = vsel %vm712_vm0, %v1229_v3, %v16538_v13  ;;  %v11041_v62 = vmul.f32 %v16518_v63, %v16539_v36  ;;  %v16540_v13 = vrot.slane %v10991_v54, 1  ;;  %v16541_v11 = vrot.slane %v11006_v60, 1  ;;  %v11069_v60 = vld [vmem:[%s7389_s18 + $0xd8] sm:$0xff]  ;;  %v16547_v54 = vld [vmem:[#allocation54_spill] sm:$0xff] }
 0x21a   : > { %v3631_v17 = vadd.f32 %v10816_v25, %v3507_v56  ;;  %v1149_v27 = vadd.f32 %v1107_v16, %v1025_v33  ;;  %v1918_v34 = vmul.f32 %v16499_v4, %v16542_v29  ;;  %v11053_v25 = vmul.f32 %v16521_v55, %v16542_v29  ;;  %v16543_v56 = vld [vmem:[#allocation31_spill] sm:$0xff]  ;;  %16544 = vst [vmem:[#allocation68_spill] sm:$0xff] %v11069_v60 }
 0x21b   : > { %v1355_v3 = vsel %vm712_vm0, %v1353_v49, %v16540_v13  ;;  %v1479_v58 = vsel %vm712_vm0, %v1477_v10, %v16541_v11  ;;  %v2042_v46 = vmul.f32 %v16508_v19, %v16543_v56  ;;  %v11060_v49 = vmul.f32 %v16524_v39, %v16543_v56 }
 0x21c   : > { %v3755_v16 = vadd.f32 %v10838_v59, %v3631_v17  ;;  %v1273_v33 = vadd.f32 %v1231_v18, %v1149_v27  ;;  %v1604_v10 = vsel %vm1581_vm1, %v1602_v53, %v15098_v48  ;;  %v1728_v13 = vsel %vm1581_vm1, %v1726_v21, %v15099_v0 }
 0x21d   : > { %v1850_v11 = vrot.slane %v1794_v24, 2  ;;  %v2166_v59 = vmul.f32 %v11069_v60, %v16146_v50  ;;  %v11077_v8 = vmul.f32 %v16146_v50, %v16526_v28  ;;  %v1974_v53 = vrot.slane %v1918_v34, 2 }
 0x21e   : > { %v3879_v17 = vadd.f32 %v10843_v38, %v3755_v16  ;;  %v1397_v18 = vadd.f32 %v1355_v3, %v1273_v33  ;;  %v2290_v24 = vmul.f32 %v15884_v32, %v10940_v31  ;;  %v11084_v21 = vmul.f32 %v15884_v32, %v10995_v30 }
 0x21f   : > { %v2098_v3 = vrot.slane %v2042_v46, 2  ;;  %v15106_v16 = vrot.slane %v11060_v49, 2  ;;  %v2222_v33 = vrot.slane %v2166_v59, 2  ;;  %v15105_v28 = vrot.slane %v11077_v8, 2  ;;  %v16550_v46 = vld [vmem:[#allocation57_spill] sm:$0xff] }
 0x220   : > { %16545 = vst [vmem:[#allocation75_spill] sm:$0xff] %v11084_v21  ;;  %v4003_v0 = vadd.f32 %v10848_v9, %v3879_v17  ;;  %v1521_v38 = vadd.f32 %v1479_v58, %v1397_v18  ;;  %v2346_v27 = vrot.slane %v2290_v24, 2  ;;  %v15104_v34 = vrot.slane %v11084_v21, 2 }
 0x221   : > { %v16546_v57 = vrot.slane %v10910_v42, 6  ;;  %v16548_v50 = vrot.slane %v16547_v54, 6  ;;  %v16549_v9 = vrot.slane %v10924_v61, 6  ;;  %v16551_v58 = vrot.slane %v16550_v46, 6 }
 0x222   : > { %v4127_v48 = vadd.f32 %v10853_v20, %v4003_v0  ;;  %v1646_v17 = vadd.f32 %v1604_v10, %v1521_v38  ;;  %v16552_v18 = vrot.slane %v11041_v62, 2  ;;  %v16553_v20 = vrot.slane %v11053_v25, 2 }
 0x223   : > { %v11096_v32 = vsel %vm5057_vm5, %v16548_v50, %v16546_v57  ;;  %v11103_v59 = vsel %vm5057_vm5, %v16551_v58, %v16549_v9  ;;  %v2414_v50 = vmul.f32 %v16483_v5, %v16027_v6  ;;  %v11115_v61 = vmul.f32 %v16512_v22, %v16027_v6 }
 0x224   : > { %v1852_v24 = vsel %vm1581_vm1, %v1850_v11, %v16552_v18  ;;  %v1976_v42 = vsel %vm1581_vm1, %v1974_v53, %v16553_v20  ;;  %v4252_v54 = vadd.f32 %v10858_v43, %v4127_v48  ;;  %v1770_v57 = vadd.f32 %v1728_v13, %v1646_v17 }
 0x225   : > { %16554 = vst [vmem:[#allocation80_spill] sm:$0xff] %v11115_v61  ;;  %v2100_v0 = vsel %vm1581_vm1, %v2098_v3, %v15106_v16  ;;  %v2539_v10 = vmul.f32 %v16485_v47, %v16035_v52  ;;  %v2224_v11 = vsel %vm1581_vm1, %v2222_v33, %v15105_v28  ;;  %v2348_v53 = vsel %vm1581_vm1, %v2346_v27, %v15104_v34 }
 0x226   : > { %v11131_v38 = vmul.f32 %v16515_v14, %v16035_v52  ;;  %v2663_v43 = vmul.f32 %v16496_v41, %v16419_v12  ;;  %v4376_v48 = vadd.f32 %v10863_v1, %v4252_v54  ;;  %v1894_v13 = vadd.f32 %v1852_v24, %v1770_v57  ;;  %v11158_v54 = vld [vmem:[%s7389_s18 + $0xe0] sm:$0xff] }
 0x227   : > { %v11138_v3 = vmul.f32 %v16518_v63, %v16419_v12  ;;  %v2787_v33 = vmul.f32 %v16499_v4, %v16422_v44  ;;  %v2471_v9 = vrot.slane %v2414_v50, 3  ;;  %v11145_v46 = vmul.f32 %v16521_v55, %v16422_v44  ;;  %16559 = vst [vmem:[#allocation99_spill] sm:$0xff] %v11158_v54  ;;  %v16562_v4 = vld [vmem:[#allocation107_spill] sm:$0xff] }
 0x228   : > { %16555 = vst [vmem:[#allocation33_spill] sm:$0xff] %v11131_v38  ;;  %v2911_v58 = vmul.f32 %v16508_v19, %v16423_v2  ;;  %v4500_v1 = vadd.f32 %v10868_v15, %v4376_v48  ;;  %v2018_v17 = vadd.f32 %v1976_v42, %v1894_v13  ;;  %v2595_v18 = vrot.slane %v2539_v10, 3 }
 0x229   : > { %16556 = vst [vmem:[#allocation30_spill] sm:$0xff] %v11138_v3  ;;  %16557 = vst [vmem:[#allocation97_spill] sm:$0xff] %v11145_v46  ;;  %v11152_v24 = vmul.f32 %v16524_v39, %v16423_v2  ;;  %v2719_v20 = vrot.slane %v2663_v43, 3  ;;  %v3035_v50 = vmul.f32 %v11069_v60, %v16425_v7  ;;  %v11162_v57 = vmul.f32 %v11158_v54, %v16425_v7 }
 0x22a   : > { %v4624_v15 = vadd.f32 %v10873_v23, %v4500_v1  ;;  %v2142_v19 = vadd.f32 %v2100_v0, %v2018_v17  ;;  %v15107_v42 = vrot.slane %v11138_v3, 3  ;;  %v2843_v10 = vrot.slane %v2787_v33, 3 }
 0x22b   : > { %16558 = vst [vmem:[#allocation98_spill] sm:$0xff] %v11152_v24  ;;  %16560 = vst [vmem:[#allocation111_spill] sm:$0xff] %v11162_v57  ;;  %v2967_v13 = vrot.slane %v2911_v58, 3  ;;  %v3159_v34 = vmul.f32 %v16426_v51, %v10940_v31  ;;  %v16561_v16 = vrot.slane %v10928_v40, 6  ;;  %v16563_v27 = vrot.slane %v16562_v4, 6  ;;  %v16566_v40 = vld [vmem:[#allocation83_spill] sm:$0xff] }
 0x22c   : > { %v4748_v28 = vadd.f32 %v10878_v26, %v4624_v15  ;;  %v2266_v0 = vadd.f32 %v2224_v11, %v2142_v19  ;;  %v11180_v33 = vmul.f32 %v16426_v51, %v10995_v30  ;;  %v16565_v58 = vrot.slane %v11115_v61, 3  ;;  %v16587_v61 = vld [vmem:[#allocation62_spill] sm:$0xff] }
 0x22d   : > { %v11176_v23 = vsel %vm5057_vm5, %v16563_v27, %v16561_v16  ;;  %v3091_v17 = vrot.slane %v3035_v50, 3  ;;  %v15108_v43 = vrot.slane %v11162_v57, 3  ;;  %v3283_v26 = vmul.f32 %v16483_v5, %v16303_v37  ;;  %v16568_v27 = vld [vmem:[#allocation58_spill] sm:$0xff] }
 0x22e   : > { %16564 = vst [vmem:[#allocation101_spill] sm:$0xff] %v11180_v33  ;;  %v2473_v1 = vsel %vm2450_vm2, %v2471_v9, %v16565_v58  ;;  %v4872_v4 = vadd.f32 %v16566_v40, %v4748_v28  ;;  %v16567_v16 = vrot.slane %v10932_v45, 6  ;;  %v16569_v11 = vrot.slane %v16568_v27, 6  ;;  %v16573_v27 = vld [vmem:[#allocation86_spill] sm:$0xff] }
 0x22f   : > { %v2390_v19 = vadd.f32 %v2348_v53, %v2266_v0  ;;  %v16570_v48 = vrot.slane %v11131_v38, 3  ;;  %v2721_v50 = vsel %vm2450_vm2, %v2719_v20, %v15107_v42  ;;  %v16571_v58 = vrot.slane %v11145_v46, 3  ;;  %v11231_v42 = vld [vmem:[%s7389_s18 + $0xa8] sm:$0xff] }
 0x230   : > { %v11194_v15 = vsel %vm5057_vm5, %v16569_v11, %v16567_v16  ;;  %v16572_v45 = vrot.slane %v11152_v24, 3  ;;  %v3215_v16 = vrot.slane %v3159_v34, 3  ;;  %v4996_v53 = vadd.f32 %v16573_v27, %v4872_v4  ;;  %v16574_v11 = vld [vmem:[#allocation55_spill] sm:$0xff]  ;;  %16579 = vst [vmem:[#allocation113_spill] sm:$0xff] %v11231_v42 }
 0x231   : > { %v2597_v9 = vsel %vm2450_vm2, %v2595_v18, %v16570_v48  ;;  %v2845_v28 = vsel %vm2450_vm2, %v2843_v10, %v16571_v58  ;;  %v2515_v0 = vadd.f32 %v2473_v1, %v2390_v19  ;;  %v11212_v48 = vmul.f32 %v16512_v22, %v16303_v37  ;;  %v16577_v19 = vld [vmem:[#allocation56_spill] sm:$0xff]  ;;  %v11240_v18 = vld [vmem:[%s7389_s18 + $0xc0] sm:$0xff] }
 0x232   : > { %v2969_v40 = vsel %vm2450_vm2, %v2967_v13, %v16572_v45  ;;  %v3093_v20 = vsel %vm2450_vm2, %v3091_v17, %v15108_v43  ;;  %v3340_v10 = vrot.slane %v3283_v26, 4  ;;  %v3408_v58 = vmul.f32 %v16485_v47, %v16574_v11  ;;  %v16576_v13 = vld [vmem:[#allocation88_spill] sm:$0xff]  ;;  %v16580_v17 = vld [vmem:[#allocation59_spill] sm:$0xff]  ;;  %16582 = vst [vmem:[#allocation103_spill] sm:$0xff] %v11240_v18 }
 0x233   : > { %v11221_v34 = vmul.f32 %v16515_v14, %v16574_v11  ;;  %v5121_v1 = vadd.f32 %v16576_v13, %v4996_v53  ;;  %v2639_v4 = vadd.f32 %v2597_v9, %v2515_v0  ;;  %v3532_v45 = vmul.f32 %v16496_v41, %v16577_v19  ;;  %v16583_v53 = vld [vmem:[#allocation60_spill] sm:$0xff]  ;;  %v16585_v13 = vld [vmem:[#allocation89_spill] sm:$0xff]  ;;  %v16591_v11 = vld [vmem:[#allocation63_spill] sm:$0xff] }
 0x234   : > { %v11228_v27 = vmul.f32 %v16518_v63, %v16577_v19  ;;  %v3656_v26 = vmul.f32 %v11231_v42, %v16580_v17  ;;  %v11237_v43 = vmul.f32 %v16521_v55, %v16580_v17  ;;  %v3780_v9 = vmul.f32 %v11240_v18, %v16583_v53 }
 0x235   : > { %16575 = vst [vmem:[#allocation112_spill] sm:$0xff] %v11221_v34  ;;  %v11246_v0 = vmul.f32 %v16524_v39, %v16583_v53  ;;  %v5245_v57 = vadd.f32 %v16585_v13, %v5121_v1  ;;  %v2763_v24 = vadd.f32 %v2721_v50, %v2639_v4  ;;  %v16586_v46 = vrot.slane %v11180_v33, 3  ;;  %v16589_v39 = vld [vmem:[#allocation93_spill] sm:$0xff] }
 0x236   : > { %16578 = vst [vmem:[#allocation102_spill] sm:$0xff] %v11228_v27  ;;  %16581 = vst [vmem:[#allocation114_spill] sm:$0xff] %v11237_v43  ;;  %v3464_v55 = vrot.slane %v3408_v58, 4  ;;  %v3904_v21 = vmul.f32 %v11069_v60, %v16587_v61  ;;  %v11258_v19 = vmul.f32 %v11158_v54, %v16587_v61  ;;  %v3588_v50 = vrot.slane %v3532_v45, 4 }
 0x237   : > { %16584 = vst [vmem:[#allocation104_spill] sm:$0xff] %v11246_v0  ;;  %v3217_v3 = vsel %vm2450_vm2, %v3215_v16, %v16586_v46  ;;  %v5369_v53 = vadd.f32 %v16589_v39, %v5245_v57  ;;  %v2887_v1 = vadd.f32 %v2845_v28, %v2763_v24  ;;  %v15124_v4 = vrot.slane %v11228_v27, 4  ;;  %v16609_v27 = vld [vmem:[#allocation79_spill] sm:$0xff] }
 0x238   : > { %16588 = vst [vmem:[#allocation105_spill] sm:$0xff] %v11258_v19  ;;  %v3712_v13 = vrot.slane %v3656_v26, 4  ;;  %v15123_v46 = vrot.slane %v11237_v43, 4  ;;  %v3836_v16 = vrot.slane %v3780_v9, 4  ;;  %v15122_v58 = vrot.slane %v11246_v0, 4  ;;  %v16601_v43 = vld [vmem:[#allocation148_spill] sm:$0xff] }
 0x239   : > { %v5493_v17 = vadd.f32 %v11096_v32, %v5369_v53  ;;  %v3011_v38 = vadd.f32 %v2969_v40, %v2887_v1  ;;  %v16590_v33 = vrot.slane %v11212_v48, 4  ;;  %v4028_v57 = vmul.f32 %v16591_v11, %v10940_v31 }
 0x23a   : > { %v16592_v24 = vrot.slane %v11221_v34, 4  ;;  %v3960_v45 = vrot.slane %v3904_v21, 4  ;;  %v15125_v26 = vrot.slane %v11258_v19, 4  ;;  %v11276_v9 = vmul.f32 %v16591_v11, %v10995_v30  ;;  %v16600_v19 = vld [vmem:[#allocation74_spill] sm:$0xff] }
 0x23b   : > { %v3342_v61 = vsel %vm3319_vm3, %v3340_v10, %v16590_v33  ;;  %v5617_v32 = vadd.f32 %v11103_v59, %v5493_v17  ;;  %v3135_v40 = vadd.f32 %v3093_v20, %v3011_v38  ;;  %v3590_v33 = vsel %vm3319_vm3, %v3588_v50, %v15124_v4  ;;  %v16594_v10 = vld [vmem:[#allocation66_spill] sm:$0xff]  ;;  %v16595_v59 = vld [vmem:[#allocation69_spill] sm:$0xff] }
 0x23c   : > { %v3466_v28 = vsel %vm3319_vm3, %v3464_v55, %v16592_v24  ;;  %16593 = vst [vmem:[#allocation108_spill] sm:$0xff] %v11276_v9  ;;  %v4152_v53 = vmul.f32 %v16483_v5, %v16594_v10  ;;  %v3714_v21 = vsel %vm3319_vm3, %v3712_v13, %v15123_v46  ;;  %v3838_v55 = vsel %vm3319_vm3, %v3836_v16, %v15122_v58  ;;  %v16596_v24 = vld [vmem:[#allocation70_spill] sm:$0xff]  ;;  %v16605_v4 = vld [vmem:[#allocation77_spill] sm:$0xff] }
 0x23d   : > { %v11292_v39 = vmul.f32 %v16512_v22, %v16594_v10  ;;  %v4277_v38 = vmul.f32 %v16485_v47, %v16595_v59  ;;  %v5741_v20 = vadd.f32 %v11176_v23, %v5617_v32  ;;  %v3259_v17 = vadd.f32 %v3217_v3, %v3135_v40  ;;  %v16597_v32 = vld [vmem:[#allocation73_spill] sm:$0xff] }
 0x23e   : > { %v4084_v1 = vrot.slane %v4028_v57, 4  ;;  %v11299_v50 = vmul.f32 %v16515_v14, %v16595_v59  ;;  %v3962_v13 = vsel %vm3319_vm3, %v3960_v45, %v15125_v26  ;;  %v4401_v58 = vmul.f32 %v16496_v41, %v16596_v24  ;;  %v11316_v26 = vld [vmem:[%s7389_s18 + $0xb0] sm:$0xff] }
 0x23f   : > { %v11309_v46 = vmul.f32 %v16518_v63, %v16596_v24  ;;  %v5865_v3 = vadd.f32 %v11194_v15, %v5741_v20  ;;  %v3384_v23 = vadd.f32 %v3342_v61, %v3259_v17  ;;  %v4209_v57 = vrot.slane %v4152_v53, 5  ;;  %16598 = vst [vmem:[#allocation109_spill] sm:$0xff] %v11316_v26  ;;  %v11329_v53 = vld [vmem:[%s7389_s18 + $0xc8] sm:$0xff] }
 0x240   : > { %v4525_v40 = vmul.f32 %v11231_v42, %v16597_v32  ;;  %v4333_v45 = vrot.slane %v4277_v38, 5  ;;  %v11320_v16 = vmul.f32 %v11316_v26, %v16597_v32  ;;  %v4649_v0 = vmul.f32 %v11240_v18, %v16600_v19  ;;  %16603 = vst [vmem:[#allocation32_spill] sm:$0xff] %v11329_v53 }
 0x241   : > { %v11325_v24 = vadd.f32 %v16601_v43, %v5865_v3  ;;  %v3508_v61 = vadd.f32 %v3466_v28, %v3384_v23  ;;  %v11333_v38 = vmul.f32 %v11329_v53, %v16600_v19  ;;  %v4457_v20 = vrot.slane %v4401_v58, 5  ;;  %v16607_v23 = vld [vmem:[#allocation78_spill] sm:$0xff] }
 0x242   : > { %16599 = vst [vmem:[#allocation106_spill] sm:$0xff] %v11320_v16  ;;  %v4773_v32 = vmul.f32 %v11069_v60, %v16605_v4  ;;  %v11340_v59 = vmul.f32 %v11158_v54, %v16605_v4  ;;  %v4581_v3 = vrot.slane %v4525_v40, 5  ;;  %v4897_v15 = vmul.f32 %v16607_v23, %v10940_v31  ;;  %v16611_v40 = vld [vmem:[#allocation82_spill] sm:$0xff] }
 0x243   : > { %16602 = vst [vmem:[#allocation116_spill] sm:$0xff] %v11325_v24  ;;  %16604 = vst [vmem:[#allocation117_spill] sm:$0xff] %v11333_v38  ;;  %v5919_v43 = vsel %vm5897_vm6, %v11325_v24, 0.0  ;;  %v3632_v28 = vadd.f32 %v3590_v33, %v3508_v61  ;;  %v4705_v19 = vrot.slane %v4649_v0, 5  ;;  %v11349_v17 = vmul.f32 %v16607_v23, %v10995_v30 }
 0x244   : > { %16606 = vst [vmem:[#allocation118_spill] sm:$0xff] %v11340_v59  ;;  %5920 = vadd.xlane.f32.xlu1 %v5919_v43  ;;  %v5021_v4 = vmul.f32 %v16483_v5, %v16609_v27  ;;  %v11356_v33 = vmul.f32 %v16512_v22, %v16609_v27  ;;  %v5146_v61 = vmul.f32 %v16485_v47, %v16611_v40  ;;  %v4829_v43 = vrot.slane %v4773_v32, 5  ;;  %v16617_v5 = vld [vmem:[#allocation84_spill] sm:$0xff] }
 0x245   : > { %16608 = vst [vmem:[#allocation119_spill] sm:$0xff] %v11349_v17  ;;  %v3756_v34 = vadd.f32 %v3714_v21, %v3632_v28  ;;  %v4953_v58 = vrot.slane %v4897_v15, 5  ;;  %v11363_v24 = vmul.f32 %v16515_v14, %v16611_v40  ;;  %v16613_v10 = vrot.slane %v11276_v9, 4 }
 0x246   : > { %16610 = vst [vmem:[#allocation121_spill] sm:$0xff] %v11356_v33  ;;  %v5078_v21 = vrot.slane %v5021_v4, 6  ;;  %v16614_v47 = vrot.slane %v11292_v39, 5  ;;  %v16615_v15 = vrot.slane %v11299_v50, 5  ;;  %v16616_v40 = vrot.slane %v11309_v46, 5 }
 0x247   : > { %16612 = vst [vmem:[#allocation122_spill] sm:$0xff] %v11363_v24  ;;  %v3880_v23 = vadd.f32 %v3838_v55, %v3756_v34  ;;  %v4086_v27 = vsel %vm3319_vm3, %v4084_v1, %v16613_v10  ;;  %v5202_v4 = vrot.slane %v5146_v61, 6  ;;  %v15150_v28 = vrot.slane %v11363_v24, 6  ;;  %v16624_v61 = vld [vmem:[#allocation85_spill] sm:$0xff]  ;;  %v16634_v24 = vld [vmem:[#allocation4_spill] sm:$0xff] }
 0x248   : > { %v4211_v32 = vsel %vm4188_vm4, %v4209_v57, %v16614_v47  ;;  %v4335_v0 = vsel %vm4188_vm4, %v4333_v45, %v16615_v15  ;;  %v4459_v34 = vsel %vm4188_vm4, %v4457_v20, %v16616_v40  ;;  %v5270_v9 = vmul.f32 %v16496_v41, %v16617_v5 }
 0x249   : > { %v4004_v55 = vadd.f32 %v3962_v13, %v3880_v23  ;;  %v16618_v10 = vrot.slane %v11320_v16, 5  ;;  %v16619_v57 = vrot.slane %v11333_v38, 5  ;;  %v16620_v45 = vrot.slane %v11340_v59, 5  ;;  %v16635_v16 = vld [vmem:[#allocation5_spill] sm:$0xff] }
 0x24a   : > { %v11393_v13 = vmul.f32 %v16518_v63, %v16617_v5  ;;  %v16622_v23 = vrot.slane %v11349_v17, 5  ;;  %v16623_v40 = vrot.slane %v11356_v33, 6 }
 0x24b   : > { %v4583_v1 = vsel %vm4188_vm4, %v4581_v3, %v16618_v10  ;;  %v4707_v47 = vsel %vm4188_vm4, %v4705_v19, %v16619_v57  ;;  %v4831_v15 = vsel %vm4188_vm4, %v4829_v43, %v16620_v45  ;;  %v4128_v20 = vadd.f32 %v4086_v27, %v4004_v55  ;;  %v16626_v10 = vld [vmem:[#allocation87_spill] sm:$0xff] }
 0x24c   : > { %16621 = vst [vmem:[#allocation123_spill] sm:$0xff] %v11393_v13  ;;  %v4955_v41 = vsel %vm4188_vm4, %v4953_v58, %v16622_v23  ;;  %v11401_v3 = vsel %vm5057_vm5, %v5078_v21, %v16623_v40  ;;  %v5394_v19 = vmul.f32 %v11231_v42, %v16624_v61  ;;  %v11407_v43 = vmul.f32 %v11316_v26, %v16624_v61  ;;  %v16628_v58 = vld [vmem:[#allocation90_spill] sm:$0xff]  ;;  %v16630_v42 = vld [vmem:[#allocation92_spill] sm:$0xff] }
 0x24d   : > { %v5518_v57 = vmul.f32 %v11240_v18, %v16626_v10  ;;  %v11413_v27 = vmul.f32 %v11329_v53, %v16626_v10  ;;  %v5642_v55 = vmul.f32 %v11069_v60, %v16628_v58  ;;  %v4253_v45 = vadd.f32 %v4211_v32, %v4128_v20  ;;  %v16632_v32 = vld [vmem:[#allocation2_spill] sm:$0xff]  ;;  %v16638_v18 = vld [vmem:[#allocation71_spill] sm:$0xff] }
 0x24e   : > { %16625 = vst [vmem:[#allocation124_spill] sm:$0xff] %v11407_v43  ;;  %v11420_v21 = vsel %vm5057_vm5, %v5202_v4, %v15150_v28  ;;  %v5326_v23 = vrot.slane %v5270_v9, 6  ;;  %v11424_v40 = vmul.f32 %v11158_v54, %v16628_v58  ;;  %v5766_v10 = vmul.f32 %v16630_v42, %v10940_v31  ;;  %v16633_v28 = vld [vmem:[#allocation3_spill] sm:$0xff] }
 0x24f   : > { %16627 = vst [vmem:[#allocation127_spill] sm:$0xff] %v11413_v27  ;;  %v11431_v33 = vmul.f32 %v16630_v42, %v10995_v30  ;;  %v421_v20 = vmul.f32 %v16512_v22, %v16632_v32  ;;  %v4377_v60 = vadd.f32 %v4335_v0, %v4253_v45  ;;  %v5450_v4 = vrot.slane %v5394_v19, 6  ;;  %v16636_v19 = vld [vmem:[#allocation7_spill] sm:$0xff]  ;;  %v16637_v45 = vld [vmem:[#allocation6_spill] sm:$0xff] }
 0x250   : > { %16629 = vst [vmem:[#allocation130_spill] sm:$0xff] %v11424_v40  ;;  %v457_v9 = vmul.f32 %v16515_v14, %v16633_v28  ;;  %v493_v58 = vmul.f32 %v16518_v63, %v16634_v24  ;;  %v5574_v17 = vrot.slane %v5518_v57, 6  ;;  %v5698_v59 = vrot.slane %v5642_v55, 6  ;;  %v16639_v55 = vld [vmem:[#allocation8_spill] sm:$0xff]  ;;  %v16641_v42 = vld [vmem:[#allocation10_spill] sm:$0xff] }
 0x251   : > { %16631 = vst [vmem:[#allocation131_spill] sm:$0xff] %v11431_v33  ;;  %v4501_v38 = vadd.f32 %v4459_v34, %v4377_v60  ;;  %v529_v22 = vmul.f32 %v11316_v26, %v16635_v16  ;;  %v5822_v0 = vrot.slane %v5766_v10, 6  ;;  %v565_v63 = vmul.f32 %v11329_v53, %v16636_v19  ;;  %v16640_v60 = vld [vmem:[#allocation64_spill] sm:$0xff]  ;;  %v11470_v19 = vld [vmem:[%s7389_s18 + $0x100] sm:$0x3f] }
 0x252   : > { %v473_v61 = vadd.f32 %v457_v9, %v421_v20  ;;  %v678_v57 = vmul.f32 %v16638_v18, %v16637_v45  ;;  %v803_v34 = vmul.f32 %v16640_v60, %v16639_v55  ;;  %v16642_v20 = vld [vmem:[#allocation81_spill] sm:$0xff]  ;;  %v16643_v28 = vrot.slane %v11393_v13, 6  ;;  %16649 = vst [vmem:[#allocation132_spill] sm:$0xff] %v11470_v19  ;;  %v16656_v16 = vld [vmem:[#allocation18_spill] sm:$0xff] }
 0x253   : > { %v4625_v24 = vadd.f32 %v4583_v1, %v4501_v38  ;;  %v927_v9 = vmul.f32 %v16642_v20, %v16641_v42  ;;  %v16644_v14 = vrot.slane %v11407_v43, 6  ;;  %v16645_v53 = vrot.slane %v11413_v27, 6  ;;  %v16646_v38 = vld [vmem:[#allocation13_spill] sm:$0xff]  ;;  %v16647_v1 = vld [vmem:[#allocation50_spill] sm:$0xff] }
 0x254   : > { %v509_v31 = vadd.f32 %v493_v58, %v473_v61  ;;  %v5328_v10 = vsel %vm5057_vm5, %v5326_v23, %v16643_v28  ;;  %v1051_v61 = vmul.f32 %v16647_v1, %v16646_v38  ;;  %v16648_v55 = vrot.slane %v11424_v40, 6  ;;  %v16650_v23 = vld [vmem:[#allocation11_spill] sm:$0xff] }
 0x255   : > { %v5452_v26 = vsel %vm5057_vm5, %v5450_v4, %v16644_v14  ;;  %v5576_v45 = vsel %vm5057_vm5, %v5574_v17, %v16645_v53  ;;  %v4749_v58 = vadd.f32 %v4707_v47, %v4625_v24  ;;  %v601_v43 = vmul.f32 %v11158_v54, %v16650_v23  ;;  %v16652_v53 = vld [vmem:[#allocation12_spill] sm:$0xff]  ;;  %v16654_v40 = vld [vmem:[#allocation67_spill] sm:$0xff] }
 0x256   : > { %v11467_v42 = vsel %vm5057_vm5, %v5698_v59, %v16648_v55  ;;  %v545_v28 = vadd.f32 %v529_v22, %v509_v31  ;;  %v16651_v4 = vrot.slane %v11431_v33, 6  ;;  %v637_v17 = vmul.f32 %v16652_v53, %v10995_v30  ;;  %v16653_v47 = vld [vmem:[#allocation16_spill] sm:$0xff]  ;;  %v16655_v22 = vld [vmem:[#allocation61_spill] sm:$0xff] }
 0x257   : > { %v736_v24 = vrot.slane %v678_v57, 1  ;;  %v1175_v27 = vmul.f32 %v16654_v40, %v16653_v47  ;;  %v4873_v59 = vadd.f32 %v4831_v15, %v4749_v58  ;;  %v860_v38 = vrot.slane %v803_v34, 1  ;;  %v16657_v33 = vld [vmem:[#allocation20_spill] sm:$0xff]  ;;  %v16659_v57 = vld [vmem:[#allocation25_spill] sm:$0xff] }
 0x258   : > { %v11477_v14 = vsel %vm5057_vm5, %v5822_v0, %v16651_v4  ;;  %v581_v55 = vadd.f32 %v565_v63, %v545_v28  ;;  %v984_v13 = vrot.slane %v927_v9, 1  ;;  %v1108_v31 = vrot.slane %v1051_v61, 1  ;;  %v16658_v0 = vld [vmem:[#allocation21_spill] sm:$0xff]  ;;  %v16660_v63 = vld [vmem:[#allocation94_spill] sm:$0xff] }
 0x259   : > { %v1299_v54 = vmul.f32 %v16656_v16, %v16655_v22  ;;  %v1423_v23 = vmul.f32 %v16657_v33, %v11470_v19  ;;  %v1547_v4 = vmul.f32 %v16638_v18, %v16658_v0  ;;  %v4997_v32 = vadd.f32 %v4955_v41, %v4873_v59  ;;  %v16662_v59 = vld [vmem:[#allocation100_spill] sm:$0xff]  ;;  %v16664_v0 = vld [vmem:[#allocation95_spill] sm:$0xff] }
 0x25a   : > { %v617_v30 = vadd.f32 %v601_v43, %v581_v55  ;;  %v1672_v53 = vmul.f32 %v16640_v60, %v16659_v57  ;;  %v1796_v15 = vmul.f32 %v16642_v20, %v16539_v36  ;;  %v16661_v34 = vrot.slane %v16660_v63, 1  ;;  %v16666_v33 = vld [vmem:[#allocation96_spill] sm:$0xff] }
 0x25b   : > { %v1232_v61 = vrot.slane %v1175_v27, 1  ;;  %v1920_v58 = vmul.f32 %v16647_v1, %v16542_v29  ;;  %v2044_v28 = vmul.f32 %v16654_v40, %v16543_v56  ;;  %v5122_v41 = vadd.f32 %v11401_v3, %v4997_v32 }
 0x25c   : > { %v737_v9 = vsel %vm712_vm0, %v16661_v34, %v736_v24  ;;  %v653_v43 = vadd.f32 %v637_v17, %v617_v30  ;;  %v16663_v55 = vrot.slane %v16662_v59, 1  ;;  %v16665_v36 = vrot.slane %v16664_v0, 1 }
 0x25d   : > { %v16667_v24 = vrot.slane %v16666_v33, 1  ;;  %v1356_v34 = vrot.slane %v1299_v54, 1  ;;  %v1480_v29 = vrot.slane %v1423_v23, 1  ;;  %v1605_v16 = vrot.slane %v1547_v4, 2  ;;  %v16670_v54 = vld [vmem:[#allocation35_spill] sm:$0xff] }
 0x25e   : > { %v861_v57 = vsel %vm712_vm0, %v16663_v55, %v860_v38  ;;  %v985_v63 = vsel %vm712_vm0, %v16665_v36, %v984_v13  ;;  %v5246_v56 = vadd.f32 %v11420_v21, %v5122_v41  ;;  %v778_v47 = vadd.f32 %v737_v9, %v653_v43  ;;  %v16669_v36 = vld [vmem:[#allocation34_spill] sm:$0xff] }
 0x25f   : > { %v1109_v27 = vsel %vm712_vm0, %v16667_v24, %v1108_v31  ;;  %v1729_v3 = vrot.slane %v1672_v53, 2  ;;  %v1853_v30 = vrot.slane %v1796_v15, 2  ;;  %v16668_v32 = vrot.slane %v10984_v35, 1  ;;  %v16671_v31 = vld [vmem:[#allocation72_spill] sm:$0xff]  ;;  %v16673_v35 = vld [vmem:[#allocation23_spill] sm:$0xff] }
 0x260   : > { %v1977_v17 = vrot.slane %v1920_v58, 2  ;;  %v2101_v0 = vrot.slane %v2044_v28, 2  ;;  %v2168_v13 = vmul.f32 %v16669_v36, %v16655_v22  ;;  %v5370_v33 = vadd.f32 %v5328_v10, %v5246_v56 }
 0x261   : > { %v1233_v38 = vsel %vm712_vm0, %v16668_v32, %v1232_v61  ;;  %v902_v59 = vadd.f32 %v861_v57, %v778_v47  ;;  %v2292_v23 = vmul.f32 %v16670_v54, %v11470_v19  ;;  %v2416_v21 = vmul.f32 %v16638_v18, %v16027_v6  ;;  %v16675_v61 = vld [vmem:[#allocation24_spill] sm:$0xff]  ;;  %v16677_v57 = vld [vmem:[#allocation65_spill] sm:$0xff] }
 0x262   : > { %v16672_v53 = vrot.slane %v16671_v31, 1  ;;  %v16674_v15 = vrot.slane %v16673_v35, 1  ;;  %v16676_v58 = vrot.slane %v16675_v61, 2  ;;  %v2541_v56 = vmul.f32 %v16640_v60, %v16035_v52 }
 0x263   : > { %v5494_v10 = vadd.f32 %v5452_v26, %v5370_v33  ;;  %v1026_v47 = vadd.f32 %v985_v63, %v902_v59  ;;  %v16678_v28 = vrot.slane %v16677_v57, 2  ;;  %v16679_v43 = vrot.slane %v11041_v62, 2 }
 0x264   : > { %v1357_v4 = vsel %vm712_vm0, %v16672_v53, %v1356_v34  ;;  %v1481_v9 = vsel %vm712_vm0, %v16674_v15, %v1480_v29  ;;  %v1606_v22 = vsel %vm1581_vm1, %v16676_v58, %v1605_v16  ;;  %v16680_v29 = vrot.slane %v11053_v25, 2  ;;  %v16684_v53 = vld [vmem:[#allocation55_spill] sm:$0xff]  ;;  %v16685_v15 = vld [vmem:[#allocation56_spill] sm:$0xff] }
 0x265   : > { %v1730_v41 = vsel %vm1581_vm1, %v16678_v28, %v1729_v3  ;;  %v1854_v55 = vsel %vm1581_vm1, %v16679_v43, %v1853_v30  ;;  %v16681_v16 = vrot.slane %v11060_v49, 2  ;;  %v2225_v26 = vrot.slane %v2168_v13, 2  ;;  %v16686_v58 = vld [vmem:[#allocation75_spill] sm:$0xff]  ;;  %v16690_v28 = vld [vmem:[#allocation33_spill] sm:$0xff] }
 0x266   : > { %v11540_v24 = vsel %vm1581_vm1, %v16680_v29, %v1977_v17  ;;  %v2665_v63 = vmul.f32 %v16642_v20, %v16419_v12  ;;  %v5618_v32 = vadd.f32 %v5576_v45, %v5494_v10  ;;  %v1150_v3 = vadd.f32 %v1109_v27, %v1026_v47  ;;  %v11554_v17 = vld [vmem:[%s7389_s18 + $0xe8] sm:$0x3f]  ;;  %v16688_v47 = vld [vmem:[#allocation80_spill] sm:$0xff] }
 0x267   : > { %v11545_v34 = vsel %vm1581_vm1, %v16681_v16, %v2101_v0  ;;  %v2349_v33 = vrot.slane %v2292_v23, 2  ;;  %v2474_v62 = vrot.slane %v2416_v21, 3  ;;  %v2598_v59 = vrot.slane %v2541_v56, 3  ;;  %16682 = vst [vmem:[#allocation134_spill] sm:$0xff] %v11554_v17 }
 0x268   : > { %v2789_v25 = vmul.f32 %v16647_v1, %v16422_v44  ;;  %v2913_v30 = vmul.f32 %v16654_v40, %v16423_v2  ;;  %v3037_v49 = vmul.f32 %v11554_v17, %v16425_v7  ;;  %v5742_v0 = vadd.f32 %v11467_v42, %v5618_v32 }
 0x269   : > { %v1274_v13 = vadd.f32 %v1233_v38, %v1150_v3  ;;  %v3161_v45 = vmul.f32 %v16426_v51, %v11470_v19  ;;  %v3285_v27 = vmul.f32 %v16638_v18, %v16303_v37  ;;  %v16683_v23 = vrot.slane %v11077_v8, 2  ;;  %v16787_v37 = vld [vmem:[#allocation133_spill] sm:$0xff] }
 0x26a   : > { %v2722_v31 = vrot.slane %v2665_v63, 3  ;;  %v3410_v35 = vmul.f32 %v16640_v60, %v16684_v53  ;;  %v3534_v61 = vmul.f32 %v16642_v20, %v16685_v15  ;;  %v5866_v42 = vadd.f32 %v11477_v14, %v5742_v0  ;;  %v11591_v14 = vld [vmem:[%s14562_s2] ss:$0 sm:$0xff]  ;;  %v16781_v15 = vld [vmem:[#allocation16_spill] sm:$0xff] }
 0x26b   : > { %v11566_v21 = vsel %vm1581_vm1, %v16683_v23, %v2225_v26  ;;  %v1398_v38 = vadd.f32 %v1357_v4, %v1274_v13  ;;  %v16687_v56 = vrot.slane %v16686_v58, 2  ;;  %v16689_v8 = vrot.slane %v16688_v47, 3  ;;  %16692 = vst [vmem:[#allocation126_spill] sm:$0xff] %v11591_v14 }
 0x26c   : > { %v16691_v43 = vrot.slane %v16690_v28, 3  ;;  %v2846_v16 = vrot.slane %v2789_v25, 3  ;;  %v2970_v26 = vrot.slane %v2913_v30, 3  ;;  %v3094_v63 = vrot.slane %v3037_v49, 3  ;;  %v16696_v30 = vld [vmem:[#allocation59_spill] sm:$0xff] }
 0x26d   : > { %v11576_v10 = vsel %vm1581_vm1, %v16687_v56, %v2349_v33  ;;  %v11581_v57 = vsel %vm2450_vm2, %v16689_v8, %v2474_v62  ;;  %v11594_v4 = vadd.f32 %v11591_v14, %v5866_v42  ;;  %v1522_v32 = vadd.f32 %v1481_v9, %v1398_v38  ;;  %v16694_v62 = vld [vmem:[#allocation30_spill] sm:$0xff]  ;;  %v16697_v56 = vld [vmem:[#allocation60_spill] sm:$0xff]  ;;  %v16703_v8 = vld [vmem:[#allocation111_spill] sm:$0xff] }
 0x26e   : > { %v11586_v29 = vsel %vm2450_vm2, %v16691_v43, %v2598_v59  ;;  %v3218_v3 = vrot.slane %v3161_v45, 3  ;;  %v3343_v33 = vrot.slane %v3285_v27, 4  ;;  %v16695_v0 = vrot.slane %v16694_v62, 3  ;;  %v16698_v9 = vld [vmem:[#allocation62_spill] sm:$0xff]  ;;  %v16699_v27 = vld [vmem:[#allocation97_spill] sm:$0xff] }
 0x26f   : > { %16693 = vst [vmem:[#allocation137_spill] sm:$0xff] %v11594_v4  ;;  %v3467_v59 = vrot.slane %v3410_v35, 4  ;;  %v3591_v25 = vrot.slane %v3534_v61, 4  ;;  %v3658_v49 = vmul.f32 %v16647_v1, %v16696_v30  ;;  %v5922_v23 = vsel %vm5897_vm6, %v11594_v4, 0.0  ;;  %v16701_v35 = vld [vmem:[#allocation98_spill] sm:$0xff]  ;;  %v16705_v62 = vld [vmem:[#allocation101_spill] sm:$0xff] }
 0x270   : > { %v11599_v13 = vsel %vm2450_vm2, %v16695_v0, %v2722_v31  ;;  %v1647_v58 = vadd.f32 %v1606_v22, %v1522_v32  ;;  %v3782_v42 = vmul.f32 %v16654_v40, %v16697_v56  ;;  %v3906_v45 = vmul.f32 %v11554_v17, %v16698_v9  ;;  %5923 = vadd.xlane.f32.xlu0 %v5922_v23  ;;  %v16715_v14 = vld [vmem:[#allocation73_spill] sm:$0xff]  ;;  %v16777_v30 = vld [vmem:[#allocation12_spill] sm:$0xff] }
 0x271   : > { %v16700_v38 = vrot.slane %v16699_v27, 3  ;;  %v16702_v61 = vrot.slane %v16701_v35, 3  ;;  %v16704_v28 = vrot.slane %v16703_v8, 3  ;;  %v4030_v43 = vmul.f32 %v16591_v11, %v11470_v19  ;;  %v16709_v35 = vld [vmem:[#allocation112_spill] sm:$0xff]  ;;  %v16711_v8 = vld [vmem:[#allocation102_spill] sm:$0xff]  ;;  %v16773_v9 = vld [vmem:[#allocation53_spill] sm:$0xff] }
 0x272   : > { %v1771_v32 = vadd.f32 %v1730_v41, %v1647_v58  ;;  %v16706_v0 = vrot.slane %v16705_v62, 3  ;;  %v16712_v41 = vrot.slane %v16711_v8, 4  ;;  %v3963_v4 = vrot.slane %v3906_v45, 4 }
 0x273   : > { %v11612_v31 = vsel %vm2450_vm2, %v16700_v38, %v2846_v16  ;;  %v11617_v47 = vsel %vm2450_vm2, %v16702_v61, %v2970_v26  ;;  %v11622_v22 = vsel %vm2450_vm2, %v16704_v28, %v3094_v63  ;;  %v16707_v16 = vrot.slane %v11212_v48, 4  ;;  %v16708_v26 = vld [vmem:[#allocation66_spill] sm:$0xff] }
 0x274   : > { %v11629_v23 = vsel %vm2450_vm2, %v16706_v0, %v3218_v3  ;;  %v4154_v38 = vmul.f32 %v16638_v18, %v16708_v26  ;;  %v16710_v63 = vrot.slane %v16709_v35, 4  ;;  %v11646_v58 = vsel %vm3319_vm3, %v16712_v41, %v3591_v25  ;;  %v16713_v3 = vld [vmem:[#allocation69_spill] sm:$0xff]  ;;  %v16714_v48 = vld [vmem:[#allocation70_spill] sm:$0xff] }
 0x275   : > { %v11634_v27 = vsel %vm3319_vm3, %v16707_v16, %v3343_v33  ;;  %v4279_v28 = vmul.f32 %v16640_v60, %v16713_v3  ;;  %v4403_v33 = vmul.f32 %v16642_v20, %v16714_v48  ;;  %v1895_v62 = vadd.f32 %v1854_v55, %v1771_v32  ;;  %v16717_v25 = vld [vmem:[#allocation77_spill] sm:$0xff]  ;;  %v16718_v48 = vld [vmem:[#allocation78_spill] sm:$0xff]  ;;  %v16719_v55 = vld [vmem:[#allocation79_spill] sm:$0xff] }
 0x276   : > { %v11641_v61 = vsel %vm3319_vm3, %v16710_v63, %v3467_v59  ;;  %v3715_v0 = vrot.slane %v3658_v49, 4  ;;  %v3839_v16 = vrot.slane %v3782_v42, 4  ;;  %v4087_v35 = vrot.slane %v4030_v43, 4  ;;  %v16716_v63 = vld [vmem:[#allocation74_spill] sm:$0xff]  ;;  %v11664_v32 = vld [vmem:[%s7389_s18 + $0x88] sm:$0x3f] }
 0x277   : > { %v4527_v59 = vmul.f32 %v16647_v1, %v16715_v14  ;;  %v4651_v8 = vmul.f32 %v16654_v40, %v16716_v63  ;;  %v4775_v41 = vmul.f32 %v11554_v17, %v16717_v25  ;;  %v2019_v60 = vadd.f32 %v11540_v24, %v1895_v62  ;;  %16720 = vst [vmem:[#allocation142_spill] sm:$0xff] %v11664_v32  ;;  %v16721_v14 = vld [vmem:[#allocation82_spill] sm:$0xff] }
 0x278   : > { %v4212_v3 = vrot.slane %v4154_v38, 5  ;;  %v4899_v26 = vmul.f32 %v16718_v48, %v11470_v19  ;;  %v5023_v49 = vmul.f32 %v16638_v18, %v16719_v55  ;;  %v4336_v42 = vrot.slane %v4279_v28, 5  ;;  %v16722_v25 = vld [vmem:[#allocation114_spill] sm:$0xff]  ;;  %v16724_v38 = vld [vmem:[#allocation104_spill] sm:$0xff]  ;;  %v16726_v28 = vld [vmem:[#allocation105_spill] sm:$0xff] }
 0x279   : > { %v4460_v45 = vrot.slane %v4403_v33, 5  ;;  %v4584_v43 = vrot.slane %v4527_v59, 5  ;;  %v5148_v40 = vmul.f32 %v11664_v32, %v16721_v14  ;;  %v2143_v63 = vadd.f32 %v11545_v34, %v2019_v60  ;;  %v11780_v14 = vld [vmem:[%s7389_s18 + $0x108] sm:$0xff] }
 0x27a   : > { %v16723_v11 = vrot.slane %v16722_v25, 4  ;;  %v16725_v62 = vrot.slane %v16724_v38, 4  ;;  %v5272_v18 = vmul.f32 %v16642_v20, %v16617_v5  ;;  %v16727_v33 = vrot.slane %v16726_v28, 4  ;;  %16764 = vst [vmem:[#allocation144_spill] sm:$0xff] %v11780_v14 }
 0x27b   : > { %v4708_v34 = vrot.slane %v4651_v8, 5  ;;  %v4832_v60 = vrot.slane %v4775_v41, 5  ;;  %v4956_v25 = vrot.slane %v4899_v26, 5  ;;  %v5081_v38 = vrot.slane %v5023_v49, 6  ;;  %v16735_v49 = vld [vmem:[#allocation85_spill] sm:$0xff] }
 0x27c   : > { %v11672_v24 = vsel %vm3319_vm3, %v16723_v11, %v3715_v0  ;;  %v11677_v48 = vsel %vm3319_vm3, %v16725_v62, %v3839_v16  ;;  %v11684_v59 = vsel %vm3319_vm3, %v16727_v33, %v3963_v4  ;;  %v2267_v11 = vadd.f32 %v11566_v21, %v2143_v63  ;;  %v16728_v0 = vld [vmem:[#allocation108_spill] sm:$0xff]  ;;  %v16733_v63 = vld [vmem:[#allocation106_spill] sm:$0xff] }
 0x27d   : > { %v16729_v32 = vrot.slane %v16728_v0, 4  ;;  %v5205_v62 = vrot.slane %v5148_v40, 6  ;;  %v16730_v20 = vrot.slane %v11292_v39, 5  ;;  %v16731_v4 = vrot.slane %v11299_v50, 5  ;;  %v16739_v0 = vld [vmem:[#allocation118_spill] sm:$0xff] }
 0x27e   : > { %v16732_v21 = vrot.slane %v11309_v46, 5  ;;  %v2391_v39 = vadd.f32 %v11576_v10, %v2267_v11  ;;  %v11715_v50 = vmul.f32 %v16647_v1, %v16735_v49  ;;  %v16742_v10 = vld [vmem:[#allocation119_spill] sm:$0xff]  ;;  %v11738_v11 = vld [vmem:[%s7389_s18 + $0x90] sm:$0xff] }
 0x27f   : > { %v11690_v16 = vsel %vm3319_vm3, %v16729_v32, %v4087_v35  ;;  %v11695_v28 = vsel %vm4188_vm4, %v16730_v20, %v4212_v3  ;;  %v11700_v8 = vsel %vm4188_vm4, %v16731_v4, %v4336_v42  ;;  %v16734_v35 = vrot.slane %v16733_v63, 5  ;;  %v11718_v42 = vld [vmem:[%s7389_s18 + $0x78] sm:$0xff]  ;;  %v16736_v32 = vld [vmem:[#allocation2_spill] sm:$0xff]  ;;  %16745 = vst [vmem:[#allocation138_spill] sm:$0xff] %v11738_v11  ;;  %v16746_v4 = vld [vmem:[#allocation3_spill] sm:$0xff] }
 0x280   : > { %v11705_v26 = vsel %vm4188_vm4, %v16732_v21, %v4460_v45  ;;  %v5329_v3 = vrot.slane %v5272_v18, 6  ;;  %v422_v46 = vmul.f32 %v11718_v42, %v16736_v32  ;;  %v16737_v45 = vld [vmem:[#allocation117_spill] sm:$0xff]  ;;  %v16743_v18 = vrot.slane %v16742_v10, 5  ;;  %v16756_v32 = vld [vmem:[#allocation87_spill] sm:$0xff] }
 0x281   : > { %v11710_v41 = vsel %vm4188_vm4, %v16734_v35, %v4584_v43  ;;  %v16738_v40 = vrot.slane %v16737_v45, 5  ;;  %v16740_v43 = vrot.slane %v16739_v0, 5  ;;  %v458_v21 = vmul.f32 %v11738_v11, %v16746_v4 }
 0x282   : > { %v11735_v1 = vsel %vm4188_vm4, %v16743_v18, %v4956_v25  ;;  %v2516_v63 = vadd.f32 %v11581_v57, %v2391_v39  ;;  %v16753_v25 = vld [vmem:[#allocation4_spill] sm:$0xff]  ;;  %v16757_v57 = vld [vmem:[#allocation90_spill] sm:$0xff] }
 0x283   : > { %v11725_v33 = vsel %vm4188_vm4, %v16738_v40, %v4708_v34  ;;  %v11730_v20 = vsel %vm4188_vm4, %v16740_v43, %v4832_v60  ;;  %16744 = vst [vmem:[#allocation136_spill] sm:$0xff] %v11735_v1  ;;  %v16747_v34 = vld [vmem:[#allocation121_spill] sm:$0xff]  ;;  %v16750_v60 = vld [vmem:[#allocation122_spill] sm:$0xff]  ;;  %v11756_v18 = vld [vmem:[%s7389_s18 + $0xd0] sm:$0x3f]  ;;  %v474_v39 = vadd.f32 %v458_v21, %v422_v46 }
 0x284   : > { %16741 = vst [vmem:[#allocation145_spill] sm:$0xff] %v11730_v20  ;;  %v16748_v35 = vrot.slane %v16747_v34, 6  ;;  %v16751_v40 = vrot.slane %v16750_v60, 6  ;;  %v16754_v43 = vld [vmem:[#allocation113_spill] sm:$0xff]  ;;  %16755 = vst [vmem:[#allocation143_spill] sm:$0xff] %v11756_v18  ;;  %v11760_v4 = vmul.f32 %v11756_v18, %v16756_v32  ;;  %v16763_v18 = vld [vmem:[#allocation92_spill] sm:$0xff] }
 0x285   : > { %v494_v10 = vmul.f32 %v16754_v43, %v16753_v25  ;;  %v16758_v34 = vld [vmem:[#allocation5_spill] sm:$0xff]  ;;  %v11777_v32 = vmul.f32 %v16763_v18, %v11470_v19  ;;  %v16765_v46 = vld [vmem:[#allocation7_spill] sm:$0xff]  ;;  %v16766_v21 = vld [vmem:[#allocation68_spill] sm:$0xff] }
 0x286   : > { %v11746_v45 = vsel %vm5057_vm5, %v16748_v35, %v5081_v38  ;;  %v11751_v0 = vsel %vm5057_vm5, %v16751_v40, %v5205_v62  ;;  %v11764_v38 = vmul.f32 %v11554_v17, %v16757_v57  ;;  %v16759_v35 = vld [vmem:[#allocation103_spill] sm:$0xff]  ;;  %v2640_v62 = vadd.f32 %v11586_v29, %v2516_v63  ;;  %v11787_v63 = vld [vmem:[%s7389_s18 + $0x80] sm:$0xff]  ;;  %v11797_v19 = vld [vmem:[%s7389_s18 + $0x98] sm:$0xff] }
 0x287   : > { %16749 = vst [vmem:[#allocation139_spill] sm:$0xff] %v11746_v45  ;;  %16752 = vst [vmem:[#allocation140_spill] sm:$0xff] %v11751_v0  ;;  %v530_v60 = vmul.f32 %v16759_v35, %v16758_v34  ;;  %v16760_v40 = vld [vmem:[#allocation123_spill] sm:$0xff]  ;;  %v510_v17 = vadd.f32 %v494_v10, %v474_v39  ;;  %v566_v57 = vmul.f32 %v16766_v21, %v16765_v46  ;;  %v16767_v34 = vld [vmem:[#allocation6_spill] sm:$0xff] }
 0x288   : > { %v16761_v49 = vrot.slane %v16760_v40, 6  ;;  %v679_v29 = vmul.f32 %v11718_v42, %v16767_v34  ;;  %v16769_v40 = vld [vmem:[#allocation8_spill] sm:$0xff]  ;;  %16770 = vst [vmem:[#allocation14_spill] sm:$0xff] %v11797_v19  ;;  %v16772_v39 = vld [vmem:[#allocation10_spill] sm:$0xff]  ;;  %v638_v0 = vmul.f32 %v16777_v30, %v11780_v14 }
 0x289   : > { %v804_v5 = vmul.f32 %v11738_v11, %v16769_v40  ;;  %v11801_v10 = vmul.f32 %v11797_v19, %v16769_v40  ;;  %v928_v46 = vmul.f32 %v16754_v43, %v16772_v39  ;;  %v546_v55 = vadd.f32 %v530_v60, %v510_v17  ;;  %v16778_v60 = vld [vmem:[#allocation13_spill] sm:$0xff]  ;;  %v16784_v1 = vld [vmem:[#allocation18_spill] sm:$0xff] }
 0x28a   : > { %v11772_v25 = vsel %vm5057_vm5, %v16761_v49, %v5329_v3  ;;  %v11791_v3 = vmul.f32 %v11787_v63, %v16767_v34  ;;  %v2764_v49 = vadd.f32 %v11599_v13, %v2640_v62  ;;  %v16774_v34 = vld [vmem:[#allocation11_spill] sm:$0xff]  ;;  %v16775_v13 = vld [vmem:[#allocation109_spill] sm:$0xff]  ;;  %v738_v40 = vrot.slane %v679_v29, 1 }
 0x28b   : > { %16762 = vst [vmem:[#allocation146_spill] sm:$0xff] %v11772_v25  ;;  %16771 = vst [vmem:[#allocation15_spill] sm:$0xff] %v11801_v10  ;;  %v602_v25 = vmul.f32 %v16774_v34, %v16773_v9  ;;  %v11810_v62 = vmul.f32 %v16775_v13, %v16772_v39  ;;  %v582_v45 = vadd.f32 %v566_v57, %v546_v55  ;;  %v862_v53 = vrot.slane %v804_v5, 1  ;;  %v16782_v55 = vld [vmem:[#allocation99_spill] sm:$0xff] }
 0x28c   : > { %16768 = vst [vmem:[#allocation147_spill] sm:$0xff] %v11791_v3  ;;  %v2888_v56 = vadd.f32 %v11612_v31, %v2764_v49  ;;  %v1052_v18 = vmul.f32 %v16759_v35, %v16778_v60  ;;  %v986_v39 = vrot.slane %v928_v46, 1  ;;  %v16779_v31 = vld [vmem:[#allocation32_spill] sm:$0xff]  ;;  %v1176_v5 = vmul.f32 %v16766_v21, %v16781_v15 }
 0x28d   : > { %16776 = vst [vmem:[#allocation17_spill] sm:$0xff] %v11810_v62  ;;  %v11823_v49 = vmul.f32 %v16779_v31, %v16778_v60  ;;  %v618_v29 = vadd.f32 %v602_v25, %v582_v45  ;;  %v11829_v57 = vmul.f32 %v16782_v55, %v16781_v15  ;;  %v1300_v60 = vmul.f32 %v16784_v1, %v16773_v9  ;;  %v11840_v25 = vld [vmem:[%s7389_s18 + $0x110] sm:$0xff] }
 0x28e   : > { %v3012_v34 = vadd.f32 %v11617_v47, %v2888_v56  ;;  %v1110_v30 = vrot.slane %v1052_v18, 1  ;;  %v16783_v56 = vrot.slane %v11791_v3, 1  ;;  %16785 = vst [vmem:[#allocation41_spill] sm:$0xff] %v11840_v25  ;;  %v16786_v20 = vrot.slane %v11801_v10, 1  ;;  %v16789_v9 = vld [vmem:[#allocation20_spill] sm:$0xff] }
 0x28f   : > { %16780 = vst [vmem:[#allocation141_spill] sm:$0xff] %v11823_v49  ;;  %v15200_v46 = vrot.slane %v11823_v49, 1  ;;  %v654_v18 = vadd.f32 %v638_v0, %v618_v29  ;;  %v1424_v45 = vmul.f32 %v16789_v9, %v11780_v14  ;;  %v11857_v0 = vmul.f32 %v16789_v9, %v11840_v25 }
 0x290   : > { %v3136_v17 = vadd.f32 %v11622_v22, %v3012_v34  ;;  %v740_v47 = vsel %vm712_vm0, %v738_v40, %v16783_v56  ;;  %v864_v15 = vsel %vm712_vm0, %v862_v53, %v16786_v20  ;;  %v11847_v22 = vmul.f32 %v16784_v1, %v16787_v37  ;;  %v16796_v1 = vld [vmem:[#allocation26_spill] sm:$0xff] }
 0x291   : > { %v16788_v40 = vrot.slane %v11810_v62, 1  ;;  %16790 = vst [vmem:[#allocation28_spill] sm:$0xff] %v11857_v0  ;;  %v779_v29 = vadd.f32 %v740_v47, %v654_v18  ;;  %v1112_v53 = vsel %vm712_vm0, %v1110_v30, %v15200_v46  ;;  %v1234_v20 = vrot.slane %v1176_v5, 1  ;;  %v16791_v62 = vld [vmem:[#allocation21_spill] sm:$0xff] }
 0x292   : > { %v3260_v34 = vadd.f32 %v11629_v23, %v3136_v17  ;;  %v1358_v17 = vrot.slane %v1300_v60, 1  ;;  %v16793_v18 = vld [vmem:[#allocation25_spill] sm:$0xff]  ;;  %v1482_v60 = vrot.slane %v1424_v45, 1  ;;  %v15207_v5 = vrot.slane %v11857_v0, 1  ;;  %v16805_v0 = vld [vmem:[#allocation124_spill] sm:$0xff] }
 0x293   : > { %v988_v56 = vsel %vm712_vm0, %v986_v39, %v16788_v40  ;;  %v1548_v39 = vmul.f32 %v11718_v42, %v16791_v62  ;;  %v11868_v40 = vmul.f32 %v11787_v63, %v16791_v62  ;;  %v903_v9 = vadd.f32 %v864_v15, %v779_v29 }
 0x294   : > { %v3385_v23 = vadd.f32 %v11634_v27, %v3260_v34  ;;  %v1673_v49 = vmul.f32 %v11738_v11, %v16793_v18  ;;  %v11875_v30 = vmul.f32 %v11797_v19, %v16793_v18  ;;  %v16795_v3 = vrot.slane %v11829_v57, 1 }
 0x295   : > { %16792 = vst [vmem:[#allocation36_spill] sm:$0xff] %v11868_v40  ;;  %v1607_v34 = vrot.slane %v1548_v39, 2  ;;  %v1027_v46 = vadd.f32 %v988_v56, %v903_v9  ;;  %v15205_v10 = vrot.slane %v11868_v40, 2  ;;  %v11890_v56 = vmul.f32 %v16775_v13, %v16796_v1 }
 0x296   : > { %16794 = vst [vmem:[#allocation40_spill] sm:$0xff] %v11875_v30  ;;  %v3509_v27 = vadd.f32 %v11641_v61, %v3385_v23  ;;  %v1731_v62 = vrot.slane %v1673_v49, 2  ;;  %v15206_v15 = vrot.slane %v11875_v30, 2  ;;  %v1236_v18 = vsel %vm712_vm0, %v1234_v20, %v16795_v3  ;;  %v16797_v49 = vld [vmem:[#allocation27_spill] sm:$0xff] }
 0x297   : > { %v1797_v61 = vmul.f32 %v16754_v43, %v16796_v1  ;;  %v1151_v45 = vadd.f32 %v1112_v53, %v1027_v46  ;;  %v1921_v9 = vmul.f32 %v16759_v35, %v16797_v49  ;;  %v16798_v3 = vrot.slane %v11847_v22, 1  ;;  %v16799_v53 = vld [vmem:[#allocation31_spill] sm:$0xff] }
 0x298   : > { %v3633_v29 = vadd.f32 %v11646_v58, %v3509_v27  ;;  %v11896_v58 = vmul.f32 %v16779_v31, %v16797_v49  ;;  %v1484_v46 = vsel %vm712_vm0, %v1482_v60, %v15207_v5  ;;  %v2045_v39 = vmul.f32 %v16766_v21, %v16799_v53  ;;  %v11919_v60 = vld [vmem:[%s7389_s18 + $0xf0] sm:$0xff] }
 0x299   : > { %v1360_v20 = vsel %vm712_vm0, %v1358_v17, %v16798_v3  ;;  %v1275_v27 = vadd.f32 %v1236_v18, %v1151_v45  ;;  %v1609_v47 = vsel %vm1581_vm1, %v1607_v34, %v15205_v10  ;;  %v1855_v3 = vrot.slane %v1797_v61, 2  ;;  %16800 = vst [vmem:[#allocation47_spill] sm:$0xff] %v11919_v60 }
 0x29a   : > { %v3757_v23 = vadd.f32 %v11672_v24, %v3633_v29  ;;  %v1733_v24 = vsel %vm1581_vm1, %v1731_v62, %v15206_v15  ;;  %v11915_v29 = vmul.f32 %v16782_v55, %v16799_v53  ;;  %v2169_v18 = vmul.f32 %v11919_v60, %v16669_v36 }
 0x29b   : > { %v11925_v45 = vmul.f32 %v16669_v36, %v16787_v37  ;;  %v1399_v34 = vadd.f32 %v1360_v20, %v1275_v27  ;;  %v1979_v62 = vrot.slane %v1921_v9, 2  ;;  %v2103_v30 = vrot.slane %v2045_v39, 2 }
 0x29c   : > { %v3881_v17 = vadd.f32 %v11677_v48, %v3757_v23  ;;  %v2293_v48 = vmul.f32 %v16670_v54, %v11780_v14  ;;  %v11934_v61 = vmul.f32 %v16670_v54, %v11840_v25  ;;  %v2417_v20 = vmul.f32 %v11718_v42, %v16027_v6 }
 0x29d   : > { %16801 = vst [vmem:[#allocation125_spill] sm:$0xff] %v11925_v45  ;;  %v1523_v23 = vadd.f32 %v1484_v46, %v1399_v34  ;;  %v11941_v9 = vmul.f32 %v11787_v63, %v16027_v6  ;;  %v2227_v39 = vrot.slane %v2169_v18, 2  ;;  %v15215_v27 = vrot.slane %v11925_v45, 2 }
 0x29e   : > { %v4005_v5 = vadd.f32 %v11684_v59, %v3881_v17  ;;  %16802 = vst [vmem:[#allocation46_spill] sm:$0xff] %v11934_v61  ;;  %v2351_v17 = vrot.slane %v2293_v48, 2  ;;  %v15214_v10 = vrot.slane %v11934_v61, 2  ;;  %v2476_v40 = vrot.slane %v2417_v20, 3  ;;  %v16812_v20 = vld [vmem:[#allocation130_spill] sm:$0xff] }
 0x29f   : > { %16803 = vst [vmem:[#allocation129_spill] sm:$0xff] %v11941_v9  ;;  %v1648_v15 = vadd.f32 %v1609_v47, %v1523_v23  ;;  %v15213_v46 = vrot.slane %v11941_v9, 3  ;;  %v16804_v37 = vrot.slane %v11715_v50, 6  ;;  %v16806_v54 = vrot.slane %v16805_v0, 6 }
 0x2a0   : > { %v4129_v59 = vadd.f32 %v11690_v16, %v4005_v5  ;;  %v16807_v16 = vrot.slane %v11760_v4, 6  ;;  %v16808_v5 = vld [vmem:[#allocation127_spill] sm:$0xff]  ;;  %v16810_v48 = vrot.slane %v11890_v56, 2  ;;  %v16813_v50 = vrot.slane %v16812_v20, 6 }
 0x2a1   : > { %v11953_v6 = vsel %vm5057_vm5, %v16806_v54, %v16804_v37  ;;  %v16809_v18 = vrot.slane %v16808_v5, 6  ;;  %v1772_v54 = vadd.f32 %v1733_v24, %v1648_v15  ;;  %v16814_v37 = vrot.slane %v11896_v58, 2 }
 0x2a2   : > { %v4254_v34 = vadd.f32 %v11695_v28, %v4129_v59  ;;  %v1857_v23 = vsel %vm1581_vm1, %v1855_v3, %v16810_v48  ;;  %v16811_v28 = vrot.slane %v11764_v38, 6  ;;  %v2542_v59 = vmul.f32 %v11738_v11, %v16035_v52 }
 0x2a3   : > { %v11960_v47 = vsel %vm5057_vm5, %v16809_v18, %v16807_v16  ;;  %v1981_v4 = vsel %vm1581_vm1, %v1979_v62, %v16814_v37  ;;  %v16815_v5 = vrot.slane %v11915_v29, 2  ;;  %v2229_v38 = vsel %vm1581_vm1, %v2227_v39, %v15215_v27 }
 0x2a4   : > { %v11970_v0 = vsel %vm5057_vm5, %v16813_v50, %v16811_v28  ;;  %v4378_v16 = vadd.f32 %v11700_v8, %v4254_v34  ;;  %v11986_v15 = vmul.f32 %v11797_v19, %v16035_v52  ;;  %v1896_v24 = vadd.f32 %v1857_v23, %v1772_v54  ;;  %v12018_v54 = vld [vmem:[%s7389_s18 + $0xf8] sm:$0xff] }
 0x2a5   : > { %v2105_v3 = vsel %vm1581_vm1, %v2103_v30, %v16815_v5  ;;  %v2353_v62 = vsel %vm1581_vm1, %v2351_v17, %v15214_v10  ;;  %v2478_v8 = vsel %vm2450_vm2, %v2476_v40, %v15213_v46  ;;  %v2666_v30 = vmul.f32 %v16754_v43, %v16419_v12  ;;  %16819 = vst [vmem:[#allocation51_spill] sm:$0xff] %v12018_v54  ;;  %v16828_v5 = vld [vmem:[#allocation136_spill] sm:$0xff] }
 0x2a6   : > { %v4502_v34 = vadd.f32 %v11705_v26, %v4378_v16  ;;  %v11999_v39 = vmul.f32 %v16775_v13, %v16419_v12  ;;  %v2790_v18 = vmul.f32 %v16759_v35, %v16422_v44  ;;  %v12005_v48 = vmul.f32 %v16779_v31, %v16422_v44 }
 0x2a7   : > { %v2020_v17 = vadd.f32 %v1981_v4, %v1896_v24  ;;  %v2600_v23 = vrot.slane %v2542_v59, 3  ;;  %v2914_v40 = vmul.f32 %v16766_v21, %v16423_v2  ;;  %v12011_v28 = vmul.f32 %v16782_v55, %v16423_v2 }
 0x2a8   : > { %16816 = vst [vmem:[#allocation115_spill] sm:$0xff] %v11999_v39  ;;  %16817 = vst [vmem:[#allocation37_spill] sm:$0xff] %v12005_v48  ;;  %v4626_v26 = vadd.f32 %v11710_v41, %v4502_v34  ;;  %v3038_v50 = vmul.f32 %v11919_v60, %v16425_v7  ;;  %v12022_v37 = vmul.f32 %v12018_v54, %v16425_v7  ;;  %v2724_v59 = vrot.slane %v2666_v30, 3 }
 0x2a9   : > { %16818 = vst [vmem:[#allocation42_spill] sm:$0xff] %v12011_v28  ;;  %v2144_v4 = vadd.f32 %v2105_v3, %v2020_v17  ;;  %v3162_v21 = vmul.f32 %v16426_v51, %v11780_v14  ;;  %v12028_v16 = vmul.f32 %v16426_v51, %v11840_v25  ;;  %v2848_v24 = vrot.slane %v2790_v18, 3  ;;  %v16822_v3 = vld [vmem:[#allocation52_spill] sm:$0xff]  ;;  %v16823_v17 = vld [vmem:[#allocation145_spill] sm:$0xff] }
 0x2aa   : > { %16820 = vst [vmem:[#allocation135_spill] sm:$0xff] %v12022_v37  ;;  %v4750_v41 = vadd.f32 %v11725_v33, %v4626_v26  ;;  %v2972_v10 = vrot.slane %v2914_v40, 3  ;;  %v3286_v30 = vmul.f32 %v11718_v42, %v16822_v3  ;;  %v3096_v9 = vrot.slane %v3038_v50, 3  ;;  %v16826_v26 = vld [vmem:[#allocation131_spill] sm:$0xff] }
 0x2ab   : > { %16821 = vst [vmem:[#allocation128_spill] sm:$0xff] %v12028_v16  ;;  %v2268_v46 = vadd.f32 %v2229_v38, %v2144_v4  ;;  %v12040_v33 = vmul.f32 %v11787_v63, %v16822_v3  ;;  %v16825_v18 = vrot.slane %v11777_v32, 6  ;;  %v16827_v34 = vrot.slane %v16826_v26, 6  ;;  %v16831_v3 = vld [vmem:[#allocation55_spill] sm:$0xff] }
 0x2ac   : > { %v4874_v20 = vadd.f32 %v16823_v17, %v4750_v41  ;;  %v3220_v4 = vrot.slane %v3162_v21, 3  ;;  %v15221_v27 = vrot.slane %v12028_v16, 3  ;;  %v16829_v50 = vrot.slane %v11986_v15, 3 }
 0x2ad   : > { %16824 = vst [vmem:[#allocation120_spill] sm:$0xff] %v12040_v33  ;;  %v5826_v38 = vsel %vm5057_vm5, %v16827_v34, %v16825_v18  ;;  %v2392_v40 = vadd.f32 %v2353_v62, %v2268_v46  ;;  %v16830_v17 = vrot.slane %v11999_v39, 3  ;;  %v3411_v32 = vmul.f32 %v11738_v11, %v16831_v3  ;;  %v16852_v39 = vld [vmem:[#allocation70_spill] sm:$0xff] }
 0x2ae   : > { %v4998_v45 = vadd.f32 %v16828_v5, %v4874_v20  ;;  %v2602_v41 = vsel %vm2450_vm2, %v2600_v23, %v16829_v50  ;;  %v3345_v51 = vrot.slane %v3286_v30, 4  ;;  %v15224_v46 = vrot.slane %v12040_v33, 4  ;;  %v16832_v20 = vld [vmem:[#allocation139_spill] sm:$0xff]  ;;  %v16836_v50 = vld [vmem:[#allocation56_spill] sm:$0xff] }
 0x2af   : > { %v2726_v61 = vsel %vm2450_vm2, %v2724_v59, %v16830_v17  ;;  %v2517_v26 = vadd.f32 %v2478_v8, %v2392_v40  ;;  %v12060_v62 = vmul.f32 %v11797_v19, %v16831_v3  ;;  %v16833_v23 = vrot.slane %v12005_v48, 3  ;;  %v16846_v33 = vld [vmem:[#allocation63_spill] sm:$0xff] }
 0x2b0   : > { %v5123_v21 = vadd.f32 %v16832_v20, %v4998_v45  ;;  %v16834_v59 = vrot.slane %v12011_v28, 3  ;;  %v16835_v8 = vrot.slane %v12022_v37, 3  ;;  %v3222_v40 = vsel %vm2450_vm2, %v3220_v4, %v15221_v27  ;;  %v16841_v27 = vld [vmem:[#allocation60_spill] sm:$0xff]  ;;  %v16844_v37 = vld [vmem:[#allocation62_spill] sm:$0xff] }
 0x2b1   : > { %v2850_v5 = vsel %vm2450_vm2, %v2848_v24, %v16833_v23  ;;  %v2641_v18 = vadd.f32 %v2602_v41, %v2517_v26  ;;  %v3535_v45 = vmul.f32 %v16754_v43, %v16836_v50  ;;  %v12079_v17 = vmul.f32 %v16775_v13, %v16836_v50  ;;  %v16837_v24 = vld [vmem:[#allocation140_spill] sm:$0xff] }
 0x2b2   : > { %v2974_v34 = vsel %vm2450_vm2, %v2972_v10, %v16834_v59  ;;  %v3098_v30 = vsel %vm2450_vm2, %v3096_v9, %v16835_v8  ;;  %v5247_v20 = vadd.f32 %v16837_v24, %v5123_v21  ;;  %v3469_v23 = vrot.slane %v3411_v32, 4  ;;  %v16838_v10 = vld [vmem:[#allocation59_spill] sm:$0xff]  ;;  %v12093_v8 = vld [vmem:[%s7389_s18 + $0xd8] sm:$0xff]  ;;  %v16842_v32 = vld [vmem:[#allocation146_spill] sm:$0xff] }
 0x2b3   : > { %v3659_v59 = vmul.f32 %v16759_v35, %v16838_v10  ;;  %v12086_v9 = vmul.f32 %v16779_v31, %v16838_v10  ;;  %v2765_v41 = vadd.f32 %v2726_v61, %v2641_v18  ;;  %v3347_v4 = vsel %vm3319_vm3, %v3345_v51, %v15224_v46  ;;  %16840 = vst [vmem:[#allocation57_spill] sm:$0xff] %v12093_v8 }
 0x2b4   : > { %v3783_v21 = vmul.f32 %v12093_v8, %v16841_v27  ;;  %v5371_v24 = vadd.f32 %v16842_v32, %v5247_v20  ;;  %v12100_v16 = vmul.f32 %v16782_v55, %v16841_v27  ;;  %v3907_v61 = vmul.f32 %v11919_v60, %v16844_v37 }
 0x2b5   : > { %16839 = vst [vmem:[#allocation54_spill] sm:$0xff] %v12086_v9  ;;  %v12106_v18 = vmul.f32 %v12018_v54, %v16844_v37  ;;  %v2889_v51 = vadd.f32 %v2850_v5, %v2765_v41  ;;  %v3593_v46 = vrot.slane %v3535_v45, 4  ;;  %v4031_v28 = vmul.f32 %v16846_v33, %v11780_v14  ;;  %v16848_v37 = vld [vmem:[#allocation66_spill] sm:$0xff] }
 0x2b6   : > { %16843 = vst [vmem:[#allocation107_spill] sm:$0xff] %v12100_v16  ;;  %v5495_v20 = vadd.f32 %v11953_v6, %v5371_v24  ;;  %v3717_v32 = vrot.slane %v3659_v59, 4  ;;  %v12115_v27 = vmul.f32 %v16846_v33, %v11840_v25  ;;  %v3841_v48 = vrot.slane %v3783_v21, 4  ;;  %v16850_v33 = vld [vmem:[#allocation69_spill] sm:$0xff] }
 0x2b7   : > { %16845 = vst [vmem:[#allocation83_spill] sm:$0xff] %v12106_v18  ;;  %v3013_v10 = vadd.f32 %v2974_v34, %v2889_v51  ;;  %v4155_v5 = vmul.f32 %v11718_v42, %v16848_v37  ;;  %v12121_v45 = vmul.f32 %v11787_v63, %v16848_v37  ;;  %v3965_v59 = vrot.slane %v3907_v61, 4 }
 0x2b8   : > { %16847 = vst [vmem:[#allocation58_spill] sm:$0xff] %v12115_v27  ;;  %v5619_v41 = vadd.f32 %v11960_v47, %v5495_v20  ;;  %v4089_v26 = vrot.slane %v4031_v28, 4  ;;  %v4280_v34 = vmul.f32 %v11738_v11, %v16850_v33  ;;  %v12130_v21 = vmul.f32 %v11797_v19, %v16850_v33 }
 0x2b9   : > { %16849 = vst [vmem:[#allocation86_spill] sm:$0xff] %v12121_v45  ;;  %v3137_v55 = vadd.f32 %v3098_v30, %v3013_v10  ;;  %v4404_v47 = vmul.f32 %v16754_v43, %v16852_v39  ;;  %v12138_v61 = vmul.f32 %v16775_v13, %v16852_v39  ;;  %v16854_v28 = vrot.slane %v12060_v62, 4 }
 0x2ba   : > { %16851 = vst [vmem:[#allocation88_spill] sm:$0xff] %v12130_v21  ;;  %v5743_v51 = vadd.f32 %v11970_v0, %v5619_v41  ;;  %v4214_v20 = vrot.slane %v4155_v5, 5  ;;  %v16855_v0 = vrot.slane %v12079_v17, 4  ;;  %v16856_v37 = vrot.slane %v12086_v9, 4 }
 0x2bb   : > { %16853 = vst [vmem:[#allocation89_spill] sm:$0xff] %v12138_v61  ;;  %v3261_v30 = vadd.f32 %v3222_v40, %v3137_v55  ;;  %v3471_v10 = vsel %vm3319_vm3, %v3469_v23, %v16854_v28  ;;  %v16857_v39 = vrot.slane %v12100_v16, 4  ;;  %v16858_v23 = vrot.slane %v12106_v18, 4 }
 0x2bc   : > { %v5867_v6 = vadd.f32 %v5826_v38, %v5743_v51  ;;  %v3595_v41 = vsel %vm3319_vm3, %v3593_v46, %v16855_v0  ;;  %v3719_v43 = vsel %vm3319_vm3, %v3717_v32, %v16856_v37  ;;  %v4338_v28 = vrot.slane %v4280_v34, 5  ;;  %v16859_v51 = vld [vmem:[#allocation126_spill] sm:$0xff] }
 0x2bd   : > { %v3843_v40 = vsel %vm3319_vm3, %v3841_v48, %v16857_v39  ;;  %v3386_v55 = vadd.f32 %v3347_v4, %v3261_v30  ;;  %v3967_v5 = vsel %vm3319_vm3, %v3965_v59, %v16858_v23  ;;  %v15238_v38 = vrot.slane %v12130_v21, 5  ;;  %v16863_v4 = vld [vmem:[#allocation73_spill] sm:$0xff]  ;;  %v16865_v30 = vld [vmem:[#allocation74_spill] sm:$0xff] }
 0x2be   : > { %v12158_v24 = vadd.f32 %v16859_v51, %v5867_v6  ;;  %v16861_v46 = vrot.slane %v12115_v27, 4  ;;  %v4462_v32 = vrot.slane %v4404_v47, 5  ;;  %v16862_v39 = vrot.slane %v12121_v45, 5  ;;  %v12178_v47 = vld [vmem:[%s7389_s18 + $0xe0] sm:$0xff] }
 0x2bf   : > { %v3510_v16 = vadd.f32 %v3471_v10, %v3386_v55  ;;  %v4528_v59 = vmul.f32 %v16759_v35, %v16863_v4  ;;  %v12171_v34 = vmul.f32 %v16779_v31, %v16863_v4  ;;  %16866 = vst [vmem:[#allocation71_spill] sm:$0xff] %v12178_v47  ;;  %v12182_v10 = vmul.f32 %v12178_v47, %v16865_v30  ;;  %v16875_v27 = vld [vmem:[#allocation82_spill] sm:$0xff] }
 0x2c0   : > { %16860 = vst [vmem:[#allocation93_spill] sm:$0xff] %v12158_v24  ;;  %v4091_v37 = vsel %vm3319_vm3, %v4089_v26, %v16861_v46  ;;  %v4216_v48 = vsel %vm4188_vm4, %v4214_v20, %v16862_v39  ;;  %v5925_v6 = vsel %vm5897_vm6, %v12158_v24, 0.0  ;;  %v4652_v26 = vmul.f32 %v12093_v8, %v16865_v30  ;;  %v16868_v20 = vld [vmem:[#allocation77_spill] sm:$0xff]  ;;  %v16870_v39 = vld [vmem:[#allocation78_spill] sm:$0xff] }
 0x2c1   : > { %16864 = vst [vmem:[#allocation148_spill] sm:$0xff] %v12171_v34  ;;  %16867 = vst [vmem:[#allocation64_spill] sm:$0xff] %v12182_v10  ;;  %v4776_v55 = vmul.f32 %v11919_v60, %v16868_v20  ;;  %5926 = vadd.xlane.f32.xlu1 %v5925_v6  ;;  %v3634_v35 = vadd.f32 %v3595_v41, %v3510_v16  ;;  %v4340_v23 = vsel %vm4188_vm4, %v4338_v28, %v15238_v38  ;;  %v16873_v16 = vld [vmem:[#allocation79_spill] sm:$0xff] }
 0x2c2   : > { %v12191_v46 = vmul.f32 %v12018_v54, %v16868_v20  ;;  %v4900_v0 = vmul.f32 %v16870_v39, %v11780_v14  ;;  %v16871_v24 = vrot.slane %v12138_v61, 5  ;;  %v12200_v6 = vmul.f32 %v16870_v39, %v11840_v25 }
 0x2c3   : > { %v5024_v41 = vmul.f32 %v11718_v42, %v16873_v16  ;;  %v12206_v28 = vmul.f32 %v11787_v63, %v16873_v16  ;;  %v3758_v38 = vadd.f32 %v3719_v43, %v3634_v35  ;;  %v4586_v21 = vrot.slane %v4528_v59, 5  ;;  %v12218_v43 = vld [vmem:[%s7389_s18 + $0xa8] sm:$0xff]  ;;  %v16878_v59 = vld [vmem:[#allocation84_spill] sm:$0xff] }
 0x2c4   : > { %16869 = vst [vmem:[#allocation81_spill] sm:$0xff] %v12191_v46  ;;  %v4464_v45 = vsel %vm4188_vm4, %v4462_v32, %v16871_v24  ;;  %16872 = vst [vmem:[#allocation50_spill] sm:$0xff] %v12200_v6  ;;  %v5149_v18 = vmul.f32 %v11738_v11, %v16875_v27  ;;  %v12212_v61 = vmul.f32 %v11797_v19, %v16875_v27  ;;  %v15255_v24 = vrot.slane %v12171_v34, 5 }
 0x2c5   : > { %16874 = vst [vmem:[#allocation67_spill] sm:$0xff] %v12206_v28  ;;  %v4710_v32 = vrot.slane %v4652_v26, 5  ;;  %v4834_v42 = vrot.slane %v4776_v55, 5  ;;  %v3882_v39 = vadd.f32 %v3843_v40, %v3758_v38  ;;  %v4958_v20 = vrot.slane %v4900_v0, 5  ;;  %16877 = vst [vmem:[#allocation94_spill] sm:$0xff] %v12218_v43  ;;  %v12230_v38 = vld [vmem:[%s7389_s18 + $0xc0] sm:$0xff] }
 0x2c6   : > { %16876 = vst [vmem:[#allocation61_spill] sm:$0xff] %v12212_v61  ;;  %v5273_v35 = vmul.f32 %v12218_v43, %v16878_v59  ;;  %v5083_v27 = vrot.slane %v5024_v41, 6  ;;  %v12226_v26 = vmul.f32 %v16775_v13, %v16878_v59  ;;  %v5207_v55 = vrot.slane %v5149_v18, 6  ;;  %16880 = vst [vmem:[#allocation95_spill] sm:$0xff] %v12230_v38  ;;  %v16881_v0 = vld [vmem:[#allocation85_spill] sm:$0xff]  ;;  %v16884_v18 = vld [vmem:[#allocation87_spill] sm:$0xff] }
 0x2c7   : > { %v4006_v9 = vadd.f32 %v3967_v5, %v3882_v39  ;;  %v5397_v16 = vmul.f32 %v12230_v38, %v16881_v0  ;;  %v4588_v11 = vsel %vm4188_vm4, %v4586_v21, %v15255_v24  ;;  %v16882_v41 = vrot.slane %v12182_v10, 5  ;;  %v16916_v10 = vld [vmem:[#allocation134_spill] sm:$0xff]  ;;  %v16922_v59 = vld [vmem:[#allocation20_spill] sm:$0xff] }
 0x2c8   : > { %16879 = vst [vmem:[#allocation100_spill] sm:$0xff] %v12226_v26  ;;  %v12242_v13 = vmul.f32 %v16779_v31, %v16881_v0  ;;  %v5521_v5 = vmul.f32 %v12093_v8, %v16884_v18  ;;  %v5331_v40 = vrot.slane %v5273_v35, 6  ;;  %v12249_v38 = vmul.f32 %v12178_v47, %v16884_v18  ;;  %v16893_v0 = vld [vmem:[#allocation3_spill] sm:$0xff] }
 0x2c9   : > { %v4712_v30 = vsel %vm4188_vm4, %v4710_v32, %v16882_v41  ;;  %v4130_v39 = vadd.f32 %v4091_v37, %v4006_v9  ;;  %v16886_v21 = vrot.slane %v12191_v46, 5  ;;  %v16887_v41 = vrot.slane %v12200_v6, 5  ;;  %v16889_v37 = vld [vmem:[#allocation90_spill] sm:$0xff]  ;;  %v12316_v6 = vld [vmem:[%s7389_s18 + $0xb8] sm:$0x3f] }
 0x2ca   : > { %16883 = vst [vmem:[#allocation96_spill] sm:$0xff] %v12242_v13  ;;  %16885 = vst [vmem:[#allocation34_spill] sm:$0xff] %v12249_v38  ;;  %v16888_v24 = vrot.slane %v12206_v28, 6  ;;  %v5645_v35 = vmul.f32 %v11919_v60, %v16889_v37  ;;  %v16890_v18 = vrot.slane %v12212_v61, 6  ;;  %v16894_v60 = vrot.slane %v12226_v26, 6  ;;  %v16901_v28 = vld [vmem:[#allocation6_spill] sm:$0xff] }
 0x2cb   : > { %v4836_v32 = vsel %vm4188_vm4, %v4834_v42, %v16886_v21  ;;  %v4960_v31 = vsel %vm4188_vm4, %v4958_v20, %v16887_v41  ;;  %v4255_v43 = vadd.f32 %v4216_v48, %v4130_v39  ;;  %v5455_v42 = vrot.slane %v5397_v16, 6  ;;  %16907 = vst [vmem:[#allocation80_spill] sm:$0xff] %v12316_v6 }
 0x2cc   : > { %v12260_v9 = vsel %vm5057_vm5, %v5083_v27, %v16888_v24  ;;  %v12267_v8 = vsel %vm5057_vm5, %v5207_v55, %v16890_v18  ;;  %v12271_v21 = vmul.f32 %v12018_v54, %v16889_v37  ;;  %v5579_v41 = vrot.slane %v5521_v5, 6  ;;  %v16892_v27 = vld [vmem:[#allocation2_spill] sm:$0xff]  ;;  %v12285_v18 = vld [vmem:[%s7389_s18 + $0xb0] sm:$0xff] }
 0x2cd   : > { %v423_v24 = vmul.f32 %v11787_v63, %v16892_v27  ;;  %v459_v48 = vmul.f32 %v11797_v19, %v16893_v0  ;;  %v4379_v39 = vadd.f32 %v4340_v23, %v4255_v43  ;;  %v12281_v55 = vsel %vm5057_vm5, %v5331_v40, %v16894_v60  ;;  %16895 = vst [vmem:[#allocation23_spill] sm:$0xff] %v12285_v18  ;;  %v16896_v37 = vld [vmem:[#allocation4_spill] sm:$0xff]  ;;  %v12292_v23 = vld [vmem:[%s7389_s18 + $0xc8] sm:$0xff]  ;;  %v16899_v43 = vld [vmem:[#allocation5_spill] sm:$0xff] }
 0x2ce   : > { %16891 = vst [vmem:[#allocation72_spill] sm:$0xff] %v12271_v21  ;;  %v495_v5 = vmul.f32 %v12285_v18, %v16896_v37  ;;  %v5703_v20 = vrot.slane %v5645_v35, 6  ;;  %v16897_v63 = vld [vmem:[#allocation92_spill] sm:$0xff]  ;;  %16898 = vst [vmem:[#allocation24_spill] sm:$0xff] %v12292_v23  ;;  %v531_v60 = vmul.f32 %v12292_v23, %v16899_v43  ;;  %v16902_v18 = vld [vmem:[#allocation142_spill] sm:$0xff]  ;;  %v16903_v37 = vrot.slane %v12242_v13, 6 }
 0x2cf   : > { %v5769_v61 = vmul.f32 %v16897_v63, %v11780_v14  ;;  %v475_v19 = vadd.f32 %v459_v48, %v423_v24  ;;  %v4503_v40 = vadd.f32 %v4464_v45, %v4379_v39  ;;  %v12299_v16 = vmul.f32 %v16897_v63, %v11840_v25  ;;  %v16904_v48 = vld [vmem:[#allocation7_spill] sm:$0xff]  ;;  %v12311_v45 = vld [vmem:[%s7389_s18 + $0xa0] sm:$0x3f]  ;;  %v16906_v39 = vld [vmem:[#allocation8_spill] sm:$0xff] }
 0x2d0   : > { %v681_v35 = vmul.f32 %v16902_v18, %v16901_v28  ;;  %v12306_v14 = vsel %vm5057_vm5, %v5455_v42, %v16903_v37  ;;  %v567_v23 = vmul.f32 %v12178_v47, %v16904_v48  ;;  %16905 = vst [vmem:[#allocation75_spill] sm:$0xff] %v12311_v45  ;;  %v806_v26 = vmul.f32 %v12311_v45, %v16906_v39  ;;  %v16908_v28 = vld [vmem:[#allocation10_spill] sm:$0xff]  ;;  %v16909_v0 = vld [vmem:[#allocation13_spill] sm:$0xff]  ;;  %v16910_v37 = vld [vmem:[#allocation143_spill] sm:$0xff] }
 0x2d1   : > { %16900 = vst [vmem:[#allocation65_spill] sm:$0xff] %v12299_v16  ;;  %v511_v24 = vadd.f32 %v495_v5, %v475_v19  ;;  %v4627_v63 = vadd.f32 %v4588_v11, %v4503_v40  ;;  %v930_v13 = vmul.f32 %v12316_v6, %v16908_v28  ;;  %v1054_v42 = vmul.f32 %v16910_v37, %v16909_v0  ;;  %v16912_v27 = vld [vmem:[#allocation11_spill] sm:$0xff]  ;;  %v12334_v28 = vld [vmem:[%s7389_s18 + $0x118] sm:$0x3f]  ;;  %v16915_v0 = vld [vmem:[#allocation16_spill] sm:$0xff] }
 0x2d2   : > { %v741_v43 = vrot.slane %v681_v35, 1  ;;  %v16911_v19 = vrot.slane %v12249_v38, 6  ;;  %v5827_v47 = vrot.slane %v5769_v61, 6  ;;  %v603_v46 = vmul.f32 %v12018_v54, %v16912_v27  ;;  %16914 = vst [vmem:[#allocation33_spill] sm:$0xff] %v12334_v28  ;;  %v16917_v61 = vld [vmem:[#allocation12_spill] sm:$0xff] }
 0x2d3   : > { %v547_v48 = vadd.f32 %v531_v60, %v511_v24  ;;  %v4751_v39 = vadd.f32 %v4712_v30, %v4627_v63  ;;  %v16913_v11 = vrot.slane %v12271_v21, 6  ;;  %v1178_v38 = vmul.f32 %v16916_v10, %v16915_v0  ;;  %v16918_v24 = vld [vmem:[#allocation132_spill] sm:$0xff]  ;;  %v16920_v21 = vld [vmem:[#allocation147_spill] sm:$0xff]  ;;  %v16923_v0 = vld [vmem:[#allocation21_spill] sm:$0xff] }
 0x2d4   : > { %v5581_v5 = vsel %vm5057_vm5, %v5579_v41, %v16911_v19  ;;  %v639_v41 = vmul.f32 %v16917_v61, %v11840_v25  ;;  %v865_v60 = vrot.slane %v806_v26, 1  ;;  %v16919_v19 = vld [vmem:[#allocation18_spill] sm:$0xff]  ;;  %v16921_v54 = vrot.slane %v16920_v21, 1 }
 0x2d5   : > { %v12330_v40 = vsel %vm5057_vm5, %v5703_v20, %v16913_v11  ;;  %v583_v34 = vadd.f32 %v567_v23, %v547_v48  ;;  %v1302_v30 = vmul.f32 %v16919_v19, %v16918_v24  ;;  %v4875_v63 = vadd.f32 %v4836_v32, %v4751_v39  ;;  %v16924_v48 = vld [vmem:[#allocation25_spill] sm:$0xff] }
 0x2d6   : > { %v742_v20 = vsel %vm712_vm0, %v16921_v54, %v741_v43  ;;  %v989_v11 = vrot.slane %v930_v13, 1  ;;  %v1113_v35 = vrot.slane %v1054_v42, 1  ;;  %v1426_v4 = vmul.f32 %v16922_v59, %v12334_v28  ;;  %v16926_v42 = vld [vmem:[#allocation15_spill] sm:$0xff] }
 0x2d7   : > { %v619_v27 = vadd.f32 %v603_v46, %v583_v34  ;;  %v1550_v23 = vmul.f32 %v16902_v18, %v16923_v0  ;;  %v1675_v26 = vmul.f32 %v12311_v45, %v16924_v48  ;;  %v4999_v25 = vadd.f32 %v4960_v31, %v4875_v63  ;;  %v16928_v63 = vld [vmem:[#allocation17_spill] sm:$0xff] }
 0x2d8   : > { %v1237_v61 = vrot.slane %v1178_v38, 1  ;;  %v1799_v32 = vmul.f32 %v12316_v6, %v16796_v1  ;;  %v1923_v54 = vmul.f32 %v16910_v37, %v16797_v49  ;;  %v16925_v13 = vrot.slane %v12299_v16, 6  ;;  %v16930_v49 = vld [vmem:[#allocation141_spill] sm:$0xff] }
 0x2d9   : > { %v655_v46 = vadd.f32 %v639_v41, %v619_v27  ;;  %v1361_v21 = vrot.slane %v1302_v30, 1  ;;  %v2047_v43 = vmul.f32 %v16916_v10, %v16799_v53  ;;  %v5124_v39 = vadd.f32 %v12260_v9, %v4999_v25 }
 0x2da   : > { %v5829_v34 = vsel %vm5057_vm5, %v5827_v47, %v16925_v13  ;;  %v16927_v31 = vrot.slane %v16926_v42, 1  ;;  %v16929_v1 = vrot.slane %v16928_v63, 1  ;;  %v16931_v0 = vrot.slane %v16930_v49, 1 }
 0x2db   : > { %v780_v47 = vadd.f32 %v742_v20, %v655_v46  ;;  %v1485_v27 = vrot.slane %v1426_v4, 1  ;;  %v1610_v41 = vrot.slane %v1550_v23, 2  ;;  %v1734_v30 = vrot.slane %v1675_v26, 2  ;;  %v16935_v20 = vld [vmem:[#allocation38_spill] sm:$0xff]  ;;  %v16936_v23 = vld [vmem:[#allocation28_spill] sm:$0xff] }
 0x2dc   : > { %v866_v38 = vsel %vm712_vm0, %v16927_v31, %v865_v60  ;;  %v990_v48 = vsel %vm712_vm0, %v16929_v1, %v989_v11  ;;  %v1114_v16 = vsel %vm712_vm0, %v16931_v0, %v1113_v35  ;;  %v5248_v13 = vadd.f32 %v12267_v8, %v5124_v39  ;;  %v16934_v35 = vld [vmem:[#allocation35_spill] sm:$0xff]  ;;  %v16940_v46 = vld [vmem:[#allocation40_spill] sm:$0xff] }
 0x2dd   : > { %v16932_v25 = vrot.slane %v11829_v57, 1  ;;  %v1858_v42 = vrot.slane %v1799_v32, 2  ;;  %v1982_v60 = vrot.slane %v1923_v54, 2  ;;  %v904_v31 = vadd.f32 %v866_v38, %v780_v47  ;;  %v16938_v32 = vld [vmem:[#allocation36_spill] sm:$0xff] }
 0x2de   : > { %v16933_v63 = vrot.slane %v11847_v22, 1  ;;  %v2106_v49 = vrot.slane %v2047_v43, 2  ;;  %v2171_v0 = vmul.f32 %v16669_v36, %v16918_v24  ;;  %v5372_v4 = vadd.f32 %v12281_v55, %v5248_v13 }
 0x2df   : > { %v1238_v9 = vsel %vm712_vm0, %v16932_v25, %v1237_v61  ;;  %v2295_v8 = vmul.f32 %v16934_v35, %v12334_v28  ;;  %v2419_v57 = vmul.f32 %v16902_v18, %v16935_v20  ;;  %v2544_v61 = vmul.f32 %v12311_v45, %v16035_v52 }
 0x2e0   : > { %v1362_v1 = vsel %vm712_vm0, %v16933_v63, %v1361_v21  ;;  %v1028_v11 = vadd.f32 %v990_v48, %v904_v31  ;;  %v16937_v22 = vrot.slane %v16936_v23, 1  ;;  %v16939_v54 = vrot.slane %v16938_v32, 2  ;;  %v16947_v23 = vld [vmem:[#allocation52_spill] sm:$0xff] }
 0x2e1   : > { %v16941_v55 = vrot.slane %v16940_v46, 2  ;;  %v5496_v43 = vadd.f32 %v12306_v14, %v5372_v4  ;;  %v16942_v39 = vrot.slane %v11890_v56, 2  ;;  %v16943_v48 = vrot.slane %v11896_v58, 2  ;;  %v12414_v4 = vld [vmem:[%s7389_s18 + $0x100] sm:$0x3f] }
 0x2e2   : > { %v1486_v26 = vsel %vm712_vm0, %v16937_v22, %v1485_v27  ;;  %v1611_v24 = vsel %vm1581_vm1, %v16939_v54, %v1610_v41  ;;  %v2668_v27 = vmul.f32 %v12316_v6, %v16419_v12  ;;  %v1152_v13 = vadd.f32 %v1114_v16, %v1028_v11  ;;  %16945 = vst [vmem:[#allocation30_spill] sm:$0xff] %v12414_v4  ;;  %v16946_v16 = vld [vmem:[#allocation49_spill] sm:$0xff] }
 0x2e3   : > { %v1735_v21 = vsel %vm1581_vm1, %v16941_v55, %v1734_v30  ;;  %v1859_v38 = vsel %vm1581_vm1, %v16942_v39, %v1858_v42  ;;  %v1983_v47 = vsel %vm1581_vm1, %v16943_v48, %v1982_v60  ;;  %v16944_v41 = vrot.slane %v11915_v29, 2  ;;  %v16950_v55 = vld [vmem:[#allocation46_spill] sm:$0xff]  ;;  %v16952_v39 = vld [vmem:[#allocation129_spill] sm:$0xff] }
 0x2e4   : > { %v2230_v30 = vrot.slane %v2171_v0, 2  ;;  %v2792_v14 = vmul.f32 %v16910_v37, %v16422_v44  ;;  %v5620_v56 = vadd.f32 %v5581_v5, %v5496_v43  ;;  %v2354_v31 = vrot.slane %v2295_v8, 2 }
 0x2e5   : > { %v12407_v25 = vsel %vm1581_vm1, %v16944_v41, %v2106_v49  ;;  %v2479_v42 = vrot.slane %v2419_v57, 3  ;;  %v2603_v63 = vrot.slane %v2544_v61, 3  ;;  %v1276_v58 = vadd.f32 %v1238_v9, %v1152_v13  ;;  %v16948_v57 = vld [vmem:[#allocation125_spill] sm:$0xff] }
 0x2e6   : > { %v2916_v60 = vmul.f32 %v16916_v10, %v16423_v2  ;;  %v3040_v29 = vmul.f32 %v12414_v4, %v16425_v7  ;;  %v3164_v49 = vmul.f32 %v16946_v16, %v12334_v28  ;;  %v5744_v0 = vadd.f32 %v12330_v40, %v5620_v56 }
 0x2e7   : > { %v2727_v11 = vrot.slane %v2668_v27, 3  ;;  %v3288_v5 = vmul.f32 %v16902_v18, %v16947_v23  ;;  %v3413_v9 = vmul.f32 %v12311_v45, %v16831_v3  ;;  %v1400_v8 = vadd.f32 %v1362_v1, %v1276_v58  ;;  %v16956_v58 = vld [vmem:[#allocation115_spill] sm:$0xff] }
 0x2e8   : > { %v16949_v61 = vrot.slane %v16948_v57, 2  ;;  %v2851_v32 = vrot.slane %v2792_v14, 3  ;;  %v3537_v54 = vmul.f32 %v12316_v6, %v16836_v50  ;;  %v5868_v46 = vadd.f32 %v5829_v34, %v5744_v0  ;;  %v17048_v3 = vld [vmem:[#allocation51_spill] sm:$0xff] }
 0x2e9   : > { %v16951_v43 = vrot.slane %v16950_v55, 2  ;;  %v16953_v48 = vrot.slane %v16952_v39, 3  ;;  %v16954_v1 = vrot.slane %v11986_v15, 3  ;;  %v1524_v41 = vadd.f32 %v1486_v26, %v1400_v8  ;;  %v16958_v55 = vld [vmem:[#allocation37_spill] sm:$0xff]  ;;  %v16966_v39 = vld [vmem:[#allocation135_spill] sm:$0xff] }
 0x2ea   : > { %v2231_v22 = vsel %vm1581_vm1, %v16949_v61, %v2230_v30  ;;  %v2975_v30 = vrot.slane %v2916_v60, 3  ;;  %v3099_v14 = vrot.slane %v3040_v29, 3  ;;  %v3223_v56 = vrot.slane %v3164_v49, 3  ;;  %v16960_v60 = vld [vmem:[#allocation59_spill] sm:$0xff]  ;;  %v16961_v49 = vld [vmem:[#allocation60_spill] sm:$0xff] }
 0x2eb   : > { %v2355_v40 = vsel %vm1581_vm1, %v16951_v43, %v2354_v31  ;;  %v12436_v27 = vsel %vm2450_vm2, %v16953_v48, %v2479_v42  ;;  %v12441_v13 = vsel %vm2450_vm2, %v16954_v1, %v2603_v63  ;;  %v12444_v34 = vadd.f32 %v16859_v51, %v5868_v46 }
 0x2ec   : > { %v16957_v0 = vrot.slane %v16956_v58, 3  ;;  %v3348_v57 = vrot.slane %v3288_v5, 4  ;;  %v3472_v42 = vrot.slane %v3413_v9, 4  ;;  %v1649_v61 = vadd.f32 %v1611_v24, %v1524_v41  ;;  %v16963_v24 = vld [vmem:[#allocation63_spill] sm:$0xff]  ;;  %v16968_v41 = vld [vmem:[#allocation128_spill] sm:$0xff] }
 0x2ed   : > { %16955 = vst [vmem:[#allocation97_spill] sm:$0xff] %v12444_v34  ;;  %v16959_v15 = vrot.slane %v16958_v55, 3  ;;  %v3596_v26 = vrot.slane %v3537_v54, 4  ;;  %v3661_v29 = vmul.f32 %v16910_v37, %v16960_v60  ;;  %v5928_v51 = vsel %vm5897_vm6, %v12444_v34, 0.0  ;;  %v16970_v55 = vld [vmem:[#allocation120_spill] sm:$0xff]  ;;  %v16977_v34 = vld [vmem:[#allocation74_spill] sm:$0xff] }
 0x2ee   : > { %v12449_v31 = vsel %vm2450_vm2, %v16957_v0, %v2727_v11  ;;  %v3785_v8 = vmul.f32 %v16916_v10, %v16961_v49  ;;  %v16962_v11 = vld [vmem:[#allocation62_spill] sm:$0xff]  ;;  %v4033_v9 = vmul.f32 %v16963_v24, %v12334_v28  ;;  %5929 = vadd.xlane.f32.xlu0 %v5928_v51  ;;  %v1773_v46 = vadd.f32 %v1735_v21, %v1649_v61  ;;  %v16984_v24 = vld [vmem:[#allocation107_spill] sm:$0xff]  ;;  %v17031_v49 = vld [vmem:[#allocation144_spill] sm:$0xff] }
 0x2ef   : > { %v12454_v63 = vsel %vm2450_vm2, %v16959_v15, %v2851_v32  ;;  %v3909_v5 = vmul.f32 %v12414_v4, %v16962_v11  ;;  %v16964_v32 = vld [vmem:[#allocation42_spill] sm:$0xff]  ;;  %v16967_v48 = vrot.slane %v16966_v39, 3  ;;  %v16969_v58 = vrot.slane %v16968_v41, 3 }
 0x2f0   : > { %v16965_v43 = vrot.slane %v16964_v32, 3  ;;  %v16971_v15 = vrot.slane %v16970_v55, 4  ;;  %v16972_v21 = vrot.slane %v12060_v62, 4  ;;  %v16973_v61 = vld [vmem:[#allocation66_spill] sm:$0xff]  ;;  %v3844_v62 = vrot.slane %v3785_v8, 4  ;;  %v16976_v55 = vld [vmem:[#allocation73_spill] sm:$0xff] }
 0x2f1   : > { %v12474_v1 = vsel %vm2450_vm2, %v16967_v48, %v3099_v14  ;;  %v12479_v0 = vsel %vm2450_vm2, %v16969_v58, %v3223_v56  ;;  %v4157_v32 = vmul.f32 %v16902_v18, %v16973_v61  ;;  %v4282_v14 = vmul.f32 %v12311_v45, %v16850_v33  ;;  %v16980_v61 = vld [vmem:[#allocation79_spill] sm:$0xff] }
 0x2f2   : > { %v12469_v54 = vsel %vm2450_vm2, %v16965_v43, %v2975_v30  ;;  %v12484_v51 = vsel %vm3319_vm3, %v16971_v15, %v3348_v57  ;;  %v12489_v30 = vsel %vm3319_vm3, %v16972_v21, %v3472_v42  ;;  %v1897_v43 = vadd.f32 %v1859_v38, %v1773_v46  ;;  %v16975_v57 = vld [vmem:[#allocation70_spill] sm:$0xff]  ;;  %v16978_v38 = vld [vmem:[#allocation77_spill] sm:$0xff] }
 0x2f3   : > { %v16974_v56 = vrot.slane %v12079_v17, 4  ;;  %v3720_v48 = vrot.slane %v3661_v29, 4  ;;  %v4406_v41 = vmul.f32 %v12316_v6, %v16975_v57  ;;  %v3968_v58 = vrot.slane %v3909_v5, 4  ;;  %v16981_v5 = vld [vmem:[#allocation82_spill] sm:$0xff] }
 0x2f4   : > { %v4092_v42 = vrot.slane %v4033_v9, 4  ;;  %v4530_v15 = vmul.f32 %v16910_v37, %v16976_v55  ;;  %v2021_v21 = vadd.f32 %v1983_v47, %v1897_v43  ;;  %v4654_v33 = vmul.f32 %v16916_v10, %v16977_v34  ;;  %v16982_v10 = vld [vmem:[#allocation54_spill] sm:$0xff] }
 0x2f5   : > { %v12498_v39 = vsel %vm3319_vm3, %v16974_v56, %v3596_v26  ;;  %v4778_v17 = vmul.f32 %v12414_v4, %v16978_v38  ;;  %v16979_v26 = vld [vmem:[#allocation78_spill] sm:$0xff]  ;;  %v4217_v29 = vrot.slane %v4157_v32, 5  ;;  %v4341_v56 = vrot.slane %v4282_v14, 5 }
 0x2f6   : > { %v4902_v46 = vmul.f32 %v16979_v26, %v12334_v28  ;;  %v5026_v8 = vmul.f32 %v16902_v18, %v16980_v61  ;;  %v5151_v9 = vmul.f32 %v12311_v45, %v16981_v5  ;;  %v2145_v55 = vadd.f32 %v12407_v25, %v2021_v21  ;;  %v16986_v18 = vld [vmem:[#allocation84_spill] sm:$0xff] }
 0x2f7   : > { %v4465_v47 = vrot.slane %v4406_v41, 5  ;;  %v4589_v43 = vrot.slane %v4530_v15, 5  ;;  %v4713_v57 = vrot.slane %v4654_v33, 5  ;;  %v16983_v34 = vrot.slane %v16982_v10, 4  ;;  %v16987_v15 = vld [vmem:[#allocation83_spill] sm:$0xff]  ;;  %v16993_v10 = vld [vmem:[#allocation88_spill] sm:$0xff] }
 0x2f8   : > { %v16985_v26 = vrot.slane %v16984_v24, 4  ;;  %v4837_v14 = vrot.slane %v4778_v17, 5  ;;  %v5275_v61 = vmul.f32 %v12316_v6, %v16986_v18  ;;  %v2269_v45 = vadd.f32 %v2231_v22, %v2145_v55  ;;  %v17017_v6 = vld [vmem:[#allocation85_spill] sm:$0xff] }
 0x2f9   : > { %v12518_v38 = vsel %vm3319_vm3, %v16983_v34, %v3720_v48  ;;  %v4961_v5 = vrot.slane %v4902_v46, 5  ;;  %v5086_v25 = vrot.slane %v5026_v8, 6  ;;  %v5210_v41 = vrot.slane %v5151_v9, 6  ;;  %v16989_v34 = vld [vmem:[#allocation58_spill] sm:$0xff]  ;;  %v16995_v8 = vld [vmem:[#allocation89_spill] sm:$0xff] }
 0x2fa   : > { %v12523_v32 = vsel %vm3319_vm3, %v16985_v26, %v3844_v62  ;;  %v16988_v33 = vrot.slane %v16987_v15, 4  ;;  %v16990_v48 = vrot.slane %v16989_v34, 4  ;;  %v16991_v62 = vld [vmem:[#allocation86_spill] sm:$0xff]  ;;  %v16994_v22 = vrot.slane %v16993_v10, 5  ;;  %v16997_v15 = vld [vmem:[#allocation148_spill] sm:$0xff] }
 0x2fb   : > { %v16992_v26 = vrot.slane %v16991_v62, 5  ;;  %v2393_v46 = vadd.f32 %v2355_v40, %v2269_v45  ;;  %v16996_v9 = vrot.slane %v16995_v8, 5  ;;  %v16999_v34 = vld [vmem:[#allocation64_spill] sm:$0xff]  ;;  %v17001_v62 = vld [vmem:[#allocation81_spill] sm:$0xff]  ;;  %v5334_v40 = vrot.slane %v5275_v61, 6  ;;  %v17007_v8 = vld [vmem:[#allocation94_spill] sm:$0xff] }
 0x2fc   : > { %v12530_v21 = vsel %vm3319_vm3, %v16988_v33, %v3968_v58  ;;  %v12535_v24 = vsel %vm3319_vm3, %v16990_v48, %v4092_v42  ;;  %v12545_v55 = vsel %vm4188_vm4, %v16994_v22, %v4341_v56  ;;  %v16998_v33 = vrot.slane %v16997_v15, 5  ;;  %v17006_v22 = vld [vmem:[#allocation3_spill] sm:$0xff]  ;;  %v17008_v15 = vld [vmem:[#allocation50_spill] sm:$0xff] }
 0x2fd   : > { %v12540_v17 = vsel %vm4188_vm4, %v16992_v26, %v4217_v29  ;;  %v12550_v58 = vsel %vm4188_vm4, %v16996_v9, %v4465_v47  ;;  %v17000_v29 = vrot.slane %v16999_v34, 5  ;;  %v17002_v56 = vrot.slane %v17001_v62, 5  ;;  %v17004_v26 = vld [vmem:[#allocation2_spill] sm:$0xff] }
 0x2fe   : > { %v12555_v42 = vsel %vm4188_vm4, %v16998_v33, %v4589_v43  ;;  %v17005_v47 = vld [vmem:[#allocation138_spill] sm:$0xff]  ;;  %v460_v9 = vmul.f32 %v17007_v8, %v17006_v22  ;;  %v2518_v43 = vadd.f32 %v12436_v27, %v2393_v46  ;;  %v17009_v33 = vrot.slane %v17008_v15, 5  ;;  %v17018_v46 = vld [vmem:[#allocation4_spill] sm:$0xff]  ;;  %v17019_v15 = vld [vmem:[#allocation95_spill] sm:$0xff] }
 0x2ff   : > { %v12560_v48 = vsel %vm4188_vm4, %v17000_v29, %v4713_v57  ;;  %v12565_v45 = vsel %vm4188_vm4, %v17002_v56, %v4837_v14  ;;  %v424_v10 = vmul.f32 %v17005_v47, %v17004_v26  ;;  %v17011_v57 = vld [vmem:[#allocation67_spill] sm:$0xff]  ;;  %v17014_v14 = vld [vmem:[#allocation61_spill] sm:$0xff]  ;;  %v12589_v22 = vmul.f32 %v16910_v37, %v17017_v6  ;;  %v17025_v37 = vld [vmem:[#allocation92_spill] sm:$0xff] }
 0x300   : > { %17003 = vst [vmem:[#allocation98_spill] sm:$0xff] %v12565_v45  ;;  %v12575_v34 = vsel %vm4188_vm4, %v17009_v33, %v4961_v5  ;;  %v17012_v29 = vrot.slane %v17011_v57, 6  ;;  %v17015_v61 = vrot.slane %v17014_v14, 6  ;;  %v496_v5 = vmul.f32 %v17019_v15, %v17018_v46  ;;  %v17020_v33 = vld [vmem:[#allocation5_spill] sm:$0xff]  ;;  %v17023_v14 = vld [vmem:[#allocation87_spill] sm:$0xff] }
 0x301   : > { %17010 = vst [vmem:[#allocation111_spill] sm:$0xff] %v12575_v34  ;;  %v476_v27 = vadd.f32 %v460_v9, %v424_v10  ;;  %v17021_v26 = vld [vmem:[#allocation57_spill] sm:$0xff]  ;;  %v12609_v10 = vmul.f32 %v17025_v37, %v12334_v28  ;;  %v17026_v9 = vld [vmem:[#allocation100_spill] sm:$0xff]  ;;  %v17030_v6 = vld [vmem:[#allocation47_spill] sm:$0xff] }
 0x302   : > { %v12580_v62 = vsel %vm5057_vm5, %v17012_v29, %v5086_v25  ;;  %v12585_v56 = vsel %vm5057_vm5, %v17015_v61, %v5210_v41  ;;  %v532_v57 = vmul.f32 %v17021_v26, %v17020_v33  ;;  %v2642_v25 = vadd.f32 %v12441_v13, %v2518_v43  ;;  %v12597_v29 = vld [vmem:[%s7389_s18 + $0xe8] sm:$0x3f]  ;;  %v17024_v41 = vld [vmem:[#allocation90_spill] sm:$0xff]  ;;  %v17044_v45 = vld [vmem:[#allocation13_spill] sm:$0xff] }
 0x303   : > { %17013 = vst [vmem:[#allocation101_spill] sm:$0xff] %v12580_v62  ;;  %17016 = vst [vmem:[#allocation112_spill] sm:$0xff] %v12585_v56  ;;  %v12601_v18 = vmul.f32 %v12597_v29, %v17023_v14  ;;  %v12605_v61 = vmul.f32 %v12414_v4, %v17024_v41  ;;  %v17027_v46 = vrot.slane %v17026_v9, 6  ;;  %v512_v13 = vadd.f32 %v496_v5, %v476_v27  ;;  %v17029_v43 = vld [vmem:[#allocation7_spill] sm:$0xff]  ;;  %v12622_v4 = vld [vmem:[%s7389_s18 + $0x120] sm:$0xff] }
 0x304   : > { %17022 = vst [vmem:[#allocation102_spill] sm:$0xff] %v12597_v29  ;;  %v568_v11 = vmul.f32 %v17030_v6, %v17029_v43  ;;  %v17032_v29 = vld [vmem:[#allocation11_spill] sm:$0xff]  ;;  %v2766_v56 = vadd.f32 %v12449_v31, %v2642_v25  ;;  %17033 = vst [vmem:[#allocation104_spill] sm:$0xff] %v12622_v4  ;;  %v17034_v41 = vld [vmem:[#allocation6_spill] sm:$0xff] }
 0x305   : > { %v12614_v33 = vsel %vm5057_vm5, %v17027_v46, %v5334_v40  ;;  %v604_v14 = vmul.f32 %v17032_v29, %v17031_v49  ;;  %v682_v28 = vmul.f32 %v17005_v47, %v17034_v41  ;;  %v17035_v37 = vld [vmem:[#allocation14_spill] sm:$0xff]  ;;  %v17037_v40 = vld [vmem:[#allocation8_spill] sm:$0xff]  ;;  %v548_v46 = vadd.f32 %v532_v57, %v512_v13  ;;  %v17038_v5 = vld [vmem:[#allocation23_spill] sm:$0xff] }
 0x306   : > { %17028 = vst [vmem:[#allocation114_spill] sm:$0xff] %v12614_v33  ;;  %v12628_v9 = vmul.f32 %v17035_v37, %v17034_v41  ;;  %v807_v27 = vmul.f32 %v17007_v8, %v17037_v40  ;;  %v12634_v43 = vmul.f32 %v17038_v5, %v17037_v40  ;;  %v17040_v29 = vld [vmem:[#allocation10_spill] sm:$0xff]  ;;  %v17041_v25 = vld [vmem:[#allocation24_spill] sm:$0xff]  ;;  %v2890_v47 = vadd.f32 %v12454_v63, %v2766_v56  ;;  %v17045_v63 = vld [vmem:[#allocation71_spill] sm:$0xff] }
 0x307   : > { %v931_v31 = vmul.f32 %v17019_v15, %v17040_v29  ;;  %v12640_v33 = vmul.f32 %v17041_v25, %v17040_v29  ;;  %v743_v60 = vrot.slane %v682_v28, 1  ;;  %v584_v62 = vadd.f32 %v568_v11, %v548_v46  ;;  %v17043_v57 = vld [vmem:[#allocation12_spill] sm:$0xff] }
 0x308   : > { %17036 = vst [vmem:[#allocation105_spill] sm:$0xff] %v12628_v9  ;;  %17039 = vst [vmem:[#allocation108_spill] sm:$0xff] %v12634_v43  ;;  %v15310_v50 = vrot.slane %v12628_v9, 1  ;;  %v640_v13 = vmul.f32 %v17043_v57, %v12622_v4  ;;  %v867_v40 = vrot.slane %v807_v27, 1  ;;  %v3014_v23 = vadd.f32 %v12469_v54, %v2890_v47  ;;  %v17047_v46 = vld [vmem:[#allocation16_spill] sm:$0xff] }
 0x309   : > { %17042 = vst [vmem:[#allocation106_spill] sm:$0xff] %v12640_v33  ;;  %v991_v34 = vrot.slane %v931_v31, 1  ;;  %v1055_v29 = vmul.f32 %v17021_v26, %v17044_v45  ;;  %v12653_v56 = vmul.f32 %v17045_v63, %v17044_v45  ;;  %v620_v28 = vadd.f32 %v604_v14, %v584_v62 }
 0x30a   : > { %v745_v11 = vsel %vm712_vm0, %v743_v60, %v15310_v50  ;;  %v1179_v41 = vmul.f32 %v17030_v6, %v17047_v46  ;;  %v3138_v54 = vadd.f32 %v12474_v1, %v3014_v23  ;;  %v12665_v57 = vmul.f32 %v17048_v3, %v17047_v46  ;;  %v17050_v50 = vld [vmem:[#allocation41_spill] sm:$0xff] }
 0x30b   : > { %17046 = vst [vmem:[#allocation117_spill] sm:$0xff] %v12653_v56  ;;  %v1115_v31 = vrot.slane %v1055_v29, 1  ;;  %v656_v14 = vadd.f32 %v640_v13, %v620_v28  ;;  %v1303_v60 = vmul.f32 %v16919_v19, %v17031_v49  ;;  %v12672_v27 = vmul.f32 %v16919_v19, %v17050_v50  ;;  %v12677_v29 = vld [vmem:[%s7389_s18 + $0x128] sm:$0xff] }
 0x30c   : > { %17049 = vst [vmem:[#allocation118_spill] sm:$0xff] %v12665_v57  ;;  %v3262_v23 = vadd.f32 %v12479_v0, %v3138_v54  ;;  %17052 = vst [vmem:[#allocation121_spill] sm:$0xff] %v12677_v29  ;;  %v17053_v47 = vrot.slane %v12634_v43, 1  ;;  %v1427_v13 = vmul.f32 %v16922_v59, %v12622_v4  ;;  %v1239_v62 = vrot.slane %v1179_v41, 1 }
 0x30d   : > { %17051 = vst [vmem:[#allocation119_spill] sm:$0xff] %v12672_v27  ;;  %v781_v28 = vadd.f32 %v745_v11, %v656_v14  ;;  %v12687_v19 = vmul.f32 %v16922_v59, %v12677_v29  ;;  %v17055_v54 = vrot.slane %v12640_v33, 1  ;;  %v17056_v43 = vrot.slane %v12653_v56, 1  ;;  %v17057_v11 = vld [vmem:[#allocation21_spill] sm:$0xff] }
 0x30e   : > { %v869_v9 = vsel %vm712_vm0, %v867_v40, %v17053_v47  ;;  %v3387_v0 = vadd.f32 %v12484_v51, %v3262_v23  ;;  %v12697_v47 = vld [vmem:[%s7389_s18 + $0x90] sm:$0xff]  ;;  %v1363_v49 = vrot.slane %v1303_v60, 1  ;;  %v12704_v51 = vmul.f32 %v17035_v37, %v17057_v11  ;;  %v17059_v56 = vld [vmem:[#allocation25_spill] sm:$0xff] }
 0x30f   : > { %17054 = vst [vmem:[#allocation122_spill] sm:$0xff] %v12687_v19  ;;  %v993_v1 = vsel %vm712_vm0, %v991_v34, %v17055_v54  ;;  %v1117_v40 = vsel %vm712_vm0, %v1115_v31, %v17056_v43  ;;  %v1551_v41 = vmul.f32 %v12697_v47, %v17057_v11  ;;  %v905_v14 = vadd.f32 %v869_v9, %v781_v28 }
 0x310   : > { %17058 = vst [vmem:[#allocation113_spill] sm:$0xff] %v12704_v51  ;;  %v3511_v23 = vadd.f32 %v12489_v30, %v3387_v0  ;;  %v1487_v34 = vrot.slane %v1427_v13, 1  ;;  %v1676_v43 = vmul.f32 %v17007_v8, %v17059_v56  ;;  %v17060_v9 = vrot.slane %v12665_v57, 1  ;;  %v17061_v0 = vld [vmem:[#allocation26_spill] sm:$0xff] }
 0x311   : > { %v1029_v33 = vadd.f32 %v993_v1, %v905_v14  ;;  %v12716_v28 = vmul.f32 %v17038_v5, %v17059_v56  ;;  %v1612_v30 = vrot.slane %v1551_v41, 2  ;;  %v1800_v54 = vmul.f32 %v17019_v15, %v17061_v0 }
 0x312   : > { %v1241_v60 = vsel %vm712_vm0, %v1239_v62, %v17060_v9  ;;  %v3635_v37 = vadd.f32 %v12498_v39, %v3511_v23  ;;  %v17062_v1 = vrot.slane %v12672_v27, 1  ;;  %v12727_v62 = vmul.f32 %v17041_v25, %v17061_v0  ;;  %v17063_v9 = vld [vmem:[#allocation27_spill] sm:$0xff] }
 0x313   : > { %v1153_v59 = vadd.f32 %v1117_v40, %v1029_v33  ;;  %v1924_v31 = vmul.f32 %v17021_v26, %v17063_v9  ;;  %v17064_v41 = vrot.slane %v12687_v19, 1  ;;  %v1736_v13 = vrot.slane %v1676_v43, 2 }
 0x314   : > { %v1365_v14 = vsel %vm712_vm0, %v1363_v49, %v17062_v1  ;;  %v3759_v39 = vadd.f32 %v12518_v38, %v3635_v37  ;;  %v12737_v33 = vmul.f32 %v17045_v63, %v17063_v9  ;;  %v2048_v1 = vmul.f32 %v17030_v6, %v16799_v53 }
 0x315   : > { %v1489_v23 = vsel %vm712_vm0, %v1487_v34, %v17064_v41  ;;  %v1277_v40 = vadd.f32 %v1241_v60, %v1153_v59  ;;  %v12744_v27 = vmul.f32 %v17048_v3, %v16799_v53  ;;  %v17065_v37 = vrot.slane %v12704_v51, 2  ;;  %v12751_v41 = vld [vmem:[%s7389_s18 + $0x108] sm:$0xff] }
 0x316   : > { %v3883_v38 = vadd.f32 %v12523_v32, %v3759_v39  ;;  %v1860_v43 = vrot.slane %v1800_v54, 2  ;;  %17066 = vst [vmem:[#allocation103_spill] sm:$0xff] %v12751_v41  ;;  %v2172_v59 = vmul.f32 %v12751_v41, %v16669_v36  ;;  %v15323_v49 = vrot.slane %v12727_v62, 2 }
 0x317   : > { %v1614_v34 = vsel %vm1581_vm1, %v1612_v30, %v17065_v37  ;;  %v1401_v60 = vadd.f32 %v1365_v14, %v1277_v40  ;;  %v1984_v19 = vrot.slane %v1924_v31, 2  ;;  %v12758_v57 = vmul.f32 %v16669_v36, %v17050_v50  ;;  %v17069_v37 = vld [vmem:[#allocation96_spill] sm:$0xff] }
 0x318   : > { %v4007_v32 = vadd.f32 %v12530_v21, %v3883_v38  ;;  %v2108_v51 = vrot.slane %v2048_v1, 2  ;;  %v17068_v30 = vrot.slane %v12589_v22, 6  ;;  %v17070_v53 = vrot.slane %v17069_v37, 6 }
 0x319   : > { %17067 = vst [vmem:[#allocation123_spill] sm:$0xff] %v12758_v57  ;;  %v1525_v31 = vadd.f32 %v1489_v23, %v1401_v60  ;;  %v2296_v50 = vmul.f32 %v16934_v35, %v12622_v4  ;;  %v12774_v21 = vmul.f32 %v16934_v35, %v12677_v29  ;;  %v17072_v1 = vrot.slane %v12716_v28, 2 }
 0x31a   : > { %v12768_v14 = vsel %vm5057_vm5, %v17070_v53, %v17068_v30  ;;  %v4131_v40 = vadd.f32 %v12535_v24, %v4007_v32  ;;  %v2232_v38 = vrot.slane %v2172_v59, 2  ;;  %v15322_v37 = vrot.slane %v12758_v57, 2  ;;  %v17074_v30 = vld [vmem:[#allocation34_spill] sm:$0xff] }
 0x31b   : > { %17071 = vst [vmem:[#allocation68_spill] sm:$0xff] %v12774_v21  ;;  %v1738_v22 = vsel %vm1581_vm1, %v1736_v13, %v17072_v1  ;;  %v17073_v53 = vrot.slane %v12601_v18, 6  ;;  %v17075_v23 = vrot.slane %v17074_v30, 6  ;;  %v1650_v54 = vadd.f32 %v1614_v34, %v1525_v31 }
 0x31c   : > { %v1862_v39 = vsel %vm1581_vm1, %v1860_v43, %v15323_v49  ;;  %v2420_v24 = vmul.f32 %v12697_v47, %v16935_v20  ;;  %v4256_v13 = vadd.f32 %v12540_v17, %v4131_v40  ;;  %v17076_v59 = vrot.slane %v12737_v33, 2 }
 0x31d   : > { %v12786_v60 = vsel %vm5057_vm5, %v17075_v23, %v17073_v53  ;;  %v17077_v18 = vrot.slane %v12744_v27, 2  ;;  %v12801_v53 = vld [vmem:[%s7389_s18 + $0x98] sm:$0xff]  ;;  %v1774_v43 = vadd.f32 %v1738_v22, %v1650_v54  ;;  %v2356_v31 = vrot.slane %v2296_v50, 2 }
 0x31e   : > { %v1986_v32 = vsel %vm1581_vm1, %v1984_v19, %v17076_v59  ;;  %v12805_v34 = vmul.f32 %v12801_v53, %v16935_v20  ;;  %v15325_v30 = vrot.slane %v12774_v21, 2  ;;  %v2545_v17 = vmul.f32 %v17007_v8, %v16035_v52 }
 0x31f   : > { %v2110_v1 = vsel %vm1581_vm1, %v2108_v51, %v17077_v18  ;;  %v4380_v40 = vadd.f32 %v12545_v55, %v4256_v13  ;;  %v2234_v19 = vsel %vm1581_vm1, %v2232_v38, %v15322_v37  ;;  %v12816_v51 = vmul.f32 %v17038_v5, %v16035_v52 }
 0x320   : > { %17078 = vst [vmem:[#allocation53_spill] sm:$0xff] %v12805_v34  ;;  %v2669_v23 = vmul.f32 %v17019_v15, %v16419_v12  ;;  %v1898_v54 = vadd.f32 %v1862_v39, %v1774_v43  ;;  %v2481_v50 = vrot.slane %v2420_v24, 3  ;;  %v12822_v22 = vmul.f32 %v17041_v25, %v16419_v12 }
 0x321   : > { %17079 = vst [vmem:[#allocation109_spill] sm:$0xff] %v12816_v51  ;;  %v2793_v55 = vmul.f32 %v17021_v26, %v16422_v44  ;;  %v4504_v13 = vadd.f32 %v12550_v58, %v4380_v40  ;;  %v12830_v59 = vmul.f32 %v17045_v63, %v16422_v44  ;;  %v2917_v39 = vmul.f32 %v17030_v6, %v16423_v2  ;;  %v17086_v40 = vld [vmem:[#allocation72_spill] sm:$0xff] }
 0x322   : > { %17080 = vst [vmem:[#allocation32_spill] sm:$0xff] %v12822_v22  ;;  %v2022_v24 = vadd.f32 %v1986_v32, %v1898_v54  ;;  %v2358_v18 = vsel %vm1581_vm1, %v2356_v31, %v15325_v30  ;;  %v2605_v43 = vrot.slane %v2545_v17, 3  ;;  %v12839_v37 = vmul.f32 %v17048_v3, %v16423_v2  ;;  %v12847_v54 = vld [vmem:[%s7389_s18 + $0x110] sm:$0xff] }
 0x323   : > { %17081 = vst [vmem:[#allocation99_spill] sm:$0xff] %v12830_v59  ;;  %v4628_v58 = vadd.f32 %v12555_v42, %v4504_v13  ;;  %v2729_v49 = vrot.slane %v2669_v23, 3  ;;  %v3041_v38 = vmul.f32 %v12751_v41, %v16425_v7  ;;  %v2853_v32 = vrot.slane %v2793_v55, 3  ;;  %17083 = vst [vmem:[#allocation124_spill] sm:$0xff] %v12847_v54 }
 0x324   : > { %17082 = vst [vmem:[#allocation133_spill] sm:$0xff] %v12839_v37  ;;  %v2146_v57 = vadd.f32 %v2110_v1, %v2022_v24  ;;  %v12851_v31 = vmul.f32 %v12847_v54, %v16425_v7  ;;  %v2977_v13 = vrot.slane %v2917_v39, 3  ;;  %v17085_v30 = vrot.slane %v12605_v61, 6 }
 0x325   : > { %v4752_v17 = vadd.f32 %v12560_v48, %v4628_v58  ;;  %v17087_v1 = vrot.slane %v17086_v40, 6  ;;  %v17088_v6 = vrot.slane %v12805_v34, 3  ;;  %v3165_v7 = vmul.f32 %v16946_v16, %v12622_v4  ;;  %v17089_v48 = vld [vmem:[#allocation98_spill] sm:$0xff] }
 0x326   : > { %17084 = vst [vmem:[#allocation127_spill] sm:$0xff] %v12851_v31  ;;  %v2270_v55 = vadd.f32 %v2234_v19, %v2146_v57  ;;  %v3101_v42 = vrot.slane %v3041_v38, 3  ;;  %v12870_v61 = vmul.f32 %v16946_v16, %v12677_v29  ;;  %v17090_v40 = vrot.slane %v12609_v10, 6 }
 0x327   : > { %v5707_v24 = vsel %vm5057_vm5, %v17087_v1, %v17085_v30  ;;  %v2483_v21 = vsel %vm2450_vm2, %v2481_v50, %v17088_v6  ;;  %v4876_v58 = vadd.f32 %v17089_v48, %v4752_v17  ;;  %v17091_v30 = vld [vmem:[#allocation65_spill] sm:$0xff]  ;;  %v17093_v50 = vrot.slane %v12816_v51, 3  ;;  %v17095_v48 = vld [vmem:[#allocation111_spill] sm:$0xff] }
 0x328   : > { %v17092_v57 = vrot.slane %v17091_v30, 6  ;;  %v2394_v1 = vadd.f32 %v2358_v18, %v2270_v55  ;;  %v17094_v17 = vrot.slane %v12822_v22, 3  ;;  %v17096_v23 = vrot.slane %v12830_v59, 3 }
 0x329   : > { %v2607_v6 = vsel %vm2450_vm2, %v2605_v43, %v17093_v50  ;;  %v5000_v39 = vadd.f32 %v17095_v48, %v4876_v58  ;;  %v17097_v10 = vrot.slane %v12839_v37, 3  ;;  %v3225_v43 = vrot.slane %v3165_v7, 3  ;;  %v17101_v50 = vld [vmem:[#allocation101_spill] sm:$0xff]  ;;  %v17106_v37 = vld [vmem:[#allocation59_spill] sm:$0xff] }
 0x32a   : > { %v5831_v19 = vsel %vm5057_vm5, %v17092_v57, %v17090_v40  ;;  %v2731_v38 = vsel %vm2450_vm2, %v2729_v49, %v17094_v17  ;;  %v2855_v34 = vsel %vm2450_vm2, %v2853_v32, %v17096_v23  ;;  %v17098_v40 = vld [vmem:[#allocation52_spill] sm:$0xff]  ;;  %v2519_v55 = vadd.f32 %v2483_v21, %v2394_v1  ;;  %v17100_v49 = vld [vmem:[#allocation55_spill] sm:$0xff] }
 0x32b   : > { %v2979_v30 = vsel %vm2450_vm2, %v2977_v13, %v17097_v10  ;;  %v3289_v18 = vmul.f32 %v12697_v47, %v17098_v40  ;;  %v12894_v57 = vmul.f32 %v12801_v53, %v17098_v40  ;;  %v3414_v58 = vmul.f32 %v17007_v8, %v17100_v49  ;;  %v17104_v21 = vld [vmem:[#allocation56_spill] sm:$0xff] }
 0x32c   : > { %v5125_v17 = vadd.f32 %v17101_v50, %v5000_v39  ;;  %v17102_v32 = vrot.slane %v12851_v31, 3  ;;  %v12905_v48 = vmul.f32 %v17038_v5, %v17100_v49  ;;  %v2643_v7 = vadd.f32 %v2607_v6, %v2519_v55  ;;  %v17107_v50 = vld [vmem:[#allocation112_spill] sm:$0xff]  ;;  %v17112_v49 = vld [vmem:[#allocation114_spill] sm:$0xff] }
 0x32d   : > { %17099 = vst [vmem:[#allocation130_spill] sm:$0xff] %v12894_v57  ;;  %v3538_v1 = vmul.f32 %v17019_v15, %v17104_v21  ;;  %v12911_v10 = vmul.f32 %v17041_v25, %v17104_v21  ;;  %v3662_v39 = vmul.f32 %v17021_v26, %v17106_v37  ;;  %v12921_v13 = vld [vmem:[%s7389_s18 + $0xf0] sm:$0xff]  ;;  %v3474_v51 = vrot.slane %v3414_v58, 4 }
 0x32e   : > { %v3103_v23 = vsel %vm2450_vm2, %v3101_v42, %v17102_v32  ;;  %17103 = vst [vmem:[#allocation145_spill] sm:$0xff] %v12905_v48  ;;  %v5249_v31 = vadd.f32 %v17107_v50, %v5125_v17  ;;  %v3350_v42 = vrot.slane %v3289_v18, 4  ;;  %v12918_v32 = vmul.f32 %v17045_v63, %v17106_v37  ;;  %17109 = vst [vmem:[#allocation139_spill] sm:$0xff] %v12921_v13  ;;  %v17110_v6 = vld [vmem:[#allocation60_spill] sm:$0xff]  ;;  %v17113_v50 = vld [vmem:[#allocation62_spill] sm:$0xff] }
 0x32f   : > { %17105 = vst [vmem:[#allocation131_spill] sm:$0xff] %v12911_v10  ;;  %v3786_v55 = vmul.f32 %v12921_v13, %v17110_v6  ;;  %v2767_v59 = vadd.f32 %v2731_v38, %v2643_v7  ;;  %v12928_v21 = vmul.f32 %v17048_v3, %v17110_v6  ;;  %v3910_v37 = vmul.f32 %v12751_v41, %v17113_v50 }
 0x330   : > { %17108 = vst [vmem:[#allocation136_spill] sm:$0xff] %v12918_v32  ;;  %v5373_v17 = vadd.f32 %v17112_v49, %v5249_v31  ;;  %v12936_v40 = vmul.f32 %v12847_v54, %v17113_v50  ;;  %v3598_v38 = vrot.slane %v3538_v1, 4  ;;  %v15344_v7 = vrot.slane %v12911_v10, 4  ;;  %v17129_v10 = vld [vmem:[#allocation77_spill] sm:$0xff] }
 0x331   : > { %17111 = vst [vmem:[#allocation140_spill] sm:$0xff] %v12928_v21  ;;  %v2891_v16 = vadd.f32 %v2855_v34, %v2767_v59  ;;  %v3722_v58 = vrot.slane %v3662_v39, 4  ;;  %v15343_v3 = vrot.slane %v12918_v32, 4  ;;  %v3846_v6 = vrot.slane %v3786_v55, 4  ;;  %v17117_v59 = vld [vmem:[#allocation63_spill] sm:$0xff] }
 0x332   : > { %17114 = vst [vmem:[#allocation146_spill] sm:$0xff] %v12936_v40  ;;  %v5497_v22 = vadd.f32 %v12768_v14, %v5373_v17  ;;  %v15342_v31 = vrot.slane %v12928_v21, 4  ;;  %v17115_v18 = vrot.slane %v12870_v61, 3  ;;  %v17116_v50 = vrot.slane %v12894_v57, 4 }
 0x333   : > { %v3015_v49 = vadd.f32 %v2979_v30, %v2891_v16  ;;  %v4034_v1 = vmul.f32 %v17117_v59, %v12622_v4  ;;  %v3970_v14 = vrot.slane %v3910_v37, 4  ;;  %v15346_v17 = vrot.slane %v12936_v40, 4  ;;  %v13009_v40 = vld [vmem:[%s7389_s18 + $0xf8] sm:$0xff] }
 0x334   : > { %v3227_v2 = vsel %vm2450_vm2, %v3225_v43, %v17115_v18  ;;  %v3352_v34 = vsel %vm3319_vm3, %v3350_v42, %v17116_v50  ;;  %v5621_v39 = vadd.f32 %v12786_v60, %v5497_v22  ;;  %v12954_v55 = vmul.f32 %v17117_v59, %v12677_v29  ;;  %v17120_v18 = vld [vmem:[#allocation66_spill] sm:$0xff]  ;;  %17127 = vst [vmem:[#allocation134_spill] sm:$0xff] %v13009_v40 }
 0x335   : > { %v3139_v16 = vadd.f32 %v3103_v23, %v3015_v49  ;;  %v17119_v30 = vrot.slane %v12905_v48, 4  ;;  %v3600_v42 = vsel %vm3319_vm3, %v3598_v38, %v15344_v7  ;;  %v4158_v50 = vmul.f32 %v12697_v47, %v17120_v18  ;;  %v17123_v7 = vld [vmem:[#allocation73_spill] sm:$0xff] }
 0x336   : > { %17118 = vst [vmem:[#allocation126_spill] sm:$0xff] %v12954_v55  ;;  %v5745_v60 = vadd.f32 %v5707_v24, %v5621_v39  ;;  %v3724_v37 = vsel %vm3319_vm3, %v3722_v58, %v15343_v3  ;;  %v3848_v22 = vsel %vm3319_vm3, %v3846_v6, %v15342_v31  ;;  %v12972_v23 = vmul.f32 %v12801_v53, %v17120_v18  ;;  %v17122_v31 = vld [vmem:[#allocation70_spill] sm:$0xff] }
 0x337   : > { %v3476_v43 = vsel %vm3319_vm3, %v3474_v51, %v17119_v30  ;;  %v3263_v51 = vadd.f32 %v3227_v2, %v3139_v16  ;;  %v4094_v49 = vrot.slane %v4034_v1, 4  ;;  %v17121_v30 = vld [vmem:[#allocation69_spill] sm:$0xff]  ;;  %v3972_v58 = vsel %vm3319_vm3, %v3970_v14, %v15346_v17 }
 0x338   : > { %v4283_v38 = vmul.f32 %v17007_v8, %v17121_v30  ;;  %v12978_v24 = vmul.f32 %v17038_v5, %v17121_v30  ;;  %v5869_v39 = vadd.f32 %v5831_v19, %v5745_v60  ;;  %v4407_v3 = vmul.f32 %v17019_v15, %v17122_v31  ;;  %v12995_v19 = vld [vmem:[%s14562_s2] ss:$0 sm:$0xff] }
 0x339   : > { %v3388_v2 = vadd.f32 %v3352_v34, %v3263_v51  ;;  %v4219_v1 = vrot.slane %v4158_v50, 5  ;;  %v12988_v16 = vmul.f32 %v17041_v25, %v17122_v31  ;;  %v4531_v21 = vmul.f32 %v17021_v26, %v17123_v7  ;;  %17124 = vst [vmem:[#allocation142_spill] sm:$0xff] %v12995_v19  ;;  %v17126_v50 = vld [vmem:[#allocation74_spill] sm:$0xff] }
 0x33a   : > { %v12998_v14 = vadd.f32 %v12995_v19, %v5869_v39  ;;  %v13003_v34 = vmul.f32 %v17045_v63, %v17123_v7  ;;  %v4655_v51 = vmul.f32 %v12921_v13, %v17126_v50  ;;  %v4343_v6 = vrot.slane %v4283_v38, 5  ;;  %v17131_v26 = vld [vmem:[#allocation78_spill] sm:$0xff] }
 0x33b   : > { %v3512_v17 = vadd.f32 %v3476_v43, %v3388_v2  ;;  %v13013_v32 = vmul.f32 %v13009_v40, %v17126_v50  ;;  %v4467_v60 = vrot.slane %v4407_v3, 5  ;;  %v4779_v7 = vmul.f32 %v12751_v41, %v17129_v10 }
 0x33c   : > { %17125 = vst [vmem:[#allocation143_spill] sm:$0xff] %v12998_v14  ;;  %v5931_v39 = vsel %vm5897_vm6, %v12998_v14, 0.0  ;;  %v13021_v31 = vmul.f32 %v12847_v54, %v17129_v10  ;;  %v4591_v2 = vrot.slane %v4531_v21, 5  ;;  %v4903_v50 = vmul.f32 %v17131_v26, %v12622_v4  ;;  %v17133_v14 = vld [vmem:[#allocation79_spill] sm:$0xff]  ;;  %v17135_v21 = vld [vmem:[#allocation82_spill] sm:$0xff] }
 0x33d   : > { %17128 = vst [vmem:[#allocation132_spill] sm:$0xff] %v13013_v32  ;;  %5932 = vadd.xlane.f32.xlu1 %v5931_v39  ;;  %v3636_v43 = vadd.f32 %v3600_v42, %v3512_v17  ;;  %v4715_v57 = vrot.slane %v4655_v51, 5  ;;  %v13029_v3 = vmul.f32 %v17131_v26, %v12677_v29  ;;  %v5027_v30 = vmul.f32 %v12697_v47, %v17133_v14 }
 0x33e   : > { %17130 = vst [vmem:[#allocation147_spill] sm:$0xff] %v13021_v31  ;;  %v13036_v17 = vmul.f32 %v12801_v53, %v17133_v14  ;;  %v5152_v42 = vmul.f32 %v17007_v8, %v17135_v21  ;;  %v4839_v38 = vrot.slane %v4779_v7, 5  ;;  %v4963_v48 = vrot.slane %v4903_v50, 5 }
 0x33f   : > { %17132 = vst [vmem:[#allocation15_spill] sm:$0xff] %v13029_v3  ;;  %v3760_v10 = vadd.f32 %v3724_v37, %v3636_v43  ;;  %v13043_v26 = vmul.f32 %v17038_v5, %v17135_v21  ;;  %v5088_v37 = vrot.slane %v5027_v30, 6  ;;  %v17137_v39 = vrot.slane %v12954_v55, 4  ;;  %v17141_v55 = vld [vmem:[#allocation84_spill] sm:$0xff] }
 0x340   : > { %17134 = vst [vmem:[#allocation17_spill] sm:$0xff] %v13036_v17  ;;  %v17138_v8 = vrot.slane %v12972_v23, 5  ;;  %v17139_v50 = vrot.slane %v12978_v24, 5  ;;  %v5212_v47 = vrot.slane %v5152_v42, 6  ;;  %v5276_v21 = vmul.f32 %v17019_v15, %v17141_v55 }
 0x341   : > { %17136 = vst [vmem:[#allocation141_spill] sm:$0xff] %v13043_v26  ;;  %v3884_v18 = vadd.f32 %v3848_v22, %v3760_v10  ;;  %v4096_v14 = vsel %vm3319_vm3, %v4094_v49, %v17137_v39  ;;  %v17140_v10 = vrot.slane %v12988_v16, 5  ;;  %v15370_v43 = vrot.slane %v13043_v26, 6 }
 0x342   : > { %v4221_v7 = vsel %vm4188_vm4, %v4219_v1, %v17138_v8  ;;  %v4345_v51 = vsel %vm4188_vm4, %v4343_v6, %v17139_v50  ;;  %v17142_v49 = vrot.slane %v13003_v34, 5  ;;  %v17143_v1 = vrot.slane %v13013_v32, 5  ;;  %v17166_v32 = vld [vmem:[#allocation80_spill] sm:$0xff] }
 0x343   : > { %v4469_v22 = vsel %vm4188_vm4, %v4467_v60, %v17140_v10  ;;  %v4008_v30 = vadd.f32 %v3972_v58, %v3884_v18  ;;  %v17144_v6 = vrot.slane %v13021_v31, 5  ;;  %v13073_v18 = vmul.f32 %v17041_v25, %v17141_v55  ;;  %v13084_v10 = vld [vmem:[%s7389_s18 + $0xd8] sm:$0xff] }
 0x344   : > { %v4593_v39 = vsel %vm4188_vm4, %v4591_v2, %v17142_v49  ;;  %v4717_v8 = vsel %vm4188_vm4, %v4715_v57, %v17143_v1  ;;  %v17146_v60 = vrot.slane %v13029_v3, 5  ;;  %v17147_v42 = vrot.slane %v13036_v17, 6  ;;  %17148 = vst [vmem:[#allocation28_spill] sm:$0xff] %v13084_v10  ;;  %v17149_v57 = vld [vmem:[#allocation85_spill] sm:$0xff]  ;;  %v17151_v1 = vld [vmem:[#allocation87_spill] sm:$0xff]  ;;  %v17155_v17 = vld [vmem:[#allocation92_spill] sm:$0xff] }
 0x345   : > { %v4841_v50 = vsel %vm4188_vm4, %v4839_v38, %v17144_v6  ;;  %17145 = vst [vmem:[#allocation35_spill] sm:$0xff] %v13073_v18  ;;  %v4132_v58 = vadd.f32 %v4096_v14, %v4008_v30  ;;  %v5400_v49 = vmul.f32 %v13084_v10, %v17149_v57  ;;  %v13090_v38 = vmul.f32 %v17045_v63, %v17149_v57  ;;  %v17153_v30 = vld [vmem:[#allocation90_spill] sm:$0xff]  ;;  %v17159_v3 = vld [vmem:[#allocation4_spill] sm:$0xff] }
 0x346   : > { %v4965_v15 = vsel %vm4188_vm4, %v4963_v48, %v17146_v60  ;;  %v13081_v2 = vsel %vm5057_vm5, %v5088_v37, %v17147_v42  ;;  %v5524_v14 = vmul.f32 %v12921_v13, %v17151_v1  ;;  %v13096_v48 = vmul.f32 %v13009_v40, %v17151_v1 }
 0x347   : > { %17150 = vst [vmem:[#allocation36_spill] sm:$0xff] %v13090_v38  ;;  %v5648_v37 = vmul.f32 %v12751_v41, %v17153_v30  ;;  %v4257_v6 = vadd.f32 %v4221_v7, %v4132_v58  ;;  %v13103_v60 = vsel %vm5057_vm5, %v5212_v47, %v15370_v43  ;;  %v5336_v42 = vrot.slane %v5276_v21, 6  ;;  %v17157_v7 = vld [vmem:[#allocation2_spill] sm:$0xff]  ;;  %v17158_v21 = vld [vmem:[#allocation3_spill] sm:$0xff] }
 0x348   : > { %17152 = vst [vmem:[#allocation40_spill] sm:$0xff] %v13096_v48  ;;  %v13107_v63 = vmul.f32 %v12847_v54, %v17153_v30  ;;  %v5772_v10 = vmul.f32 %v17155_v17, %v12622_v4  ;;  %v13114_v41 = vmul.f32 %v17155_v17, %v12677_v29  ;;  %v425_v58 = vmul.f32 %v12801_v53, %v17157_v7  ;;  %v13126_v53 = vld [vmem:[%s7389_s18 + $0xe0] sm:$0xff] }
 0x349   : > { %v4381_v47 = vadd.f32 %v4345_v51, %v4257_v6  ;;  %v5460_v43 = vrot.slane %v5400_v49, 6  ;;  %v461_v26 = vmul.f32 %v17038_v5, %v17158_v21  ;;  %v497_v30 = vmul.f32 %v17041_v25, %v17159_v3  ;;  %17160 = vst [vmem:[#allocation129_spill] sm:$0xff] %v13126_v53  ;;  %v17161_v51 = vld [vmem:[#allocation5_spill] sm:$0xff]  ;;  %v17162_v6 = vld [vmem:[#allocation7_spill] sm:$0xff]  ;;  %v17167_v21 = vld [vmem:[#allocation10_spill] sm:$0xff] }
 0x34a   : > { %17154 = vst [vmem:[#allocation125_spill] sm:$0xff] %v13107_v63  ;;  %17156 = vst [vmem:[#allocation46_spill] sm:$0xff] %v13114_v41  ;;  %v5584_v1 = vrot.slane %v5524_v14, 6  ;;  %v5708_v31 = vrot.slane %v5648_v37, 6  ;;  %v533_v5 = vmul.f32 %v13126_v53, %v17161_v51  ;;  %v5832_v49 = vrot.slane %v5772_v10, 6  ;;  %v17163_v14 = vld [vmem:[#allocation6_spill] sm:$0xff] }
 0x34b   : > { %v4505_v17 = vadd.f32 %v4469_v22, %v4381_v47  ;;  %v477_v57 = vadd.f32 %v461_v26, %v425_v58  ;;  %v569_v13 = vmul.f32 %v13009_v40, %v17162_v6  ;;  %v17164_v3 = vld [vmem:[#allocation75_spill] sm:$0xff]  ;;  %v17165_v47 = vld [vmem:[#allocation8_spill] sm:$0xff]  ;;  %v17168_v10 = vrot.slane %v13073_v18, 6 }
 0x34c   : > { %v684_v4 = vmul.f32 %v17164_v3, %v17163_v14  ;;  %v809_v26 = vmul.f32 %v17166_v32, %v17165_v47  ;;  %v13138_v58 = vld [vmem:[%s7389_s18 + $0xd0] sm:$0x3f]  ;;  %v17169_v53 = vrot.slane %v13090_v38, 6  ;;  %v17170_v14 = vrot.slane %v13096_v48, 6 }
 0x34d   : > { %v4629_v37 = vadd.f32 %v4593_v39, %v4505_v17  ;;  %v513_v22 = vadd.f32 %v497_v30, %v477_v57  ;;  %v933_v7 = vmul.f32 %v13138_v58, %v17167_v21  ;;  %v5338_v25 = vsel %vm5057_vm5, %v5336_v42, %v17168_v10  ;;  %v17171_v39 = vld [vmem:[#allocation102_spill] sm:$0xff]  ;;  %v13154_v47 = vld [vmem:[%s7389_s18 + $0x130] sm:$0x3f]  ;;  %v17173_v21 = vld [vmem:[#allocation11_spill] sm:$0xff] }
 0x34e   : > { %v5462_v40 = vsel %vm5057_vm5, %v5460_v43, %v17169_v53  ;;  %v5586_v17 = vsel %vm5057_vm5, %v5584_v1, %v17170_v14  ;;  %v1057_v57 = vmul.f32 %v17171_v39, %v17044_v45  ;;  %17172 = vst [vmem:[#allocation115_spill] sm:$0xff] %v13154_v47  ;;  %v605_v51 = vmul.f32 %v12847_v54, %v17173_v21  ;;  %v17174_v42 = vld [vmem:[#allocation30_spill] sm:$0xff]  ;;  %v17178_v21 = vld [vmem:[#allocation33_spill] sm:$0xff] }
 0x34f   : > { %v4753_v30 = vadd.f32 %v4717_v8, %v4629_v37  ;;  %v549_v6 = vadd.f32 %v533_v5, %v513_v22  ;;  %v1181_v10 = vmul.f32 %v17174_v42, %v17047_v46  ;;  %v17175_v38 = vrot.slane %v13107_v63, 6  ;;  %v17177_v8 = vld [vmem:[#allocation12_spill] sm:$0xff]  ;;  %v17179_v46 = vld [vmem:[#allocation18_spill] sm:$0xff] }
 0x350   : > { %v17176_v53 = vrot.slane %v13114_v41, 6  ;;  %v641_v14 = vmul.f32 %v17177_v8, %v12677_v29  ;;  %v746_v37 = vrot.slane %v684_v4, 1  ;;  %v870_v45 = vrot.slane %v809_v26, 1  ;;  %v17180_v63 = vld [vmem:[#allocation20_spill] sm:$0xff] }
 0x351   : > { %v5710_v43 = vsel %vm5057_vm5, %v5708_v31, %v17175_v38  ;;  %v4877_v5 = vadd.f32 %v4841_v50, %v4753_v30  ;;  %v585_v22 = vadd.f32 %v569_v13, %v549_v6  ;;  %v994_v54 = vrot.slane %v933_v7, 1  ;;  %v17181_v50 = vld [vmem:[#allocation105_spill] sm:$0xff] }
 0x352   : > { %v13166_v1 = vsel %vm5057_vm5, %v5832_v49, %v17176_v53  ;;  %v1118_v48 = vrot.slane %v1057_v57, 1  ;;  %v1305_v18 = vmul.f32 %v17179_v46, %v17178_v21  ;;  %v1429_v31 = vmul.f32 %v17180_v63, %v13154_v47  ;;  %v17183_v57 = vld [vmem:[#allocation31_spill] sm:$0xff] }
 0x353   : > { %v1553_v38 = vmul.f32 %v17164_v3, %v17057_v11  ;;  %v5001_v49 = vadd.f32 %v4965_v15, %v4877_v5  ;;  %v621_v53 = vadd.f32 %v605_v51, %v585_v22  ;;  %v1242_v41 = vrot.slane %v1181_v10, 1  ;;  %v17184_v10 = vld [vmem:[#allocation108_spill] sm:$0xff] }
 0x354   : > { %v1678_v4 = vmul.f32 %v17166_v32, %v17059_v56  ;;  %v17182_v13 = vrot.slane %v17181_v50, 1  ;;  %v1802_v6 = vmul.f32 %v13138_v58, %v17061_v0  ;;  %v1926_v26 = vmul.f32 %v17171_v39, %v17063_v9  ;;  %v17186_v56 = vld [vmem:[#allocation106_spill] sm:$0xff] }
 0x355   : > { %v2050_v30 = vmul.f32 %v17174_v42, %v17183_v57  ;;  %v5126_v15 = vadd.f32 %v13081_v2, %v5001_v49  ;;  %v657_v51 = vadd.f32 %v641_v14, %v621_v53  ;;  %v17185_v5 = vrot.slane %v17184_v10, 1  ;;  %v17190_v2 = vld [vmem:[#allocation118_spill] sm:$0xff] }
 0x356   : > { %v747_v7 = vsel %vm712_vm0, %v17182_v13, %v746_v37  ;;  %v17187_v50 = vrot.slane %v17186_v56, 1  ;;  %v17188_v13 = vld [vmem:[#allocation117_spill] sm:$0xff]  ;;  %v1366_v63 = vrot.slane %v1305_v18, 1  ;;  %v1490_v9 = vrot.slane %v1429_v31, 1 }
 0x357   : > { %v871_v22 = vsel %vm712_vm0, %v17185_v5, %v870_v45  ;;  %v17189_v11 = vrot.slane %v17188_v13, 1  ;;  %v1615_v46 = vrot.slane %v1553_v38, 2  ;;  %v5250_v57 = vadd.f32 %v13103_v60, %v5126_v15 }
 0x358   : > { %v995_v37 = vsel %vm712_vm0, %v17187_v50, %v994_v54  ;;  %v782_v29 = vadd.f32 %v747_v7, %v657_v51  ;;  %v17191_v14 = vrot.slane %v17190_v2, 1  ;;  %v1739_v53 = vrot.slane %v1678_v4, 2  ;;  %v17196_v7 = vld [vmem:[#allocation113_spill] sm:$0xff] }
 0x359   : > { %v1119_v0 = vsel %vm712_vm0, %v17189_v11, %v1118_v48  ;;  %v1863_v45 = vrot.slane %v1802_v6, 2  ;;  %v1987_v10 = vrot.slane %v1926_v26, 2  ;;  %v2111_v56 = vrot.slane %v2050_v30, 2  ;;  %v17192_v48 = vld [vmem:[#allocation119_spill] sm:$0xff] }
 0x35a   : > { %v1243_v49 = vsel %vm712_vm0, %v17191_v14, %v1242_v41  ;;  %v2174_v54 = vmul.f32 %v16669_v36, %v17178_v21  ;;  %v5374_v5 = vadd.f32 %v5338_v25, %v5250_v57  ;;  %v906_v50 = vadd.f32 %v871_v22, %v782_v29  ;;  %v17194_v41 = vld [vmem:[#allocation122_spill] sm:$0xff] }
 0x35b   : > { %v2298_v11 = vmul.f32 %v16934_v35, %v13154_v47  ;;  %v2422_v18 = vmul.f32 %v17164_v3, %v16935_v20  ;;  %v17193_v60 = vrot.slane %v17192_v48, 1  ;;  %v17195_v38 = vrot.slane %v17194_v41, 1  ;;  %v17208_v48 = vld [vmem:[#allocation52_spill] sm:$0xff]  ;;  %v13255_v41 = vld [vmem:[%s7389_s18 + $0xb8] sm:$0x3f] }
 0x35c   : > { %v17197_v6 = vrot.slane %v17196_v7, 2  ;;  %v2547_v29 = vmul.f32 %v17166_v32, %v16035_v52  ;;  %v5498_v25 = vadd.f32 %v5462_v40, %v5374_v5  ;;  %v1030_v26 = vadd.f32 %v995_v37, %v906_v50  ;;  %v17206_v5 = vld [vmem:[#allocation123_spill] sm:$0xff]  ;;  %17209 = vst [vmem:[#allocation42_spill] sm:$0xff] %v13255_v41 }
 0x35d   : > { %v1367_v31 = vsel %vm712_vm0, %v17193_v60, %v1366_v63  ;;  %v1491_v4 = vsel %vm712_vm0, %v17195_v38, %v1490_v9  ;;  %v17198_v3 = vrot.slane %v12716_v28, 2  ;;  %v2671_v63 = vmul.f32 %v13138_v58, %v16419_v12  ;;  %v17210_v38 = vld [vmem:[#allocation55_spill] sm:$0xff] }
 0x35e   : > { %v1616_v21 = vsel %vm1581_vm1, %v17197_v6, %v1615_v46  ;;  %v17199_v30 = vrot.slane %v12727_v62, 2  ;;  %v17200_v15 = vrot.slane %v12737_v33, 2  ;;  %v17201_v32 = vrot.slane %v12744_v27, 2  ;;  %v17202_v33 = vld [vmem:[#allocation45_spill] sm:$0xff]  ;;  %v17204_v27 = vld [vmem:[#allocation48_spill] sm:$0xff] }
 0x35f   : > { %v1740_v57 = vsel %vm1581_vm1, %v17198_v3, %v1739_v53  ;;  %v2235_v28 = vrot.slane %v2174_v54, 2  ;;  %v5622_v51 = vadd.f32 %v5586_v17, %v5498_v25  ;;  %v1154_v22 = vadd.f32 %v1119_v0, %v1030_v26  ;;  %v13241_v53 = vld [vmem:[%s7389_s18 + $0x118] sm:$0x3f]  ;;  %v17211_v6 = vld [vmem:[#allocation56_spill] sm:$0xff] }
 0x360   : > { %v1864_v9 = vsel %vm1581_vm1, %v17199_v30, %v1863_v45  ;;  %v13229_v46 = vsel %vm1581_vm1, %v17200_v15, %v1987_v10  ;;  %v13234_v40 = vsel %vm1581_vm1, %v17201_v32, %v2111_v56  ;;  %v2359_v37 = vrot.slane %v2298_v11, 2  ;;  %17203 = vst [vmem:[#allocation37_spill] sm:$0xff] %v13241_v53  ;;  %v17205_v17 = vld [vmem:[#allocation49_spill] sm:$0xff]  ;;  %v17212_v25 = vld [vmem:[#allocation68_spill] sm:$0xff] }
 0x361   : > { %v2484_v13 = vrot.slane %v2422_v18, 3  ;;  %v2608_v62 = vrot.slane %v2547_v29, 3  ;;  %v2795_v2 = vmul.f32 %v17171_v39, %v16422_v44  ;;  %v2919_v14 = vmul.f32 %v17174_v42, %v17202_v33  ;;  %v7182_v18 = vld [vmem:[%s7389_s18 + $0xa0] sm:$0x3f]  ;;  %v17216_v32 = vld [vmem:[#allocation109_spill] sm:$0xff] }
 0x362   : > { %v3043_v45 = vmul.f32 %v13241_v53, %v17204_v27  ;;  %v5746_v10 = vadd.f32 %v5710_v43, %v5622_v51  ;;  %v1278_v56 = vadd.f32 %v1243_v49, %v1154_v22  ;;  %v2732_v54 = vrot.slane %v2671_v63, 3  ;;  %v17214_v63 = vld [vmem:[#allocation53_spill] sm:$0xff]  ;;  %v17301_v27 = vld [vmem:[#allocation134_spill] sm:$0xff] }
 0x363   : > { %v3167_v0 = vmul.f32 %v17205_v17, %v13154_v47  ;;  %v17207_v50 = vrot.slane %v17206_v5, 2  ;;  %v3291_v60 = vmul.f32 %v7182_v18, %v17208_v48  ;;  %v3416_v7 = vmul.f32 %v13255_v41, %v17210_v38  ;;  %v17284_v17 = vld [vmem:[#allocation5_spill] sm:$0xff]  ;;  %v17302_v44 = vld [vmem:[#allocation46_spill] sm:$0xff] }
 0x364   : > { %v3540_v43 = vmul.f32 %v13138_v58, %v17211_v6  ;;  %v5870_v49 = vadd.f32 %v13166_v1, %v5746_v10  ;;  %v1402_v29 = vadd.f32 %v1367_v31, %v1278_v56  ;;  %v17213_v26 = vrot.slane %v17212_v25, 2  ;;  %v17219_v10 = vld [vmem:[#allocation32_spill] sm:$0xff] }
 0x365   : > { %v13250_v11 = vsel %vm1581_vm1, %v17207_v50, %v2235_v28  ;;  %v17215_v30 = vrot.slane %v17214_v63, 3  ;;  %v17217_v28 = vrot.slane %v17216_v32, 3  ;;  %v2856_v22 = vrot.slane %v2795_v2, 3 }
 0x366   : > { %v13265_v3 = vsel %vm1581_vm1, %v17213_v26, %v2359_v37  ;;  %v2980_v5 = vrot.slane %v2919_v14, 3  ;;  %v3104_v50 = vrot.slane %v3043_v45, 3  ;;  %v13278_v1 = vadd.f32 %v12995_v19, %v5870_v49  ;;  %v17222_v45 = vld [vmem:[#allocation60_spill] sm:$0xff] }
 0x367   : > { %v13270_v15 = vsel %vm2450_vm2, %v17215_v30, %v2484_v13  ;;  %v13275_v51 = vsel %vm2450_vm2, %v17217_v28, %v2608_v62  ;;  %v1526_v31 = vadd.f32 %v1491_v4, %v1402_v29  ;;  %v17220_v37 = vrot.slane %v17219_v10, 3  ;;  %v17221_v30 = vld [vmem:[#allocation59_spill] sm:$0xff]  ;;  %v17223_v4 = vld [vmem:[#allocation62_spill] sm:$0xff] }
 0x368   : > { %17218 = vst [vmem:[#allocation135_spill] sm:$0xff] %v13278_v1  ;;  %v3228_v25 = vrot.slane %v3167_v0, 3  ;;  %v3353_v13 = vrot.slane %v3291_v60, 4  ;;  %v3477_v26 = vrot.slane %v3416_v7, 4  ;;  %v3601_v63 = vrot.slane %v3540_v43, 4  ;;  %v17226_v60 = vld [vmem:[#allocation133_spill] sm:$0xff] }
 0x369   : > { %v13283_v56 = vsel %vm2450_vm2, %v17220_v37, %v2732_v54  ;;  %v3664_v62 = vmul.f32 %v17171_v39, %v17221_v30  ;;  %v5934_v2 = vsel %vm5897_vm6, %v13278_v1, 0.0  ;;  %v1651_v14 = vadd.f32 %v1616_v21, %v1526_v31  ;;  %v17224_v54 = vld [vmem:[#allocation99_spill] sm:$0xff] }
 0x36a   : > { %v3788_v49 = vmul.f32 %v17174_v42, %v17222_v45  ;;  %v3912_v29 = vmul.f32 %v13241_v53, %v17223_v4  ;;  %5935 = vadd.xlane.f32.xlu0 %v5934_v2  ;;  %v17225_v32 = vrot.slane %v17224_v54, 3  ;;  %v17227_v7 = vrot.slane %v17226_v60, 3  ;;  %v17228_v28 = vld [vmem:[#allocation127_spill] sm:$0xff]  ;;  %v17232_v60 = vld [vmem:[#allocation69_spill] sm:$0xff] }
 0x36b   : > { %v17229_v10 = vrot.slane %v17228_v28, 3  ;;  %v4036_v31 = vmul.f32 %v17117_v59, %v13154_v47  ;;  %v1775_v37 = vadd.f32 %v1740_v57, %v1651_v14  ;;  %v17230_v2 = vrot.slane %v12870_v61, 3  ;;  %v17237_v61 = vld [vmem:[#allocation70_spill] sm:$0xff]  ;;  %v17246_v45 = vld [vmem:[#allocation79_spill] sm:$0xff] }
 0x36c   : > { %v13296_v0 = vsel %vm2450_vm2, %v17225_v32, %v2856_v22  ;;  %v13301_v43 = vsel %vm2450_vm2, %v17227_v7, %v2980_v5  ;;  %v17231_v22 = vld [vmem:[#allocation66_spill] sm:$0xff]  ;;  %v4285_v5 = vmul.f32 %v13255_v41, %v17232_v60  ;;  %v3725_v57 = vrot.slane %v3664_v62, 4 }
 0x36d   : > { %v13306_v21 = vsel %vm2450_vm2, %v17229_v10, %v3104_v50  ;;  %v13313_v54 = vsel %vm2450_vm2, %v17230_v2, %v3228_v25  ;;  %v4160_v32 = vmul.f32 %v7182_v18, %v17231_v22  ;;  %v17233_v7 = vld [vmem:[#allocation130_spill] sm:$0xff]  ;;  %v17235_v50 = vld [vmem:[#allocation145_spill] sm:$0xff]  ;;  %v4409_v25 = vmul.f32 %v13138_v58, %v17237_v61  ;;  %v17238_v2 = vld [vmem:[#allocation131_spill] sm:$0xff] }
 0x36e   : > { %v17234_v1 = vrot.slane %v17233_v7, 4  ;;  %v17236_v10 = vrot.slane %v17235_v50, 4  ;;  %v1899_v14 = vadd.f32 %v1864_v9, %v1775_v37  ;;  %v17239_v22 = vrot.slane %v17238_v2, 4  ;;  %v17241_v50 = vld [vmem:[#allocation74_spill] sm:$0xff] }
 0x36f   : > { %v3849_v60 = vrot.slane %v3788_v49, 4  ;;  %v3973_v7 = vrot.slane %v3912_v29, 4  ;;  %v4097_v4 = vrot.slane %v4036_v31, 4  ;;  %v4222_v9 = vrot.slane %v4160_v32, 5  ;;  %v17243_v2 = vld [vmem:[#allocation78_spill] sm:$0xff] }
 0x370   : > { %v13321_v28 = vsel %vm3319_vm3, %v17234_v1, %v3353_v13  ;;  %v13326_v19 = vsel %vm3319_vm3, %v17236_v10, %v3477_v26  ;;  %v13333_v59 = vsel %vm3319_vm3, %v17239_v22, %v3601_v63  ;;  %v17240_v1 = vld [vmem:[#allocation73_spill] sm:$0xff]  ;;  %v4657_v26 = vmul.f32 %v17174_v42, %v17241_v50  ;;  %v17244_v22 = vld [vmem:[#allocation136_spill] sm:$0xff] }
 0x371   : > { %v4533_v13 = vmul.f32 %v17171_v39, %v17240_v1  ;;  %v17242_v10 = vld [vmem:[#allocation77_spill] sm:$0xff]  ;;  %v2023_v61 = vadd.f32 %v13229_v46, %v1899_v14  ;;  %v4346_v37 = vrot.slane %v4285_v5, 5  ;;  %v4905_v63 = vmul.f32 %v17243_v2, %v13154_v47  ;;  %v17247_v50 = vld [vmem:[#allocation140_spill] sm:$0xff]  ;;  %v17249_v5 = vld [vmem:[#allocation82_spill] sm:$0xff] }
 0x372   : > { %v4781_v62 = vmul.f32 %v13241_v53, %v17242_v10  ;;  %v17245_v49 = vrot.slane %v17244_v22, 4  ;;  %v4470_v31 = vrot.slane %v4409_v25, 5  ;;  %v5029_v30 = vmul.f32 %v7182_v18, %v17246_v45  ;;  %v17250_v2 = vld [vmem:[#allocation146_spill] sm:$0xff]  ;;  %v17281_v45 = vld [vmem:[#allocation35_spill] sm:$0xff] }
 0x373   : > { %v4594_v1 = vrot.slane %v4533_v13, 5  ;;  %v2147_v42 = vadd.f32 %v13234_v40, %v2023_v61  ;;  %v17248_v10 = vrot.slane %v17247_v50, 4  ;;  %v4718_v32 = vrot.slane %v4657_v26, 5  ;;  %v17252_v25 = vld [vmem:[#allocation126_spill] sm:$0xff] }
 0x374   : > { %v13347_v29 = vsel %vm3319_vm3, %v17245_v49, %v3725_v57  ;;  %v5154_v14 = vmul.f32 %v13255_v41, %v17249_v5  ;;  %v17251_v22 = vrot.slane %v17250_v2, 4  ;;  %v17253_v13 = vrot.slane %v17252_v25, 4  ;;  %v17262_v25 = vld [vmem:[#allocation147_spill] sm:$0xff] }
 0x375   : > { %v13354_v46 = vsel %vm3319_vm3, %v17248_v10, %v3849_v60  ;;  %v4842_v40 = vrot.slane %v4781_v62, 5  ;;  %v5278_v60 = vmul.f32 %v13138_v58, %v17141_v55  ;;  %v2271_v61 = vadd.f32 %v13250_v11, %v2147_v42 }
 0x376   : > { %v13361_v57 = vsel %vm3319_vm3, %v17251_v22, %v3973_v7  ;;  %v13366_v18 = vsel %vm3319_vm3, %v17253_v13, %v4097_v4  ;;  %v17254_v50 = vrot.slane %v12972_v23, 5  ;;  %v17255_v7 = vrot.slane %v12978_v24, 5 }
 0x377   : > { %v4966_v2 = vrot.slane %v4905_v63, 5  ;;  %v17256_v4 = vrot.slane %v12988_v16, 5  ;;  %v17257_v49 = vrot.slane %v13003_v34, 5  ;;  %v5091_v23 = vrot.slane %v5029_v30, 6  ;;  %v17261_v34 = vld [vmem:[#allocation2_spill] sm:$0xff] }
 0x378   : > { %v13374_v26 = vsel %vm4188_vm4, %v17254_v50, %v4222_v9  ;;  %v13379_v10 = vsel %vm4188_vm4, %v17255_v7, %v4346_v37  ;;  %v17258_v9 = vld [vmem:[#allocation85_spill] sm:$0xff]  ;;  %v2395_v24 = vadd.f32 %v13265_v3, %v2271_v61  ;;  %v17259_v37 = vld [vmem:[#allocation132_spill] sm:$0xff]  ;;  %v5215_v63 = vrot.slane %v5154_v14, 6  ;;  %v13410_v3 = vld [vmem:[%s7389_s18 + $0x100] sm:$0x3f] }
 0x379   : > { %v13384_v62 = vsel %vm4188_vm4, %v17256_v4, %v4470_v31  ;;  %v13389_v11 = vsel %vm4188_vm4, %v17257_v49, %v4594_v1  ;;  %v5402_v42 = vmul.f32 %v17171_v39, %v17258_v9  ;;  %v17260_v22 = vrot.slane %v17259_v37, 5  ;;  %v13400_v31 = vld [vmem:[%s7389_s18 + $0xa8] sm:$0xff]  ;;  %17265 = vst [vmem:[#allocation120_spill] sm:$0xff] %v13410_v3 }
 0x37a   : > { %v426_v1 = vmul.f32 %v13400_v31, %v17261_v34  ;;  %v17263_v30 = vrot.slane %v17262_v25, 5  ;;  %v5339_v39 = vrot.slane %v5278_v60, 6  ;;  %v17266_v61 = vld [vmem:[#allocation87_spill] sm:$0xff]  ;;  %v2520_v7 = vadd.f32 %v13270_v15, %v2395_v24  ;;  %v13425_v25 = vld [vmem:[%s7389_s18 + $0xc0] sm:$0xff] }
 0x37b   : > { %v13397_v16 = vsel %vm4188_vm4, %v17260_v22, %v4718_v32  ;;  %v5526_v50 = vmul.f32 %v13410_v3, %v17266_v61  ;;  %v17267_v32 = vld [vmem:[#allocation90_spill] sm:$0xff]  ;;  %v17268_v4 = vld [vmem:[#allocation15_spill] sm:$0xff]  ;;  %v17271_v22 = vld [vmem:[#allocation92_spill] sm:$0xff]  ;;  %v5463_v9 = vrot.slane %v5402_v42, 6  ;;  %v17282_v6 = vrot.slane %v17281_v45, 6 }
 0x37c   : > { %v13407_v13 = vsel %vm4188_vm4, %v17263_v30, %v4842_v40  ;;  %v5650_v14 = vmul.f32 %v13241_v53, %v17267_v32  ;;  %v17269_v49 = vrot.slane %v17268_v4, 5  ;;  %v5774_v40 = vmul.f32 %v17271_v22, %v13154_v47  ;;  %v17272_v60 = vld [vmem:[#allocation3_spill] sm:$0xff]  ;;  %v13430_v3 = vld [vmem:[%s7389_s18 + $0xb0] sm:$0xff]  ;;  %v17275_v47 = vld [vmem:[#allocation17_spill] sm:$0xff] }
 0x37d   : > { %17264 = vst [vmem:[#allocation128_spill] sm:$0xff] %v13407_v13  ;;  %v462_v30 = vmul.f32 %v13425_v25, %v17272_v60  ;;  %v427_v15 = vmul.f32 %v13430_v3, %v17261_v34  ;;  %v13435_v24 = vld [vmem:[%s7389_s18 + $0xc8] sm:$0xff]  ;;  %v17273_v4 = vld [vmem:[#allocation4_spill] sm:$0xff]  ;;  %v2644_v32 = vadd.f32 %v13275_v51, %v2520_v7  ;;  %v17276_v53 = vrot.slane %v17275_v47, 6  ;;  %v17278_v61 = vld [vmem:[#allocation141_spill] sm:$0xff] }
 0x37e   : > { %v13420_v37 = vsel %vm4188_vm4, %v17269_v49, %v4966_v2  ;;  %v463_v2 = vmul.f32 %v13435_v24, %v17272_v60  ;;  %v17274_v49 = vld [vmem:[#allocation28_spill] sm:$0xff]  ;;  %v17279_v55 = vrot.slane %v17278_v61, 6  ;;  %v13455_v60 = vsel %vm5057_vm5, %v17282_v6, %v5339_v39  ;;  %v17285_v51 = vld [vmem:[#allocation139_spill] sm:$0xff]  ;;  %v17291_v39 = vld [vmem:[#allocation129_spill] sm:$0xff] }
 0x37f   : > { %17270 = vst [vmem:[#allocation54_spill] sm:$0xff] %v13420_v37  ;;  %v498_v22 = vmul.f32 %v17274_v49, %v17273_v4  ;;  %v13445_v42 = vsel %vm5057_vm5, %v17276_v53, %v5091_v23  ;;  %v478_v34 = vadd.f32 %v462_v30, %v426_v1  ;;  %17283 = vst [vmem:[#allocation58_spill] sm:$0xff] %v13455_v60  ;;  %v5587_v38 = vrot.slane %v5526_v50, 6  ;;  %v13461_v23 = vld [vmem:[%s7389_s18 + $0x138] sm:$0xff]  ;;  %v17288_v1 = vld [vmem:[#allocation36_spill] sm:$0xff] }
 0x380   : > { %17277 = vst [vmem:[#allocation107_spill] sm:$0xff] %v13445_v42  ;;  %v13450_v5 = vsel %vm5057_vm5, %v17279_v55, %v5215_v63  ;;  %v5711_v48 = vrot.slane %v5650_v14, 6  ;;  %v534_v7 = vmul.f32 %v17285_v51, %v17284_v17  ;;  %v2768_v47 = vadd.f32 %v13283_v56, %v2644_v32  ;;  %v17286_v42 = vld [vmem:[#allocation7_spill] sm:$0xff]  ;;  %v17292_v14 = vld [vmem:[#allocation104_spill] sm:$0xff] }
 0x381   : > { %17280 = vst [vmem:[#allocation83_spill] sm:$0xff] %v13450_v5  ;;  %v5835_v53 = vrot.slane %v5774_v40, 6  ;;  %v514_v61 = vadd.f32 %v498_v22, %v478_v34  ;;  %v17287_v55 = vld [vmem:[#allocation103_spill] sm:$0xff]  ;;  %v17289_v30 = vrot.slane %v17288_v1, 6  ;;  %v479_v6 = vadd.f32 %v463_v2, %v427_v15  ;;  %v17294_v22 = vld [vmem:[#allocation6_spill] sm:$0xff] }
 0x382   : > { %v570_v63 = vmul.f32 %v17287_v55, %v17286_v42  ;;  %v499_v50 = vmul.f32 %v17291_v39, %v17273_v4  ;;  %v17293_v60 = vld [vmem:[#allocation11_spill] sm:$0xff]  ;;  %v2892_v32 = vadd.f32 %v13296_v0, %v2768_v47  ;;  %v685_v34 = vmul.f32 %v13400_v31, %v17294_v22  ;;  %v17298_v4 = vld [vmem:[#allocation8_spill] sm:$0xff] }
 0x383   : > { %v13468_v45 = vsel %vm5057_vm5, %v17289_v30, %v5463_v9  ;;  %v606_v56 = vmul.f32 %v17293_v60, %v17292_v14  ;;  %v550_v40 = vadd.f32 %v534_v7, %v514_v61  ;;  %v13479_v1 = vmul.f32 %v13430_v3, %v17294_v22  ;;  %v17295_v9 = vld [vmem:[#allocation40_spill] sm:$0xff] }
 0x384   : > { %17290 = vst [vmem:[#allocation86_spill] sm:$0xff] %v13468_v45  ;;  %v17296_v30 = vrot.slane %v17295_v9, 6  ;;  %v642_v2 = vmul.f32 %v17177_v8, %v13461_v23  ;;  %v810_v14 = vmul.f32 %v13425_v25, %v17298_v4  ;;  %v13492_v0 = vmul.f32 %v13435_v24, %v17298_v4  ;;  %v17299_v9 = vld [vmem:[#allocation125_spill] sm:$0xff] }
 0x385   : > { %v3016_v7 = vadd.f32 %v13301_v43, %v2892_v32  ;;  %v586_v47 = vadd.f32 %v570_v63, %v550_v40  ;;  %v748_v61 = vrot.slane %v685_v34, 1  ;;  %v15411_v45 = vrot.slane %v13479_v1, 1  ;;  %v17305_v34 = vld [vmem:[#allocation121_spill] sm:$0xff] }
 0x386   : > { %v13484_v15 = vsel %vm5057_vm5, %v17296_v30, %v5587_v38  ;;  %v17300_v5 = vrot.slane %v17299_v9, 6  ;;  %v13502_v30 = vld [vmem:[%s7389_s18 + $0x140] sm:$0xff]  ;;  %v535_v37 = vmul.f32 %v17301_v27, %v17284_v17  ;;  %v872_v33 = vrot.slane %v810_v14, 1 }
 0x387   : > { %17297 = vst [vmem:[#allocation88_spill] sm:$0xff] %v13484_v15  ;;  %v515_v15 = vadd.f32 %v499_v50, %v479_v6  ;;  %v3140_v13 = vadd.f32 %v13306_v21, %v3016_v7  ;;  %v17303_v43 = vrot.slane %v17302_v44, 6  ;;  %v622_v32 = vadd.f32 %v606_v56, %v586_v47  ;;  %v17306_v21 = vld [vmem:[#allocation10_spill] sm:$0xff]  ;;  %v17307_v47 = vld [vmem:[#allocation13_spill] sm:$0xff] }
 0x388   : > { %v13499_v38 = vsel %vm5057_vm5, %v17300_v5, %v5711_v48  ;;  %v15410_v40 = vrot.slane %v13492_v0, 1  ;;  %v17304_v48 = vld [vmem:[#allocation124_spill] sm:$0xff]  ;;  %v13517_v6 = vmul.f32 %v17293_v60, %v17305_v34  ;;  %v750_v17 = vsel %vm712_vm0, %v748_v61, %v15411_v45 }
 0x389   : > { %v13510_v63 = vsel %vm5057_vm5, %v17303_v43, %v5835_v53  ;;  %v571_v5 = vmul.f32 %v17304_v48, %v17286_v42  ;;  %v934_v44 = vmul.f32 %v17274_v49, %v17306_v21  ;;  %v3264_v53 = vadd.f32 %v13313_v54, %v3140_v13 }
 0x38a   : > { %v13527_v50 = vmul.f32 %v17177_v8, %v13502_v30  ;;  %v658_v56 = vadd.f32 %v642_v2, %v622_v32  ;;  %v13531_v42 = vmul.f32 %v17291_v39, %v17306_v21  ;;  %v551_v60 = vadd.f32 %v535_v37, %v515_v15 }
 0x38b   : > { %v874_v14 = vsel %vm712_vm0, %v872_v33, %v15410_v40  ;;  %v996_v7 = vrot.slane %v934_v44, 1  ;;  %v1058_v61 = vmul.f32 %v17285_v51, %v17307_v47  ;;  %v3389_v54 = vadd.f32 %v13321_v28, %v3264_v53  ;;  %v17309_v33 = vld [vmem:[#allocation16_spill] sm:$0xff]  ;;  %v17311_v40 = vld [vmem:[#allocation18_spill] sm:$0xff] }
 0x38c   : > { %v783_v13 = vadd.f32 %v750_v17, %v658_v56  ;;  %v15416_v8 = vrot.slane %v13531_v42, 1  ;;  %v13542_v2 = vmul.f32 %v17301_v27, %v17307_v47  ;;  %v13546_v37 = vmul.f32 %v13255_v41, %v17294_v22 }
 0x38d   : > { %v1120_v15 = vrot.slane %v1058_v61, 1  ;;  %v1182_v9 = vmul.f32 %v17287_v55, %v17309_v33  ;;  %v13552_v43 = vmul.f32 %v17304_v48, %v17309_v33  ;;  %v3513_v28 = vadd.f32 %v13326_v19, %v3389_v54  ;;  %v13563_v61 = vld [vmem:[%s7389_s18 + $0x120] sm:$0xff]  ;;  %v17312_v54 = vld [vmem:[#allocation20_spill] sm:$0xff] }
 0x38e   : > { %17308 = vst [vmem:[#allocation89_spill] sm:$0xff] %v13542_v2  ;;  %v907_v32 = vadd.f32 %v874_v14, %v783_v13  ;;  %v998_v17 = vsel %vm712_vm0, %v996_v7, %v15416_v8  ;;  %v15414_v44 = vrot.slane %v13542_v2, 1  ;;  %v13559_v53 = vadd.f32 %v571_v5, %v551_v60 }
 0x38f   : > { %17310 = vst [vmem:[#allocation148_spill] sm:$0xff] %v13552_v43  ;;  %v1244_v22 = vrot.slane %v1182_v9, 1  ;;  %v15415_v56 = vrot.slane %v13552_v43, 1  ;;  %v1306_v45 = vmul.f32 %v13563_v61, %v17311_v40  ;;  %v3637_v41 = vadd.f32 %v13333_v59, %v3513_v28 }
 0x390   : > { %v1031_v19 = vadd.f32 %v998_v17, %v907_v32  ;;  %v1122_v14 = vsel %vm712_vm0, %v1120_v15, %v15414_v44  ;;  %v13573_v7 = vmul.f32 %v17311_v40, %v17305_v34  ;;  %v1430_v13 = vmul.f32 %v17312_v54, %v13461_v23  ;;  %v17314_v32 = vld [vmem:[#allocation21_spill] sm:$0xff] }
 0x391   : > { %v1246_v5 = vsel %vm712_vm0, %v1244_v22, %v15415_v56  ;;  %v1368_v60 = vrot.slane %v1306_v45, 1  ;;  %v13582_v59 = vmul.f32 %v17312_v54, %v13502_v30  ;;  %v3761_v9 = vadd.f32 %v13347_v29, %v3637_v41  ;;  %v17316_v22 = vld [vmem:[#allocation25_spill] sm:$0xff] }
 0x392   : > { %v1155_v28 = vadd.f32 %v1122_v14, %v1031_v19  ;;  %v15422_v15 = vrot.slane %v13573_v7, 1  ;;  %v1554_v34 = vmul.f32 %v13400_v31, %v17314_v32  ;;  %v1492_v17 = vrot.slane %v1430_v13, 1 }
 0x393   : > { %17313 = vst [vmem:[#allocation64_spill] sm:$0xff] %v13582_v59  ;;  %v15420_v44 = vrot.slane %v13582_v59, 1  ;;  %v13591_v45 = vmul.f32 %v13430_v3, %v17314_v32  ;;  %v1679_v56 = vmul.f32 %v13425_v25, %v17316_v22  ;;  %v3885_v8 = vadd.f32 %v13354_v46, %v3761_v9 }
 0x394   : > { %v1279_v43 = vadd.f32 %v1246_v5, %v1155_v28  ;;  %v1370_v41 = vsel %vm712_vm0, %v1368_v60, %v15422_v15  ;;  %v1617_v29 = vrot.slane %v1554_v34, 2  ;;  %v13605_v13 = vmul.f32 %v13435_v24, %v17316_v22  ;;  %v17317_v5 = vld [vmem:[#allocation26_spill] sm:$0xff] }
 0x395   : > { %17315 = vst [vmem:[#allocation81_spill] sm:$0xff] %v13591_v45  ;;  %v1494_v19 = vsel %vm712_vm0, %v1492_v17, %v15420_v44  ;;  %v15421_v14 = vrot.slane %v13591_v45, 2  ;;  %v1741_v2 = vrot.slane %v1679_v56, 2  ;;  %v4009_v32 = vadd.f32 %v13361_v57, %v3885_v8  ;;  %v17318_v17 = vld [vmem:[#allocation27_spill] sm:$0xff] }
 0x396   : > { %v1403_v46 = vadd.f32 %v1370_v41, %v1279_v43  ;;  %v1803_v9 = vmul.f32 %v17274_v49, %v17317_v5  ;;  %v13612_v60 = vmul.f32 %v17291_v39, %v17317_v5  ;;  %v15429_v34 = vrot.slane %v13605_v13, 2  ;;  %v17319_v45 = vld [vmem:[#allocation31_spill] sm:$0xff] }
 0x397   : > { %v1619_v28 = vsel %vm1581_vm1, %v1617_v29, %v15421_v14  ;;  %v1927_v44 = vmul.f32 %v17285_v51, %v17318_v17  ;;  %v13622_v57 = vmul.f32 %v17301_v27, %v17318_v17  ;;  %v4133_v8 = vadd.f32 %v13366_v18, %v4009_v32 }
 0x398   : > { %v1527_v43 = vadd.f32 %v1494_v19, %v1403_v46  ;;  %v1865_v56 = vrot.slane %v1803_v9, 2  ;;  %v15428_v41 = vrot.slane %v13612_v60, 2  ;;  %v1743_v29 = vsel %vm1581_vm1, %v1741_v2, %v15429_v34 }
 0x399   : > { %v1989_v14 = vrot.slane %v1927_v44, 2  ;;  %v15427_v15 = vrot.slane %v13622_v57, 2  ;;  %v2051_v59 = vmul.f32 %v17287_v55, %v17319_v45  ;;  %v4258_v17 = vadd.f32 %v13374_v26, %v4133_v8  ;;  %v13646_v55 = vld [vmem:[%s7389_s18 + $0x128] sm:$0xff] }
 0x39a   : > { %v1652_v5 = vadd.f32 %v1619_v28, %v1527_v43  ;;  %v1867_v18 = vsel %vm1581_vm1, %v1865_v56, %v15428_v41  ;;  %v13638_v32 = vmul.f32 %v17304_v48, %v17319_v45  ;;  %v2175_v19 = vmul.f32 %v13563_v61, %v16669_v36 }
 0x39b   : > { %v1991_v2 = vsel %vm1581_vm1, %v1989_v14, %v15427_v15  ;;  %v2113_v44 = vrot.slane %v2051_v59, 2  ;;  %v13650_v26 = vmul.f32 %v13646_v55, %v16669_v36  ;;  %v4382_v46 = vadd.f32 %v13379_v10, %v4258_v17 }
 0x39c   : > { %17320 = vst [vmem:[#allocation138_spill] sm:$0xff] %v13638_v32  ;;  %v1776_v9 = vadd.f32 %v1743_v29, %v1652_v5  ;;  %v15431_v28 = vrot.slane %v13638_v32, 2  ;;  %v2299_v8 = vmul.f32 %v16934_v35, %v13461_v23  ;;  %v2237_v43 = vrot.slane %v2175_v19, 2 }
 0x39d   : > { %17321 = vst [vmem:[#allocation94_spill] sm:$0xff] %v13650_v26  ;;  %v15430_v59 = vrot.slane %v13650_v26, 2  ;;  %v13659_v14 = vmul.f32 %v16934_v35, %v13502_v30  ;;  %v2423_v56 = vmul.f32 %v13400_v31, %v16935_v20  ;;  %v4506_v15 = vadd.f32 %v13384_v62, %v4382_v46 }
 0x39e   : > { %v751_v10 = vrot.slane %v13546_v37, 1  ;;  %v1900_v5 = vadd.f32 %v1867_v18, %v1776_v9  ;;  %v2361_v17 = vrot.slane %v2299_v8, 2  ;;  %v2115_v29 = vsel %vm1581_vm1, %v2113_v44, %v15431_v28  ;;  %v17326_v9 = vld [vmem:[#allocation44_spill] sm:$0xff] }
 0x39f   : > { %17322 = vst [vmem:[#allocation50_spill] sm:$0xff] %v13659_v14  ;;  %v2239_v19 = vsel %vm1581_vm1, %v2237_v43, %v15430_v59  ;;  %v15436_v41 = vrot.slane %v13659_v14, 2  ;;  %v13674_v34 = vmul.f32 %v13430_v3, %v16935_v20  ;;  %v4630_v62 = vadd.f32 %v13389_v11, %v4506_v15 }
 0x3a0   : > { %v2024_v46 = vadd.f32 %v1991_v2, %v1900_v5  ;;  %v2548_v37 = vmul.f32 %v13425_v25, %v16035_v52  ;;  %v13681_v18 = vmul.f32 %v13435_v24, %v16035_v52  ;;  %v2486_v44 = vrot.slane %v2423_v56, 3 }
 0x3a1   : > { %17323 = vst [vmem:[#allocation67_spill] sm:$0xff] %v13674_v34  ;;  %v2672_v8 = vmul.f32 %v17274_v49, %v16419_v12  ;;  %v13688_v43 = vmul.f32 %v17291_v39, %v16419_v12  ;;  %v4754_v11 = vadd.f32 %v13397_v16, %v4630_v62  ;;  %v13693_v15 = vmul.f32 %v13138_v58, %v17298_v4  ;;  %v17327_v12 = vld [vmem:[#allocation128_spill] sm:$0xff] }
 0x3a2   : > { %17324 = vst [vmem:[#allocation61_spill] sm:$0xff] %v13681_v18  ;;  %v2148_v2 = vadd.f32 %v2115_v29, %v2024_v46  ;;  %v2363_v56 = vsel %vm1581_vm1, %v2361_v17, %v15436_v41  ;;  %v2610_v5 = vrot.slane %v2548_v37, 3  ;;  %v15438_v59 = vrot.slane %v13681_v18, 3  ;;  %v13711_v46 = vld [vmem:[%s7389_s18 + $0x108] sm:$0xff]  ;;  %v17330_v37 = vld [vmem:[#allocation45_spill] sm:$0xff]  ;;  %v17345_v18 = vld [vmem:[#allocation56_spill] sm:$0xff] }
 0x3a3   : > { %17325 = vst [vmem:[#allocation95_spill] sm:$0xff] %v13688_v43  ;;  %v2734_v28 = vrot.slane %v2672_v8, 3  ;;  %v2796_v26 = vmul.f32 %v17285_v51, %v17326_v9  ;;  %v4878_v52 = vadd.f32 %v17327_v12, %v4754_v11  ;;  %v13705_v4 = vmul.f32 %v17301_v27, %v17326_v9  ;;  %v17346_v9 = vld [vmem:[#allocation86_spill] sm:$0xff] }
 0x3a4   : > { %v2272_v32 = vadd.f32 %v2239_v19, %v2148_v2  ;;  %v17329_v29 = vrot.slane %v13674_v34, 3  ;;  %v2920_v8 = vmul.f32 %v13711_v46, %v17330_v37  ;;  %v13717_v12 = vmul.f32 %v17304_v48, %v17330_v37  ;;  %v17331_v19 = vld [vmem:[#allocation54_spill] sm:$0xff]  ;;  %v17333_v34 = vld [vmem:[#allocation48_spill] sm:$0xff] }
 0x3a5   : > { %17328 = vst [vmem:[#allocation57_spill] sm:$0xff] %v13705_v4  ;;  %v2858_v62 = vrot.slane %v2796_v26, 3  ;;  %v5002_v11 = vadd.f32 %v17331_v19, %v4878_v52  ;;  %v623_v2 = vadd.f32 %v13517_v6, %v13559_v53  ;;  %v15441_v16 = vrot.slane %v13705_v4, 3  ;;  %v17334_v6 = vld [vmem:[#allocation107_spill] sm:$0xff] }
 0x3a6   : > { %v2488_v17 = vsel %vm2450_vm2, %v2486_v44, %v17329_v29  ;;  %v2396_v41 = vadd.f32 %v2363_v56, %v2272_v32  ;;  %v17332_v44 = vrot.slane %v13479_v1, 1  ;;  %v2612_v29 = vsel %vm2450_vm2, %v2610_v5, %v15438_v59 }
 0x3a7   : > { %v3044_v48 = vmul.f32 %v13563_v61, %v17333_v34  ;;  %v13735_v52 = vmul.f32 %v13646_v55, %v17333_v34  ;;  %v5127_v53 = vadd.f32 %v17334_v6, %v5002_v11  ;;  %v17335_v56 = vrot.slane %v13688_v43, 3  ;;  %v17338_v11 = vld [vmem:[#allocation83_spill] sm:$0xff]  ;;  %v17339_v6 = vld [vmem:[#allocation52_spill] sm:$0xff] }
 0x3a8   : > { %v13726_v26 = vsel %vm712_vm0, %v17332_v44, %v751_v10  ;;  %v2521_v32 = vadd.f32 %v2488_v17, %v2396_v41  ;;  %v17336_v10 = vld [vmem:[#allocation49_spill] sm:$0xff]  ;;  %v2860_v5 = vsel %vm2450_vm2, %v2858_v62, %v15441_v16  ;;  %v2982_v44 = vrot.slane %v2920_v8, 3  ;;  %v17341_v8 = vld [vmem:[#allocation55_spill] sm:$0xff] }
 0x3a9   : > { %v2736_v1 = vsel %vm2450_vm2, %v2734_v28, %v17335_v56  ;;  %v3168_v19 = vmul.f32 %v17336_v10, %v13461_v23  ;;  %v13749_v34 = vmul.f32 %v17336_v10, %v13502_v30  ;;  %v5251_v41 = vadd.f32 %v17338_v11, %v5127_v53  ;;  %v17343_v10 = vld [vmem:[#allocation58_spill] sm:$0xff] }
 0x3aa   : > { %v2645_v17 = vadd.f32 %v2612_v29, %v2521_v32  ;;  %v3292_v28 = vmul.f32 %v13400_v31, %v17339_v6  ;;  %v13756_v56 = vmul.f32 %v13430_v3, %v17339_v6  ;;  %v3106_v4 = vrot.slane %v3044_v48, 3 }
 0x3ab   : > { %17337 = vst [vmem:[#allocation100_spill] sm:$0xff] %v13749_v34  ;;  %v3417_v16 = vmul.f32 %v13425_v25, %v17341_v8  ;;  %v13763_v59 = vmul.f32 %v13435_v24, %v17341_v8  ;;  %v5375_v53 = vadd.f32 %v17343_v10, %v5251_v41  ;;  %v3230_v32 = vrot.slane %v3168_v19, 3  ;;  %v17349_v41 = vld [vmem:[#allocation59_spill] sm:$0xff] }
 0x3ac   : > { %17340 = vst [vmem:[#allocation47_spill] sm:$0xff] %v13756_v56  ;;  %v2769_v29 = vadd.f32 %v2736_v1, %v2645_v17  ;;  %v15452_v11 = vrot.slane %v13749_v34, 3  ;;  %v17344_v43 = vrot.slane %v13717_v12, 3  ;;  %v3355_v48 = vrot.slane %v3292_v28, 4  ;;  %v17350_v28 = vld [vmem:[#allocation88_spill] sm:$0xff] }
 0x3ad   : > { %17342 = vst [vmem:[#allocation144_spill] sm:$0xff] %v13763_v59  ;;  %v15451_v62 = vrot.slane %v13756_v56, 4  ;;  %v3541_v37 = vmul.f32 %v17274_v49, %v17345_v18  ;;  %v5499_v14 = vadd.f32 %v17346_v9, %v5375_v53  ;;  %v875_v8 = vrot.slane %v13693_v15, 1 }
 0x3ae   : > { %v2984_v6 = vsel %vm2450_vm2, %v2982_v44, %v17344_v43  ;;  %v2893_v20 = vadd.f32 %v2860_v5, %v2769_v29  ;;  %v13777_v1 = vmul.f32 %v17291_v39, %v17345_v18  ;;  %v17348_v10 = vrot.slane %v13735_v52, 3 }
 0x3af   : > { %v3479_v19 = vrot.slane %v3417_v16, 4  ;;  %v15453_v44 = vrot.slane %v13763_v59, 4  ;;  %v3665_v17 = vmul.f32 %v17285_v51, %v17349_v41  ;;  %v5623_v9 = vadd.f32 %v17350_v28, %v5499_v14 }
 0x3b0   : > { %17347 = vst [vmem:[#allocation14_spill] sm:$0xff] %v13777_v1  ;;  %v3108_v43 = vsel %vm2450_vm2, %v3106_v4, %v17348_v10  ;;  %v659_v15 = vadd.f32 %v13527_v50, %v623_v2  ;;  %v3017_v5 = vadd.f32 %v2984_v6, %v2893_v20  ;;  %v3232_v53 = vsel %vm2450_vm2, %v3230_v32, %v15452_v11  ;;  %v17351_v50 = vld [vmem:[#allocation60_spill] sm:$0xff] }
 0x3b1   : > { %v3357_v29 = vsel %vm3319_vm3, %v3355_v48, %v15451_v62  ;;  %v3603_v4 = vrot.slane %v3541_v37, 4  ;;  %v15459_v16 = vrot.slane %v13777_v1, 4  ;;  %v13796_v10 = vmul.f32 %v17301_v27, %v17349_v41  ;;  %v13802_v2 = vld [vmem:[%s7389_s18 + $0x110] sm:$0xff]  ;;  %v17352_v48 = vld [vmem:[#allocation62_spill] sm:$0xff] }
 0x3b2   : > { %v5747_v51 = vadd.f32 %v13499_v38, %v5623_v9  ;;  %v3141_v14 = vadd.f32 %v3108_v43, %v3017_v5  ;;  %v3789_v20 = vmul.f32 %v13711_v46, %v17351_v50  ;;  %v13806_v6 = vmul.f32 %v13802_v2, %v17351_v50  ;;  %v17354_v5 = vld [vmem:[#allocation63_spill] sm:$0xff] }
 0x3b3   : > { %v3481_v37 = vsel %vm3319_vm3, %v3479_v19, %v15453_v44  ;;  %v3727_v32 = vrot.slane %v3665_v17, 4  ;;  %v3913_v28 = vmul.f32 %v13563_v61, %v17352_v48  ;;  %v13815_v38 = vmul.f32 %v13646_v55, %v17352_v48  ;;  %v17356_v44 = vld [vmem:[#allocation66_spill] sm:$0xff] }
 0x3b4   : > { %v5871_v43 = vadd.f32 %v13510_v63, %v5747_v51  ;;  %v3265_v9 = vadd.f32 %v3232_v53, %v3141_v14  ;;  %v4037_v62 = vmul.f32 %v17354_v5, %v13461_v23  ;;  %v13822_v11 = vmul.f32 %v17354_v5, %v13502_v30  ;;  %v17358_v53 = vld [vmem:[#allocation142_spill] sm:$0xff] }
 0x3b5   : > { %17353 = vst [vmem:[#allocation23_spill] sm:$0xff] %v13815_v38  ;;  %v3605_v19 = vsel %vm3319_vm3, %v3603_v4, %v15459_v16  ;;  %v4161_v59 = vmul.f32 %v13400_v31, %v17356_v44  ;;  %v13832_v63 = vmul.f32 %v13430_v3, %v17356_v44  ;;  %v3851_v48 = vrot.slane %v3789_v20, 4  ;;  %v17361_v20 = vld [vmem:[#allocation69_spill] sm:$0xff] }
 0x3b6   : > { %17355 = vst [vmem:[#allocation24_spill] sm:$0xff] %v13822_v11  ;;  %v13835_v51 = vadd.f32 %v17358_v53, %v5871_v43  ;;  %v3390_v14 = vadd.f32 %v3357_v29, %v3265_v9  ;;  %v15467_v5 = vrot.slane %v13806_v6, 4  ;;  %v3975_v56 = vrot.slane %v3913_v28, 4  ;;  %v17363_v53 = vld [vmem:[#allocation70_spill] sm:$0xff] }
 0x3b7   : > { %17357 = vst [vmem:[#allocation71_spill] sm:$0xff] %v13832_v63  ;;  %v15465_v1 = vrot.slane %v13815_v38, 4  ;;  %v4099_v4 = vrot.slane %v4037_v62, 4  ;;  %v15466_v16 = vrot.slane %v13822_v11, 4  ;;  %v4224_v34 = vrot.slane %v4161_v59, 5 }
 0x3b8   : > { %17359 = vst [vmem:[#allocation51_spill] sm:$0xff] %v13835_v51  ;;  %v5937_v17 = vsel %vm5897_vm6, %v13835_v51, 0.0  ;;  %v3514_v50 = vadd.f32 %v3481_v37, %v3390_v14  ;;  %v17360_v43 = vrot.slane %v13796_v10, 4  ;;  %v4286_v28 = vmul.f32 %v13425_v25, %v17361_v20 }
 0x3b9   : > { %5938 = vadd.xlane.f32.xlu1 %v5937_v17  ;;  %v13850_v62 = vmul.f32 %v13435_v24, %v17361_v20  ;;  %v4410_v37 = vmul.f32 %v17274_v49, %v17363_v53  ;;  %v13856_v59 = vmul.f32 %v17291_v39, %v17363_v53  ;;  %v784_v17 = vadd.f32 %v13726_v26, %v659_v15  ;;  %v7193_v15 = vld [vmem:[%s7389_s18 + $0xf0] sm:$0xff] }
 0x3ba   : > { %v3729_v29 = vsel %vm3319_vm3, %v3727_v32, %v17360_v43  ;;  %v3638_v9 = vadd.f32 %v3605_v19, %v3514_v50  ;;  %v17364_v14 = vrot.slane %v13492_v0, 1  ;;  %v3853_v43 = vsel %vm3319_vm3, %v3851_v48, %v15467_v5  ;;  %v17371_v5 = vld [vmem:[#allocation79_spill] sm:$0xff] }
 0x3bb   : > { %17362 = vst [vmem:[#allocation41_spill] sm:$0xff] %v13850_v62  ;;  %v3977_v50 = vsel %vm3319_vm3, %v3975_v56, %v15465_v1  ;;  %v4101_v19 = vsel %vm3319_vm3, %v4099_v4, %v15466_v16  ;;  %v17365_v51 = vrot.slane %v13832_v63, 5  ;;  %v4348_v0 = vrot.slane %v4286_v28, 5  ;;  %v17367_v1 = vld [vmem:[#allocation74_spill] sm:$0xff] }
 0x3bc   : > { %v876_v32 = vsel %vm712_vm0, %v17364_v14, %v875_v8  ;;  %v3762_v44 = vadd.f32 %v3729_v29, %v3638_v9  ;;  %v17366_v14 = vld [vmem:[#allocation73_spill] sm:$0xff]  ;;  %v4472_v56 = vrot.slane %v4410_v37, 5  ;;  %v4658_v4 = vmul.f32 %v13711_v46, %v17367_v1 }
 0x3bd   : > { %v4226_v26 = vsel %vm4188_vm4, %v4224_v34, %v17365_v51  ;;  %v4534_v53 = vmul.f32 %v7193_v15, %v17366_v14  ;;  %v13879_v48 = vmul.f32 %v17301_v27, %v17366_v14  ;;  %v13886_v34 = vmul.f32 %v13802_v2, %v17367_v1  ;;  %v17368_v51 = vld [vmem:[#allocation77_spill] sm:$0xff]  ;;  %v17369_v27 = vld [vmem:[#allocation78_spill] sm:$0xff] }
 0x3be   : > { %v3886_v29 = vadd.f32 %v3853_v43, %v3762_v44  ;;  %v4782_v28 = vmul.f32 %v13563_v61, %v17368_v51  ;;  %v13892_v16 = vmul.f32 %v13646_v55, %v17368_v51  ;;  %v4906_v44 = vmul.f32 %v17369_v27, %v13461_v23  ;;  %v17374_v14 = vld [vmem:[#allocation82_spill] sm:$0xff] }
 0x3bf   : > { %v13898_v43 = vmul.f32 %v17369_v27, %v13502_v30  ;;  %v5030_v9 = vmul.f32 %v13400_v31, %v17371_v5  ;;  %v13904_v8 = vmul.f32 %v13430_v3, %v17371_v5  ;;  %v17373_v63 = vrot.slane %v13850_v62, 5 }
 0x3c0   : > { %v4010_v37 = vadd.f32 %v3977_v50, %v3886_v29  ;;  %v4596_v1 = vrot.slane %v4534_v53, 5  ;;  %v5155_v11 = vmul.f32 %v13425_v25, %v17374_v14  ;;  %v13913_v50 = vmul.f32 %v13435_v24, %v17374_v14 }
 0x3c1   : > { %17370 = vst [vmem:[#allocation96_spill] sm:$0xff] %v13898_v43  ;;  %17372 = vst [vmem:[#allocation34_spill] sm:$0xff] %v13904_v8  ;;  %v4350_v51 = vsel %vm4188_vm4, %v4348_v0, %v17373_v63  ;;  %v17376_v27 = vrot.slane %v13856_v59, 5  ;;  %v15482_v3 = vrot.slane %v13879_v48, 5  ;;  %v4720_v5 = vrot.slane %v4658_v4, 5 }
 0x3c2   : > { %17375 = vst [vmem:[#allocation72_spill] sm:$0xff] %v13913_v50  ;;  %v4134_v29 = vadd.f32 %v4101_v19, %v4010_v37  ;;  %v15481_v62 = vrot.slane %v13886_v34, 5  ;;  %v4844_v38 = vrot.slane %v4782_v28, 5  ;;  %v15480_v63 = vrot.slane %v13892_v16, 5 }
 0x3c3   : > { %v4474_v31 = vsel %vm4188_vm4, %v4472_v56, %v17376_v27  ;;  %v4968_v53 = vrot.slane %v4906_v44, 5  ;;  %v15479_v25 = vrot.slane %v13898_v43, 5  ;;  %v5093_v20 = vrot.slane %v5030_v9, 6  ;;  %v17377_v56 = vld [vmem:[#allocation84_spill] sm:$0xff]  ;;  %v17378_v44 = vld [vmem:[#allocation85_spill] sm:$0xff] }
 0x3c4   : > { %v4259_v0 = vadd.f32 %v4226_v26, %v4134_v29  ;;  %v15478_v24 = vrot.slane %v13904_v8, 6  ;;  %v5217_v19 = vrot.slane %v5155_v11, 6  ;;  %v5279_v4 = vmul.f32 %v17274_v49, %v17377_v56 }
 0x3c5   : > { %v13928_v28 = vmul.f32 %v17291_v39, %v17377_v56  ;;  %v908_v26 = vadd.f32 %v876_v32, %v784_v17  ;;  %v4598_v9 = vsel %vm4188_vm4, %v4596_v1, %v15482_v3  ;;  %v4722_v11 = vsel %vm4188_vm4, %v4720_v5, %v15481_v62  ;;  %v17382_v62 = vld [vmem:[#allocation37_spill] sm:$0xff]  ;;  %v17383_v3 = vld [vmem:[#allocation115_spill] sm:$0xff] }
 0x3c6   : > { %v4383_v27 = vadd.f32 %v4350_v51, %v4259_v0  ;;  %v5403_v29 = vmul.f32 %v7193_v15, %v17378_v44  ;;  %v4846_v49 = vsel %vm4188_vm4, %v4844_v38, %v15480_v63  ;;  %v4970_v39 = vsel %vm4188_vm4, %v4968_v53, %v15479_v25  ;;  %v13951_v51 = vld [vmem:[%s7389_s18 + $0x148] sm:$0x3f]  ;;  %v7195_v53 = vld [vmem:[%s7389_s18 + $0xf8] sm:$0xff]  ;;  %v17384_v15 = vld [vmem:[#allocation90_spill] sm:$0xff] }
 0x3c7   : > { %v5095_v17 = vsel %vm5057_vm5, %v5093_v20, %v15478_v24  ;;  %v17379_v1 = vrot.slane %v13913_v50, 6  ;;  %v5341_v5 = vrot.slane %v5279_v4, 6  ;;  %v17380_v20 = vld [vmem:[#allocation87_spill] sm:$0xff] }
 0x3c8   : > { %v4507_v37 = vadd.f32 %v4474_v31, %v4383_v27  ;;  %v13954_v31 = vld [vmem:[%s7389_s18 + $0xe8] sm:$0x3f]  ;;  %v13960_v27 = vmul.f32 %v7195_v53, %v17378_v44  ;;  %v5527_v24 = vmul.f32 %v13711_v46, %v17380_v20  ;;  %v13968_v25 = vmul.f32 %v13802_v2, %v17380_v20  ;;  %v17387_v20 = vld [vmem:[#allocation42_spill] sm:$0xff] }
 0x3c9   : > { %v5219_v32 = vsel %vm5057_vm5, %v5217_v19, %v17379_v1  ;;  %v936_v38 = vmul.f32 %v13954_v31, %v17306_v21  ;;  %v17381_v19 = vld [vmem:[#allocation120_spill] sm:$0xff]  ;;  %v5465_v1 = vrot.slane %v5403_v29, 6  ;;  %v1184_v21 = vmul.f32 %v17382_v62, %v17309_v33 }
 0x3ca   : > { %v4631_v0 = vadd.f32 %v4598_v9, %v4507_v37  ;;  %v1060_v4 = vmul.f32 %v17381_v19, %v17307_v47  ;;  %v1308_v53 = vmul.f32 %v17311_v40, %v17383_v3  ;;  %v1432_v46 = vmul.f32 %v17312_v54, %v13951_v51 }
 0x3cb   : > { %v999_v63 = vrot.slane %v936_v38, 1  ;;  %v5651_v47 = vmul.f32 %v13563_v61, %v17384_v15  ;;  %v17385_v29 = vrot.slane %v13531_v42, 1  ;;  %v1247_v50 = vrot.slane %v1184_v21, 1  ;;  %v17386_v38 = vld [vmem:[#allocation21_spill] sm:$0xff]  ;;  %v17391_v61 = vld [vmem:[#allocation148_spill] sm:$0xff] }
 0x3cc   : > { %v4755_v37 = vadd.f32 %v4722_v11, %v4631_v0  ;;  %v1123_v9 = vrot.slane %v1060_v4, 1  ;;  %v1556_v8 = vmul.f32 %v17387_v20, %v17386_v38  ;;  %v17388_v0 = vld [vmem:[#allocation89_spill] sm:$0xff]  ;;  %v1371_v44 = vrot.slane %v1308_v53, 1  ;;  %v17394_v38 = vld [vmem:[#allocation26_spill] sm:$0xff] }
 0x3cd   : > { %v1000_v2 = vsel %vm712_vm0, %v17385_v29, %v999_v63  ;;  %v17389_v4 = vrot.slane %v17388_v0, 1  ;;  %v17390_v54 = vrot.slane %v13928_v28, 6  ;;  %v17392_v56 = vrot.slane %v17391_v61, 1 }
 0x3ce   : > { %v4879_v33 = vadd.f32 %v4846_v49, %v4755_v37  ;;  %v1032_v11 = vadd.f32 %v1000_v2, %v908_v26  ;;  %v1495_v63 = vrot.slane %v1432_v46, 1  ;;  %v1681_v21 = vmul.f32 %v13138_v58, %v17316_v22  ;;  %v17395_v22 = vld [vmem:[#allocation92_spill] sm:$0xff] }
 0x3cf   : > { %v1124_v40 = vsel %vm712_vm0, %v17389_v4, %v1123_v9  ;;  %v5343_v43 = vsel %vm5057_vm5, %v5341_v5, %v17390_v54  ;;  %v1248_v42 = vsel %vm712_vm0, %v17392_v56, %v1247_v50  ;;  %v5466_v26 = vrot.slane %v13960_v27, 6  ;;  %v17399_v54 = vld [vmem:[#allocation81_spill] sm:$0xff] }
 0x3d0   : > { %v5003_v29 = vadd.f32 %v4970_v39, %v4879_v33  ;;  %v5589_v49 = vrot.slane %v5527_v24, 6  ;;  %v1156_v37 = vadd.f32 %v1124_v40, %v1032_v11  ;;  %v13997_v9 = vmul.f32 %v13646_v55, %v17384_v15  ;;  %v17396_v55 = vld [vmem:[#allocation64_spill] sm:$0xff] }
 0x3d1   : > { %v17393_v53 = vrot.slane %v13573_v7, 1  ;;  %v1620_v2 = vrot.slane %v1556_v8, 2  ;;  %v1805_v50 = vmul.f32 %v13954_v31, %v17394_v38  ;;  %v5590_v58 = vrot.slane %v13968_v25, 6  ;;  %v17398_v8 = vld [vmem:[#allocation27_spill] sm:$0xff] }
 0x3d2   : > { %v5128_v56 = vadd.f32 %v5095_v17, %v5003_v29  ;;  %v5775_v39 = vmul.f32 %v17395_v22, %v13461_v23  ;;  %v1280_v24 = vadd.f32 %v1248_v42, %v1156_v37  ;;  %v14009_v46 = vmul.f32 %v17395_v22, %v13502_v30 }
 0x3d3   : > { %v1372_v5 = vsel %vm712_vm0, %v17393_v53, %v1371_v44  ;;  %v17397_v33 = vrot.slane %v17396_v55, 1  ;;  %v1744_v44 = vrot.slane %v1681_v21, 2  ;;  %v1929_v11 = vmul.f32 %v17381_v19, %v17398_v8  ;;  %v5900_v55 = vpop.xlane.xlu0 %5899 }
 0x3d4   : > { %v5252_v0 = vadd.f32 %v5219_v32, %v5128_v56  ;;  %v5467_v17 = vsel %vm5057_vm5, %v5465_v1, %v5466_v26  ;;  %v5713_v4 = vrot.slane %v5651_v47, 6  ;;  %v1404_v23 = vadd.f32 %v1372_v5, %v1280_v24 }
 0x3d5   : > { %v1496_v7 = vsel %vm712_vm0, %v17397_v33, %v1495_v63  ;;  %v5714_v40 = vrot.slane %v13997_v9, 6  ;;  %v17400_v30 = vrot.slane %v17399_v54, 2  ;;  %v1868_v42 = vrot.slane %v1805_v50, 2  ;;  %v17407_v54 = vld [vmem:[#allocation39_spill] sm:$0xff] }
 0x3d6   : > { %v2053_v63 = vmul.f32 %v17382_v62, %v17319_v45  ;;  %v5376_v21 = vadd.f32 %v5343_v43, %v5252_v0  ;;  %v5591_v32 = vsel %vm5057_vm5, %v5589_v49, %v5590_v58  ;;  %v5837_v29 = vrot.slane %v5775_v39, 6  ;;  %v17405_v0 = vld [vmem:[#allocation138_spill] sm:$0xff] }
 0x3d7   : > { %v1621_v61 = vsel %vm1581_vm1, %v17400_v30, %v1620_v2  ;;  %v1528_v37 = vadd.f32 %v1496_v7, %v1404_v23  ;;  %v5838_v1 = vrot.slane %v14009_v46, 6  ;;  %v17401_v47 = vrot.slane %v13605_v13, 2  ;;  %v14054_v23 = vld [vmem:[%s7389_s18 + $0xd0] sm:$0x3f] }
 0x3d8   : > { %v1992_v5 = vrot.slane %v1929_v11, 2  ;;  %v2177_v2 = vmul.f32 %v16669_v36, %v17383_v3  ;;  %v5500_v38 = vadd.f32 %v5467_v17, %v5376_v21  ;;  %v5715_v45 = vsel %vm5057_vm5, %v5713_v4, %v5714_v40 }
 0x3d9   : > { %v1745_v53 = vsel %vm1581_vm1, %v17401_v47, %v1744_v44  ;;  %v1653_v50 = vadd.f32 %v1621_v61, %v1528_v37  ;;  %v17402_v43 = vrot.slane %v13612_v60, 2  ;;  %v2116_v56 = vrot.slane %v2053_v63, 2  ;;  %v17404_v44 = vld [vmem:[#allocation38_spill] sm:$0xff] }
 0x3da   : > { %v2301_v13 = vmul.f32 %v16934_v35, %v13951_v51  ;;  %v5624_v39 = vadd.f32 %v5591_v32, %v5500_v38  ;;  %v5839_v36 = vsel %vm5057_vm5, %v5837_v29, %v5838_v1  ;;  %v17403_v3 = vrot.slane %v13622_v57, 2  ;;  %v17410_v29 = vld [vmem:[#allocation43_spill] sm:$0xff]  ;;  %v14066_v47 = vld [vmem:[%s14562_s2] ss:$0 sm:$0xff] }
 0x3db   : > { %v1869_v49 = vsel %vm1581_vm1, %v17402_v43, %v1868_v42  ;;  %v1777_v24 = vadd.f32 %v1745_v53, %v1653_v50  ;;  %v2240_v7 = vrot.slane %v2177_v2, 2  ;;  %v2425_v60 = vmul.f32 %v17387_v20, %v17404_v44  ;;  %v17408_v42 = vld [vmem:[#allocation94_spill] sm:$0xff]  ;;  %v14071_v2 = vpop.xlane.xlu0 %5902 }
 0x3dc   : > { %v1993_v33 = vsel %vm1581_vm1, %v17403_v3, %v1992_v5  ;;  %v5748_v8 = vadd.f32 %v5715_v45, %v5624_v39  ;;  %v17406_v17 = vrot.slane %v17405_v0, 2  ;;  %v2364_v4 = vrot.slane %v2301_v13, 2  ;;  %v17411_v38 = vld [vmem:[#allocation50_spill] sm:$0xff] }
 0x3dd   : > { %v1901_v11 = vadd.f32 %v1869_v49, %v1777_v24  ;;  %v2550_v30 = vmul.f32 %v14054_v23, %v17407_v54  ;;  %v17409_v63 = vrot.slane %v17408_v42, 2  ;;  %v2489_v32 = vrot.slane %v2425_v60, 3  ;;  %v17413_v49 = vld [vmem:[#allocation44_spill] sm:$0xff]  ;;  %v17414_v24 = vld [vmem:[#allocation67_spill] sm:$0xff] }
 0x3de   : > { %v2117_v35 = vsel %vm1581_vm1, %v17406_v17, %v2116_v56  ;;  %v5872_v61 = vadd.f32 %v5839_v36, %v5748_v8  ;;  %v2674_v37 = vmul.f32 %v13954_v31, %v17410_v29  ;;  %v17412_v50 = vrot.slane %v17411_v38, 2  ;;  %v17417_v8 = vld [vmem:[#allocation61_spill] sm:$0xff] }
 0x3df   : > { %v2025_v57 = vadd.f32 %v1993_v33, %v1901_v11  ;;  %v2241_v21 = vsel %vm1581_vm1, %v17409_v63, %v2240_v7  ;;  %v2613_v43 = vrot.slane %v2550_v30, 3  ;;  %v2798_v56 = vmul.f32 %v17381_v19, %v17413_v49  ;;  %v17416_v7 = vld [vmem:[#allocation45_spill] sm:$0xff] }
 0x3e0   : > { %v14069_v53 = vadd.f32 %v14066_v47, %v5872_v61  ;;  %v2365_v45 = vsel %vm1581_vm1, %v17412_v50, %v2364_v4  ;;  %v17415_v36 = vrot.slane %v17414_v24, 3  ;;  %v2737_v33 = vrot.slane %v2674_v37, 3  ;;  %v17419_v4 = vld [vmem:[#allocation48_spill] sm:$0xff]  ;;  %v5912_v61 = vpop.xlane.xlu0 %5911 }
 0x3e1   : > { %v2149_v5 = vadd.f32 %v2117_v35, %v2025_v57  ;;  %v2922_v44 = vmul.f32 %v17382_v62, %v17416_v7  ;;  %v17418_v11 = vrot.slane %v17417_v8, 3  ;;  %v2861_v17 = vrot.slane %v2798_v56, 3  ;;  %v14089_v35 = vld [vmem:[%s7389_s18 + $0x130] sm:$0x3f]  ;;  %v17420_v57 = vld [vmem:[#allocation95_spill] sm:$0xff] }
 0x3e2   : > { %v5940_v13 = vsel %vm5897_vm6, %v14069_v53, 0.0  ;;  %v2490_v3 = vsel %vm2450_vm2, %v17415_v36, %v2489_v32  ;;  %v3046_v54 = vmul.f32 %v14089_v35, %v17419_v4  ;;  %v17421_v42 = vrot.slane %v17420_v57, 3  ;;  %v17422_v32 = vld [vmem:[#allocation49_spill] sm:$0xff]  ;;  %v17427_v36 = vld [vmem:[#allocation55_spill] sm:$0xff] }
 0x3e3   : > { %v2273_v39 = vadd.f32 %v2241_v21, %v2149_v5  ;;  %5941 = vadd.xlane.f32.xlu0 %v5940_v13  ;;  %v2614_v0 = vsel %vm2450_vm2, %v17418_v11, %v2613_v43  ;;  %v2985_v21 = vrot.slane %v2922_v44, 3  ;;  %v3170_v29 = vmul.f32 %v17422_v32, %v13951_v51  ;;  %v17423_v5 = vld [vmem:[#allocation57_spill] sm:$0xff]  ;;  %v17425_v43 = vld [vmem:[#allocation52_spill] sm:$0xff]  ;;  %v17432_v32 = vld [vmem:[#allocation47_spill] sm:$0xff] }
 0x3e4   : > { %v2738_v63 = vsel %vm2450_vm2, %v17421_v42, %v2737_v33  ;;  %v17424_v38 = vrot.slane %v17423_v5, 3  ;;  %v3294_v49 = vmul.f32 %v17387_v20, %v17425_v43  ;;  %v17426_v13 = vrot.slane %v13717_v12, 3  ;;  %v5918_v7 = vpop.xlane.xlu0 %5917  ;;  %v5906_v20 = vpop.xlane.xlu1 %5905  ;;  %v17434_v5 = vld [vmem:[#allocation110_spill] sm:$0xff] }
 0x3e5   : > { %v2397_v60 = vadd.f32 %v2365_v45, %v2273_v39  ;;  %v3109_v45 = vrot.slane %v3046_v54, 3  ;;  %v3233_v24 = vrot.slane %v3170_v29, 3  ;;  %v17428_v44 = vrot.slane %v13735_v52, 3  ;;  %v17435_v43 = vld [vmem:[#allocation62_spill] sm:$0xff] }
 0x3e6   : > { %v2862_v50 = vsel %vm2450_vm2, %v17424_v38, %v2861_v17  ;;  %v2986_v39 = vsel %vm2450_vm2, %v17426_v13, %v2985_v21  ;;  %v3358_v8 = vrot.slane %v3294_v49, 4  ;;  %v3543_v11 = vmul.f32 %v13954_v31, %v17345_v18  ;;  %v17429_v17 = vld [vmem:[#allocation100_spill] sm:$0xff] }
 0x3e7   : > { %v2522_v30 = vadd.f32 %v2490_v3, %v2397_v60  ;;  %v3419_v3 = vmul.f32 %v14054_v23, %v17427_v36  ;;  %v3110_v60 = vsel %vm2450_vm2, %v17428_v44, %v3109_v45  ;;  %v3667_v12 = vmul.f32 %v17381_v19, %v17349_v41  ;;  %v17437_v13 = vld [vmem:[#allocation144_spill] sm:$0xff] }
 0x3e8   : > { %v17430_v4 = vrot.slane %v17429_v17, 3  ;;  %v5947_v57 = vmul.f32 0.125, %v5900_v55  ;;  %v5949_v21 = vmul.f32 0.125, %v5906_v20  ;;  %v17433_v29 = vrot.slane %v17432_v32, 4  ;;  %v17436_v55 = vld [vmem:[#allocation9_spill] sm:$0xff] }
 0x3e9   : > { %v2646_v37 = vadd.f32 %v2614_v0, %v2522_v30  ;;  %v3482_v30 = vrot.slane %v3419_v3, 4  ;;  %v5951_v41 = vmul.f32 0.125, %v5912_v61  ;;  %v3730_v45 = vrot.slane %v3667_v12, 4  ;;  %v17439_v3 = vld [vmem:[#allocation29_spill] sm:$0xff]  ;;  %v17442_v12 = vld [vmem:[#allocation63_spill] sm:$0xff] }
 0x3ea   : > { %v3234_v54 = vsel %vm2450_vm2, %v17430_v4, %v3233_v24  ;;  %v3359_v18 = vsel %vm3319_vm3, %v17433_v29, %v3358_v8  ;;  %v14124_v38 = vsub.f32 %v17434_v5, %v5947_v57  ;;  %v3915_v49 = vmul.f32 %v14089_v35, %v17435_v43  ;;  %v17440_v8 = vld [vmem:[#allocation14_spill] sm:$0xff]  ;;  %v17447_v43 = vld [vmem:[#allocation69_spill] sm:$0xff] }
 0x3eb   : > { %v2770_v56 = vadd.f32 %v2738_v63, %v2646_v37  ;;  %v17431_v63 = vld [vmem:[#allocation60_spill] sm:$0xff]  ;;  %v3606_v37 = vrot.slane %v3543_v11, 4  ;;  %v17441_v11 = vrot.slane %v17440_v8, 4  ;;  %v4039_v17 = vmul.f32 %v17442_v12, %v13951_v51 }
 0x3ec   : > { %v3791_v52 = vmul.f32 %v17382_v62, %v17431_v63  ;;  %v5924_v62 = vpop.xlane.xlu0 %5923  ;;  %v5979_v36 = vmul.f32 %v14124_v38, %v14124_v38  ;;  %v14151_v63 = vld [vmem:[%s7389_s18 + $0xb8] sm:$0x3f] }
 0x3ed   : > { %v2894_v33 = vadd.f32 %v2862_v50, %v2770_v56  ;;  %v14129_v56 = vsub.f32 %v17436_v55, %v5949_v21  ;;  %v3607_v20 = vsel %vm3319_vm3, %v17441_v11, %v3606_v37  ;;  %v17444_v21 = vld [vmem:[#allocation66_spill] sm:$0xff]  ;;  %v5955_v37 = vmul.f32 0.125, %v5924_v62 }
 0x3ee   : > { %v5995_v4 = vsel %vm5897_vm6, %v5979_v36, 0.0 }
 0x3ef   : > { %v3018_v0 = vadd.f32 %v2986_v39, %v2894_v33  ;;  %v17438_v39 = vrot.slane %v17437_v13, 4  ;;  %v14137_v33 = vsub.f32 %v17439_v3, %v5951_v41  ;;  %v5981_v44 = vmul.f32 %v14129_v56, %v14129_v56  ;;  %5996 = vadd.xlane.f32.xlu0 %v5995_v4  ;;  %v17448_v13 = vld [vmem:[#allocation23_spill] sm:$0xff]  ;;  %v17450_v3 = vld [vmem:[#allocation70_spill] sm:$0xff]  ;;  %v17454_v4 = vld [vmem:[#allocation73_spill] sm:$0xff] }
 0x3f0   : > { %v17446_v41 = vrot.slane %v13806_v6, 4  ;;  %v4412_v62 = vmul.f32 %v13954_v31, %v17450_v3  ;;  %v17451_v6 = vld [vmem:[#allocation137_spill] sm:$0xff] }
 0x3f1   : > { %v3142_v42 = vadd.f32 %v3110_v60, %v3018_v0  ;;  %v3483_v24 = vsel %vm3319_vm3, %v17438_v39, %v3482_v30  ;;  %v5953_v60 = vmul.f32 0.125, %v5918_v7  ;;  %v3854_v0 = vrot.slane %v3791_v52, 4  ;;  %v17445_v52 = vld [vmem:[#allocation76_spill] sm:$0xff] }
 0x3f2   : > { %v17443_v30 = vrot.slane %v13796_v10, 4  ;;  %v4163_v7 = vmul.f32 %v14151_v63, %v17444_v21  ;;  %v6001_v32 = vsel %vm5897_vm6, %v5981_v44, 0.0  ;;  %v5930_v10 = vpop.xlane.xlu0 %5929  ;;  %v17449_v39 = vrot.slane %v17448_v13, 4  ;;  %v17455_v21 = vld [vmem:[#allocation74_spill] sm:$0xff]  ;;  %v17461_v13 = vld [vmem:[#allocation77_spill] sm:$0xff] }
 0x3f3   : > { %v3266_v50 = vadd.f32 %v3234_v54, %v3142_v42  ;;  %v3978_v42 = vrot.slane %v3915_v49, 4  ;;  %v14157_v29 = vsub.f32 %v17445_v52, %v5953_v60  ;;  %v4288_v49 = vmul.f32 %v14054_v23, %v17447_v43  ;;  %6002 = vadd.xlane.f32.xlu0 %v6001_v32  ;;  %v17456_v32 = vld [vmem:[#allocation71_spill] sm:$0xff] }
 0x3f4   : > { %v3731_v57 = vsel %vm3319_vm3, %v17443_v30, %v3730_v45  ;;  %v4102_v45 = vrot.slane %v4039_v17, 4  ;;  %v4227_v36 = vrot.slane %v4163_v7, 5  ;;  %v14173_v44 = vsub.f32 %v17451_v6, %v5955_v37 }
 0x3f5   : > { %v3391_v61 = vadd.f32 %v3359_v18, %v3266_v50  ;;  %v5983_v18 = vmul.f32 %v14137_v33, %v14137_v33  ;;  %v3855_v50 = vsel %vm3319_vm3, %v17446_v41, %v3854_v0  ;;  %v5985_v60 = vmul.f32 %v14157_v29, %v14157_v29 }
 0x3f6   : > { %v5957_v8 = vmul.f32 0.125, %v5930_v10  ;;  %v4351_v17 = vrot.slane %v4288_v49, 5  ;;  %v17457_v52 = vrot.slane %v17456_v32, 5  ;;  %v5987_v41 = vmul.f32 %v14173_v44, %v14173_v44 }
 0x3f7   : > { %v3515_v54 = vadd.f32 %v3483_v24, %v3391_v61  ;;  %v3979_v24 = vsel %vm3319_vm3, %v17449_v39, %v3978_v42  ;;  %v6007_v61 = vsel %vm5897_vm6, %v5983_v18, 0.0  ;;  %v7200_v42 = vld [vmem:[%s7389_s18 + $0x118] sm:$0x3f]  ;;  %v6013_v37 = vsel %vm5897_vm6, %v5985_v60, 0.0 }
 0x3f8   : > { %v4660_v7 = vmul.f32 %v7200_v42, %v17455_v21  ;;  %6008 = vadd.xlane.f32.xlu0 %v6007_v61  ;;  %v4228_v18 = vsel %vm4188_vm4, %v17457_v52, %v4227_v36  ;;  %v4784_v39 = vmul.f32 %v14089_v35, %v17461_v13  ;;  %v17462_v36 = vrot.slane %v13856_v59, 5  ;;  %v17463_v61 = vld [vmem:[#allocation78_spill] sm:$0xff] }
 0x3f9   : > { %v3639_v5 = vadd.f32 %v3607_v20, %v3515_v54  ;;  %v17452_v20 = vld [vmem:[#allocation24_spill] sm:$0xff]  ;;  %v4536_v54 = vmul.f32 %v17381_v19, %v17454_v4  ;;  %v4908_v6 = vmul.f32 %v17463_v61, %v13951_v51  ;;  %v6019_v60 = vsel %vm5897_vm6, %v5987_v41, 0.0 }
 0x3fa   : > { %v17453_v0 = vrot.slane %v17452_v20, 4  ;;  %v4723_v3 = vrot.slane %v4660_v7, 5  ;;  %v17464_v20 = vrot.slane %v13879_v48, 5  ;;  %v5157_v21 = vmul.f32 %v14054_v23, %v17374_v14 }
 0x3fb   : > { %v3763_v55 = vadd.f32 %v3731_v57, %v3639_v5  ;;  %v4475_v57 = vrot.slane %v4412_v62, 5  ;;  %v17458_v5 = vld [vmem:[#allocation97_spill] sm:$0xff]  ;;  %v17467_v48 = vrot.slane %v13892_v16, 5 }
 0x3fc   : > { %v4103_v12 = vsel %vm3319_vm3, %v17453_v0, %v4102_v45  ;;  %v14189_v10 = vsub.f32 %v17458_v5, %v5957_v8  ;;  %v17459_v45 = vld [vmem:[#allocation41_spill] sm:$0xff]  ;;  %6014 = vadd.xlane.f32.xlu0 %v6013_v37  ;;  %v17468_v37 = vld [vmem:[#allocation84_spill] sm:$0xff] }
 0x3fd   : > { %v3887_v11 = vadd.f32 %v3855_v50, %v3763_v55  ;;  %v17460_v43 = vrot.slane %v17459_v45, 5  ;;  %v4599_v55 = vrot.slane %v4536_v54, 5  ;;  %v4476_v62 = vsel %vm4188_vm4, %v17462_v36, %v4475_v57 }
 0x3fe   : > { %v5989_v8 = vmul.f32 %v14189_v10, %v14189_v10  ;;  %v17466_v54 = vrot.slane %v13886_v34, 5  ;;  %v4971_v57 = vrot.slane %v4908_v6, 5  ;;  %v5281_v5 = vmul.f32 %v13954_v31, %v17468_v37  ;;  %v17469_v34 = vld [vmem:[#allocation96_spill] sm:$0xff] }
 0x3ff   : > { %v4011_v30 = vadd.f32 %v3979_v24, %v3887_v11  ;;  %v4352_v49 = vsel %vm4188_vm4, %v17460_v43, %v4351_v17  ;;  %v4600_v0 = vsel %vm4188_vm4, %v17464_v20, %v4599_v55  ;;  %v17465_v17 = vld [vmem:[#allocation79_spill] sm:$0xff]  ;;  %v5220_v43 = vrot.slane %v5157_v21, 6  ;;  %v17472_v55 = vld [vmem:[#allocation34_spill] sm:$0xff]  ;;  %v17475_v31 = vld [vmem:[#allocation72_spill] sm:$0xff] }
 0x400   : > { %v5032_v4 = vmul.f32 %v14151_v63, %v17465_v17  ;;  %6020 = vadd.xlane.f32.xlu0 %v6019_v60  ;;  %v6025_v7 = vsel %vm5897_vm6, %v5989_v8, 0.0  ;;  %v17473_v13 = vrot.slane %v17472_v55, 6  ;;  %v5653_v60 = vmul.f32 %v14089_v35, %v17384_v15  ;;  %v5909_v8 = vpop.xlane.xlu1 %5908  ;;  %v17482_v55 = vld [vmem:[#allocation135_spill] sm:$0xff] }
 0x401   : > { %v4135_v50 = vadd.f32 %v4103_v12, %v4011_v30  ;;  %v4847_v12 = vrot.slane %v4784_v39, 5  ;;  %v4724_v30 = vsel %vm4188_vm4, %v17466_v54, %v4723_v3  ;;  %v5344_v39 = vrot.slane %v5281_v5, 6 }
 0x402   : > { %v5950_v25 = vmul.f32 0.125, %v5909_v8 }
 0x403   : > { %v4260_v24 = vadd.f32 %v4228_v18, %v4135_v50  ;;  %v4848_v52 = vsel %vm4188_vm4, %v17467_v48, %v4847_v12  ;;  %v5096_v18 = vrot.slane %v5032_v4, 6  ;;  %v17470_v50 = vrot.slane %v17469_v34, 5 }
 0x404   : > { %6026 = vadd.xlane.f32.xlu0 %v6025_v7  ;;  %v5777_v12 = vmul.f32 %v17395_v22, %v13951_v51  ;;  %v5716_v4 = vrot.slane %v5653_v60, 6  ;;  %v5915_v54 = vpop.xlane.xlu1 %5914 }
 0x405   : > { %v4384_v11 = vadd.f32 %v4352_v49, %v4260_v24  ;;  %v4972_v45 = vsel %vm4188_vm4, %v17470_v50, %v4971_v57  ;;  %v17471_v49 = vld [vmem:[#allocation85_spill] sm:$0xff]  ;;  %v5097_v16 = vsel %vm5057_vm5, %v17473_v13, %v5096_v18  ;;  %v17474_v24 = vld [vmem:[#allocation87_spill] sm:$0xff]  ;;  %v17478_v57 = vld [vmem:[#allocation22_spill] sm:$0xff]  ;;  %v5952_v9 = vmul.f32 0.125, %v5915_v54 }
 0x406   : > { %v5405_v14 = vmul.f32 %v17381_v19, %v17471_v49  ;;  %v5529_v3 = vmul.f32 %v7200_v42, %v17474_v24  ;;  %v17477_v19 = vrot.slane %v13928_v28, 6  ;;  %v5840_v35 = vrot.slane %v5777_v12, 6  ;;  %v17480_v18 = vld [vmem:[#allocation19_spill] sm:$0xff]  ;;  %v17481_v50 = vld [vmem:[#allocation116_spill] sm:$0xff] }
 0x407   : > { %v4508_v59 = vadd.f32 %v4476_v62, %v4384_v11  ;;  %v17476_v62 = vrot.slane %v17475_v31, 6  ;;  %v5717_v51 = vsel %vm5057_vm5, %v5714_v40, %v5716_v4  ;;  %v14268_v37 = vsub.f32 %v17480_v18, %v5952_v9 }
 0x408   : > { %v5468_v6 = vrot.slane %v5405_v14, 6  ;;  %v5345_v20 = vsel %vm5057_vm5, %v17477_v19, %v5344_v39  ;;  %v5841_v27 = vsel %vm5057_vm5, %v5838_v1, %v5840_v35  ;;  %v5936_v1 = vpop.xlane.xlu0 %5935 }
 0x409   : > { %v4632_v32 = vadd.f32 %v4600_v0, %v4508_v59  ;;  %v5221_v61 = vsel %vm5057_vm5, %v17476_v62, %v5220_v43  ;;  %v5592_v0 = vrot.slane %v5529_v3, 6  ;;  %v5959_v34 = vmul.f32 0.125, %v5936_v1 }
 0x40a   : > { %v5469_v17 = vsel %vm5057_vm5, %v5466_v26, %v5468_v6  ;;  %v5984_v14 = vmul.f32 %v14268_v37, %v14268_v37 }
 0x40b   : > { %v4756_v41 = vadd.f32 %v4724_v30, %v4632_v32  ;;  %v5593_v15 = vsel %vm5057_vm5, %v5590_v58, %v5592_v0  ;;  %v5948_v30 = vmul.f32 0.125, %v14071_v2  ;;  %v5921_v58 = vpop.xlane.xlu1 %5920  ;;  %v17479_v2 = vld [vmem:[#allocation91_spill] sm:$0xff]  ;;  %v14280_v13 = vsub.f32 %v17482_v55, %v5959_v34 }
 0x40c   : > { %v14261_v48 = vsub.f32 %v17479_v2, %v5950_v25  ;;  %v6010_v24 = vsel %vm5897_vm6, %v5984_v14, 0.0  ;;  %v14319_v25 = vld [vmem:[%s14563_s3] ss:$0 sm:$0xff] }
 0x40d   : > { %v4880_v23 = vadd.f32 %v4848_v52, %v4756_v41  ;;  %v14255_v21 = vsub.f32 %v17478_v57, %v5948_v30  ;;  %v5991_v31 = vmul.f32 %v14280_v13, %v14280_v13 }
 0x40e   : > { %v5982_v41 = vmul.f32 %v14261_v48, %v14261_v48 }
 0x40f   : > { %v5004_v36 = vadd.f32 %v4972_v45, %v4880_v23  ;;  %v5980_v40 = vmul.f32 %v14255_v21, %v14255_v21  ;;  %v5927_v52 = vpop.xlane.xlu1 %5926  ;;  %v6031_v62 = vsel %vm5897_vm6, %v5991_v31, 0.0 }
 0x410   : > { %v6004_v43 = vsel %vm5897_vm6, %v5982_v41, 0.0  ;;  %v5956_v49 = vmul.f32 0.125, %v5927_v52  ;;  %6032 = vadd.xlane.f32.xlu0 %v6031_v62 }
 0x411   : > { %v5129_v11 = vadd.f32 %v5097_v16, %v5004_v36  ;;  %v5998_v5 = vsel %vm5897_vm6, %v5980_v40, 0.0  ;;  %v17483_v16 = vld [vmem:[#allocation93_spill] sm:$0xff] }
 0x412   : > { %v14283_v39 = vsub.f32 %v17483_v16, %v5956_v49 }
 0x413   : > { %v5253_v42 = vadd.f32 %v5221_v61, %v5129_v11  ;;  %v5933_v23 = vpop.xlane.xlu1 %5932  ;;  %v17484_v61 = vld [vmem:[#allocation143_spill] sm:$0xff] }
 0x414   : > { %v5958_v3 = vmul.f32 0.125, %v5933_v23  ;;  %v5988_v8 = vmul.f32 %v14283_v39, %v14283_v39 }
 0x415   : > { %v5377_v59 = vadd.f32 %v5345_v20, %v5253_v42  ;;  %v6153_v42 = vld [vmem:[%s14565_s5] sm:$0xff] }
 0x416   : > { %v14292_v6 = vsub.f32 %v17484_v61, %v5958_v3  ;;  %v6022_v11 = vsel %vm5897_vm6, %v5988_v8, 0.0  ;;  %6924 = vmatprep.subr.mxu0 %v6153_v42 }
 0x417   : > { %v5501_v28 = vadd.f32 %v5469_v17, %v5377_v59  ;;  %v17485_v17 = vld [vmem:[#allocation51_spill] sm:$0xff]  ;;  %6925 = vmatpush3.msra.mxu0 %v6153_v42 }
 0x418   : > { %v5990_v19 = vmul.f32 %v14292_v6, %v14292_v6 }
 0x419   : > { %v5625_v22 = vadd.f32 %v5593_v15, %v5501_v28 }
 0x41a   : > { %v6028_v20 = vsel %vm5897_vm6, %v5990_v19, 0.0 }
 0x41b   : > { %v5749_v26 = vadd.f32 %v5717_v51, %v5625_v22 }
 0x41d   : > { %v5873_v7 = vadd.f32 %v5841_v27, %v5749_v26 }
 0x41f   : > { %v14258_v32 = vadd.f32 %v14066_v47, %v5873_v7  ;;  %v5954_v47 = vmul.f32 0.125, %v5921_v58 }
 0x421   : > { %v5943_v46 = vsel %vm5897_vm6, %v14258_v32, 0.0  ;;  %v14274_v45 = vsub.f32 %v17481_v50, %v5954_v47 }
 0x422   : > { %5944 = vadd.xlane.f32.xlu1 %v5943_v46 }
 0x423   : > { %v5986_v36 = vmul.f32 %v14274_v45, %v14274_v45 }
 0x425   : > { %v6016_v60 = vsel %vm5897_vm6, %v5986_v36, 0.0 }
 0x426   : > { %5999 = vadd.xlane.f32.xlu1 %v5998_v5 }
 0x42a   : > { %6005 = vadd.xlane.f32.xlu1 %v6004_v43 }
 0x42e   : > { %6011 = vadd.xlane.f32.xlu1 %v6010_v24 }
 0x432   : > { %6017 = vadd.xlane.f32.xlu1 %v6016_v60 }
 0x436   : > { %6023 = vadd.xlane.f32.xlu1 %v6022_v11 }
 0x43a   : > { %6029 = vadd.xlane.f32.xlu1 %v6028_v20 }
 0x446   : > { %v5939_v0 = vpop.xlane.xlu1 %5938 }
 0x447   : > { %v5960_v12 = vmul.f32 0.125, %v5939_v0 }
 0x449   : > { %v14305_v4 = vsub.f32 %v17485_v17, %v5960_v12 }
 0x44b   : > { %v5992_v59 = vmul.f32 %v14305_v4, %v14305_v4 }
 0x44d   : > { %v6034_v15 = vsel %vm5897_vm6, %v5992_v59, 0.0 }
 0x44e   : > { %6035 = vadd.xlane.f32.xlu1 %v6034_v15 }
 0x470   : > { %v5942_v35 = vpop.xlane.xlu0 %5941 }
 0x471   : > { %v5961_v54 = vmul.f32 0.125, %v5942_v35 }
 0x473   : > { %v14311_v28 = vsub.f32 %v14069_v53, %v5961_v54  ;;  %v14325_v53 = vld [vmem:[%s14564_s4] ss:$0 sm:$0xff] }
 0x475   : > { %v5993_v30 = vmul.f32 %v14311_v28, %v14311_v28 }
 0x477   : > { %v6037_v51 = vsel %vm5897_vm6, %v5993_v30, 0.0 }
 0x478   : > { %6038 = vadd.xlane.f32.xlu0 %v6037_v51 }
 0x47c   : > { %v5997_v22 = vpop.xlane.xlu0 %5996 }
 0x47d   : > { %v6043_v27 = vmul.f32 0.125, %v5997_v22 }
 0x47f   : > { %v6059_v26 = vadd.f32 1e-06, %v6043_v27 }
 0x480   : > { %v6003_v9 = vpop.xlane.xlu0 %6002 }
 0x481   : > { %7031 = vrsqrt.f32 %v6059_v26  ;;  %v6045_v46 = vmul.f32 0.125, %v6003_v9 }
 0x483   : > { %v6061_v52 = vadd.f32 1e-06, %v6045_v46 }
 0x485   : > { %v6009_v40 = vpop.xlane.xlu0 %6008  ;;  %7033 = vrsqrt.f32 %v6061_v52 }
 0x486   : > { %v6047_v18 = vmul.f32 0.125, %v6009_v40 }
 0x488   : > { %v6063_v41 = vadd.f32 1e-06, %v6047_v18 }
 0x489   : > { %v6015_v1 = vpop.xlane.xlu0 %6014 }
 0x48a   : > { %v6049_v34 = vmul.f32 0.125, %v6015_v1  ;;  %7035 = vrsqrt.f32 %v6063_v41 }
 0x48b   : > { %v7032_v57 = vpop.eup %7031 }
 0x48c   : > { %v6091_v58 = vmul.f32 %v7032_v57, %v14124_v38  ;;  %v6065_v23 = vadd.f32 1e-06, %v6049_v34 }
 0x48d   : > { %v6021_v38 = vpop.xlane.xlu0 %6020 }
 0x48e   : > { %v6114_v7 = vmul.f32 %v14319_v25, %v6091_v58  ;;  %v6051_v55 = vmul.f32 0.125, %v6021_v38 }
 0x48f   : > { %v7034_v60 = vpop.eup %7033 }
 0x490   : > { %v6137_v2 = vadd.f32 %v14325_v53, %v6114_v7  ;;  %v6067_v62 = vadd.f32 1e-06, %v6051_v55  ;;  %v6093_v42 = vmul.f32 %v7034_v60, %v14129_v56 }
 0x491   : > { %v6027_v3 = vpop.xlane.xlu0 %6026 }
 0x492   : > { %6926 = vmatprep.mubr.msk.f32.mxu0 %vm5897_vm6, %v6137_v2  ;;  %v6116_v51 = vmul.f32 %v14319_v25, %v6093_v42 }
 0x494   : > { %v7036_v17 = vpop.eup %7035  ;;  %v6139_v9 = vadd.f32 %v14325_v53, %v6116_v51 }
 0x495   : > { %v6095_v22 = vmul.f32 %v7036_v17, %v14137_v33 }
 0x497   : > { %v6118_v40 = vmul.f32 %v14319_v25, %v6095_v22 }
 0x499   : > { %v6141_v41 = vadd.f32 %v14325_v53, %v6118_v40 }
 0x49d   : > { %v6033_v19 = vpop.xlane.xlu0 %6032 }
 0x49e   : > { %v6055_v0 = vmul.f32 0.125, %v6033_v19 }
 0x4a0   : > { %v6071_v35 = vadd.f32 1e-06, %v6055_v0 }
 0x4af   : > { %v5945_v5 = vpop.xlane.xlu1 %5944 }
 0x4b0   : > { %v5962_v47 = vmul.f32 0.125, %v5945_v5 }
 0x4b2   : > { %v14331_v50 = vsub.f32 %v14258_v32, %v5962_v47  ;;  %v6053_v32 = vmul.f32 0.125, %v6027_v3 }
 0x4b3   : > { %v6000_v43 = vpop.xlane.xlu1 %5999 }
 0x4b4   : > { %v5994_v49 = vmul.f32 %v14331_v50, %v14331_v50  ;;  %v6044_v14 = vmul.f32 0.125, %v6000_v43  ;;  %v6069_v20 = vadd.f32 1e-06, %v6053_v32 }
 0x4b6   : > { %v6040_v16 = vsel %vm5897_vm6, %v5994_v49, 0.0  ;;  %v6060_v24 = vadd.f32 1e-06, %v6044_v14 }
 0x4b7   : > { %6041 = vadd.xlane.f32.xlu1 %v6040_v16  ;;  %v6006_v36 = vpop.xlane.xlu1 %6005 }
 0x4b8   : > { %7037 = vrsqrt.f32 %v6060_v24  ;;  %v6046_v31 = vmul.f32 0.125, %v6006_v36 }
 0x4b9   : > { %7039 = vrsqrt.f32 %v6065_v23 }
 0x4ba   : > { %v6062_v61 = vadd.f32 1e-06, %v6046_v31 }
 0x4bb   : > { %v6012_v8 = vpop.xlane.xlu1 %6011 }
 0x4bc   : > { %7041 = vrsqrt.f32 %v6062_v61  ;;  %v6048_v11 = vmul.f32 0.125, %v6012_v8 }
 0x4bd   : > { %7043 = vrsqrt.f32 %v6067_v62 }
 0x4be   : > { %v6064_v12 = vadd.f32 1e-06, %v6048_v11 }
 0x4bf   : > { %v6018_v59 = vpop.xlane.xlu1 %6017 }
 0x4c0   : > { %7045 = vrsqrt.f32 %v6064_v12  ;;  %v6050_v15 = vmul.f32 0.125, %v6018_v59 }
 0x4c1   : > { %7047 = vrsqrt.f32 %v6069_v20 }
 0x4c2   : > { %v7038_v54 = vpop.eup %7037  ;;  %v6066_v30 = vadd.f32 1e-06, %v6050_v15 }
 0x4c3   : > { %v7040_v27 = vpop.eup %7039  ;;  %v6024_v26 = vpop.xlane.xlu1 %6023  ;;  %v6092_v57 = vmul.f32 %v7038_v54, %v14255_v21 }
 0x4c4   : > { %7049 = vrsqrt.f32 %v6066_v30  ;;  %v6052_v58 = vmul.f32 0.125, %v6024_v26  ;;  %v6097_v46 = vmul.f32 %v7040_v27, %v14157_v29 }
 0x4c5   : > { %7051 = vrsqrt.f32 %v6071_v35  ;;  %v6115_v56 = vmul.f32 %v14319_v25, %v6092_v57 }
 0x4c6   : > { %v7042_v7 = vpop.eup %7041  ;;  %v6068_v2 = vadd.f32 1e-06, %v6052_v58  ;;  %v6120_v29 = vmul.f32 %v14319_v25, %v6097_v46 }
 0x4c7   : > { %v7044_v1 = vpop.eup %7043  ;;  %v6030_v52 = vpop.xlane.xlu1 %6029  ;;  %v6138_v33 = vadd.f32 %v14325_v53, %v6115_v56  ;;  %v6094_v18 = vmul.f32 %v7042_v7, %v14261_v48  ;;  %v6435_v56 = vld [vmem:[%s14567_s7 + $0x8] sm:$0xff] }
 0x4c8   : > { %7053 = vrsqrt.f32 %v6068_v2  ;;  %v6054_v21 = vmul.f32 0.125, %v6030_v52  ;;  %v6099_v34 = vmul.f32 %v7044_v1, %v14173_v44  ;;  %v6143_v55 = vadd.f32 %v14325_v53, %v6120_v29  ;;  %v6437_v2 = vld [vmem:[%s14567_s7 + $0x18] sm:$0xff] }
 0x4c9   : > { %6927 = vmatmul.mubr.msk.f32.vlgmr.msra.gmra.mrb[0].mxu0 %vm5897_vm6, %v6138_v33  ;;  %v6117_v5 = vmul.f32 %v14319_v25, %v6094_v18 }
 0x4ca   : > { %v7046_v47 = vpop.eup %7045  ;;  %v6070_v38 = vadd.f32 1e-06, %v6054_v21  ;;  %6929 = vmatprep.mubr.msk.f32.mxu0 %vm5897_vm6, %v6139_v9  ;;  %v6122_v16 = vmul.f32 %v14319_v25, %v6099_v34 }
 0x4cb   : > { %v7048_v43 = vpop.eup %7047  ;;  %v6140_v49 = vadd.f32 %v14325_v53, %v6117_v5  ;;  %v6096_v48 = vmul.f32 %v7046_v47, %v14268_v37  ;;  %v14411_v5 = vld [vmem:[%s14566_s6] ss:$0 sm:$0xff] }
 0x4cc   : > { %7055 = vrsqrt.f32 %v6070_v38  ;;  %v6101_v24 = vmul.f32 %v7048_v43, %v14189_v10  ;;  %v6145_v62 = vadd.f32 %v14325_v53, %v6122_v16 }
 0x4cd   : > { %6930 = vmatmul.mubr.msk.f32.gmra.mrb[2].mxu0 %vm5897_vm6, %v6140_v49  ;;  %v6119_v14 = vmul.f32 %v14319_v25, %v6096_v48 }
 0x4ce   : > { %v7050_v23 = vpop.eup %7049  ;;  %6932 = vmatprep.mubr.msk.f32.mxu0 %vm5897_vm6, %v6141_v41  ;;  %v6124_v32 = vmul.f32 %v14319_v25, %v6101_v24 }
 0x4cf   : > { %v7052_v44 = vpop.eup %7051  ;;  %v6142_v3 = vadd.f32 %v14325_v53, %v6119_v14  ;;  %v6098_v36 = vmul.f32 %v7050_v23, %v14274_v45 }
 0x4d0   : > { %v6103_v61 = vmul.f32 %v7052_v44, %v14280_v13  ;;  %v6147_v11 = vadd.f32 %v14325_v53, %v6124_v32 }
 0x4d1   : > { %6933 = vmatmul.mubr.msk.f32.gmra.mrb[4].mxu0 %vm5897_vm6, %v6142_v3  ;;  %v6121_v37 = vmul.f32 %v14319_v25, %v6098_v36 }
 0x4d2   : > { %v7054_v31 = vpop.eup %7053  ;;  %6935 = vmatprep.mubr.msk.f32.mxu0 %vm5897_vm6, %v6143_v55  ;;  %v6126_v19 = vmul.f32 %v14319_v25, %v6103_v61 }
 0x4d3   : > { %v6144_v10 = vadd.f32 %v14325_v53, %v6121_v37  ;;  %v6100_v60 = vmul.f32 %v7054_v31, %v14283_v39 }
 0x4d4   : > { %v6149_v39 = vadd.f32 %v14325_v53, %v6126_v19 }
 0x4d5   : > { %6936 = vmatmul.mubr.msk.f32.gmra.mrb[6].mxu0 %vm5897_vm6, %v6144_v10  ;;  %v6123_v45 = vmul.f32 %v14319_v25, %v6100_v60 }
 0x4d6   : > { %v7056_v8 = vpop.eup %7055  ;;  %6938 = vmatprep.mubr.msk.f32.mxu0 %vm5897_vm6, %v6145_v62 }
 0x4d7   : > { %v6146_v20 = vadd.f32 %v14325_v53, %v6123_v45  ;;  %v6102_v0 = vmul.f32 %v7056_v8, %v14292_v6 }
 0x4d9   : > { %6939 = vmatmul.mubr.msk.f32.gmra.mrb[8].mxu0 %vm5897_vm6, %v6146_v20  ;;  %v6125_v13 = vmul.f32 %v14319_v25, %v6102_v0 }
 0x4da   : > { %6941 = vmatprep.mubr.msk.f32.mxu0 %vm5897_vm6, %v6147_v11 }
 0x4db   : > { %v6148_v12 = vadd.f32 %v14325_v53, %v6125_v13  ;;  %v6036_v42 = vpop.xlane.xlu1 %6035 }
 0x4dc   : > { %v6056_v17 = vmul.f32 0.125, %v6036_v42 }
 0x4dd   : > { %6942 = vmatmul.mubr.msk.f32.gmra.mrb[10].mxu0 %vm5897_vm6, %v6148_v12 }
 0x4de   : > { %6944 = vmatprep.mubr.msk.f32.mxu0 %vm5897_vm6, %v6149_v39  ;;  %v6072_v59 = vadd.f32 1e-06, %v6056_v17 }
 0x4e0   : > { %7057 = vrsqrt.f32 %v6072_v59 }
 0x4ea   : > { %v7058_v15 = vpop.eup %7057 }
 0x4eb   : > { %v6104_v6 = vmul.f32 %v7058_v15, %v14305_v4  ;;  %v6434_v4 = vld [vmem:[%s14567_s7] sm:$0xff] }
 0x4ec   : > { %v6982_v7 = vpack.c.bf16 %v6435_v56, %v6434_v4 }
 0x4ed   : > { %v6127_v35 = vmul.f32 %v14319_v25, %v6104_v6 }
 0x4ee   : > { %6983 = vmatprep.subr.bf16.mxu1 %v6982_v7 }
 0x4ef   : > { %v6150_v54 = vadd.f32 %v14325_v53, %v6127_v35  ;;  %6985 = vmatpush3.bf16.msra.mxu1 %v6982_v7 }
 0x4f1   : > { %6945 = vmatmul.mubr.msk.f32.gmra.mrb[12].mxu0 %vm5897_vm6, %v6150_v54 }
 0x505   : > { %v6039_v30 = vpop.xlane.xlu0 %6038 }
 0x506   : > { %v6057_v51 = vmul.f32 0.125, %v6039_v30 }
 0x508   : > { %v6073_v22 = vadd.f32 1e-06, %v6057_v51 }
 0x50a   : > { %7059 = vrsqrt.f32 %v6073_v22 }
 0x514   : > { %v7060_v27 = vpop.eup %7059 }
 0x515   : > { %v6105_v26 = vmul.f32 %v7060_v27, %v14311_v28  ;;  %v6436_v28 = vld [vmem:[%s14567_s7 + $0x10] sm:$0xff] }
 0x516   : > { %v6986_v9 = vpack.c.bf16 %v6437_v2, %v6436_v28 }
 0x517   : > { %v6128_v57 = vmul.f32 %v14319_v25, %v6105_v26 }
 0x518   : > { %6987 = vmatprep.subr.bf16.mxu1 %v6986_v9 }
 0x519   : > { %v6151_v58 = vadd.f32 %v14325_v53, %v6128_v57  ;;  %6989 = vmatpush3.bf16.msra.mxu1 %v6986_v9 }
 0x51b   : > { %6947 = vmatprep.mubr.msk.f32.mxu0 %vm5897_vm6, %v6151_v58 }
 0x544   : > { %v6042_v40 = vpop.xlane.xlu1 %6041 }
 0x545   : > { %v6058_v46 = vmul.f32 0.125, %v6042_v40 }
 0x547   : > { %v6074_v1 = vadd.f32 1e-06, %v6058_v46 }
 0x549   : > { %7061 = vrsqrt.f32 %v6074_v1 }
 0x553   : > { %v7062_v52 = vpop.eup %7061 }
 0x554   : > { %v6106_v33 = vmul.f32 %v7062_v52, %v14331_v50 }
 0x556   : > { %v6129_v18 = vmul.f32 %v14319_v25, %v6106_v33 }
 0x558   : > { %v6152_v21 = vadd.f32 %v14325_v53, %v6129_v18 }
 0x55a   : > { %6948 = vmatmul.mubr.msk.f32.gmra.mrb[14].mxu0 %vm5897_vm6, %v6152_v21 }
 0x59c   : > { %v6928_v47 = vpop.f32.mrb[0].mxu0 }
 0x59d   : > { %v6281_v38 = vadd.f32 %v6928_v47, %v14411_v5  ;;  %v6275_v41 = vpop.f32.mrb[1].mxu0 }
 0x59e   : > { %v6276_v29 = vadd.f32 %v14411_v5, %v6275_v41 }
 0x59f   : > { %v6371_v34 = vmul.f32 0.70710677, %v6281_v38  ;;  %v6355_v13 = vmul.f32 0.5, %v6281_v38 }
 0x5a0   : > { %v6370_v43 = vmul.f32 0.70710677, %v6276_v29  ;;  %v6931_v50 = vpop.f32.mrb[2].mxu0  ;;  %v6354_v11 = vmul.f32 0.5, %v6276_v29 }
 0x5a1   : > { %7063 = verf.f32 %v6371_v34  ;;  %v6291_v25 = vadd.f32 %v6931_v50, %v14411_v5  ;;  %v6285_v53 = vpop.f32.mrb[3].mxu0 }
 0x5a2   : > { %7065 = verf.f32 %v6370_v43  ;;  %v6286_v49 = vadd.f32 %v14411_v5, %v6285_v53 }
 0x5a3   : > { %v6373_v48 = vmul.f32 0.70710677, %v6291_v25  ;;  %v6357_v26 = vmul.f32 0.5, %v6291_v25 }
 0x5a4   : > { %v6372_v14 = vmul.f32 0.70710677, %v6286_v49  ;;  %v6934_v23 = vpop.f32.mrb[4].mxu0  ;;  %v6356_v30 = vmul.f32 0.5, %v6286_v49 }
 0x5a5   : > { %7067 = verf.f32 %v6373_v48  ;;  %v6301_v55 = vadd.f32 %v6934_v23, %v14411_v5  ;;  %v6295_v16 = vpop.f32.mrb[5].mxu0 }
 0x5a6   : > { %7069 = verf.f32 %v6372_v14  ;;  %v6296_v24 = vadd.f32 %v14411_v5, %v6295_v16 }
 0x5a7   : > { %v6375_v44 = vmul.f32 0.70710677, %v6301_v55  ;;  %v6359_v1 = vmul.f32 0.5, %v6301_v55 }
 0x5a8   : > { %v6374_v3 = vmul.f32 0.70710677, %v6296_v24  ;;  %v6937_v36 = vpop.f32.mrb[6].mxu0  ;;  %v6358_v40 = vmul.f32 0.5, %v6296_v24 }
 0x5a9   : > { %7071 = verf.f32 %v6375_v44  ;;  %v6311_v37 = vadd.f32 %v6937_v36, %v14411_v5  ;;  %v6305_v31 = vpop.f32.mrb[7].mxu0 }
 0x5aa   : > { %7073 = verf.f32 %v6374_v3  ;;  %v6306_v62 = vadd.f32 %v14411_v5, %v6305_v31 }
 0x5ab   : > { %v7064_v32 = vpop.eup %7063  ;;  %v6377_v61 = vmul.f32 0.70710677, %v6311_v37  ;;  %v6361_v29 = vmul.f32 0.5, %v6311_v37 }
 0x5ac   : > { %v7066_v10 = vpop.eup %7065  ;;  %v6403_v60 = vadd.f32 1.0, %v7064_v32  ;;  %v6376_v45 = vmul.f32 0.70710677, %v6306_v62  ;;  %v6940_v8 = vpop.f32.mrb[8].mxu0  ;;  %v6360_v38 = vmul.f32 0.5, %v6306_v62 }
 0x5ad   : > { %7075 = verf.f32 %v6377_v61  ;;  %v6321_v19 = vadd.f32 %v6940_v8, %v14411_v5  ;;  %v6315_v20 = vpop.f32.mrb[9].mxu0  ;;  %v6402_v0 = vadd.f32 1.0, %v7066_v10 }
 0x5ae   : > { %7077 = verf.f32 %v6376_v45  ;;  %v6316_v39 = vadd.f32 %v14411_v5, %v6315_v20  ;;  %v6419_v15 = vmul.f32 %v6403_v60, %v6355_v13 }
 0x5af   : > { %v7068_v12 = vpop.eup %7067  ;;  %v6379_v42 = vmul.f32 0.70710677, %v6321_v19  ;;  %v6418_v17 = vmul.f32 %v6402_v0, %v6354_v11  ;;  %v6363_v14 = vmul.f32 0.5, %v6321_v19 }
 0x5b0   : > { %v7070_v59 = vpop.eup %7069  ;;  %v6405_v6 = vadd.f32 1.0, %v7068_v12  ;;  %v6378_v35 = vmul.f32 0.70710677, %v6316_v39  ;;  %v6943_v54 = vpop.f32.mrb[10].mxu0  ;;  %v6362_v49 = vmul.f32 0.5, %v6316_v39 }
 0x5b1   : > { %v6404_v51 = vadd.f32 1.0, %v7070_v59  ;;  %7079 = verf.f32 %v6379_v42  ;;  %v6331_v22 = vadd.f32 %v6943_v54, %v14411_v5  ;;  %v6325_v27 = vpop.f32.mrb[11].mxu0  ;;  %6958 = vmatprep.mubr.msk.f32.mxu1 %vm6445_vm7, %v6418_v17 }
 0x5b2   : > { %7081 = verf.f32 %v6378_v35  ;;  %v6326_v57 = vadd.f32 %v14411_v5, %v6325_v27  ;;  %6959 = vmatmul.mubr.msk.f32.vlgmr.msra.gmra.mrb[0].mxu1 %vm6445_vm7, %v6419_v15  ;;  %v6421_v28 = vmul.f32 %v6405_v6, %v6357_v26 }
 0x5b3   : > { %v7072_v58 = vpop.eup %7071  ;;  %v6420_v4 = vmul.f32 %v6404_v51, %v6356_v30  ;;  %v6381_v56 = vmul.f32 0.70710677, %v6331_v22  ;;  %v6365_v37 = vmul.f32 0.5, %v6331_v22 }
 0x5b4   : > { %v7074_v7 = vpop.eup %7073  ;;  %v6407_v2 = vadd.f32 1.0, %v7072_v58  ;;  %v6380_v9 = vmul.f32 0.70710677, %v6326_v57  ;;  %v6364_v3 = vmul.f32 0.5, %v6326_v57 }
 0x5b5   : > { %v6406_v46 = vadd.f32 1.0, %v7074_v7  ;;  %7083 = verf.f32 %v6381_v56  ;;  %6961 = vmatprep.mubr.msk.f32.mxu1 %vm6445_vm7, %v6420_v4  ;;  %v7202_v7 = vld [vmem:[%s7389_s18 + $0x58] sm:$0x3f] }
 0x5b6   : > { %7085 = verf.f32 %v6380_v9  ;;  %6962 = vmatmul.mubr.msk.f32.gmra.mrb[2].mxu1 %vm6445_vm7, %v6421_v28  ;;  %v6423_v21 = vmul.f32 %v6407_v2, %v6359_v1  ;;  %v6666_v28 = vrot.slane %v7202_v7, 3  ;;  %v7203_v2 = vld [vmem:[%s7389_s18 + $0x48] sm:$0xff]  ;;  %v7216_v7 = vld [vmem:[%s7389_s18 + $0xd0] sm:$0x3f] }
 0x5b7   : > { %v7076_v52 = vpop.eup %7075  ;;  %v6422_v33 = vmul.f32 %v6406_v46, %v6358_v40  ;;  %v6663_v9 = vrot.slane %v7203_v2, 3  ;;  %v14453_v40 = vld [vmem:[%s14568_s8] ss:$0 sm:$0xff] }
 0x5b8   : > { %v7078_v18 = vpop.eup %7077  ;;  %v6409_v47 = vadd.f32 1.0, %v7076_v52  ;;  %v7204_v52 = vld [vmem:[%s7389_s18 + $0x68] sm:$0xff] }
 0x5b9   : > { %v6408_v41 = vadd.f32 1.0, %v7078_v18  ;;  %6964 = vmatprep.mubr.msk.f32.mxu1 %vm6445_vm7, %v6422_v33  ;;  %v6669_v33 = vrot.slane %v7204_v52, 3  ;;  %v7205_v18 = vld [vmem:[%s7389_s18 + $0x70] sm:$0x3f] }
 0x5ba   : > { %6965 = vmatmul.mubr.msk.f32.gmra.mrb[4].mxu1 %vm6445_vm7, %v6423_v21  ;;  %v6425_v25 = vmul.f32 %v6409_v47, %v6361_v29  ;;  %v6671_v21 = vrot.slane %v7205_v18, 3  ;;  %v7206_v29 = vld [vmem:[%s7389_s18 + $0x60] sm:$0xff] }
 0x5bb   : > { %v7080_v34 = vpop.eup %7079  ;;  %v6424_v43 = vmul.f32 %v6408_v41, %v6360_v38 }
 0x5bc   : > { %v7082_v50 = vpop.eup %7081  ;;  %v6411_v53 = vadd.f32 1.0, %v7080_v34  ;;  %v6668_v34 = vrot.slane %v7206_v29, 3 }
 0x5bd   : > { %v6410_v48 = vadd.f32 1.0, %v7082_v50  ;;  %6967 = vmatprep.mubr.msk.f32.mxu1 %vm6445_vm7, %v6424_v43 }
 0x5be   : > { %6968 = vmatmul.mubr.msk.f32.gmra.mrb[6].mxu1 %vm6445_vm7, %v6425_v25  ;;  %v6427_v24 = vmul.f32 %v6411_v53, %v6363_v14 }
 0x5bf   : > { %v7084_v23 = vpop.eup %7083  ;;  %v6426_v55 = vmul.f32 %v6410_v48, %v6362_v49  ;;  %v6672_v49 = vsel %vm2450_vm2, %v6669_v33, %v6671_v21  ;;  %v7207_v48 = vld [vmem:[%s7389_s18 + $0x80] sm:$0xff] }
 0x5c0   : > { %v7086_v16 = vpop.eup %7085  ;;  %v6413_v44 = vadd.f32 1.0, %v7084_v23  ;;  %v6674_v14 = vrot.slane %v7207_v48, 3  ;;  %v7208_v23 = vld [vmem:[%s7389_s18 + $0x88] sm:$0x3f] }
 0x5c1   : > { %v6412_v36 = vadd.f32 1.0, %v7086_v16  ;;  %6970 = vmatprep.mubr.msk.f32.mxu1 %vm6445_vm7, %v6426_v55  ;;  %v6676_v55 = vrot.slane %v7208_v23, 3  ;;  %v7219_v48 = vld [vmem:[%s7389_s18 + $0xe8] sm:$0x3f]  ;;  %v7220_v23 = vld [vmem:[%s7389_s18 + $0xd8] sm:$0xff] }
 0x5c2   : > { %6971 = vmatmul.mubr.msk.f32.gmra.mrb[8].mxu1 %vm6445_vm7, %v6427_v24  ;;  %v6429_v62 = vmul.f32 %v6413_v44, %v6365_v37  ;;  %v6670_v44 = vsel %vm2450_vm2, %v6668_v34, %v6669_v33 }
 0x5c3   : > { %v6428_v31 = vmul.f32 %v6412_v36, %v6364_v3  ;;  %v7209_v3 = vld [vmem:[%s7389_s18 + $0x78] sm:$0xff] }
 0x5c4   : > { %v6946_v32 = vpop.f32.mrb[12].mxu0  ;;  %v6673_v36 = vrot.slane %v7209_v3, 3 }
 0x5c5   : > { %6973 = vmatprep.mubr.msk.f32.mxu1 %vm6445_vm7, %v6428_v31  ;;  %v6341_v61 = vadd.f32 %v6946_v32, %v14411_v5  ;;  %v6335_v10 = vpop.f32.mrb[13].mxu0 }
 0x5c6   : > { %6974 = vmatmul.mubr.msk.f32.gmra.mrb[10].mxu1 %vm6445_vm7, %v6429_v62  ;;  %v6336_v60 = vadd.f32 %v14411_v5, %v6335_v10  ;;  %v7210_v10 = vld [vmem:[%s7389_s18 + $0x98] sm:$0xff] }
 0x5c7   : > { %v6383_v45 = vmul.f32 0.70710677, %v6341_v61  ;;  %v6367_v39 = vmul.f32 0.5, %v6341_v61  ;;  %v6677_v61 = vsel %vm2450_vm2, %v6674_v14, %v6676_v55  ;;  %v6693_v55 = vrot.slane %v7220_v23, 3 }
 0x5c8   : > { %v6382_v8 = vmul.f32 0.70710677, %v6336_v60  ;;  %v6366_v0 = vmul.f32 0.5, %v6336_v60  ;;  %v6679_v60 = vrot.slane %v7210_v10, 3  ;;  %v7222_v10 = vld [vmem:[%s7389_s18 + $0x100] sm:$0x3f] }
 0x5c9   : > { %7087 = verf.f32 %v6383_v45  ;;  %v7211_v45 = vld [vmem:[%s7389_s18 + $0xa0] sm:$0x3f] }
 0x5ca   : > { %7089 = verf.f32 %v6382_v8  ;;  %v6681_v8 = vrot.slane %v7211_v45, 3  ;;  %v7223_v45 = vld [vmem:[%s7389_s18 + $0xf0] sm:$0xff] }
 0x5d3   : > { %v7088_v11 = vpop.eup %7087 }
 0x5d4   : > { %v7090_v19 = vpop.eup %7089  ;;  %v6415_v20 = vadd.f32 1.0, %v7088_v11 }
 0x5d5   : > { %v6414_v13 = vadd.f32 1.0, %v7090_v19 }
 0x5d6   : > { %v6431_v42 = vmul.f32 %v6415_v20, %v6367_v39  ;;  %v6675_v20 = vsel %vm2450_vm2, %v6673_v36, %v6674_v14  ;;  %v6696_v14 = vrot.slane %v7219_v48, 3 }
 0x5d7   : > { %v6430_v12 = vmul.f32 %v6414_v13, %v6366_v0  ;;  %v7212_v0 = vld [vmem:[%s7389_s18 + $0x90] sm:$0xff] }
 0x5d8   : > { %v6678_v13 = vrot.slane %v7212_v0, 3 }
 0x5d9   : > { %6976 = vmatprep.mubr.msk.f32.mxu1 %vm6445_vm7, %v6430_v12 }
 0x5da   : > { %6977 = vmatmul.mubr.msk.f32.gmra.mrb[12].mxu1 %vm6445_vm7, %v6431_v42 }
 0x62d   : > { %v6949_v17 = vpop.f32.mrb[14].mxu0 }
 0x62e   : > { %v6351_v59 = vadd.f32 %v6949_v17, %v14411_v5  ;;  %v6345_v15 = vpop.f32.mrb[15].mxu0 }
 0x62f   : > { %v6346_v6 = vadd.f32 %v14411_v5, %v6345_v15  ;;  %v7201_v5 = vld [vmem:[%s7389_s18 + $0x50] sm:$0xff] }
 0x630   : > { %v6385_v35 = vmul.f32 0.70710677, %v6351_v59  ;;  %v6369_v57 = vmul.f32 0.5, %v6351_v59  ;;  %v6664_v56 = vrot.slane %v7201_v5, 3  ;;  %v6682_v59 = vsel %vm2450_vm2, %v6679_v60, %v6681_v8  ;;  %v7213_v15 = vld [vmem:[%s7389_s18 + $0xb0] sm:$0xff]  ;;  %v7215_v5 = vld [vmem:[%s7389_s18 + $0xc8] sm:$0xff] }
 0x631   : > { %v6384_v54 = vmul.f32 0.70710677, %v6346_v6  ;;  %v6368_v27 = vmul.f32 0.5, %v6346_v6  ;;  %v6684_v6 = vrot.slane %v7213_v15, 3  ;;  %v6698_v8 = vrot.slane %v7223_v45, 3 }
 0x632   : > { %7091 = verf.f32 %v6385_v35  ;;  %v6667_v1 = vsel %vm2450_vm2, %v6664_v56, %v6666_v28  ;;  %v6665_v41 = vsel %vm2450_vm2, %v6663_v9, %v6664_v56  ;;  %v6686_v35 = vrot.slane %v14151_v63, 3 }
 0x633   : > { %7093 = verf.f32 %v6384_v54  ;;  %v6689_v56 = vrot.slane %v7215_v5, 3  ;;  %v6691_v28 = vrot.slane %v7216_v7, 3 }
 0x634   : > { %v6687_v63 = vsel %vm2450_vm2, %v6684_v6, %v6686_v35 }
 0x63c   : > { %v7092_v30 = vpop.eup %7091 }
 0x63d   : > { %v7094_v51 = vpop.eup %7093  ;;  %v6417_v22 = vadd.f32 1.0, %v7092_v30 }
 0x63e   : > { %v6416_v26 = vadd.f32 1.0, %v7094_v51  ;;  %v6680_v51 = vsel %vm2450_vm2, %v6678_v13, %v6679_v60  ;;  %v6701_v60 = vrot.slane %v7222_v10, 3 }
 0x63f   : > { %v6433_v4 = vmul.f32 %v6417_v22, %v6369_v57  ;;  %v7214_v22 = vld [vmem:[%s7389_s18 + $0xa8] sm:$0xff] }
 0x640   : > { %v6432_v58 = vmul.f32 %v6416_v26, %v6368_v27  ;;  %v6683_v27 = vrot.slane %v7214_v22, 3 }
 0x642   : > { %6979 = vmatprep.mubr.msk.f32.mxu1 %vm6445_vm7, %v6432_v58 }
 0x643   : > { %6980 = vmatmul.mubr.msk.f32.gmra.mrb[14].mxu1 %vm6445_vm7, %v6433_v4 }
 0x685   : > { %v6960_v46 = vpop.f32.mrb[0].mxu1 }
 0x686   : > { %v6566_v47 = vadd.f32 %v6960_v46, %v14453_v40  ;;  %v6560_v38 = vpop.f32.mrb[1].mxu1  ;;  %v6685_v46 = vsel %vm2450_vm2, %v6683_v27, %v6684_v6 }
 0x687   : > { %v6561_v43 = vadd.f32 %v14453_v40, %v6560_v38  ;;  %v6692_v38 = vsel %vm2450_vm2, %v6689_v56, %v6691_v28 }
 0x688   : > { %v6720_v50 = vadd.f32 %v6667_v1, %v6566_v47  ;;  %v7217_v1 = vld [vmem:[%s7389_s18 + $0xc0] sm:$0xff] }
 0x689   : > { %v6719_v25 = vadd.f32 %v6665_v41, %v6561_v43  ;;  %v6963_v53 = vpop.f32.mrb[2].mxu1  ;;  %v6688_v52 = vrot.slane %v7217_v1, 3 }
 0x68a   : > { %6736 = vst.msk [vmem:[%s14464_s17 + $0x8] sm:$0xff] %vm5897_vm6, %v6720_v50  ;;  %v6576_v16 = vadd.f32 %v6963_v53, %v14453_v40  ;;  %v6570_v24 = vpop.f32.mrb[3].mxu1  ;;  %v7218_v53 = vld [vmem:[%s7389_s18 + $0xe0] sm:$0xff] }
 0x68b   : > { %6735 = vst.msk [vmem:[%s14464_s17] sm:$0xff] %vm5897_vm6, %v6719_v25  ;;  %v6571_v37 = vadd.f32 %v14453_v40, %v6570_v24  ;;  %v6690_v34 = vsel %vm2450_vm2, %v6688_v52, %v6689_v56 }
 0x68c   : > { %v6722_v31 = vadd.f32 %v6672_v49, %v6576_v16  ;;  %v6694_v49 = vrot.slane %v7218_v53, 3 }
 0x68d   : > { %v6721_v62 = vadd.f32 %v6670_v44, %v6571_v37  ;;  %v6966_v32 = vpop.f32.mrb[4].mxu1 }
 0x68e   : > { %6738 = vst.msk [vmem:[%s14464_s17 + $0x18] sm:$0xff] %vm5897_vm6, %v6722_v31  ;;  %v6586_v11 = vadd.f32 %v6966_v32, %v14453_v40  ;;  %v6580_v19 = vpop.f32.mrb[5].mxu1  ;;  %v6697_v24 = vsel %vm2450_vm2, %v6694_v49, %v6696_v14  ;;  %v6695_v36 = vsel %vm2450_vm2, %v6693_v55, %v6694_v49  ;;  %v7221_v32 = vld [vmem:[%s7389_s18 + $0xf8] sm:$0xff] }
 0x68f   : > { %6737 = vst.msk [vmem:[%s14464_s17 + $0x10] sm:$0xff] %vm5897_vm6, %v6721_v62  ;;  %v6581_v39 = vadd.f32 %v14453_v40, %v6580_v19 }
 0x690   : > { %v6724_v12 = vadd.f32 %v6677_v61, %v6586_v11  ;;  %v6699_v61 = vrot.slane %v7221_v32, 3 }
 0x691   : > { %v6723_v42 = vadd.f32 %v6675_v20, %v6581_v39  ;;  %v6969_v17 = vpop.f32.mrb[6].mxu1 }
 0x692   : > { %6740 = vst.msk [vmem:[%s14464_s17 + $0x28] sm:$0xff] %vm5897_vm6, %v6724_v12  ;;  %v6596_v54 = vadd.f32 %v6969_v17, %v14453_v40  ;;  %v6590_v30 = vpop.f32.mrb[7].mxu1  ;;  %v6702_v19 = vsel %vm2450_vm2, %v6699_v61, %v6701_v60  ;;  %v6700_v13 = vsel %vm2450_vm2, %v6698_v8, %v6699_v61 }
 0x693   : > { %6739 = vst.msk [vmem:[%s14464_s17 + $0x20] sm:$0xff] %vm5897_vm6, %v6723_v42  ;;  %v6591_v26 = vadd.f32 %v14453_v40, %v6590_v30 }
 0x694   : > { %v6726_v57 = vadd.f32 %v6682_v59, %v6596_v54 }
 0x695   : > { %v6725_v58 = vadd.f32 %v6680_v51, %v6591_v26  ;;  %v6972_v4 = vpop.f32.mrb[8].mxu1 }
 0x696   : > { %6742 = vst.msk [vmem:[%s14464_s17 + $0x38] sm:$0xff] %vm5897_vm6, %v6726_v57  ;;  %v6606_v2 = vadd.f32 %v6972_v4, %v14453_v40  ;;  %v6600_v9 = vpop.f32.mrb[9].mxu1 }
 0x697   : > { %6741 = vst.msk [vmem:[%s14464_s17 + $0x30] sm:$0xff] %vm5897_vm6, %v6725_v58  ;;  %v6601_v33 = vadd.f32 %v14453_v40, %v6600_v9 }
 0x698   : > { %v6728_v18 = vadd.f32 %v6687_v63, %v6606_v2 }
 0x699   : > { %v6727_v21 = vadd.f32 %v6685_v46, %v6601_v33  ;;  %v6975_v47 = vpop.f32.mrb[10].mxu1 }
 0x69a   : > { %6744 = vst.msk [vmem:[%s14464_s17 + $0x48] sm:$0xff] %vm5897_vm6, %v6728_v18  ;;  %v6616_v41 = vadd.f32 %v6975_v47, %v14453_v40  ;;  %v6610_v29 = vpop.f32.mrb[11].mxu1 }
 0x69b   : > { %6743 = vst.msk [vmem:[%s14464_s17 + $0x40] sm:$0xff] %vm5897_vm6, %v6727_v21  ;;  %v6611_v43 = vadd.f32 %v14453_v40, %v6610_v29 }
 0x69c   : > { %v6730_v50 = vadd.f32 %v6692_v38, %v6616_v41 }
 0x69d   : > { %v6729_v25 = vadd.f32 %v6690_v34, %v6611_v43 }
 0x69e   : > { %6746 = vst.msk [vmem:[%s14464_s17 + $0x58] sm:$0xff] %vm5897_vm6, %v6730_v50 }
 0x69f   : > { %6745 = vst.msk [vmem:[%s14464_s17 + $0x50] sm:$0xff] %vm5897_vm6, %v6729_v25 }
 0x6ad   : > { %v6978_v16 = vpop.f32.mrb[12].mxu1 }
 0x6ae   : > { %v6626_v44 = vadd.f32 %v6978_v16, %v14453_v40  ;;  %v6620_v3 = vpop.f32.mrb[13].mxu1 }
 0x6af   : > { %v6621_v37 = vadd.f32 %v14453_v40, %v6620_v3 }
 0x6b0   : > { %v6732_v31 = vadd.f32 %v6697_v24, %v6626_v44 }
 0x6b1   : > { %v6731_v62 = vadd.f32 %v6695_v36, %v6621_v37 }
 0x6b2   : > { %6748 = vst.msk [vmem:[%s14464_s17 + $0x68] sm:$0xff] %vm5897_vm6, %v6732_v31 }
 0x6b3   : > { %6747 = vst.msk [vmem:[%s14464_s17 + $0x60] sm:$0xff] %vm5897_vm6, %v6731_v62 }
 0x716   : > { %v6981_v11 = vpop.f32.mrb[14].mxu1 }
 0x717   : > { %v6636_v20 = vadd.f32 %v6981_v11, %v14453_v40  ;;  %v6630_v0 = vpop.f32.mrb[15].mxu1 }
 0x718   : > { %v6631_v39 = vadd.f32 %v14453_v40, %v6630_v0 }
 0x719   : > { %v6734_v12 = vadd.f32 %v6702_v19, %v6636_v20 }
 0x71a   : > { %v6733_v42 = vadd.f32 %v6700_v13, %v6631_v39 }
 0x71b   : > { %6750 = vst.msk [vmem:[%s14464_s17 + $0x78] sm:$0xff] %vm5897_vm6, %v6734_v12 }
 0x71c   : > { %6749 = vst.msk [vmem:[%s14464_s17 + $0x70] sm:$0xff] %vm5897_vm6, %v6733_v42 }
 0x71d PF: > { %s19_s13 = sadd.s32 1, %s7262_s13   ;;  %s17486_s30 = smov %s7254_s11 }
 0x71e   : > { %p16_p7 = scmp.ge.s32.totalorder %s19_s13, 6   ;;  %s17487_s10 = smov %s7258_s12 }
 0x71f   : > { %s17488_s11 = smov %s17491_s14  ;;  %s17489_s12 = smov %s17495_s15 }
 0x720   :  { %18 = sbr.rel (!%p16_p7) target bundleno = 3 (0x3), region = 87 }

</bundles_post_ra>
